<compile_context>
chip_gen: v6e
topology: v6e:2x2x1
jax: 0.10.0
libtpu: 0.0.40
codegen_flags: <defaults>
</compile_context>

<pallas_src>
import functools

import jax
import jax.numpy as jnp
from jax.experimental import pallas as pl
from jax.experimental.pallas import tpu as pltpu


# ------------------------- generation-dependent knobs -------------------------

def _tpu_vmem_capacity_bytes():
    try:
        return int(pltpu.get_tpu_info().vmem_capacity_bytes)
    except Exception:
        return 64 * 1024 * 1024  # conservative (v7x-sized) fallback


_VMEM_CAP = _tpu_vmem_capacity_bytes()
VMEM_LIMIT = min(int(_VMEM_CAP * 0.75), 96 * 1024 * 1024)   # ~48 MiB on v7x, ~96 MiB on v5e/v6e
TM_MAX = 512                                                # M (row) tile
TK_MAX = 512 if _VMEM_CAP <= 64 * 1024 * 1024 else 1024     # smaller K tile on v7x

VMEM_SPEC = pl.BlockSpec(memory_space=pltpu.MemorySpace.VMEM)


def _round_up(x, m):
    return ((x + m - 1) // m) * m


def _choose_tile(dim, max_tile, align):
    """Pick a tile size (multiple of `align`, <= max_tile) and the padded dim."""
    dim_a = _round_up(dim, align)
    if dim_a <= max_tile:
        return dim_a, dim_a
    best_t, best_pad = max_tile, _round_up(dim_a, max_tile)
    t = max_tile
    lo = max(align, max_tile // 2)
    while t >= lo:
        padded = _round_up(dim_a, t)
        if padded < best_pad:
            best_t, best_pad = t, padded
        t -= align
    return best_t, best_pad


# ------------------------------- Pallas kernels -------------------------------

def _matmul_bias_act_kernel(p_ref, w_ref, b_ref, o_ref, acc_ref, *, relu):
    """(tm, tk) @ (tk, Cout) with f32 accumulation; bias (+ReLU) epilogue; bf16 store."""
    k = pl.program_id(1)

    @pl.when(k == 0)
    def _init():
        acc_ref[...] = jnp.zeros_like(acc_ref)

    acc_ref[...] += jnp.dot(p_ref[...], w_ref[...],
                            preferred_element_type=jnp.float32)

    @pl.when(k == pl.num_programs(1) - 1)
    def _finalize():
        out = acc_ref[...] + b_ref[...]
        if relu:
            out = jnp.maximum(out, 0.0)
        o_ref[...] = out.astype(o_ref.dtype)


def _matmul_bias_add_relu_kernel(p_ref, w_ref, b_ref, r_ref, o_ref, acc_ref):
    """Conv matmul + bias + residual add + ReLU (tail of a BasicBlock)."""
    k = pl.program_id(1)

    @pl.when(k == 0)
    def _init():
        acc_ref[...] = jnp.zeros_like(acc_ref)

    acc_ref[...] += jnp.dot(p_ref[...], w_ref[...],
                            preferred_element_type=jnp.float32)

    @pl.when(k == pl.num_programs(1) - 1)
    def _finalize():
        out = acc_ref[...] + b_ref[...] + r_ref[...].astype(jnp.float32)
        o_ref[...] = jnp.maximum(out, 0.0).astype(o_ref.dtype)


def _maxpool_kernel(p_ref, o_ref):
    # p_ref: (9, tm, C) shifted window taps; max-reduce over taps.
    acc = p_ref[0]
    for t in range(1, p_ref.shape[0]):
        acc = jnp.maximum(acc, p_ref[t])
    o_ref[...] = acc


def _avgpool_linear_kernel(f_ref, w_ref, b_ref, o_ref):
    # f_ref: (N, S, C) -> global average pool over S -> (N, C) @ (C, NCP) + bias.
    pooled = jnp.mean(f_ref[...].astype(jnp.float32), axis=1)
    o_ref[...] = (
        jnp.dot(pooled.astype(jnp.bfloat16), w_ref[...],
                preferred_element_type=jnp.float32)
        + b_ref[...]
    )


# --------------------------------- JAX glue -----------------------------------

def _im2col(x, kh, kw, stride, pad):
    """NHWC -> (N*Ho*Wo, kh*kw*C) patches; patch ordering is (di, dj, cin)."""
    n, h, w, c = x.shape
    ho = (h + 2 * pad - kh) // stride + 1
    wo = (w + 2 * pad - kw) // stride + 1
    xp = jnp.pad(x, ((0, 0), (pad, pad), (pad, pad), (0, 0)))
    cols = []
    for di in range(kh):
        for dj in range(kw):
            sl = xp[
                :,
                di: di + (ho - 1) * stride + 1: stride,
                dj: dj + (wo - 1) * stride + 1: stride,
                :,
            ]
            cols.append(sl)
    patches = jnp.concatenate(cols, axis=-1)  # (N, Ho, Wo, kh*kw*C)
    return patches.reshape(n * ho * wo, kh * kw * c), (n, ho, wo)


def conv_bn(x, w_mat, bias, *, kh, kw, stride, pad, relu, residual=None):
    """Conv2d(bias=False) + BN(eval, folded) [+ residual] [+ ReLU] as one tiled pallas_call.

    x:      (N, H, W, Cin) bf16
    w_mat:  (kh*kw*Cin, Cout) bf16, BN scale already folded in
    bias:   (1, Cout) f32
    """
    cin = x.shape[-1]
    k_dim, cout = w_mat.shape
    assert k_dim == kh * kw * cin

    patches, (n, ho, wo) = _im2col(x, kh, kw, stride, pad)
    m = patches.shape[0]

    tm, m_pad = _choose_tile(m, TM_MAX, 8)
    tk, k_pad = _choose_tile(k_dim, TK_MAX, 128)

    patches = jnp.pad(patches, ((0, m_pad - m), (0, k_pad - k_dim)))
    wp = jnp.pad(w_mat, ((0, k_pad - k_dim), (0, 0)))

    grid = (m_pad // tm, k_pad // tk)
    in_specs = [
        pl.BlockSpec((tm, tk), lambda i, k: (i, k)),
        pl.BlockSpec((tk, cout), lambda i, k: (k, 0)),
        pl.BlockSpec((1, cout), lambda i, k: (0, 0)),
    ]
    out_spec = pl.BlockSpec((tm, cout), lambda i, k: (i, 0))
    scratch = [pltpu.VMEM((tm, cout), jnp.float32)]
    cp = pltpu.CompilerParams(
        dimension_semantics=("parallel", "arbitrary"),
        vmem_limit_bytes=VMEM_LIMIT,
    )
    out_shape = jax.ShapeDtypeStruct((m_pad, cout), jnp.bfloat16)

    if residual is None:
        out = pl.pallas_call(
            functools.partial(_matmul_bias_act_kernel, relu=relu),
            out_shape=out_shape,
            grid_spec=pltpu.PrefetchScalarGridSpec(
                num_scalar_prefetch=0,
                grid=grid,
                in_specs=in_specs,
                out_specs=out_spec,
                scratch_shapes=scratch,
            ),
            compiler_params=cp,
        )(patches, wp, bias)
    else:
        r = residual.reshape(m, cout)
        r = jnp.pad(r, ((0, m_pad - m), (0, 0)))
        out = pl.pallas_call(
            _matmul_bias_add_relu_kernel,
            out_shape=out_shape,
            grid_spec=pltpu.PrefetchScalarGridSpec(
                num_scalar_prefetch=0,
                grid=grid,
                in_specs=in_specs + [pl.BlockSpec((tm, cout), lambda i, k: (i, 0))],
                out_specs=out_spec,
                scratch_shapes=scratch,
            ),
            compiler_params=cp,
        )(patches, wp, bias, r)

    return out[:m].reshape(n, ho, wo, cout)


def maxpool_3x3_s2_p1(x):
    n, h, w, c = x.shape
    stride, pad, ksz = 2, 1, 3
    ho = (h + 2 * pad - ksz) // stride + 1
    wo = (w + 2 * pad - ksz) // stride + 1
    xp = jnp.pad(x, ((0, 0), (pad, pad), (pad, pad), (0, 0)),
                 constant_values=-jnp.inf)
    cols = []
    for di in range(ksz):
        for dj in range(ksz):
            sl = xp[
                :,
                di: di + (ho - 1) * stride + 1: stride,
                dj: dj + (wo - 1) * stride + 1: stride,
                :,
            ]
            cols.append(sl.reshape(1, n * ho * wo, c))
    stacked = jnp.concatenate(cols, axis=0)  # (9, M, C)

    m = n * ho * wo
    tm, m_pad = _choose_tile(m, 1024, 8)
    stacked = jnp.pad(stacked, ((0, 0), (0, m_pad - m), (0, 0)))

    out = pl.pallas_call(
        _maxpool_kernel,
        out_shape=jax.ShapeDtypeStruct((m_pad, c), jnp.bfloat16),
        grid_spec=pltpu.PrefetchScalarGridSpec(
            num_scalar_prefetch=0,
            grid=(m_pad // tm,),
            in_specs=[pl.BlockSpec((ksz * ksz, tm, c), lambda i: (0, i, 0))],
            out_specs=pl.BlockSpec((tm, c), lambda i: (i, 0)),
        ),
        compiler_params=pltpu.CompilerParams(
            dimension_semantics=("parallel",),
            vmem_limit_bytes=VMEM_LIMIT,
        ),
    )(stacked)
    return out[:m].reshape(n, ho, wo, c)


def avgpool_linear(x, fc_w, fc_b):
    n, h, w, c = x.shape
    num_classes = fc_b.shape[-1]
    ncp = fc_w.shape[-1]                      # lane-dense padded (multiple of 128)
    feat = x.reshape(n, h * w, c)
    b = jnp.pad(fc_b.reshape(1, num_classes), ((0, 0), (0, ncp - num_classes)))
    out = pl.pallas_call(
        _avgpool_linear_kernel,
        out_shape=jax.ShapeDtypeStruct((n, ncp), jnp.float32),
        in_specs=[VMEM_SPEC] * 3,
        out_specs=VMEM_SPEC,
        compiler_params=pltpu.CompilerParams(vmem_limit_bytes=VMEM_LIMIT),
    )(feat, fc_w, b)
    return out[:, :num_classes]


# ------------------------------ parameter setup -------------------------------

# (name, planes, per-block strides) — matches the module's layer2..layer5 naming.
ARCH = (
    ("layer2", 64, (1, 1)),
    ("layer3", 128, (2, 1)),
    ("layer4", 256, (2, 1)),
    ("layer5", 512, (2, 1)),
)

_BN_EPS = 1e-5


def _fold_conv_bn(w_oihw, gamma, beta, mean, var):
    """Fold BN (eval) into the conv: returns (K, Cout) bf16 weights and (1, Cout) f32 bias."""
    scale = gamma / jnp.sqrt(var + _BN_EPS)
    bias = beta - mean * scale
    cout, cin, kh, kw = w_oihw.shape
    # Match im2col ordering (di, dj, cin): (O,I,kh,kw) -> (kh,kw,I,O) -> (K, O)
    wm = jnp.transpose(w_oihw, (2, 3, 1, 0)).reshape(kh * kw * cin, cout)
    wm = (wm * scale[None, :]).astype(jnp.bfloat16)
    return wm, bias.reshape(1, cout).astype(jnp.float32)


def init_params(key, num_classes=1000):
    keys = iter(jax.random.split(key, 256))

    def conv_w(cout, cin, k):
        return jax.random.normal(next(keys), (cout, cin, k, k), jnp.float32) * 0.05

    def bn(c):
        # PyTorch running-stat defaults (mean=0, var=1), random-ish affine params.
        gamma = 1.0 + 0.1 * jax.random.normal(next(keys), (c,), jnp.float32)
        beta = 0.1 * jax.random.normal(next(keys), (c,), jnp.float32)
        mean = jnp.zeros((c,), jnp.float32)
        var = jnp.ones((c,), jnp.float32)
        return gamma, beta, mean, var

    params = {}
    params["stem_w"], params["stem_b"] = _fold_conv_bn(conv_w(64, 3, 7), *bn(64))

    inplanes = 64
    for name, planes, strides in ARCH:
        blocks = []
        for stride in strides:
            p = {}
            p["conv1_w"], p["conv1_b"] = _fold_conv_bn(conv_w(planes, inplanes, 3), *bn(planes))
            p["conv2_w"], p["conv2_b"] = _fold_conv_bn(conv_w(planes, planes, 3), *bn(planes))
            if stride != 1 or inplanes != planes:
                p["sc_w"], p["sc_b"] = _fold_conv_bn(conv_w(planes, inplanes, 1), *bn(planes))
            blocks.append(p)
            inplanes = planes
        params[name] = blocks

    ncp = _round_up(num_classes, 128)         # lane-dense FC output (1000 -> 1024)
    fc_w = jax.random.normal(next(keys), (num_classes, 512), jnp.float32) * 0.02
    fc_b = jax.random.normal(next(keys), (num_classes,), jnp.float32) * 0.02
    fc_w_pad = jnp.zeros((512, ncp), jnp.float32).at[:, :num_classes].set(fc_w.T)
    params["fc_w"] = fc_w_pad.astype(jnp.bfloat16)
    params["fc_b"] = fc_b
    return params


# -------------------------------- forward pass ---------------------------------

def basic_block_forward(x, p, stride):
    out = conv_bn(x, p["conv1_w"], p["conv1_b"],
                  kh=3, kw=3, stride=stride, pad=1, relu=True)
    if "sc_w" in p:
        sc = conv_bn(x, p["sc_w"], p["sc_b"],
                     kh=1, kw=1, stride=stride, pad=0, relu=False)
    else:
        sc = x
    out = conv_bn(out, p["conv2_w"], p["conv2_b"],
                  kh=3, kw=3, stride=1, pad=1, relu=False, residual=sc)
    return out


def resnet_forward(x_nchw, params):
    x = jnp.transpose(x_nchw, (0, 2, 3, 1)).astype(jnp.bfloat16)  # NCHW -> NHWC, bf16
    out = conv_bn(x, params["stem_w"], params["stem_b"],
                  kh=7, kw=7, stride=2, pad=3, relu=True)
    out = maxpool_3x3_s2_p1(out)
    for name, _, strides in ARCH:
        for blk_params, stride in zip(params[name], strides):
            out = basic_block_forward(out, blk_params, stride)
    return avgpool_linear(out, params["fc_w"], params["fc_b"])


# ------------------------------------ main --------------------------------------

if __name__ == "__main__":
    key = jax.random.PRNGKey(0)
    k_x, k_p = jax.random.split(key)
    x = jax.random.normal(k_x, (2, 3, 16, 16), jnp.float32)  # NCHW, like PyTorch
    params = init_params(k_p, num_classes=1000)

    fwd = jax.jit(resnet_forward)
    logits = fwd(x, params)
    jax.block_until_ready(logits)
    assert logits.shape == (2, 1000), logits.shape
    print("KERNEL_OK")
</pallas_src>

<mosaic_0001>
module attributes {stable_mosaic.version = 11 : i64} {
  func.func @_matmul_bias_act_kernel(%arg0: i32, %arg1: i32, %arg2: memref<128x256xbf16, #tpu.memory_space<vmem>>, %arg3: memref<256x64xbf16, #tpu.memory_space<vmem>>, %arg4: memref<1x64xf32, #tpu.memory_space<vmem>>, %arg5: memref<128x64xbf16, #tpu.memory_space<vmem>>, %arg6: memref<128x64xf32, #tpu.memory_space<vmem>>) attributes {dimension_semantics = [#tpu.dimension_semantics<parallel>, #tpu.dimension_semantics<arbitrary>], iteration_bounds = array<i64: 1, 1>, scalar_prefetch = 0 : i64, scratch_operands = 1 : i64, tpu.core_type = #tpu.core_type<tc>, window_params = [{transform_indices = @transform_0, window_bounds = array<i64: 128, 256>}, {transform_indices = @transform_1, window_bounds = array<i64: 256, 64>}, {pipeline_mode = #tpu.pipeline_mode<synchronous>, transform_indices = @transform_2, window_bounds = array<i64: 1, 64>}, {transform_indices = @transform_3, window_bounds = array<i64: 128, 64>}]} {
    %c0_i32 = arith.constant 0 : i32
    %0 = arith.cmpi eq, %arg1, %c0_i32 : i32
    %1 = arith.extui %0 : i1 to i32
    %c0_i32_0 = arith.constant 0 : i32
    %2 = arith.cmpi ne, %1, %c0_i32_0 : i32
    scf.if %2 {
      %cst_10 = arith.constant 0.000000e+00 : f32
      %12 = vector.broadcast %cst_10 : f32 to vector<128x64xf32>
      %c0_11 = arith.constant 0 : index
      %c0_12 = arith.constant 0 : index
      %13 = vector.load %arg6[%c0_11, %c0_12] : memref<128x64xf32, #tpu.memory_space<vmem>>, vector<128x64xf32>
      tpu.vector_store %arg6[%c0_11, %c0_12], %12 {strides = array<i32>} : memref<128x64xf32, #tpu.memory_space<vmem>>, vector<128x64xf32>,
    } else {
    }
    %c0 = arith.constant 0 : index
    %c0_1 = arith.constant 0 : index
    %3 = vector.load %arg6[%c0, %c0_1] : memref<128x64xf32, #tpu.memory_space<vmem>>, vector<128x64xf32>
    %c0_2 = arith.constant 0 : index
    %c0_3 = arith.constant 0 : index
    %4 = vector.load %arg2[%c0_2, %c0_3] : memref<128x256xbf16, #tpu.memory_space<vmem>>, vector<128x256xbf16>
    %c0_4 = arith.constant 0 : index
    %c0_5 = arith.constant 0 : index
    %5 = vector.load %arg3[%c0_4, %c0_5] : memref<256x64xbf16, #tpu.memory_space<vmem>>, vector<256x64xbf16>
    %cst = arith.constant dense<0.000000e+00> : vector<128x64xf32>
    %6 = tpu.matmul %4, %5, %cst {dimension_numbers = #tpu.dot_dimension_numbers<[1], [0], [0], [1], [0, 0, 1, 1], [], []>} : vector<128x256xbf16>, vector<256x64xbf16>, vector<128x64xf32> -> vector<128x64xf32>
    %7 = arith.addf %3, %6 : vector<128x64xf32>
    %c0_6 = arith.constant 0 : index
    %c0_7 = arith.constant 0 : index
    %8 = vector.load %arg6[%c0_6, %c0_7] : memref<128x64xf32, #tpu.memory_space<vmem>>, vector<128x64xf32>
    tpu.vector_store %arg6[%c0_6, %c0_7], %7 {strides = array<i32>} : memref<128x64xf32, #tpu.memory_space<vmem>>, vector<128x64xf32>,
    %c0_i32_8 = arith.constant 0 : i32
    %9 = arith.cmpi eq, %arg1, %c0_i32_8 : i32
    %10 = arith.extui %9 : i1 to i32
    %c0_i32_9 = arith.constant 0 : i32
    %11 = arith.cmpi ne, %10, %c0_i32_9 : i32
    scf.if %11 {
      %c0_10 = arith.constant 0 : index
      %c0_11 = arith.constant 0 : index
      %12 = vector.load %arg6[%c0_10, %c0_11] : memref<128x64xf32, #tpu.memory_space<vmem>>, vector<128x64xf32>
      %c0_12 = arith.constant 0 : index
      %c0_13 = arith.constant 0 : index
      %13 = vector.load %arg4[%c0_12, %c0_13] : memref<1x64xf32, #tpu.memory_space<vmem>>, vector<1x64xf32>
      %14 = vector.broadcast %13 : vector<1x64xf32> to vector<128x64xf32>
      %15 = arith.addf %12, %14 : vector<128x64xf32>
      %cst_14 = arith.constant 0.000000e+00 : f32
      %16 = vector.broadcast %cst_14 : f32 to vector<128x64xf32>
      %17 = arith.maximumf %15, %16 : vector<128x64xf32>
      %18 = arith.truncf %17 : vector<128x64xf32> to vector<128x64xbf16>
      %c0_15 = arith.constant 0 : index
      %c0_16 = arith.constant 0 : index
      %19 = vector.load %arg5[%c0_15, %c0_16] : memref<128x64xbf16, #tpu.memory_space<vmem>>, vector<128x64xbf16>
      tpu.vector_store %arg5[%c0_15, %c0_16], %18 {strides = array<i32>} : memref<128x64xbf16, #tpu.memory_space<vmem>>, vector<128x64xbf16>,
    } else {
    }
    return
  }
  func.func @transform_0(%arg0: i32, %arg1: i32) -> (i32, i32) {
    %c0_i32 = arith.constant 0 : i32
    return %arg0, %arg1 : i32, i32
  }
  func.func @transform_1(%arg0: i32, %arg1: i32) -> (i32, i32) {
    %c0_i32 = arith.constant 0 : i32
    %c0_i32_0 = arith.constant 0 : i32
    return %arg1, %c0_i32 : i32, i32
  }
  func.func @transform_2(%arg0: i32, %arg1: i32) -> (i32, i32) {
    %c0_i32 = arith.constant 0 : i32
    %c0_i32_0 = arith.constant 0 : i32
    %c0_i32_1 = arith.constant 0 : i32
    return %c0_i32, %c0_i32_0 : i32, i32
  }
  func.func @transform_3(%arg0: i32, %arg1: i32) -> (i32, i32) {
    %c0_i32 = arith.constant 0 : i32
    %c0_i32_0 = arith.constant 0 : i32
    return %arg0, %c0_i32 : i32, i32
  }
}

module attributes {stable_mosaic.version = 11 : i64} {
  func.func @_matmul_bias_act_kernel(%arg0: i32, %arg1: i32, %arg2: memref<32x384xbf16, #tpu.memory_space<vmem>>, %arg3: memref<384x64xbf16, #tpu.memory_space<vmem>>, %arg4: memref<1x64xf32, #tpu.memory_space<vmem>>, %arg5: memref<32x64xbf16, #tpu.memory_space<vmem>>, %arg6: memref<32x64xf32, #tpu.memory_space<vmem>>) attributes {dimension_semantics = [#tpu.dimension_semantics<parallel>, #tpu.dimension_semantics<arbitrary>], iteration_bounds = array<i64: 1, 2>, scalar_prefetch = 0 : i64, scratch_operands = 1 : i64, tpu.core_type = #tpu.core_type<tc>, window_params = [{transform_indices = @transform_0, window_bounds = array<i64: 32, 384>}, {transform_indices = @transform_1, window_bounds = array<i64: 384, 64>}, {pipeline_mode = #tpu.pipeline_mode<synchronous>, transform_indices = @transform_2, window_bounds = array<i64: 1, 64>}, {transform_indices = @transform_3, window_bounds = array<i64: 32, 64>}]} {
    %c0_i32 = arith.constant 0 : i32
    %0 = arith.cmpi eq, %arg1, %c0_i32 : i32
    %1 = arith.extui %0 : i1 to i32
    %c0_i32_0 = arith.constant 0 : i32
    %2 = arith.cmpi ne, %1, %c0_i32_0 : i32
    scf.if %2 {
      %cst_9 = arith.constant 0.000000e+00 : f32
      %12 = vector.broadcast %cst_9 : f32 to vector<32x64xf32>
      %c0_10 = arith.constant 0 : index
      %c0_11 = arith.constant 0 : index
      %13 = vector.load %arg6[%c0_10, %c0_11] : memref<32x64xf32, #tpu.memory_space<vmem>>, vector<32x64xf32>
      tpu.vector_store %arg6[%c0_10, %c0_11], %12 {strides = array<i32>} : memref<32x64xf32, #tpu.memory_space<vmem>>, vector<32x64xf32>,
    } else {
    }
    %c0 = arith.constant 0 : index
    %c0_1 = arith.constant 0 : index
    %3 = vector.load %arg6[%c0, %c0_1] : memref<32x64xf32, #tpu.memory_space<vmem>>, vector<32x64xf32>
    %c0_2 = arith.constant 0 : index
    %c0_3 = arith.constant 0 : index
    %4 = vector.load %arg2[%c0_2, %c0_3] : memref<32x384xbf16, #tpu.memory_space<vmem>>, vector<32x384xbf16>
    %c0_4 = arith.constant 0 : index
    %c0_5 = arith.constant 0 : index
    %5 = vector.load %arg3[%c0_4, %c0_5] : memref<384x64xbf16, #tpu.memory_space<vmem>>, vector<384x64xbf16>
    %cst = arith.constant dense<0.000000e+00> : vector<32x64xf32>
    %6 = tpu.matmul %4, %5, %cst {dimension_numbers = #tpu.dot_dimension_numbers<[1], [0], [0], [1], [0, 0, 1, 1], [], []>} : vector<32x384xbf16>, vector<384x64xbf16>, vector<32x64xf32> -> vector<32x64xf32>
    %7 = arith.addf %3, %6 : vector<32x64xf32>
    %c0_6 = arith.constant 0 : index
    %c0_7 = arith.constant 0 : index
    %8 = vector.load %arg6[%c0_6, %c0_7] : memref<32x64xf32, #tpu.memory_space<vmem>>, vector<32x64xf32>
    tpu.vector_store %arg6[%c0_6, %c0_7], %7 {strides = array<i32>} : memref<32x64xf32, #tpu.memory_space<vmem>>, vector<32x64xf32>,
    %c1_i32 = arith.constant 1 : i32
    %9 = arith.cmpi eq, %arg1, %c1_i32 : i32
    %10 = arith.extui %9 : i1 to i32
    %c0_i32_8 = arith.constant 0 : i32
    %11 = arith.cmpi ne, %10, %c0_i32_8 : i32
    scf.if %11 {
      %c0_9 = arith.constant 0 : index
      %c0_10 = arith.constant 0 : index
      %12 = vector.load %arg6[%c0_9, %c0_10] : memref<32x64xf32, #tpu.memory_space<vmem>>, vector<32x64xf32>
      %c0_11 = arith.constant 0 : index
      %c0_12 = arith.constant 0 : index
      %13 = vector.load %arg4[%c0_11, %c0_12] : memref<1x64xf32, #tpu.memory_space<vmem>>, vector<1x64xf32>
      %14 = vector.broadcast %13 : vector<1x64xf32> to vector<32x64xf32>
      %15 = arith.addf %12, %14 : vector<32x64xf32>
      %cst_13 = arith.constant 0.000000e+00 : f32
      %16 = vector.broadcast %cst_13 : f32 to vector<32x64xf32>
      %17 = arith.maximumf %15, %16 : vector<32x64xf32>
      %18 = arith.truncf %17 : vector<32x64xf32> to vector<32x64xbf16>
      %c0_14 = arith.constant 0 : index
      %c0_15 = arith.constant 0 : index
      %19 = vector.load %arg5[%c0_14, %c0_15] : memref<32x64xbf16, #tpu.memory_space<vmem>>, vector<32x64xbf16>
      tpu.vector_store %arg5[%c0_14, %c0_15], %18 {strides = array<i32>} : memref<32x64xbf16, #tpu.memory_space<vmem>>, vector<32x64xbf16>,
    } else {
    }
    return
  }
  func.func @transform_0(%arg0: i32, %arg1: i32) -> (i32, i32) {
    %c0_i32 = arith.constant 0 : i32
    return %arg0, %arg1 : i32, i32
  }
  func.func @transform_1(%arg0: i32, %arg1: i32) -> (i32, i32) {
    %c0_i32 = arith.constant 0 : i32
    %c0_i32_0 = arith.constant 0 : i32
    return %arg1, %c0_i32 : i32, i32
  }
  func.func @transform_2(%arg0: i32, %arg1: i32) -> (i32, i32) {
    %c0_i32 = arith.constant 0 : i32
    %c0_i32_0 = arith.constant 0 : i32
    %c0_i32_1 = arith.constant 0 : i32
    return %c0_i32, %c0_i32_0 : i32, i32
  }
  func.func @transform_3(%arg0: i32, %arg1: i32) -> (i32, i32) {
    %c0_i32 = arith.constant 0 : i32
    %c0_i32_0 = arith.constant 0 : i32
    return %arg0, %c0_i32 : i32, i32
  }
}

module attributes {stable_mosaic.version = 11 : i64} {
  func.func @_maxpool_kernel(%arg0: i32, %arg1: memref<9x32x64xbf16, #tpu.memory_space<vmem>>, %arg2: memref<32x64xbf16, #tpu.memory_space<vmem>>) attributes {dimension_semantics = [#tpu.dimension_semantics<parallel>], iteration_bounds = array<i64: 1>, scalar_prefetch = 0 : i64, scratch_operands = 0 : i64, tpu.core_type = #tpu.core_type<tc>, window_params = [{transform_indices = @transform_0, window_bounds = array<i64: 9, 32, 64>}, {transform_indices = @transform_1, window_bounds = array<i64: 32, 64>}]} {
    %c0 = arith.constant 0 : index
    %c0_0 = arith.constant 0 : index
    %c0_1 = arith.constant 0 : index
    %0 = vector.load %arg1[%c0, %c0_0, %c0_1] : memref<9x32x64xbf16, #tpu.memory_space<vmem>>, vector<1x32x64xbf16>
    %1 = vector.shape_cast %0 : vector<1x32x64xbf16> to vector<32x64xbf16>
    %c1 = arith.constant 1 : index
    %c0_2 = arith.constant 0 : index
    %c0_3 = arith.constant 0 : index
    %2 = vector.load %arg1[%c1, %c0_2, %c0_3] : memref<9x32x64xbf16, #tpu.memory_space<vmem>>, vector<1x32x64xbf16>
    %3 = vector.shape_cast %2 : vector<1x32x64xbf16> to vector<32x64xbf16>
    %4 = arith.maximumf %1, %3 : vector<32x64xbf16>
    %c2 = arith.constant 2 : index
    %c0_4 = arith.constant 0 : index
    %c0_5 = arith.constant 0 : index
    %5 = vector.load %arg1[%c2, %c0_4, %c0_5] : memref<9x32x64xbf16, #tpu.memory_space<vmem>>, vector<1x32x64xbf16>
    %6 = vector.shape_cast %5 : vector<1x32x64xbf16> to vector<32x64xbf16>
    %7 = arith.maximumf %4, %6 : vector<32x64xbf16>
    %c3 = arith.constant 3 : index
    %c0_6 = arith.constant 0 : index
    %c0_7 = arith.constant 0 : index
    %8 = vector.load %arg1[%c3, %c0_6, %c0_7] : memref<9x32x64xbf16, #tpu.memory_space<vmem>>, vector<1x32x64xbf16>
    %9 = vector.shape_cast %8 : vector<1x32x64xbf16> to vector<32x64xbf16>
    %10 = arith.maximumf %7, %9 : vector<32x64xbf16>
    %c4 = arith.constant 4 : index
    %c0_8 = arith.constant 0 : index
    %c0_9 = arith.constant 0 : index
    %11 = vector.load %arg1[%c4, %c0_8, %c0_9] : memref<9x32x64xbf16, #tpu.memory_space<vmem>>, vector<1x32x64xbf16>
    %12 = vector.shape_cast %11 : vector<1x32x64xbf16> to vector<32x64xbf16>
    %13 = arith.maximumf %10, %12 : vector<32x64xbf16>
    %c5 = arith.constant 5 : index
    %c0_10 = arith.constant 0 : index
    %c0_11 = arith.constant 0 : index
    %14 = vector.load %arg1[%c5, %c0_10, %c0_11] : memref<9x32x64xbf16, #tpu.memory_space<vmem>>, vector<1x32x64xbf16>
    %15 = vector.shape_cast %14 : vector<1x32x64xbf16> to vector<32x64xbf16>
    %16 = arith.maximumf %13, %15 : vector<32x64xbf16>
    %c6 = arith.constant 6 : index
    %c0_12 = arith.constant 0 : index
    %c0_13 = arith.constant 0 : index
    %17 = vector.load %arg1[%c6, %c0_12, %c0_13] : memref<9x32x64xbf16, #tpu.memory_space<vmem>>, vector<1x32x64xbf16>
    %18 = vector.shape_cast %17 : vector<1x32x64xbf16> to vector<32x64xbf16>
    %19 = arith.maximumf %16, %18 : vector<32x64xbf16>
    %c7 = arith.constant 7 : index
    %c0_14 = arith.constant 0 : index
    %c0_15 = arith.constant 0 : index
    %20 = vector.load %arg1[%c7, %c0_14, %c0_15] : memref<9x32x64xbf16, #tpu.memory_space<vmem>>, vector<1x32x64xbf16>
    %21 = vector.shape_cast %20 : vector<1x32x64xbf16> to vector<32x64xbf16>
    %22 = arith.maximumf %19, %21 : vector<32x64xbf16>
    %c8 = arith.constant 8 : index
    %c0_16 = arith.constant 0 : index
    %c0_17 = arith.constant 0 : index
    %23 = vector.load %arg1[%c8, %c0_16, %c0_17] : memref<9x32x64xbf16, #tpu.memory_space<vmem>>, vector<1x32x64xbf16>
    %24 = vector.shape_cast %23 : vector<1x32x64xbf16> to vector<32x64xbf16>
    %25 = arith.maximumf %22, %24 : vector<32x64xbf16>
    %c0_18 = arith.constant 0 : index
    %c0_19 = arith.constant 0 : index
    %26 = vector.load %arg2[%c0_18, %c0_19] : memref<32x64xbf16, #tpu.memory_space<vmem>>, vector<32x64xbf16>
    tpu.vector_store %arg2[%c0_18, %c0_19], %25 {strides = array<i32>} : memref<32x64xbf16, #tpu.memory_space<vmem>>, vector<32x64xbf16>,
    return
  }
  func.func @transform_0(%arg0: i32) -> (i32, i32, i32) {
    %c0_i32 = arith.constant 0 : i32
    %c0_i32_0 = arith.constant 0 : i32
    %c0_i32_1 = arith.constant 0 : i32
    return %c0_i32, %arg0, %c0_i32_0 : i32, i32, i32
  }
  func.func @transform_1(%arg0: i32) -> (i32, i32) {
    %c0_i32 = arith.constant 0 : i32
    %c0_i32_0 = arith.constant 0 : i32
    return %arg0, %c0_i32 : i32, i32
  }
}

module attributes {stable_mosaic.version = 11 : i64} {
  func.func @_matmul_bias_add_relu_kernel(%arg0: i32, %arg1: i32, %arg2: memref<32x384xbf16, #tpu.memory_space<vmem>>, %arg3: memref<384x64xbf16, #tpu.memory_space<vmem>>, %arg4: memref<1x64xf32, #tpu.memory_space<vmem>>, %arg5: memref<32x64xbf16, #tpu.memory_space<vmem>>, %arg6: memref<32x64xbf16, #tpu.memory_space<vmem>>, %arg7: memref<32x64xf32, #tpu.memory_space<vmem>>) attributes {dimension_semantics = [#tpu.dimension_semantics<parallel>, #tpu.dimension_semantics<arbitrary>], iteration_bounds = array<i64: 1, 2>, scalar_prefetch = 0 : i64, scratch_operands = 1 : i64, tpu.core_type = #tpu.core_type<tc>, window_params = [{transform_indices = @transform_0, window_bounds = array<i64: 32, 384>}, {transform_indices = @transform_1, window_bounds = array<i64: 384, 64>}, {pipeline_mode = #tpu.pipeline_mode<synchronous>, transform_indices = @transform_2, window_bounds = array<i64: 1, 64>}, {transform_indices = @transform_3, window_bounds = array<i64: 32, 64>}, {transform_indices = @transform_4, window_bounds = array<i64: 32, 64>}]} {
    %c0_i32 = arith.constant 0 : i32
    %0 = arith.cmpi eq, %arg1, %c0_i32 : i32
    %1 = arith.extui %0 : i1 to i32
    %c0_i32_0 = arith.constant 0 : i32
    %2 = arith.cmpi ne, %1, %c0_i32_0 : i32
    scf.if %2 {
      %cst_9 = arith.constant 0.000000e+00 : f32
      %12 = vector.broadcast %cst_9 : f32 to vector<32x64xf32>
      %c0_10 = arith.constant 0 : index
      %c0_11 = arith.constant 0 : index
      %13 = vector.load %arg7[%c0_10, %c0_11] : memref<32x64xf32, #tpu.memory_space<vmem>>, vector<32x64xf32>
      tpu.vector_store %arg7[%c0_10, %c0_11], %12 {strides = array<i32>} : memref<32x64xf32, #tpu.memory_space<vmem>>, vector<32x64xf32>,
    } else {
    }
    %c0 = arith.constant 0 : index
    %c0_1 = arith.constant 0 : index
    %3 = vector.load %arg7[%c0, %c0_1] : memref<32x64xf32, #tpu.memory_space<vmem>>, vector<32x64xf32>
    %c0_2 = arith.constant 0 : index
    %c0_3 = arith.constant 0 : index
    %4 = vector.load %arg2[%c0_2, %c0_3] : memref<32x384xbf16, #tpu.memory_space<vmem>>, vector<32x384xbf16>
    %c0_4 = arith.constant 0 : index
    %c0_5 = arith.constant 0 : index
    %5 = vector.load %arg3[%c0_4, %c0_5] : memref<384x64xbf16, #tpu.memory_space<vmem>>, vector<384x64xbf16>
    %cst = arith.constant dense<0.000000e+00> : vector<32x64xf32>
    %6 = tpu.matmul %4, %5, %cst {dimension_numbers = #tpu.dot_dimension_numbers<[1], [0], [0], [1], [0, 0, 1, 1], [], []>} : vector<32x384xbf16>, vector<384x64xbf16>, vector<32x64xf32> -> vector<32x64xf32>
    %7 = arith.addf %3, %6 : vector<32x64xf32>
    %c0_6 = arith.constant 0 : index
    %c0_7 = arith.constant 0 : index
    %8 = vector.load %arg7[%c0_6, %c0_7] : memref<32x64xf32, #tpu.memory_space<vmem>>, vector<32x64xf32>
    tpu.vector_store %arg7[%c0_6, %c0_7], %7 {strides = array<i32>} : memref<32x64xf32, #tpu.memory_space<vmem>>, vector<32x64xf32>,
    %c1_i32 = arith.constant 1 : i32
    %9 = arith.cmpi eq, %arg1, %c1_i32 : i32
    %10 = arith.extui %9 : i1 to i32
    %c0_i32_8 = arith.constant 0 : i32
    %11 = arith.cmpi ne, %10, %c0_i32_8 : i32
    scf.if %11 {
      %c0_9 = arith.constant 0 : index
      %c0_10 = arith.constant 0 : index
      %12 = vector.load %arg7[%c0_9, %c0_10] : memref<32x64xf32, #tpu.memory_space<vmem>>, vector<32x64xf32>
      %c0_11 = arith.constant 0 : index
      %c0_12 = arith.constant 0 : index
      %13 = vector.load %arg4[%c0_11, %c0_12] : memref<1x64xf32, #tpu.memory_space<vmem>>, vector<1x64xf32>
      %14 = vector.broadcast %13 : vector<1x64xf32> to vector<32x64xf32>
      %15 = arith.addf %12, %14 : vector<32x64xf32>
      %c0_13 = arith.constant 0 : index
      %c0_14 = arith.constant 0 : index
      %16 = vector.load %arg5[%c0_13, %c0_14] : memref<32x64xbf16, #tpu.memory_space<vmem>>, vector<32x64xbf16>
      %17 = arith.extf %16 : vector<32x64xbf16> to vector<32x64xf32>
      %18 = arith.addf %15, %17 : vector<32x64xf32>
      %cst_15 = arith.constant 0.000000e+00 : f32
      %19 = vector.broadcast %cst_15 : f32 to vector<32x64xf32>
      %20 = arith.maximumf %18, %19 : vector<32x64xf32>
      %21 = arith.truncf %20 : vector<32x64xf32> to vector<32x64xbf16>
      %c0_16 = arith.constant 0 : index
      %c0_17 = arith.constant 0 : index
      %22 = vector.load %arg6[%c0_16, %c0_17] : memref<32x64xbf16, #tpu.memory_space<vmem>>, vector<32x64xbf16>
      tpu.vector_store %arg6[%c0_16, %c0_17], %21 {strides = array<i32>} : memref<32x64xbf16, #tpu.memory_space<vmem>>, vector<32x64xbf16>,
    } else {
    }
    return
  }
  func.func @transform_0(%arg0: i32, %arg1: i32) -> (i32, i32) {
    %c0_i32 = arith.constant 0 : i32
    return %arg0, %arg1 : i32, i32
  }
  func.func @transform_1(%arg0: i32, %arg1: i32) -> (i32, i32) {
    %c0_i32 = arith.constant 0 : i32
    %c0_i32_0 = arith.constant 0 : i32
    return %arg1, %c0_i32 : i32, i32
  }
  func.func @transform_2(%arg0: i32, %arg1: i32) -> (i32, i32) {
    %c0_i32 = arith.constant 0 : i32
    %c0_i32_0 = arith.constant 0 : i32
    %c0_i32_1 = arith.constant 0 : i32
    return %c0_i32, %c0_i32_0 : i32, i32
  }
  func.func @transform_3(%arg0: i32, %arg1: i32) -> (i32, i32) {
    %c0_i32 = arith.constant 0 : i32
    %c0_i32_0 = arith.constant 0 : i32
    return %arg0, %c0_i32 : i32, i32
  }
  func.func @transform_4(%arg0: i32, %arg1: i32) -> (i32, i32) {
    %c0_i32 = arith.constant 0 : i32
    %c0_i32_0 = arith.constant 0 : i32
    return %arg0, %c0_i32 : i32, i32
  }
}

module attributes {stable_mosaic.version = 11 : i64} {
  func.func @_matmul_bias_act_kernel(%arg0: i32, %arg1: i32, %arg2: memref<8x384xbf16, #tpu.memory_space<vmem>>, %arg3: memref<384x128xbf16, #tpu.memory_space<vmem>>, %arg4: memref<1x128xf32, #tpu.memory_space<vmem>>, %arg5: memref<8x128xbf16, #tpu.memory_space<vmem>>, %arg6: memref<8x128xf32, #tpu.memory_space<vmem>>) attributes {dimension_semantics = [#tpu.dimension_semantics<parallel>, #tpu.dimension_semantics<arbitrary>], iteration_bounds = array<i64: 1, 2>, scalar_prefetch = 0 : i64, scratch_operands = 1 : i64, tpu.core_type = #tpu.core_type<tc>, window_params = [{transform_indices = @transform_0, window_bounds = array<i64: 8, 384>}, {transform_indices = @transform_1, window_bounds = array<i64: 384, 128>}, {pipeline_mode = #tpu.pipeline_mode<synchronous>, transform_indices = @transform_2, window_bounds = array<i64: 1, 128>}, {transform_indices = @transform_3, window_bounds = array<i64: 8, 128>}]} {
    %c0_i32 = arith.constant 0 : i32
    %0 = arith.cmpi eq, %arg1, %c0_i32 : i32
    %1 = arith.extui %0 : i1 to i32
    %c0_i32_0 = arith.constant 0 : i32
    %2 = arith.cmpi ne, %1, %c0_i32_0 : i32
    scf.if %2 {
      %cst_9 = arith.constant 0.000000e+00 : f32
      %12 = vector.broadcast %cst_9 : f32 to vector<8x128xf32>
      %c0_10 = arith.constant 0 : index
      %c0_11 = arith.constant 0 : index
      %13 = vector.load %arg6[%c0_10, %c0_11] : memref<8x128xf32, #tpu.memory_space<vmem>>, vector<8x128xf32>
      tpu.vector_store %arg6[%c0_10, %c0_11], %12 {strides = array<i32>} : memref<8x128xf32, #tpu.memory_space<vmem>>, vector<8x128xf32>,
    } else {
    }
    %c0 = arith.constant 0 : index
    %c0_1 = arith.constant 0 : index
    %3 = vector.load %arg6[%c0, %c0_1] : memref<8x128xf32, #tpu.memory_space<vmem>>, vector<8x128xf32>
    %c0_2 = arith.constant 0 : index
    %c0_3 = arith.constant 0 : index
    %4 = vector.load %arg2[%c0_2, %c0_3] : memref<8x384xbf16, #tpu.memory_space<vmem>>, vector<8x384xbf16>
    %c0_4 = arith.constant 0 : index
    %c0_5 = arith.constant 0 : index
    %5 = vector.load %arg3[%c0_4, %c0_5] : memref<384x128xbf16, #tpu.memory_space<vmem>>, vector<384x128xbf16>
    %cst = arith.constant dense<0.000000e+00> : vector<8x128xf32>
    %6 = tpu.matmul %4, %5, %cst {dimension_numbers = #tpu.dot_dimension_numbers<[1], [0], [0], [1], [0, 0, 1, 1], [], []>} : vector<8x384xbf16>, vector<384x128xbf16>, vector<8x128xf32> -> vector<8x128xf32>
    %7 = arith.addf %3, %6 : vector<8x128xf32>
    %c0_6 = arith.constant 0 : index
    %c0_7 = arith.constant 0 : index
    %8 = vector.load %arg6[%c0_6, %c0_7] : memref<8x128xf32, #tpu.memory_space<vmem>>, vector<8x128xf32>
    tpu.vector_store %arg6[%c0_6, %c0_7], %7 {strides = array<i32>} : memref<8x128xf32, #tpu.memory_space<vmem>>, vector<8x128xf32>,
    %c1_i32 = arith.constant 1 : i32
    %9 = arith.cmpi eq, %arg1, %c1_i32 : i32
    %10 = arith.extui %9 : i1 to i32
    %c0_i32_8 = arith.constant 0 : i32
    %11 = arith.cmpi ne, %10, %c0_i32_8 : i32
    scf.if %11 {
      %c0_9 = arith.constant 0 : index
      %c0_10 = arith.constant 0 : index
      %12 = vector.load %arg6[%c0_9, %c0_10] : memref<8x128xf32, #tpu.memory_space<vmem>>, vector<8x128xf32>
      %c0_11 = arith.constant 0 : index
      %c0_12 = arith.constant 0 : index
      %13 = vector.load %arg4[%c0_11, %c0_12] : memref<1x128xf32, #tpu.memory_space<vmem>>, vector<1x128xf32>
      %14 = vector.broadcast %13 : vector<1x128xf32> to vector<8x128xf32>
      %15 = arith.addf %12, %14 : vector<8x128xf32>
      %cst_13 = arith.constant 0.000000e+00 : f32
      %16 = vector.broadcast %cst_13 : f32 to vector<8x128xf32>
      %17 = arith.maximumf %15, %16 : vector<8x128xf32>
      %18 = arith.truncf %17 : vector<8x128xf32> to vector<8x128xbf16>
      %c0_14 = arith.constant 0 : index
      %c0_15 = arith.constant 0 : index
      %19 = vector.load %arg5[%c0_14, %c0_15] : memref<8x128xbf16, #tpu.memory_space<vmem>>, vector<8x128xbf16>
      tpu.vector_store %arg5[%c0_14, %c0_15], %18 {strides = array<i32>} : memref<8x128xbf16, #tpu.memory_space<vmem>>, vector<8x128xbf16>,
    } else {
    }
    return
  }
  func.func @transform_0(%arg0: i32, %arg1: i32) -> (i32, i32) {
    %c0_i32 = arith.constant 0 : i32
    return %arg0, %arg1 : i32, i32
  }
  func.func @transform_1(%arg0: i32, %arg1: i32) -> (i32, i32) {
    %c0_i32 = arith.constant 0 : i32
    %c0_i32_0 = arith.constant 0 : i32
    return %arg1, %c0_i32 : i32, i32
  }
  func.func @transform_2(%arg0: i32, %arg1: i32) -> (i32, i32) {
    %c0_i32 = arith.constant 0 : i32
    %c0_i32_0 = arith.constant 0 : i32
    %c0_i32_1 = arith.constant 0 : i32
    return %c0_i32, %c0_i32_0 : i32, i32
  }
  func.func @transform_3(%arg0: i32, %arg1: i32) -> (i32, i32) {
    %c0_i32 = arith.constant 0 : i32
    %c0_i32_0 = arith.constant 0 : i32
    return %arg0, %c0_i32 : i32, i32
  }
}

module attributes {stable_mosaic.version = 11 : i64} {
  func.func @_matmul_bias_add_relu_kernel(%arg0: i32, %arg1: i32, %arg2: memref<8x384xbf16, #tpu.memory_space<vmem>>, %arg3: memref<384x128xbf16, #tpu.memory_space<vmem>>, %arg4: memref<1x128xf32, #tpu.memory_space<vmem>>, %arg5: memref<8x128xbf16, #tpu.memory_space<vmem>>, %arg6: memref<8x128xbf16, #tpu.memory_space<vmem>>, %arg7: memref<8x128xf32, #tpu.memory_space<vmem>>) attributes {dimension_semantics = [#tpu.dimension_semantics<parallel>, #tpu.dimension_semantics<arbitrary>], iteration_bounds = array<i64: 1, 3>, scalar_prefetch = 0 : i64, scratch_operands = 1 : i64, tpu.core_type = #tpu.core_type<tc>, window_params = [{transform_indices = @transform_0, window_bounds = array<i64: 8, 384>}, {transform_indices = @transform_1, window_bounds = array<i64: 384, 128>}, {pipeline_mode = #tpu.pipeline_mode<synchronous>, transform_indices = @transform_2, window_bounds = array<i64: 1, 128>}, {transform_indices = @transform_3, window_bounds = array<i64: 8, 128>}, {transform_indices = @transform_4, window_bounds = array<i64: 8, 128>}]} {
    %c0_i32 = arith.constant 0 : i32
    %0 = arith.cmpi eq, %arg1, %c0_i32 : i32
    %1 = arith.extui %0 : i1 to i32
    %c0_i32_0 = arith.constant 0 : i32
    %2 = arith.cmpi ne, %1, %c0_i32_0 : i32
    scf.if %2 {
      %cst_9 = arith.constant 0.000000e+00 : f32
      %12 = vector.broadcast %cst_9 : f32 to vector<8x128xf32>
      %c0_10 = arith.constant 0 : index
      %c0_11 = arith.constant 0 : index
      %13 = vector.load %arg7[%c0_10, %c0_11] : memref<8x128xf32, #tpu.memory_space<vmem>>, vector<8x128xf32>
      tpu.vector_store %arg7[%c0_10, %c0_11], %12 {strides = array<i32>} : memref<8x128xf32, #tpu.memory_space<vmem>>, vector<8x128xf32>,
    } else {
    }
    %c0 = arith.constant 0 : index
    %c0_1 = arith.constant 0 : index
    %3 = vector.load %arg7[%c0, %c0_1] : memref<8x128xf32, #tpu.memory_space<vmem>>, vector<8x128xf32>
    %c0_2 = arith.constant 0 : index
    %c0_3 = arith.constant 0 : index
    %4 = vector.load %arg2[%c0_2, %c0_3] : memref<8x384xbf16, #tpu.memory_space<vmem>>, vector<8x384xbf16>
    %c0_4 = arith.constant 0 : index
    %c0_5 = arith.constant 0 : index
    %5 = vector.load %arg3[%c0_4, %c0_5] : memref<384x128xbf16, #tpu.memory_space<vmem>>, vector<384x128xbf16>
    %cst = arith.constant dense<0.000000e+00> : vector<8x128xf32>
    %6 = tpu.matmul %4, %5, %cst {dimension_numbers = #tpu.dot_dimension_numbers<[1], [0], [0], [1], [0, 0, 1, 1], [], []>} : vector<8x384xbf16>, vector<384x128xbf16>, vector<8x128xf32> -> vector<8x128xf32>
    %7 = arith.addf %3, %6 : vector<8x128xf32>
    %c0_6 = arith.constant 0 : index
    %c0_7 = arith.constant 0 : index
    %8 = vector.load %arg7[%c0_6, %c0_7] : memref<8x128xf32, #tpu.memory_space<vmem>>, vector<8x128xf32>
    tpu.vector_store %arg7[%c0_6, %c0_7], %7 {strides = array<i32>} : memref<8x128xf32, #tpu.memory_space<vmem>>, vector<8x128xf32>,
    %c2_i32 = arith.constant 2 : i32
    %9 = arith.cmpi eq, %arg1, %c2_i32 : i32
    %10 = arith.extui %9 : i1 to i32
    %c0_i32_8 = arith.constant 0 : i32
    %11 = arith.cmpi ne, %10, %c0_i32_8 : i32
    scf.if %11 {
      %c0_9 = arith.constant 0 : index
      %c0_10 = arith.constant 0 : index
      %12 = vector.load %arg7[%c0_9, %c0_10] : memref<8x128xf32, #tpu.memory_space<vmem>>, vector<8x128xf32>
      %c0_11 = arith.constant 0 : index
      %c0_12 = arith.constant 0 : index
      %13 = vector.load %arg4[%c0_11, %c0_12] : memref<1x128xf32, #tpu.memory_space<vmem>>, vector<1x128xf32>
      %14 = vector.broadcast %13 : vector<1x128xf32> to vector<8x128xf32>
      %15 = arith.addf %12, %14 : vector<8x128xf32>
      %c0_13 = arith.constant 0 : index
      %c0_14 = arith.constant 0 : index
      %16 = vector.load %arg5[%c0_13, %c0_14] : memref<8x128xbf16, #tpu.memory_space<vmem>>, vector<8x128xbf16>
      %17 = arith.extf %16 : vector<8x128xbf16> to vector<8x128xf32>
      %18 = arith.addf %15, %17 : vector<8x128xf32>
      %cst_15 = arith.constant 0.000000e+00 : f32
      %19 = vector.broadcast %cst_15 : f32 to vector<8x128xf32>
      %20 = arith.maximumf %18, %19 : vector<8x128xf32>
      %21 = arith.truncf %20 : vector<8x128xf32> to vector<8x128xbf16>
      %c0_16 = arith.constant 0 : index
      %c0_17 = arith.constant 0 : index
      %22 = vector.load %arg6[%c0_16, %c0_17] : memref<8x128xbf16, #tpu.memory_space<vmem>>, vector<8x128xbf16>
      tpu.vector_store %arg6[%c0_16, %c0_17], %21 {strides = array<i32>} : memref<8x128xbf16, #tpu.memory_space<vmem>>, vector<8x128xbf16>,
    } else {
    }
    return
  }
  func.func @transform_0(%arg0: i32, %arg1: i32) -> (i32, i32) {
    %c0_i32 = arith.constant 0 : i32
    return %arg0, %arg1 : i32, i32
  }
  func.func @transform_1(%arg0: i32, %arg1: i32) -> (i32, i32) {
    %c0_i32 = arith.constant 0 : i32
    %c0_i32_0 = arith.constant 0 : i32
    return %arg1, %c0_i32 : i32, i32
  }
  func.func @transform_2(%arg0: i32, %arg1: i32) -> (i32, i32) {
    %c0_i32 = arith.constant 0 : i32
    %c0_i32_0 = arith.constant 0 : i32
    %c0_i32_1 = arith.constant 0 : i32
    return %c0_i32, %c0_i32_0 : i32, i32
  }
  func.func @transform_3(%arg0: i32, %arg1: i32) -> (i32, i32) {
    %c0_i32 = arith.constant 0 : i32
    %c0_i32_0 = arith.constant 0 : i32
    return %arg0, %c0_i32 : i32, i32
  }
  func.func @transform_4(%arg0: i32, %arg1: i32) -> (i32, i32) {
    %c0_i32 = arith.constant 0 : i32
    %c0_i32_0 = arith.constant 0 : i32
    return %arg0, %c0_i32 : i32, i32
  }
}

module attributes {stable_mosaic.version = 11 : i64} {
  func.func @_matmul_bias_act_kernel(%arg0: i32, %arg1: i32, %arg2: memref<8x384xbf16, #tpu.memory_space<vmem>>, %arg3: memref<384x128xbf16, #tpu.memory_space<vmem>>, %arg4: memref<1x128xf32, #tpu.memory_space<vmem>>, %arg5: memref<8x128xbf16, #tpu.memory_space<vmem>>, %arg6: memref<8x128xf32, #tpu.memory_space<vmem>>) attributes {dimension_semantics = [#tpu.dimension_semantics<parallel>, #tpu.dimension_semantics<arbitrary>], iteration_bounds = array<i64: 1, 3>, scalar_prefetch = 0 : i64, scratch_operands = 1 : i64, tpu.core_type = #tpu.core_type<tc>, window_params = [{transform_indices = @transform_0, window_bounds = array<i64: 8, 384>}, {transform_indices = @transform_1, window_bounds = array<i64: 384, 128>}, {pipeline_mode = #tpu.pipeline_mode<synchronous>, transform_indices = @transform_2, window_bounds = array<i64: 1, 128>}, {transform_indices = @transform_3, window_bounds = array<i64: 8, 128>}]} {
    %c0_i32 = arith.constant 0 : i32
    %0 = arith.cmpi eq, %arg1, %c0_i32 : i32
    %1 = arith.extui %0 : i1 to i32
    %c0_i32_0 = arith.constant 0 : i32
    %2 = arith.cmpi ne, %1, %c0_i32_0 : i32
    scf.if %2 {
      %cst_9 = arith.constant 0.000000e+00 : f32
      %12 = vector.broadcast %cst_9 : f32 to vector<8x128xf32>
      %c0_10 = arith.constant 0 : index
      %c0_11 = arith.constant 0 : index
      %13 = vector.load %arg6[%c0_10, %c0_11] : memref<8x128xf32, #tpu.memory_space<vmem>>, vector<8x128xf32>
      tpu.vector_store %arg6[%c0_10, %c0_11], %12 {strides = array<i32>} : memref<8x128xf32, #tpu.memory_space<vmem>>, vector<8x128xf32>,
    } else {
    }
    %c0 = arith.constant 0 : index
    %c0_1 = arith.constant 0 : index
    %3 = vector.load %arg6[%c0, %c0_1] : memref<8x128xf32, #tpu.memory_space<vmem>>, vector<8x128xf32>
    %c0_2 = arith.constant 0 : index
    %c0_3 = arith.constant 0 : index
    %4 = vector.load %arg2[%c0_2, %c0_3] : memref<8x384xbf16, #tpu.memory_space<vmem>>, vector<8x384xbf16>
    %c0_4 = arith.constant 0 : index
    %c0_5 = arith.constant 0 : index
    %5 = vector.load %arg3[%c0_4, %c0_5] : memref<384x128xbf16, #tpu.memory_space<vmem>>, vector<384x128xbf16>
    %cst = arith.constant dense<0.000000e+00> : vector<8x128xf32>
    %6 = tpu.matmul %4, %5, %cst {dimension_numbers = #tpu.dot_dimension_numbers<[1], [0], [0], [1], [0, 0, 1, 1], [], []>} : vector<8x384xbf16>, vector<384x128xbf16>, vector<8x128xf32> -> vector<8x128xf32>
    %7 = arith.addf %3, %6 : vector<8x128xf32>
    %c0_6 = arith.constant 0 : index
    %c0_7 = arith.constant 0 : index
    %8 = vector.load %arg6[%c0_6, %c0_7] : memref<8x128xf32, #tpu.memory_space<vmem>>, vector<8x128xf32>
    tpu.vector_store %arg6[%c0_6, %c0_7], %7 {strides = array<i32>} : memref<8x128xf32, #tpu.memory_space<vmem>>, vector<8x128xf32>,
    %c2_i32 = arith.constant 2 : i32
    %9 = arith.cmpi eq, %arg1, %c2_i32 : i32
    %10 = arith.extui %9 : i1 to i32
    %c0_i32_8 = arith.constant 0 : i32
    %11 = arith.cmpi ne, %10, %c0_i32_8 : i32
    scf.if %11 {
      %c0_9 = arith.constant 0 : index
      %c0_10 = arith.constant 0 : index
      %12 = vector.load %arg6[%c0_9, %c0_10] : memref<8x128xf32, #tpu.memory_space<vmem>>, vector<8x128xf32>
      %c0_11 = arith.constant 0 : index
      %c0_12 = arith.constant 0 : index
      %13 = vector.load %arg4[%c0_11, %c0_12] : memref<1x128xf32, #tpu.memory_space<vmem>>, vector<1x128xf32>
      %14 = vector.broadcast %13 : vector<1x128xf32> to vector<8x128xf32>
      %15 = arith.addf %12, %14 : vector<8x128xf32>
      %cst_13 = arith.constant 0.000000e+00 : f32
      %16 = vector.broadcast %cst_13 : f32 to vector<8x128xf32>
      %17 = arith.maximumf %15, %16 : vector<8x128xf32>
      %18 = arith.truncf %17 : vector<8x128xf32> to vector<8x128xbf16>
      %c0_14 = arith.constant 0 : index
      %c0_15 = arith.constant 0 : index
      %19 = vector.load %arg5[%c0_14, %c0_15] : memref<8x128xbf16, #tpu.memory_space<vmem>>, vector<8x128xbf16>
      tpu.vector_store %arg5[%c0_14, %c0_15], %18 {strides = array<i32>} : memref<8x128xbf16, #tpu.memory_space<vmem>>, vector<8x128xbf16>,
    } else {
    }
    return
  }
  func.func @transform_0(%arg0: i32, %arg1: i32) -> (i32, i32) {
    %c0_i32 = arith.constant 0 : i32
    return %arg0, %arg1 : i32, i32
  }
  func.func @transform_1(%arg0: i32, %arg1: i32) -> (i32, i32) {
    %c0_i32 = arith.constant 0 : i32
    %c0_i32_0 = arith.constant 0 : i32
    return %arg1, %c0_i32 : i32, i32
  }
  func.func @transform_2(%arg0: i32, %arg1: i32) -> (i32, i32) {
    %c0_i32 = arith.constant 0 : i32
    %c0_i32_0 = arith.constant 0 : i32
    %c0_i32_1 = arith.constant 0 : i32
    return %c0_i32, %c0_i32_0 : i32, i32
  }
  func.func @transform_3(%arg0: i32, %arg1: i32) -> (i32, i32) {
    %c0_i32 = arith.constant 0 : i32
    %c0_i32_0 = arith.constant 0 : i32
    return %arg0, %c0_i32 : i32, i32
  }
}

module attributes {stable_mosaic.version = 11 : i64} {
  func.func @_matmul_bias_act_kernel(%arg0: i32, %arg1: i32, %arg2: memref<8x128xbf16, #tpu.memory_space<vmem>>, %arg3: memref<128x128xbf16, #tpu.memory_space<vmem>>, %arg4: memref<1x128xf32, #tpu.memory_space<vmem>>, %arg5: memref<8x128xbf16, #tpu.memory_space<vmem>>, %arg6: memref<8x128xf32, #tpu.memory_space<vmem>>) attributes {dimension_semantics = [#tpu.dimension_semantics<parallel>, #tpu.dimension_semantics<arbitrary>], iteration_bounds = array<i64: 1, 1>, scalar_prefetch = 0 : i64, scratch_operands = 1 : i64, tpu.core_type = #tpu.core_type<tc>, window_params = [{transform_indices = @transform_0, window_bounds = array<i64: 8, 128>}, {transform_indices = @transform_1, window_bounds = array<i64: 128, 128>}, {pipeline_mode = #tpu.pipeline_mode<synchronous>, transform_indices = @transform_2, window_bounds = array<i64: 1, 128>}, {transform_indices = @transform_3, window_bounds = array<i64: 8, 128>}]} {
    %c0_i32 = arith.constant 0 : i32
    %0 = arith.cmpi eq, %arg1, %c0_i32 : i32
    %1 = arith.extui %0 : i1 to i32
    %c0_i32_0 = arith.constant 0 : i32
    %2 = arith.cmpi ne, %1, %c0_i32_0 : i32
    scf.if %2 {
      %cst_10 = arith.constant 0.000000e+00 : f32
      %12 = vector.broadcast %cst_10 : f32 to vector<8x128xf32>
      %c0_11 = arith.constant 0 : index
      %c0_12 = arith.constant 0 : index
      %13 = vector.load %arg6[%c0_11, %c0_12] : memref<8x128xf32, #tpu.memory_space<vmem>>, vector<8x128xf32>
      tpu.vector_store %arg6[%c0_11, %c0_12], %12 {strides = array<i32>} : memref<8x128xf32, #tpu.memory_space<vmem>>, vector<8x128xf32>,
    } else {
    }
    %c0 = arith.constant 0 : index
    %c0_1 = arith.constant 0 : index
    %3 = vector.load %arg6[%c0, %c0_1] : memref<8x128xf32, #tpu.memory_space<vmem>>, vector<8x128xf32>
    %c0_2 = arith.constant 0 : index
    %c0_3 = arith.constant 0 : index
    %4 = vector.load %arg2[%c0_2, %c0_3] : memref<8x128xbf16, #tpu.memory_space<vmem>>, vector<8x128xbf16>
    %c0_4 = arith.constant 0 : index
    %c0_5 = arith.constant 0 : index
    %5 = vector.load %arg3[%c0_4, %c0_5] : memref<128x128xbf16, #tpu.memory_space<vmem>>, vector<128x128xbf16>
    %cst = arith.constant dense<0.000000e+00> : vector<8x128xf32>
    %6 = tpu.matmul %4, %5, %cst {dimension_numbers = #tpu.dot_dimension_numbers<[1], [0], [0], [1], [0, 0, 1, 1], [], []>} : vector<8x128xbf16>, vector<128x128xbf16>, vector<8x128xf32> -> vector<8x128xf32>
    %7 = arith.addf %3, %6 : vector<8x128xf32>
    %c0_6 = arith.constant 0 : index
    %c0_7 = arith.constant 0 : index
    %8 = vector.load %arg6[%c0_6, %c0_7] : memref<8x128xf32, #tpu.memory_space<vmem>>, vector<8x128xf32>
    tpu.vector_store %arg6[%c0_6, %c0_7], %7 {strides = array<i32>} : memref<8x128xf32, #tpu.memory_space<vmem>>, vector<8x128xf32>,
    %c0_i32_8 = arith.constant 0 : i32
    %9 = arith.cmpi eq, %arg1, %c0_i32_8 : i32
    %10 = arith.extui %9 : i1 to i32
    %c0_i32_9 = arith.constant 0 : i32
    %11 = arith.cmpi ne, %10, %c0_i32_9 : i32
    scf.if %11 {
      %c0_10 = arith.constant 0 : index
      %c0_11 = arith.constant 0 : index
      %12 = vector.load %arg6[%c0_10, %c0_11] : memref<8x128xf32, #tpu.memory_space<vmem>>, vector<8x128xf32>
      %c0_12 = arith.constant 0 : index
      %c0_13 = arith.constant 0 : index
      %13 = vector.load %arg4[%c0_12, %c0_13] : memref<1x128xf32, #tpu.memory_space<vmem>>, vector<1x128xf32>
      %14 = vector.broadcast %13 : vector<1x128xf32> to vector<8x128xf32>
      %15 = arith.addf %12, %14 : vector<8x128xf32>
      %16 = arith.truncf %15 : vector<8x128xf32> to vector<8x128xbf16>
      %c0_14 = arith.constant 0 : index
      %c0_15 = arith.constant 0 : index
      %17 = vector.load %arg5[%c0_14, %c0_15] : memref<8x128xbf16, #tpu.memory_space<vmem>>, vector<8x128xbf16>
      tpu.vector_store %arg5[%c0_14, %c0_15], %16 {strides = array<i32>} : memref<8x128xbf16, #tpu.memory_space<vmem>>, vector<8x128xbf16>,
    } else {
    }
    return
  }
  func.func @transform_0(%arg0: i32, %arg1: i32) -> (i32, i32) {
    %c0_i32 = arith.constant 0 : i32
    return %arg0, %arg1 : i32, i32
  }
  func.func @transform_1(%arg0: i32, %arg1: i32) -> (i32, i32) {
    %c0_i32 = arith.constant 0 : i32
    %c0_i32_0 = arith.constant 0 : i32
    return %arg1, %c0_i32 : i32, i32
  }
  func.func @transform_2(%arg0: i32, %arg1: i32) -> (i32, i32) {
    %c0_i32 = arith.constant 0 : i32
    %c0_i32_0 = arith.constant 0 : i32
    %c0_i32_1 = arith.constant 0 : i32
    return %c0_i32, %c0_i32_0 : i32, i32
  }
  func.func @transform_3(%arg0: i32, %arg1: i32) -> (i32, i32) {
    %c0_i32 = arith.constant 0 : i32
    %c0_i32_0 = arith.constant 0 : i32
    return %arg0, %c0_i32 : i32, i32
  }
}

module attributes {stable_mosaic.version = 11 : i64} {
  func.func @_matmul_bias_act_kernel(%arg0: i32, %arg1: i32, %arg2: memref<8x128xbf16, #tpu.memory_space<vmem>>, %arg3: memref<128x256xbf16, #tpu.memory_space<vmem>>, %arg4: memref<1x256xf32, #tpu.memory_space<vmem>>, %arg5: memref<8x256xbf16, #tpu.memory_space<vmem>>, %arg6: memref<8x256xf32, #tpu.memory_space<vmem>>) attributes {dimension_semantics = [#tpu.dimension_semantics<parallel>, #tpu.dimension_semantics<arbitrary>], iteration_bounds = array<i64: 1, 1>, scalar_prefetch = 0 : i64, scratch_operands = 1 : i64, tpu.core_type = #tpu.core_type<tc>, window_params = [{transform_indices = @transform_0, window_bounds = array<i64: 8, 128>}, {transform_indices = @transform_1, window_bounds = array<i64: 128, 256>}, {pipeline_mode = #tpu.pipeline_mode<synchronous>, transform_indices = @transform_2, window_bounds = array<i64: 1, 256>}, {transform_indices = @transform_3, window_bounds = array<i64: 8, 256>}]} {
    %c0_i32 = arith.constant 0 : i32
    %0 = arith.cmpi eq, %arg1, %c0_i32 : i32
    %1 = arith.extui %0 : i1 to i32
    %c0_i32_0 = arith.constant 0 : i32
    %2 = arith.cmpi ne, %1, %c0_i32_0 : i32
    scf.if %2 {
      %cst_10 = arith.constant 0.000000e+00 : f32
      %12 = vector.broadcast %cst_10 : f32 to vector<8x256xf32>
      %c0_11 = arith.constant 0 : index
      %c0_12 = arith.constant 0 : index
      %13 = vector.load %arg6[%c0_11, %c0_12] : memref<8x256xf32, #tpu.memory_space<vmem>>, vector<8x256xf32>
      tpu.vector_store %arg6[%c0_11, %c0_12], %12 {strides = array<i32>} : memref<8x256xf32, #tpu.memory_space<vmem>>, vector<8x256xf32>,
    } else {
    }
    %c0 = arith.constant 0 : index
    %c0_1 = arith.constant 0 : index
    %3 = vector.load %arg6[%c0, %c0_1] : memref<8x256xf32, #tpu.memory_space<vmem>>, vector<8x256xf32>
    %c0_2 = arith.constant 0 : index
    %c0_3 = arith.constant 0 : index
    %4 = vector.load %arg2[%c0_2, %c0_3] : memref<8x128xbf16, #tpu.memory_space<vmem>>, vector<8x128xbf16>
    %c0_4 = arith.constant 0 : index
    %c0_5 = arith.constant 0 : index
    %5 = vector.load %arg3[%c0_4, %c0_5] : memref<128x256xbf16, #tpu.memory_space<vmem>>, vector<128x256xbf16>
    %cst = arith.constant dense<0.000000e+00> : vector<8x256xf32>
    %6 = tpu.matmul %4, %5, %cst {dimension_numbers = #tpu.dot_dimension_numbers<[1], [0], [0], [1], [0, 0, 1, 1], [], []>} : vector<8x128xbf16>, vector<128x256xbf16>, vector<8x256xf32> -> vector<8x256xf32>
    %7 = arith.addf %3, %6 : vector<8x256xf32>
    %c0_6 = arith.constant 0 : index
    %c0_7 = arith.constant 0 : index
    %8 = vector.load %arg6[%c0_6, %c0_7] : memref<8x256xf32, #tpu.memory_space<vmem>>, vector<8x256xf32>
    tpu.vector_store %arg6[%c0_6, %c0_7], %7 {strides = array<i32>} : memref<8x256xf32, #tpu.memory_space<vmem>>, vector<8x256xf32>,
    %c0_i32_8 = arith.constant 0 : i32
    %9 = arith.cmpi eq, %arg1, %c0_i32_8 : i32
    %10 = arith.extui %9 : i1 to i32
    %c0_i32_9 = arith.constant 0 : i32
    %11 = arith.cmpi ne, %10, %c0_i32_9 : i32
    scf.if %11 {
      %c0_10 = arith.constant 0 : index
      %c0_11 = arith.constant 0 : index
      %12 = vector.load %arg6[%c0_10, %c0_11] : memref<8x256xf32, #tpu.memory_space<vmem>>, vector<8x256xf32>
      %c0_12 = arith.constant 0 : index
      %c0_13 = arith.constant 0 : index
      %13 = vector.load %arg4[%c0_12, %c0_13] : memref<1x256xf32, #tpu.memory_space<vmem>>, vector<1x256xf32>
      %14 = vector.broadcast %13 : vector<1x256xf32> to vector<8x256xf32>
      %15 = arith.addf %12, %14 : vector<8x256xf32>
      %16 = arith.truncf %15 : vector<8x256xf32> to vector<8x256xbf16>
      %c0_14 = arith.constant 0 : index
      %c0_15 = arith.constant 0 : index
      %17 = vector.load %arg5[%c0_14, %c0_15] : memref<8x256xbf16, #tpu.memory_space<vmem>>, vector<8x256xbf16>
      tpu.vector_store %arg5[%c0_14, %c0_15], %16 {strides = array<i32>} : memref<8x256xbf16, #tpu.memory_space<vmem>>, vector<8x256xbf16>,
    } else {
    }
    return
  }
  func.func @transform_0(%arg0: i32, %arg1: i32) -> (i32, i32) {
    %c0_i32 = arith.constant 0 : i32
    return %arg0, %arg1 : i32, i32
  }
  func.func @transform_1(%arg0: i32, %arg1: i32) -> (i32, i32) {
    %c0_i32 = arith.constant 0 : i32
    %c0_i32_0 = arith.constant 0 : i32
    return %arg1, %c0_i32 : i32, i32
  }
  func.func @transform_2(%arg0: i32, %arg1: i32) -> (i32, i32) {
    %c0_i32 = arith.constant 0 : i32
    %c0_i32_0 = arith.constant 0 : i32
    %c0_i32_1 = arith.constant 0 : i32
    return %c0_i32, %c0_i32_0 : i32, i32
  }
  func.func @transform_3(%arg0: i32, %arg1: i32) -> (i32, i32) {
    %c0_i32 = arith.constant 0 : i32
    %c0_i32_0 = arith.constant 0 : i32
    return %arg0, %c0_i32 : i32, i32
  }
}

module attributes {stable_mosaic.version = 11 : i64} {
  func.func @_matmul_bias_act_kernel(%arg0: i32, %arg1: i32, %arg2: memref<8x384xbf16, #tpu.memory_space<vmem>>, %arg3: memref<384x256xbf16, #tpu.memory_space<vmem>>, %arg4: memref<1x256xf32, #tpu.memory_space<vmem>>, %arg5: memref<8x256xbf16, #tpu.memory_space<vmem>>, %arg6: memref<8x256xf32, #tpu.memory_space<vmem>>) attributes {dimension_semantics = [#tpu.dimension_semantics<parallel>, #tpu.dimension_semantics<arbitrary>], iteration_bounds = array<i64: 1, 3>, scalar_prefetch = 0 : i64, scratch_operands = 1 : i64, tpu.core_type = #tpu.core_type<tc>, window_params = [{transform_indices = @transform_0, window_bounds = array<i64: 8, 384>}, {transform_indices = @transform_1, window_bounds = array<i64: 384, 256>}, {pipeline_mode = #tpu.pipeline_mode<synchronous>, transform_indices = @transform_2, window_bounds = array<i64: 1, 256>}, {transform_indices = @transform_3, window_bounds = array<i64: 8, 256>}]} {
    %c0_i32 = arith.constant 0 : i32
    %0 = arith.cmpi eq, %arg1, %c0_i32 : i32
    %1 = arith.extui %0 : i1 to i32
    %c0_i32_0 = arith.constant 0 : i32
    %2 = arith.cmpi ne, %1, %c0_i32_0 : i32
    scf.if %2 {
      %cst_9 = arith.constant 0.000000e+00 : f32
      %12 = vector.broadcast %cst_9 : f32 to vector<8x256xf32>
      %c0_10 = arith.constant 0 : index
      %c0_11 = arith.constant 0 : index
      %13 = vector.load %arg6[%c0_10, %c0_11] : memref<8x256xf32, #tpu.memory_space<vmem>>, vector<8x256xf32>
      tpu.vector_store %arg6[%c0_10, %c0_11], %12 {strides = array<i32>} : memref<8x256xf32, #tpu.memory_space<vmem>>, vector<8x256xf32>,
    } else {
    }
    %c0 = arith.constant 0 : index
    %c0_1 = arith.constant 0 : index
    %3 = vector.load %arg6[%c0, %c0_1] : memref<8x256xf32, #tpu.memory_space<vmem>>, vector<8x256xf32>
    %c0_2 = arith.constant 0 : index
    %c0_3 = arith.constant 0 : index
    %4 = vector.load %arg2[%c0_2, %c0_3] : memref<8x384xbf16, #tpu.memory_space<vmem>>, vector<8x384xbf16>
    %c0_4 = arith.constant 0 : index
    %c0_5 = arith.constant 0 : index
    %5 = vector.load %arg3[%c0_4, %c0_5] : memref<384x256xbf16, #tpu.memory_space<vmem>>, vector<384x256xbf16>
    %cst = arith.constant dense<0.000000e+00> : vector<8x256xf32>
    %6 = tpu.matmul %4, %5, %cst {dimension_numbers = #tpu.dot_dimension_numbers<[1], [0], [0], [1], [0, 0, 1, 1], [], []>} : vector<8x384xbf16>, vector<384x256xbf16>, vector<8x256xf32> -> vector<8x256xf32>
    %7 = arith.addf %3, %6 : vector<8x256xf32>
    %c0_6 = arith.constant 0 : index
    %c0_7 = arith.constant 0 : index
    %8 = vector.load %arg6[%c0_6, %c0_7] : memref<8x256xf32, #tpu.memory_space<vmem>>, vector<8x256xf32>
    tpu.vector_store %arg6[%c0_6, %c0_7], %7 {strides = array<i32>} : memref<8x256xf32, #tpu.memory_space<vmem>>, vector<8x256xf32>,
    %c2_i32 = arith.constant 2 : i32
    %9 = arith.cmpi eq, %arg1, %c2_i32 : i32
    %10 = arith.extui %9 : i1 to i32
    %c0_i32_8 = arith.constant 0 : i32
    %11 = arith.cmpi ne, %10, %c0_i32_8 : i32
    scf.if %11 {
      %c0_9 = arith.constant 0 : index
      %c0_10 = arith.constant 0 : index
      %12 = vector.load %arg6[%c0_9, %c0_10] : memref<8x256xf32, #tpu.memory_space<vmem>>, vector<8x256xf32>
      %c0_11 = arith.constant 0 : index
      %c0_12 = arith.constant 0 : index
      %13 = vector.load %arg4[%c0_11, %c0_12] : memref<1x256xf32, #tpu.memory_space<vmem>>, vector<1x256xf32>
      %14 = vector.broadcast %13 : vector<1x256xf32> to vector<8x256xf32>
      %15 = arith.addf %12, %14 : vector<8x256xf32>
      %cst_13 = arith.constant 0.000000e+00 : f32
      %16 = vector.broadcast %cst_13 : f32 to vector<8x256xf32>
      %17 = arith.maximumf %15, %16 : vector<8x256xf32>
      %18 = arith.truncf %17 : vector<8x256xf32> to vector<8x256xbf16>
      %c0_14 = arith.constant 0 : index
      %c0_15 = arith.constant 0 : index
      %19 = vector.load %arg5[%c0_14, %c0_15] : memref<8x256xbf16, #tpu.memory_space<vmem>>, vector<8x256xbf16>
      tpu.vector_store %arg5[%c0_14, %c0_15], %18 {strides = array<i32>} : memref<8x256xbf16, #tpu.memory_space<vmem>>, vector<8x256xbf16>,
    } else {
    }
    return
  }
  func.func @transform_0(%arg0: i32, %arg1: i32) -> (i32, i32) {
    %c0_i32 = arith.constant 0 : i32
    return %arg0, %arg1 : i32, i32
  }
  func.func @transform_1(%arg0: i32, %arg1: i32) -> (i32, i32) {
    %c0_i32 = arith.constant 0 : i32
    %c0_i32_0 = arith.constant 0 : i32
    return %arg1, %c0_i32 : i32, i32
  }
  func.func @transform_2(%arg0: i32, %arg1: i32) -> (i32, i32) {
    %c0_i32 = arith.constant 0 : i32
    %c0_i32_0 = arith.constant 0 : i32
    %c0_i32_1 = arith.constant 0 : i32
    return %c0_i32, %c0_i32_0 : i32, i32
  }
  func.func @transform_3(%arg0: i32, %arg1: i32) -> (i32, i32) {
    %c0_i32 = arith.constant 0 : i32
    %c0_i32_0 = arith.constant 0 : i32
    return %arg0, %c0_i32 : i32, i32
  }
}

module attributes {stable_mosaic.version = 11 : i64} {
  func.func @_matmul_bias_act_kernel(%arg0: i32, %arg1: i32, %arg2: memref<8x384xbf16, #tpu.memory_space<vmem>>, %arg3: memref<384x512xbf16, #tpu.memory_space<vmem>>, %arg4: memref<1x512xf32, #tpu.memory_space<vmem>>, %arg5: memref<8x512xbf16, #tpu.memory_space<vmem>>, %arg6: memref<8x512xf32, #tpu.memory_space<vmem>>) attributes {dimension_semantics = [#tpu.dimension_semantics<parallel>, #tpu.dimension_semantics<arbitrary>], iteration_bounds = array<i64: 1, 6>, scalar_prefetch = 0 : i64, scratch_operands = 1 : i64, tpu.core_type = #tpu.core_type<tc>, window_params = [{transform_indices = @transform_0, window_bounds = array<i64: 8, 384>}, {transform_indices = @transform_1, window_bounds = array<i64: 384, 512>}, {pipeline_mode = #tpu.pipeline_mode<synchronous>, transform_indices = @transform_2, window_bounds = array<i64: 1, 512>}, {transform_indices = @transform_3, window_bounds = array<i64: 8, 512>}]} {
    %c0_i32 = arith.constant 0 : i32
    %0 = arith.cmpi eq, %arg1, %c0_i32 : i32
    %1 = arith.extui %0 : i1 to i32
    %c0_i32_0 = arith.constant 0 : i32
    %2 = arith.cmpi ne, %1, %c0_i32_0 : i32
    scf.if %2 {
      %cst_9 = arith.constant 0.000000e+00 : f32
      %12 = vector.broadcast %cst_9 : f32 to vector<8x512xf32>
      %c0_10 = arith.constant 0 : index
      %c0_11 = arith.constant 0 : index
      %13 = vector.load %arg6[%c0_10, %c0_11] : memref<8x512xf32, #tpu.memory_space<vmem>>, vector<8x512xf32>
      tpu.vector_store %arg6[%c0_10, %c0_11], %12 {strides = array<i32>} : memref<8x512xf32, #tpu.memory_space<vmem>>, vector<8x512xf32>,
    } else {
    }
    %c0 = arith.constant 0 : index
    %c0_1 = arith.constant 0 : index
    %3 = vector.load %arg6[%c0, %c0_1] : memref<8x512xf32, #tpu.memory_space<vmem>>, vector<8x512xf32>
    %c0_2 = arith.constant 0 : index
    %c0_3 = arith.constant 0 : index
    %4 = vector.load %arg2[%c0_2, %c0_3] : memref<8x384xbf16, #tpu.memory_space<vmem>>, vector<8x384xbf16>
    %c0_4 = arith.constant 0 : index
    %c0_5 = arith.constant 0 : index
    %5 = vector.load %arg3[%c0_4, %c0_5] : memref<384x512xbf16, #tpu.memory_space<vmem>>, vector<384x512xbf16>
    %cst = arith.constant dense<0.000000e+00> : vector<8x512xf32>
    %6 = tpu.matmul %4, %5, %cst {dimension_numbers = #tpu.dot_dimension_numbers<[1], [0], [0], [1], [0, 0, 1, 1], [], []>} : vector<8x384xbf16>, vector<384x512xbf16>, vector<8x512xf32> -> vector<8x512xf32>
    %7 = arith.addf %3, %6 : vector<8x512xf32>
    %c0_6 = arith.constant 0 : index
    %c0_7 = arith.constant 0 : index
    %8 = vector.load %arg6[%c0_6, %c0_7] : memref<8x512xf32, #tpu.memory_space<vmem>>, vector<8x512xf32>
    tpu.vector_store %arg6[%c0_6, %c0_7], %7 {strides = array<i32>} : memref<8x512xf32, #tpu.memory_space<vmem>>, vector<8x512xf32>,
    %c5_i32 = arith.constant 5 : i32
    %9 = arith.cmpi eq, %arg1, %c5_i32 : i32
    %10 = arith.extui %9 : i1 to i32
    %c0_i32_8 = arith.constant 0 : i32
    %11 = arith.cmpi ne, %10, %c0_i32_8 : i32
    scf.if %11 {
      %c0_9 = arith.constant 0 : index
      %c0_10 = arith.constant 0 : index
      %12 = vector.load %arg6[%c0_9, %c0_10] : memref<8x512xf32, #tpu.memory_space<vmem>>, vector<8x512xf32>
      %c0_11 = arith.constant 0 : index
      %c0_12 = arith.constant 0 : index
      %13 = vector.load %arg4[%c0_11, %c0_12] : memref<1x512xf32, #tpu.memory_space<vmem>>, vector<1x512xf32>
      %14 = vector.broadcast %13 : vector<1x512xf32> to vector<8x512xf32>
      %15 = arith.addf %12, %14 : vector<8x512xf32>
      %cst_13 = arith.constant 0.000000e+00 : f32
      %16 = vector.broadcast %cst_13 : f32 to vector<8x512xf32>
      %17 = arith.maximumf %15, %16 : vector<8x512xf32>
      %18 = arith.truncf %17 : vector<8x512xf32> to vector<8x512xbf16>
      %c0_14 = arith.constant 0 : index
      %c0_15 = arith.constant 0 : index
      %19 = vector.load %arg5[%c0_14, %c0_15] : memref<8x512xbf16, #tpu.memory_space<vmem>>, vector<8x512xbf16>
      tpu.vector_store %arg5[%c0_14, %c0_15], %18 {strides = array<i32>} : memref<8x512xbf16, #tpu.memory_space<vmem>>, vector<8x512xbf16>,
    } else {
    }
    return
  }
  func.func @transform_0(%arg0: i32, %arg1: i32) -> (i32, i32) {
    %c0_i32 = arith.constant 0 : i32
    return %arg0, %arg1 : i32, i32
  }
  func.func @transform_1(%arg0: i32, %arg1: i32) -> (i32, i32) {
    %c0_i32 = arith.constant 0 : i32
    %c0_i32_0 = arith.constant 0 : i32
    return %arg1, %c0_i32 : i32, i32
  }
  func.func @transform_2(%arg0: i32, %arg1: i32) -> (i32, i32) {
    %c0_i32 = arith.constant 0 : i32
    %c0_i32_0 = arith.constant 0 : i32
    %c0_i32_1 = arith.constant 0 : i32
    return %c0_i32, %c0_i32_0 : i32, i32
  }
  func.func @transform_3(%arg0: i32, %arg1: i32) -> (i32, i32) {
    %c0_i32 = arith.constant 0 : i32
    %c0_i32_0 = arith.constant 0 : i32
    return %arg0, %c0_i32 : i32, i32
  }
}

module attributes {stable_mosaic.version = 11 : i64} {
  func.func @_matmul_bias_add_relu_kernel(%arg0: i32, %arg1: i32, %arg2: memref<8x384xbf16, #tpu.memory_space<vmem>>, %arg3: memref<384x256xbf16, #tpu.memory_space<vmem>>, %arg4: memref<1x256xf32, #tpu.memory_space<vmem>>, %arg5: memref<8x256xbf16, #tpu.memory_space<vmem>>, %arg6: memref<8x256xbf16, #tpu.memory_space<vmem>>, %arg7: memref<8x256xf32, #tpu.memory_space<vmem>>) attributes {dimension_semantics = [#tpu.dimension_semantics<parallel>, #tpu.dimension_semantics<arbitrary>], iteration_bounds = array<i64: 1, 6>, scalar_prefetch = 0 : i64, scratch_operands = 1 : i64, tpu.core_type = #tpu.core_type<tc>, window_params = [{transform_indices = @transform_0, window_bounds = array<i64: 8, 384>}, {transform_indices = @transform_1, window_bounds = array<i64: 384, 256>}, {pipeline_mode = #tpu.pipeline_mode<synchronous>, transform_indices = @transform_2, window_bounds = array<i64: 1, 256>}, {transform_indices = @transform_3, window_bounds = array<i64: 8, 256>}, {transform_indices = @transform_4, window_bounds = array<i64: 8, 256>}]} {
    %c0_i32 = arith.constant 0 : i32
    %0 = arith.cmpi eq, %arg1, %c0_i32 : i32
    %1 = arith.extui %0 : i1 to i32
    %c0_i32_0 = arith.constant 0 : i32
    %2 = arith.cmpi ne, %1, %c0_i32_0 : i32
    scf.if %2 {
      %cst_9 = arith.constant 0.000000e+00 : f32
      %12 = vector.broadcast %cst_9 : f32 to vector<8x256xf32>
      %c0_10 = arith.constant 0 : index
      %c0_11 = arith.constant 0 : index
      %13 = vector.load %arg7[%c0_10, %c0_11] : memref<8x256xf32, #tpu.memory_space<vmem>>, vector<8x256xf32>
      tpu.vector_store %arg7[%c0_10, %c0_11], %12 {strides = array<i32>} : memref<8x256xf32, #tpu.memory_space<vmem>>, vector<8x256xf32>,
    } else {
    }
    %c0 = arith.constant 0 : index
    %c0_1 = arith.constant 0 : index
    %3 = vector.load %arg7[%c0, %c0_1] : memref<8x256xf32, #tpu.memory_space<vmem>>, vector<8x256xf32>
    %c0_2 = arith.constant 0 : index
    %c0_3 = arith.constant 0 : index
    %4 = vector.load %arg2[%c0_2, %c0_3] : memref<8x384xbf16, #tpu.memory_space<vmem>>, vector<8x384xbf16>
    %c0_4 = arith.constant 0 : index
    %c0_5 = arith.constant 0 : index
    %5 = vector.load %arg3[%c0_4, %c0_5] : memref<384x256xbf16, #tpu.memory_space<vmem>>, vector<384x256xbf16>
    %cst = arith.constant dense<0.000000e+00> : vector<8x256xf32>
    %6 = tpu.matmul %4, %5, %cst {dimension_numbers = #tpu.dot_dimension_numbers<[1], [0], [0], [1], [0, 0, 1, 1], [], []>} : vector<8x384xbf16>, vector<384x256xbf16>, vector<8x256xf32> -> vector<8x256xf32>
    %7 = arith.addf %3, %6 : vector<8x256xf32>
    %c0_6 = arith.constant 0 : index
    %c0_7 = arith.constant 0 : index
    %8 = vector.load %arg7[%c0_6, %c0_7] : memref<8x256xf32, #tpu.memory_space<vmem>>, vector<8x256xf32>
    tpu.vector_store %arg7[%c0_6, %c0_7], %7 {strides = array<i32>} : memref<8x256xf32, #tpu.memory_space<vmem>>, vector<8x256xf32>,
    %c5_i32 = arith.constant 5 : i32
    %9 = arith.cmpi eq, %arg1, %c5_i32 : i32
    %10 = arith.extui %9 : i1 to i32
    %c0_i32_8 = arith.constant 0 : i32
    %11 = arith.cmpi ne, %10, %c0_i32_8 : i32
    scf.if %11 {
      %c0_9 = arith.constant 0 : index
      %c0_10 = arith.constant 0 : index
      %12 = vector.load %arg7[%c0_9, %c0_10] : memref<8x256xf32, #tpu.memory_space<vmem>>, vector<8x256xf32>
      %c0_11 = arith.constant 0 : index
      %c0_12 = arith.constant 0 : index
      %13 = vector.load %arg4[%c0_11, %c0_12] : memref<1x256xf32, #tpu.memory_space<vmem>>, vector<1x256xf32>
      %14 = vector.broadcast %13 : vector<1x256xf32> to vector<8x256xf32>
      %15 = arith.addf %12, %14 : vector<8x256xf32>
      %c0_13 = arith.constant 0 : index
      %c0_14 = arith.constant 0 : index
      %16 = vector.load %arg5[%c0_13, %c0_14] : memref<8x256xbf16, #tpu.memory_space<vmem>>, vector<8x256xbf16>
      %17 = arith.extf %16 : vector<8x256xbf16> to vector<8x256xf32>
      %18 = arith.addf %15, %17 : vector<8x256xf32>
      %cst_15 = arith.constant 0.000000e+00 : f32
      %19 = vector.broadcast %cst_15 : f32 to vector<8x256xf32>
      %20 = arith.maximumf %18, %19 : vector<8x256xf32>
      %21 = arith.truncf %20 : vector<8x256xf32> to vector<8x256xbf16>
      %c0_16 = arith.constant 0 : index
      %c0_17 = arith.constant 0 : index
      %22 = vector.load %arg6[%c0_16, %c0_17] : memref<8x256xbf16, #tpu.memory_space<vmem>>, vector<8x256xbf16>
      tpu.vector_store %arg6[%c0_16, %c0_17], %21 {strides = array<i32>} : memref<8x256xbf16, #tpu.memory_space<vmem>>, vector<8x256xbf16>,
    } else {
    }
    return
  }
  func.func @transform_0(%arg0: i32, %arg1: i32) -> (i32, i32) {
    %c0_i32 = arith.constant 0 : i32
    return %arg0, %arg1 : i32, i32
  }
  func.func @transform_1(%arg0: i32, %arg1: i32) -> (i32, i32) {
    %c0_i32 = arith.constant 0 : i32
    %c0_i32_0 = arith.constant 0 : i32
    return %arg1, %c0_i32 : i32, i32
  }
  func.func @transform_2(%arg0: i32, %arg1: i32) -> (i32, i32) {
    %c0_i32 = arith.constant 0 : i32
    %c0_i32_0 = arith.constant 0 : i32
    %c0_i32_1 = arith.constant 0 : i32
    return %c0_i32, %c0_i32_0 : i32, i32
  }
  func.func @transform_3(%arg0: i32, %arg1: i32) -> (i32, i32) {
    %c0_i32 = arith.constant 0 : i32
    %c0_i32_0 = arith.constant 0 : i32
    return %arg0, %c0_i32 : i32, i32
  }
  func.func @transform_4(%arg0: i32, %arg1: i32) -> (i32, i32) {
    %c0_i32 = arith.constant 0 : i32
    %c0_i32_0 = arith.constant 0 : i32
    return %arg0, %c0_i32 : i32, i32
  }
}

module attributes {stable_mosaic.version = 11 : i64} {
  func.func @_matmul_bias_act_kernel(%arg0: i32, %arg1: i32, %arg2: memref<8x384xbf16, #tpu.memory_space<vmem>>, %arg3: memref<384x256xbf16, #tpu.memory_space<vmem>>, %arg4: memref<1x256xf32, #tpu.memory_space<vmem>>, %arg5: memref<8x256xbf16, #tpu.memory_space<vmem>>, %arg6: memref<8x256xf32, #tpu.memory_space<vmem>>) attributes {dimension_semantics = [#tpu.dimension_semantics<parallel>, #tpu.dimension_semantics<arbitrary>], iteration_bounds = array<i64: 1, 6>, scalar_prefetch = 0 : i64, scratch_operands = 1 : i64, tpu.core_type = #tpu.core_type<tc>, window_params = [{transform_indices = @transform_0, window_bounds = array<i64: 8, 384>}, {transform_indices = @transform_1, window_bounds = array<i64: 384, 256>}, {pipeline_mode = #tpu.pipeline_mode<synchronous>, transform_indices = @transform_2, window_bounds = array<i64: 1, 256>}, {transform_indices = @transform_3, window_bounds = array<i64: 8, 256>}]} {
    %c0_i32 = arith.constant 0 : i32
    %0 = arith.cmpi eq, %arg1, %c0_i32 : i32
    %1 = arith.extui %0 : i1 to i32
    %c0_i32_0 = arith.constant 0 : i32
    %2 = arith.cmpi ne, %1, %c0_i32_0 : i32
    scf.if %2 {
      %cst_9 = arith.constant 0.000000e+00 : f32
      %12 = vector.broadcast %cst_9 : f32 to vector<8x256xf32>
      %c0_10 = arith.constant 0 : index
      %c0_11 = arith.constant 0 : index
      %13 = vector.load %arg6[%c0_10, %c0_11] : memref<8x256xf32, #tpu.memory_space<vmem>>, vector<8x256xf32>
      tpu.vector_store %arg6[%c0_10, %c0_11], %12 {strides = array<i32>} : memref<8x256xf32, #tpu.memory_space<vmem>>, vector<8x256xf32>,
    } else {
    }
    %c0 = arith.constant 0 : index
    %c0_1 = arith.constant 0 : index
    %3 = vector.load %arg6[%c0, %c0_1] : memref<8x256xf32, #tpu.memory_space<vmem>>, vector<8x256xf32>
    %c0_2 = arith.constant 0 : index
    %c0_3 = arith.constant 0 : index
    %4 = vector.load %arg2[%c0_2, %c0_3] : memref<8x384xbf16, #tpu.memory_space<vmem>>, vector<8x384xbf16>
    %c0_4 = arith.constant 0 : index
    %c0_5 = arith.constant 0 : index
    %5 = vector.load %arg3[%c0_4, %c0_5] : memref<384x256xbf16, #tpu.memory_space<vmem>>, vector<384x256xbf16>
    %cst = arith.constant dense<0.000000e+00> : vector<8x256xf32>
    %6 = tpu.matmul %4, %5, %cst {dimension_numbers = #tpu.dot_dimension_numbers<[1], [0], [0], [1], [0, 0, 1, 1], [], []>} : vector<8x384xbf16>, vector<384x256xbf16>, vector<8x256xf32> -> vector<8x256xf32>
    %7 = arith.addf %3, %6 : vector<8x256xf32>
    %c0_6 = arith.constant 0 : index
    %c0_7 = arith.constant 0 : index
    %8 = vector.load %arg6[%c0_6, %c0_7] : memref<8x256xf32, #tpu.memory_space<vmem>>, vector<8x256xf32>
    tpu.vector_store %arg6[%c0_6, %c0_7], %7 {strides = array<i32>} : memref<8x256xf32, #tpu.memory_space<vmem>>, vector<8x256xf32>,
    %c5_i32 = arith.constant 5 : i32
    %9 = arith.cmpi eq, %arg1, %c5_i32 : i32
    %10 = arith.extui %9 : i1 to i32
    %c0_i32_8 = arith.constant 0 : i32
    %11 = arith.cmpi ne, %10, %c0_i32_8 : i32
    scf.if %11 {
      %c0_9 = arith.constant 0 : index
      %c0_10 = arith.constant 0 : index
      %12 = vector.load %arg6[%c0_9, %c0_10] : memref<8x256xf32, #tpu.memory_space<vmem>>, vector<8x256xf32>
      %c0_11 = arith.constant 0 : index
      %c0_12 = arith.constant 0 : index
      %13 = vector.load %arg4[%c0_11, %c0_12] : memref<1x256xf32, #tpu.memory_space<vmem>>, vector<1x256xf32>
      %14 = vector.broadcast %13 : vector<1x256xf32> to vector<8x256xf32>
      %15 = arith.addf %12, %14 : vector<8x256xf32>
      %cst_13 = arith.constant 0.000000e+00 : f32
      %16 = vector.broadcast %cst_13 : f32 to vector<8x256xf32>
      %17 = arith.maximumf %15, %16 : vector<8x256xf32>
      %18 = arith.truncf %17 : vector<8x256xf32> to vector<8x256xbf16>
      %c0_14 = arith.constant 0 : index
      %c0_15 = arith.constant 0 : index
      %19 = vector.load %arg5[%c0_14, %c0_15] : memref<8x256xbf16, #tpu.memory_space<vmem>>, vector<8x256xbf16>
      tpu.vector_store %arg5[%c0_14, %c0_15], %18 {strides = array<i32>} : memref<8x256xbf16, #tpu.memory_space<vmem>>, vector<8x256xbf16>,
    } else {
    }
    return
  }
  func.func @transform_0(%arg0: i32, %arg1: i32) -> (i32, i32) {
    %c0_i32 = arith.constant 0 : i32
    return %arg0, %arg1 : i32, i32
  }
  func.func @transform_1(%arg0: i32, %arg1: i32) -> (i32, i32) {
    %c0_i32 = arith.constant 0 : i32
    %c0_i32_0 = arith.constant 0 : i32
    return %arg1, %c0_i32 : i32, i32
  }
  func.func @transform_2(%arg0: i32, %arg1: i32) -> (i32, i32) {
    %c0_i32 = arith.constant 0 : i32
    %c0_i32_0 = arith.constant 0 : i32
    %c0_i32_1 = arith.constant 0 : i32
    return %c0_i32, %c0_i32_0 : i32, i32
  }
  func.func @transform_3(%arg0: i32, %arg1: i32) -> (i32, i32) {
    %c0_i32 = arith.constant 0 : i32
    %c0_i32_0 = arith.constant 0 : i32
    return %arg0, %c0_i32 : i32, i32
  }
}

module attributes {stable_mosaic.version = 11 : i64} {
  func.func @_matmul_bias_add_relu_kernel(%arg0: i32, %arg1: i32, %arg2: memref<8x512xbf16, #tpu.memory_space<vmem>>, %arg3: memref<512x512xbf16, #tpu.memory_space<vmem>>, %arg4: memref<1x512xf32, #tpu.memory_space<vmem>>, %arg5: memref<8x512xbf16, #tpu.memory_space<vmem>>, %arg6: memref<8x512xbf16, #tpu.memory_space<vmem>>, %arg7: memref<8x512xf32, #tpu.memory_space<vmem>>) attributes {dimension_semantics = [#tpu.dimension_semantics<parallel>, #tpu.dimension_semantics<arbitrary>], iteration_bounds = array<i64: 1, 9>, scalar_prefetch = 0 : i64, scratch_operands = 1 : i64, tpu.core_type = #tpu.core_type<tc>, window_params = [{transform_indices = @transform_0, window_bounds = array<i64: 8, 512>}, {transform_indices = @transform_1, window_bounds = array<i64: 512, 512>}, {pipeline_mode = #tpu.pipeline_mode<synchronous>, transform_indices = @transform_2, window_bounds = array<i64: 1, 512>}, {transform_indices = @transform_3, window_bounds = array<i64: 8, 512>}, {transform_indices = @transform_4, window_bounds = array<i64: 8, 512>}]} {
    %c0_i32 = arith.constant 0 : i32
    %0 = arith.cmpi eq, %arg1, %c0_i32 : i32
    %1 = arith.extui %0 : i1 to i32
    %c0_i32_0 = arith.constant 0 : i32
    %2 = arith.cmpi ne, %1, %c0_i32_0 : i32
    scf.if %2 {
      %cst_9 = arith.constant 0.000000e+00 : f32
      %12 = vector.broadcast %cst_9 : f32 to vector<8x512xf32>
      %c0_10 = arith.constant 0 : index
      %c0_11 = arith.constant 0 : index
      %13 = vector.load %arg7[%c0_10, %c0_11] : memref<8x512xf32, #tpu.memory_space<vmem>>, vector<8x512xf32>
      tpu.vector_store %arg7[%c0_10, %c0_11], %12 {strides = array<i32>} : memref<8x512xf32, #tpu.memory_space<vmem>>, vector<8x512xf32>,
    } else {
    }
    %c0 = arith.constant 0 : index
    %c0_1 = arith.constant 0 : index
    %3 = vector.load %arg7[%c0, %c0_1] : memref<8x512xf32, #tpu.memory_space<vmem>>, vector<8x512xf32>
    %c0_2 = arith.constant 0 : index
    %c0_3 = arith.constant 0 : index
    %4 = vector.load %arg2[%c0_2, %c0_3] : memref<8x512xbf16, #tpu.memory_space<vmem>>, vector<8x512xbf16>
    %c0_4 = arith.constant 0 : index
    %c0_5 = arith.constant 0 : index
    %5 = vector.load %arg3[%c0_4, %c0_5] : memref<512x512xbf16, #tpu.memory_space<vmem>>, vector<512x512xbf16>
    %cst = arith.constant dense<0.000000e+00> : vector<8x512xf32>
    %6 = tpu.matmul %4, %5, %cst {dimension_numbers = #tpu.dot_dimension_numbers<[1], [0], [0], [1], [0, 0, 1, 1], [], []>} : vector<8x512xbf16>, vector<512x512xbf16>, vector<8x512xf32> -> vector<8x512xf32>
    %7 = arith.addf %3, %6 : vector<8x512xf32>
    %c0_6 = arith.constant 0 : index
    %c0_7 = arith.constant 0 : index
    %8 = vector.load %arg7[%c0_6, %c0_7] : memref<8x512xf32, #tpu.memory_space<vmem>>, vector<8x512xf32>
    tpu.vector_store %arg7[%c0_6, %c0_7], %7 {strides = array<i32>} : memref<8x512xf32, #tpu.memory_space<vmem>>, vector<8x512xf32>,
    %c8_i32 = arith.constant 8 : i32
    %9 = arith.cmpi eq, %arg1, %c8_i32 : i32
    %10 = arith.extui %9 : i1 to i32
    %c0_i32_8 = arith.constant 0 : i32
    %11 = arith.cmpi ne, %10, %c0_i32_8 : i32
    scf.if %11 {
      %c0_9 = arith.constant 0 : index
      %c0_10 = arith.constant 0 : index
      %12 = vector.load %arg7[%c0_9, %c0_10] : memref<8x512xf32, #tpu.memory_space<vmem>>, vector<8x512xf32>
      %c0_11 = arith.constant 0 : index
      %c0_12 = arith.constant 0 : index
      %13 = vector.load %arg4[%c0_11, %c0_12] : memref<1x512xf32, #tpu.memory_space<vmem>>, vector<1x512xf32>
      %14 = vector.broadcast %13 : vector<1x512xf32> to vector<8x512xf32>
      %15 = arith.addf %12, %14 : vector<8x512xf32>
      %c0_13 = arith.constant 0 : index
      %c0_14 = arith.constant 0 : index
      %16 = vector.load %arg5[%c0_13, %c0_14] : memref<8x512xbf16, #tpu.memory_space<vmem>>, vector<8x512xbf16>
      %17 = arith.extf %16 : vector<8x512xbf16> to vector<8x512xf32>
      %18 = arith.addf %15, %17 : vector<8x512xf32>
      %cst_15 = arith.constant 0.000000e+00 : f32
      %19 = vector.broadcast %cst_15 : f32 to vector<8x512xf32>
      %20 = arith.maximumf %18, %19 : vector<8x512xf32>
      %21 = arith.truncf %20 : vector<8x512xf32> to vector<8x512xbf16>
      %c0_16 = arith.constant 0 : index
      %c0_17 = arith.constant 0 : index
      %22 = vector.load %arg6[%c0_16, %c0_17] : memref<8x512xbf16, #tpu.memory_space<vmem>>, vector<8x512xbf16>
      tpu.vector_store %arg6[%c0_16, %c0_17], %21 {strides = array<i32>} : memref<8x512xbf16, #tpu.memory_space<vmem>>, vector<8x512xbf16>,
    } else {
    }
    return
  }
  func.func @transform_0(%arg0: i32, %arg1: i32) -> (i32, i32) {
    %c0_i32 = arith.constant 0 : i32
    return %arg0, %arg1 : i32, i32
  }
  func.func @transform_1(%arg0: i32, %arg1: i32) -> (i32, i32) {
    %c0_i32 = arith.constant 0 : i32
    %c0_i32_0 = arith.constant 0 : i32
    return %arg1, %c0_i32 : i32, i32
  }
  func.func @transform_2(%arg0: i32, %arg1: i32) -> (i32, i32) {
    %c0_i32 = arith.constant 0 : i32
    %c0_i32_0 = arith.constant 0 : i32
    %c0_i32_1 = arith.constant 0 : i32
    return %c0_i32, %c0_i32_0 : i32, i32
  }
  func.func @transform_3(%arg0: i32, %arg1: i32) -> (i32, i32) {
    %c0_i32 = arith.constant 0 : i32
    %c0_i32_0 = arith.constant 0 : i32
    return %arg0, %c0_i32 : i32, i32
  }
  func.func @transform_4(%arg0: i32, %arg1: i32) -> (i32, i32) {
    %c0_i32 = arith.constant 0 : i32
    %c0_i32_0 = arith.constant 0 : i32
    return %arg0, %c0_i32 : i32, i32
  }
}

module attributes {stable_mosaic.version = 11 : i64} {
  func.func @_matmul_bias_act_kernel(%arg0: i32, %arg1: i32, %arg2: memref<8x512xbf16, #tpu.memory_space<vmem>>, %arg3: memref<512x512xbf16, #tpu.memory_space<vmem>>, %arg4: memref<1x512xf32, #tpu.memory_space<vmem>>, %arg5: memref<8x512xbf16, #tpu.memory_space<vmem>>, %arg6: memref<8x512xf32, #tpu.memory_space<vmem>>) attributes {dimension_semantics = [#tpu.dimension_semantics<parallel>, #tpu.dimension_semantics<arbitrary>], iteration_bounds = array<i64: 1, 9>, scalar_prefetch = 0 : i64, scratch_operands = 1 : i64, tpu.core_type = #tpu.core_type<tc>, window_params = [{transform_indices = @transform_0, window_bounds = array<i64: 8, 512>}, {transform_indices = @transform_1, window_bounds = array<i64: 512, 512>}, {pipeline_mode = #tpu.pipeline_mode<synchronous>, transform_indices = @transform_2, window_bounds = array<i64: 1, 512>}, {transform_indices = @transform_3, window_bounds = array<i64: 8, 512>}]} {
    %c0_i32 = arith.constant 0 : i32
    %0 = arith.cmpi eq, %arg1, %c0_i32 : i32
    %1 = arith.extui %0 : i1 to i32
    %c0_i32_0 = arith.constant 0 : i32
    %2 = arith.cmpi ne, %1, %c0_i32_0 : i32
    scf.if %2 {
      %cst_9 = arith.constant 0.000000e+00 : f32
      %12 = vector.broadcast %cst_9 : f32 to vector<8x512xf32>
      %c0_10 = arith.constant 0 : index
      %c0_11 = arith.constant 0 : index
      %13 = vector.load %arg6[%c0_10, %c0_11] : memref<8x512xf32, #tpu.memory_space<vmem>>, vector<8x512xf32>
      tpu.vector_store %arg6[%c0_10, %c0_11], %12 {strides = array<i32>} : memref<8x512xf32, #tpu.memory_space<vmem>>, vector<8x512xf32>,
    } else {
    }
    %c0 = arith.constant 0 : index
    %c0_1 = arith.constant 0 : index
    %3 = vector.load %arg6[%c0, %c0_1] : memref<8x512xf32, #tpu.memory_space<vmem>>, vector<8x512xf32>
    %c0_2 = arith.constant 0 : index
    %c0_3 = arith.constant 0 : index
    %4 = vector.load %arg2[%c0_2, %c0_3] : memref<8x512xbf16, #tpu.memory_space<vmem>>, vector<8x512xbf16>
    %c0_4 = arith.constant 0 : index
    %c0_5 = arith.constant 0 : index
    %5 = vector.load %arg3[%c0_4, %c0_5] : memref<512x512xbf16, #tpu.memory_space<vmem>>, vector<512x512xbf16>
    %cst = arith.constant dense<0.000000e+00> : vector<8x512xf32>
    %6 = tpu.matmul %4, %5, %cst {dimension_numbers = #tpu.dot_dimension_numbers<[1], [0], [0], [1], [0, 0, 1, 1], [], []>} : vector<8x512xbf16>, vector<512x512xbf16>, vector<8x512xf32> -> vector<8x512xf32>
    %7 = arith.addf %3, %6 : vector<8x512xf32>
    %c0_6 = arith.constant 0 : index
    %c0_7 = arith.constant 0 : index
    %8 = vector.load %arg6[%c0_6, %c0_7] : memref<8x512xf32, #tpu.memory_space<vmem>>, vector<8x512xf32>
    tpu.vector_store %arg6[%c0_6, %c0_7], %7 {strides = array<i32>} : memref<8x512xf32, #tpu.memory_space<vmem>>, vector<8x512xf32>,
    %c8_i32 = arith.constant 8 : i32
    %9 = arith.cmpi eq, %arg1, %c8_i32 : i32
    %10 = arith.extui %9 : i1 to i32
    %c0_i32_8 = arith.constant 0 : i32
    %11 = arith.cmpi ne, %10, %c0_i32_8 : i32
    scf.if %11 {
      %c0_9 = arith.constant 0 : index
      %c0_10 = arith.constant 0 : index
      %12 = vector.load %arg6[%c0_9, %c0_10] : memref<8x512xf32, #tpu.memory_space<vmem>>, vector<8x512xf32>
      %c0_11 = arith.constant 0 : index
      %c0_12 = arith.constant 0 : index
      %13 = vector.load %arg4[%c0_11, %c0_12] : memref<1x512xf32, #tpu.memory_space<vmem>>, vector<1x512xf32>
      %14 = vector.broadcast %13 : vector<1x512xf32> to vector<8x512xf32>
      %15 = arith.addf %12, %14 : vector<8x512xf32>
      %cst_13 = arith.constant 0.000000e+00 : f32
      %16 = vector.broadcast %cst_13 : f32 to vector<8x512xf32>
      %17 = arith.maximumf %15, %16 : vector<8x512xf32>
      %18 = arith.truncf %17 : vector<8x512xf32> to vector<8x512xbf16>
      %c0_14 = arith.constant 0 : index
      %c0_15 = arith.constant 0 : index
      %19 = vector.load %arg5[%c0_14, %c0_15] : memref<8x512xbf16, #tpu.memory_space<vmem>>, vector<8x512xbf16>
      tpu.vector_store %arg5[%c0_14, %c0_15], %18 {strides = array<i32>} : memref<8x512xbf16, #tpu.memory_space<vmem>>, vector<8x512xbf16>,
    } else {
    }
    return
  }
  func.func @transform_0(%arg0: i32, %arg1: i32) -> (i32, i32) {
    %c0_i32 = arith.constant 0 : i32
    return %arg0, %arg1 : i32, i32
  }
  func.func @transform_1(%arg0: i32, %arg1: i32) -> (i32, i32) {
    %c0_i32 = arith.constant 0 : i32
    %c0_i32_0 = arith.constant 0 : i32
    return %arg1, %c0_i32 : i32, i32
  }
  func.func @transform_2(%arg0: i32, %arg1: i32) -> (i32, i32) {
    %c0_i32 = arith.constant 0 : i32
    %c0_i32_0 = arith.constant 0 : i32
    %c0_i32_1 = arith.constant 0 : i32
    return %c0_i32, %c0_i32_0 : i32, i32
  }
  func.func @transform_3(%arg0: i32, %arg1: i32) -> (i32, i32) {
    %c0_i32 = arith.constant 0 : i32
    %c0_i32_0 = arith.constant 0 : i32
    return %arg0, %c0_i32 : i32, i32
  }
}

module attributes {stable_mosaic.version = 11 : i64} {
  func.func @_avgpool_linear_kernel(%arg0: memref<2x1x512xbf16, #tpu.memory_space<vmem>>, %arg1: memref<512x1024xbf16, #tpu.memory_space<vmem>>, %arg2: memref<1x1024xf32, #tpu.memory_space<vmem>>, %arg3: memref<2x1024xf32, #tpu.memory_space<vmem>>) attributes {dimension_semantics = [], scalar_prefetch = 0 : i64, scratch_operands = 0 : i64, tpu.core_type = #tpu.core_type<tc>} {
    %c0 = arith.constant 0 : index
    %c0_0 = arith.constant 0 : index
    %c0_1 = arith.constant 0 : index
    %0 = vector.load %arg0[%c0, %c0_0, %c0_1] : memref<2x1x512xbf16, #tpu.memory_space<vmem>>, vector<2x1x512xbf16>
    %1 = arith.extf %0 : vector<2x1x512xbf16> to vector<2x1x512xf32>
    %cst = arith.constant dense<0.000000e+00> : vector<2x512xf32>
    %2 = vector.multi_reduction <add>, %1, %cst [1] : vector<2x1x512xf32> to vector<2x512xf32>
    %cst_2 = arith.constant 1.000000e+00 : f32
    %3 = vector.broadcast %cst_2 : f32 to vector<2x512xf32>
    %4 = arith.divf %2, %3 : vector<2x512xf32>
    %5 = arith.truncf %4 : vector<2x512xf32> to vector<2x512xbf16>
    %c0_3 = arith.constant 0 : index
    %c0_4 = arith.constant 0 : index
    %6 = vector.load %arg1[%c0_3, %c0_4] : memref<512x1024xbf16, #tpu.memory_space<vmem>>, vector<512x1024xbf16>
    %cst_5 = arith.constant dense<0.000000e+00> : vector<2x1024xf32>
    %7 = tpu.matmul %5, %6, %cst_5 {dimension_numbers = #tpu.dot_dimension_numbers<[1], [0], [0], [1], [0, 0, 1, 1], [], []>} : vector<2x512xbf16>, vector<512x1024xbf16>, vector<2x1024xf32> -> vector<2x1024xf32>
    %c0_6 = arith.constant 0 : index
    %c0_7 = arith.constant 0 : index
    %8 = vector.load %arg2[%c0_6, %c0_7] : memref<1x1024xf32, #tpu.memory_space<vmem>>, vector<1x1024xf32>
    %9 = vector.broadcast %8 : vector<1x1024xf32> to vector<2x1024xf32>
    %10 = arith.addf %7, %9 : vector<2x1024xf32>
    %c0_8 = arith.constant 0 : index
    %c0_9 = arith.constant 0 : index
    %11 = vector.load %arg3[%c0_8, %c0_9] : memref<2x1024xf32, #tpu.memory_space<vmem>>, vector<2x1024xf32>
    tpu.vector_store %arg3[%c0_8, %c0_9], %10 {strides = array<i32>} : memref<2x1024xf32, #tpu.memory_space<vmem>>, vector<2x1024xf32>,
    return
  }
}

module attributes {stable_mosaic.version = 11 : i64} {
  func.func @_matmul_bias_act_kernel(%arg0: i32, %arg1: i32, %arg2: memref<8x256xbf16, #tpu.memory_space<vmem>>, %arg3: memref<256x512xbf16, #tpu.memory_space<vmem>>, %arg4: memref<1x512xf32, #tpu.memory_space<vmem>>, %arg5: memref<8x512xbf16, #tpu.memory_space<vmem>>, %arg6: memref<8x512xf32, #tpu.memory_space<vmem>>) attributes {dimension_semantics = [#tpu.dimension_semantics<parallel>, #tpu.dimension_semantics<arbitrary>], iteration_bounds = array<i64: 1, 1>, scalar_prefetch = 0 : i64, scratch_operands = 1 : i64, tpu.core_type = #tpu.core_type<tc>, window_params = [{transform_indices = @transform_0, window_bounds = array<i64: 8, 256>}, {transform_indices = @transform_1, window_bounds = array<i64: 256, 512>}, {pipeline_mode = #tpu.pipeline_mode<synchronous>, transform_indices = @transform_2, window_bounds = array<i64: 1, 512>}, {transform_indices = @transform_3, window_bounds = array<i64: 8, 512>}]} {
    %c0_i32 = arith.constant 0 : i32
    %0 = arith.cmpi eq, %arg1, %c0_i32 : i32
    %1 = arith.extui %0 : i1 to i32
    %c0_i32_0 = arith.constant 0 : i32
    %2 = arith.cmpi ne, %1, %c0_i32_0 : i32
    scf.if %2 {
      %cst_10 = arith.constant 0.000000e+00 : f32
      %12 = vector.broadcast %cst_10 : f32 to vector<8x512xf32>
      %c0_11 = arith.constant 0 : index
      %c0_12 = arith.constant 0 : index
      %13 = vector.load %arg6[%c0_11, %c0_12] : memref<8x512xf32, #tpu.memory_space<vmem>>, vector<8x512xf32>
      tpu.vector_store %arg6[%c0_11, %c0_12], %12 {strides = array<i32>} : memref<8x512xf32, #tpu.memory_space<vmem>>, vector<8x512xf32>,
    } else {
    }
    %c0 = arith.constant 0 : index
    %c0_1 = arith.constant 0 : index
    %3 = vector.load %arg6[%c0, %c0_1] : memref<8x512xf32, #tpu.memory_space<vmem>>, vector<8x512xf32>
    %c0_2 = arith.constant 0 : index
    %c0_3 = arith.constant 0 : index
    %4 = vector.load %arg2[%c0_2, %c0_3] : memref<8x256xbf16, #tpu.memory_space<vmem>>, vector<8x256xbf16>
    %c0_4 = arith.constant 0 : index
    %c0_5 = arith.constant 0 : index
    %5 = vector.load %arg3[%c0_4, %c0_5] : memref<256x512xbf16, #tpu.memory_space<vmem>>, vector<256x512xbf16>
    %cst = arith.constant dense<0.000000e+00> : vector<8x512xf32>
    %6 = tpu.matmul %4, %5, %cst {dimension_numbers = #tpu.dot_dimension_numbers<[1], [0], [0], [1], [0, 0, 1, 1], [], []>} : vector<8x256xbf16>, vector<256x512xbf16>, vector<8x512xf32> -> vector<8x512xf32>
    %7 = arith.addf %3, %6 : vector<8x512xf32>
    %c0_6 = arith.constant 0 : index
    %c0_7 = arith.constant 0 : index
    %8 = vector.load %arg6[%c0_6, %c0_7] : memref<8x512xf32, #tpu.memory_space<vmem>>, vector<8x512xf32>
    tpu.vector_store %arg6[%c0_6, %c0_7], %7 {strides = array<i32>} : memref<8x512xf32, #tpu.memory_space<vmem>>, vector<8x512xf32>,
    %c0_i32_8 = arith.constant 0 : i32
    %9 = arith.cmpi eq, %arg1, %c0_i32_8 : i32
    %10 = arith.extui %9 : i1 to i32
    %c0_i32_9 = arith.constant 0 : i32
    %11 = arith.cmpi ne, %10, %c0_i32_9 : i32
    scf.if %11 {
      %c0_10 = arith.constant 0 : index
      %c0_11 = arith.constant 0 : index
      %12 = vector.load %arg6[%c0_10, %c0_11] : memref<8x512xf32, #tpu.memory_space<vmem>>, vector<8x512xf32>
      %c0_12 = arith.constant 0 : index
      %c0_13 = arith.constant 0 : index
      %13 = vector.load %arg4[%c0_12, %c0_13] : memref<1x512xf32, #tpu.memory_space<vmem>>, vector<1x512xf32>
      %14 = vector.broadcast %13 : vector<1x512xf32> to vector<8x512xf32>
      %15 = arith.addf %12, %14 : vector<8x512xf32>
      %16 = arith.truncf %15 : vector<8x512xf32> to vector<8x512xbf16>
      %c0_14 = arith.constant 0 : index
      %c0_15 = arith.constant 0 : index
      %17 = vector.load %arg5[%c0_14, %c0_15] : memref<8x512xbf16, #tpu.memory_space<vmem>>, vector<8x512xbf16>
      tpu.vector_store %arg5[%c0_14, %c0_15], %16 {strides = array<i32>} : memref<8x512xbf16, #tpu.memory_space<vmem>>, vector<8x512xbf16>,
    } else {
    }
    return
  }
  func.func @transform_0(%arg0: i32, %arg1: i32) -> (i32, i32) {
    %c0_i32 = arith.constant 0 : i32
    return %arg0, %arg1 : i32, i32
  }
  func.func @transform_1(%arg0: i32, %arg1: i32) -> (i32, i32) {
    %c0_i32 = arith.constant 0 : i32
    %c0_i32_0 = arith.constant 0 : i32
    return %arg1, %c0_i32 : i32, i32
  }
  func.func @transform_2(%arg0: i32, %arg1: i32) -> (i32, i32) {
    %c0_i32 = arith.constant 0 : i32
    %c0_i32_0 = arith.constant 0 : i32
    %c0_i32_1 = arith.constant 0 : i32
    return %c0_i32, %c0_i32_0 : i32, i32
  }
  func.func @transform_3(%arg0: i32, %arg1: i32) -> (i32, i32) {
    %c0_i32 = arith.constant 0 : i32
    %c0_i32_0 = arith.constant 0 : i32
    return %arg0, %c0_i32 : i32, i32
  }
}

</mosaic_0001>

<bundles_post_ra>
// kernel: resnet_forward.22
= control target key start
LH: loop header
LB: loop body
LE: loop exit
PB: predicated region body
PF: predicated region fallthrough
CT: control target
= control target key end

     0   :  { %vm19_vm0 = vcmask 523264   ;;  %v735_v32 = vmov 0.0   ;;  %vm528_vm1 = vcmask 519168   ;;  %s969_s1 = inlined_call_operand.vmem [shape: bf16[256,64], index: 1, kind: input, shape index: {}]   ;;  %s970_s0 = inlined_call_operand.vmem [shape: bf16[128,256], index: 0, kind: input, shape index: {}]   ;;  %s971_s2 = inlined_call_operand.vmem [shape: f32[1,64], index: 2, kind: input, shape index: {}]   ;;  %s972_s3 = inlined_call_operand.vmem [shape: bf16[128,64], index: 3, kind: output, shape index: {}]  }
   0x1   :  { %v695_v0 = vld [vmem:[%s969_s1 + $0x78] sm:$0xff]   ;;  %v697_v2 = vld [vmem:[%s969_s1 + $0x70] sm:$0xff]   ;;  %v699_v4 = vld [vmem:[%s969_s1 + $0x68] sm:$0xff]   ;;  %20 = vst.msk [vmem:[#allocation2] sm:$0xff] %vm19_vm0, %v735_v32 }
   0x2   :  { %v696_v1 = vld [vmem:[%s969_s1 + $0x38] sm:$0xff]   ;;  %614 = vmatprep.subr.bf16.mxu0 %v695_v0  ;;  %678 = vmatprep.subr.bf16.mxu1 %v695_v0  ;;  %v698_v3 = vld [vmem:[%s969_s1 + $0x30] sm:$0xff]   ;;  %v700_v5 = vld [vmem:[%s969_s1 + $0x28] sm:$0xff]   ;;  %21 = vst.msk [vmem:[#allocation2 + $0x8] sm:$0xff] %vm19_vm0, %v735_v32 }
   0x3   :  { %615 = vmatpush3.bf16.msra.mxu0 %v696_v1  ;;  %686 = vmatpush3.bf16.msra.mxu1 %v696_v1  ;;  %v701_v6 = vld [vmem:[%s969_s1 + $0x60] sm:$0xff]   ;;  %v703_v8 = vld [vmem:[%s969_s1 + $0x58] sm:$0xff]   ;;  %v705_v10 = vld [vmem:[%s969_s1 + $0x50] sm:$0xff]   ;;  %22 = vst.msk [vmem:[#allocation2 + $0x10] sm:$0xff] %vm19_vm0, %v735_v32 }
   0x4   :  { %616 = vmatprep.subr.bf16.mxu0 %v697_v2  ;;  %679 = vmatprep.subr.bf16.mxu1 %v697_v2  ;;  %v702_v7 = vld [vmem:[%s969_s1 + $0x20] sm:$0xff]   ;;  %v704_v9 = vld [vmem:[%s969_s1 + $0x18] sm:$0xff]   ;;  %v706_v13 = vld [vmem:[%s969_s1 + $0x10] sm:$0xff]   ;;  %23 = vst.msk [vmem:[#allocation2 + $0x18] sm:$0xff] %vm19_vm0, %v735_v32 }
   0x5   :  { %v713_v11 = vld [vmem:[%s970_s0 + $0x4] ss:$8 sps:$4 sm:$0xff]   ;;  %v711_v18 = vld [vmem:[%s970_s0] ss:$8 sps:$4 sm:$0xff]   ;;  %v717_v20 = vld [vmem:[%s970_s0 + $0x14] ss:$8 sps:$4 sm:$0xff]  }
   0x6   :  { %v716_v12 = vld [vmem:[%s970_s0 + $0x44] ss:$8 sps:$4 sm:$0xff]   ;;  %308 = vmatprep.mubr.bf16.mxu0 %v713_v11  ;;  %v714_v19 = vld [vmem:[%s970_s0 + $0x40] ss:$8 sps:$4 sm:$0xff]   ;;  %v719_v21 = vld [vmem:[%s970_s0 + $0x54] ss:$8 sps:$4 sm:$0xff]  }
   0x7   :  { %617 = vmatpush3.bf16.msra.mxu0 %v698_v3  ;;  %687 = vmatpush3.bf16.msra.mxu1 %v698_v3  ;;  %v707_v14 = vld [vmem:[%s969_s1 + $0x48] sm:$0xff]   ;;  %v709_v16 = vld [vmem:[%s969_s1 + $0x40] sm:$0xff]   ;;  %v721_v22 = vld [vmem:[%s970_s0 + $0x10] ss:$8 sps:$4 sm:$0xff]   ;;  %24 = vst.msk [vmem:[#allocation2 + $0x20] sm:$0xff] %vm19_vm0, %v735_v32 }
   0x8   :  { %618 = vmatprep.subr.bf16.mxu0 %v699_v4  ;;  %680 = vmatprep.subr.bf16.mxu1 %v699_v4  ;;  %v708_v15 = vld [vmem:[%s969_s1 + $0x8] sm:$0xff]   ;;  %v710_v17 = vld [vmem:[%s969_s1] sm:$0xff]   ;;  %v722_v23 = vld [vmem:[%s970_s0 + $0x50] ss:$8 sps:$4 sm:$0xff]   ;;  %25 = vst.msk [vmem:[#allocation2 + $0x28] sm:$0xff] %vm19_vm0, %v735_v32 }
   0x9   :  { %340 = vmatprep.mubr.bf16.mxu1 %v716_v12  ;;  %v723_v24 = vld [vmem:[%s970_s0 + $0x24] ss:$8 sps:$4 sm:$0xff]   ;;  %v727_v26 = vld [vmem:[%s970_s0 + $0x20] ss:$8 sps:$4 sm:$0xff]   ;;  %v729_v28 = vld [vmem:[%s970_s0 + $0x34] ss:$8 sps:$4 sm:$0xff]  }
   0xa   :  { %v725_v25 = vld [vmem:[%s970_s0 + $0x64] ss:$8 sps:$4 sm:$0xff]   ;;  %v728_v27 = vld [vmem:[%s970_s0 + $0x60] ss:$8 sps:$4 sm:$0xff]   ;;  %v731_v29 = vld [vmem:[%s970_s0 + $0x74] ss:$8 sps:$4 sm:$0xff]  }
   0xb   :  { %619 = vmatpush3.bf16.msra.mxu0 %v700_v5  ;;  %688 = vmatpush3.bf16.msra.mxu1 %v700_v5  ;;  %v733_v30 = vld [vmem:[%s970_s0 + $0x30] ss:$8 sps:$4 sm:$0xff]   ;;  %26 = vst.msk [vmem:[#allocation2 + $0x30] sm:$0xff] %vm19_vm0, %v735_v32  ;;  %27 = vst.msk [vmem:[#allocation2 + $0x38] sm:$0xff] %vm19_vm0, %v735_v32  ;;  %v36_v35 = vld [vmem:[#allocation2] sm:$0xff] }
   0xc   :  { %620 = vmatprep.subr.bf16.mxu0 %v701_v6  ;;  %681 = vmatprep.subr.bf16.mxu1 %v701_v6  ;;  %v734_v31 = vld [vmem:[%s970_s0 + $0x70] ss:$8 sps:$4 sm:$0xff]   ;;  %28 = vst.msk [vmem:[#allocation2 + $0x40] sm:$0xff] %vm19_vm0, %v735_v32  ;;  %29 = vst.msk [vmem:[#allocation2 + $0x48] sm:$0xff] %vm19_vm0, %v735_v32  ;;  %v37_v45 = vld [vmem:[#allocation2 + $0x8] sm:$0xff] }
   0xd   :  { %30 = vst.msk [vmem:[#allocation2 + $0x50] sm:$0xff] %vm19_vm0, %v735_v32  ;;  %31 = vst.msk [vmem:[#allocation2 + $0x58] sm:$0xff] %vm19_vm0, %v735_v32  ;;  %v38_v55 = vld [vmem:[#allocation2 + $0x10] sm:$0xff]  ;;  %v875_v61 = vld [vmem:[%s971_s2] ss:$0 sm:$0xff] }
   0xe   :  { %32 = vst.msk [vmem:[#allocation2 + $0x60] sm:$0xff] %vm19_vm0, %v735_v32  ;;  %33 = vst.msk [vmem:[#allocation2 + $0x68] sm:$0xff] %vm19_vm0, %v735_v32  ;;  %v39_v2 = vld [vmem:[#allocation2 + $0x18] sm:$0xff] }
   0xf   :  { %621 = vmatpush3.bf16.msra.mxu0 %v702_v7  ;;  %689 = vmatpush3.bf16.msra.mxu1 %v702_v7  ;;  %34 = vst.msk [vmem:[#allocation2 + $0x70] sm:$0xff] %vm19_vm0, %v735_v32  ;;  %35 = vst.msk [vmem:[#allocation2 + $0x78] sm:$0xff] %vm19_vm0, %v735_v32 }
  0x10   :  { %622 = vmatprep.subr.bf16.mxu0 %v703_v8  ;;  %682 = vmatprep.subr.bf16.mxu1 %v703_v8 }
  0x13   :  { %623 = vmatpush3.bf16.msra.mxu0 %v704_v9  ;;  %690 = vmatpush3.bf16.msra.mxu1 %v704_v9  ;;  %v44_v37 = vld [vmem:[#allocation2 + $0x40] sm:$0xff]  ;;  %v45_v47 = vld [vmem:[#allocation2 + $0x48] sm:$0xff] }
  0x14   :  { %624 = vmatprep.subr.bf16.mxu0 %v705_v10  ;;  %683 = vmatprep.subr.bf16.mxu1 %v705_v10  ;;  %v46_v57 = vld [vmem:[#allocation2 + $0x50] sm:$0xff]  ;;  %v47_v6 = vld [vmem:[#allocation2 + $0x58] sm:$0xff] }
  0x17   :  { %625 = vmatpush3.bf16.msra.mxu0 %v706_v13  ;;  %691 = vmatpush3.bf16.msra.mxu1 %v706_v13 }
  0x18   :  { %626 = vmatprep.subr.bf16.mxu0 %v707_v14  ;;  %684 = vmatprep.subr.bf16.mxu1 %v707_v14 }
  0x1b   :  { %627 = vmatpush3.bf16.msra.mxu0 %v708_v15  ;;  %692 = vmatpush3.bf16.msra.mxu1 %v708_v15 }
  0x1c   :  { %628 = vmatprep.subr.bf16.mxu0 %v709_v16  ;;  %685 = vmatprep.subr.bf16.mxu1 %v709_v16 }
  0x1f   :  { %629 = vmatpush3.bf16.msra.mxu0 %v710_v17  ;;  %693 = vmatpush3.bf16.msra.mxu1 %v710_v17 }
  0x22   :  { %309 = vmatmul.mubr.bf16.vlgmr.msra.gmra.mxu0 %v711_v18  ;;  %341 = vmatmul.mubr.bf16.vlgmr.msra.gmra.mxu1 %v714_v19 }
  0x23   :  { %316 = vmatprep.mubr.bf16.mxu0 %v717_v20  ;;  %348 = vmatprep.mubr.bf16.mxu1 %v719_v21 }
  0x2a   :  { %317 = vmatmul.mubr.bf16.gmra.mxu0 %v721_v22  ;;  %349 = vmatmul.mubr.bf16.gmra.mxu1 %v722_v23 }
  0x2b   :  { %324 = vmatprep.mubr.bf16.mxu0 %v723_v24  ;;  %356 = vmatprep.mubr.bf16.mxu1 %v725_v25 }
  0x32   :  { %325 = vmatmul.mubr.bf16.gmra.mxu0 %v727_v26  ;;  %357 = vmatmul.mubr.bf16.gmra.mxu1 %v728_v27  ;;  %v40_v26 = vld [vmem:[#allocation2 + $0x20] sm:$0xff] }
  0x33   :  { %332 = vmatprep.mubr.bf16.mxu0 %v729_v28  ;;  %364 = vmatprep.mubr.bf16.mxu1 %v731_v29  ;;  %v48_v27 = vld [vmem:[#allocation2 + $0x60] sm:$0xff] }
  0x3a   :  { %333 = vmatmul.mubr.bf16.gmra.mxu0 %v733_v30  ;;  %365 = vmatmul.mubr.bf16.gmra.mxu1 %v734_v31 }
  0xe2   :  { %v630_v33 = vpop.f32.mrf.mxu0  ;;  %v654_v34 = vpop.f32.mrf.mxu1 }
  0xe4   :  { %v631_v36 = vpop.f32.mrf.mxu0  ;;  %v655_v38 = vpop.f32.mrf.mxu1 }
  0xe5   :  { %v632_v39 = vadd.f32 %v631_v36, %v630_v33  ;;  %v656_v40 = vadd.f32 %v655_v38, %v654_v34 }
  0xe6   :  { %v633_v41 = vpop.f32.mrf.mxu0  ;;  %v657_v42 = vpop.f32.mrf.mxu1 }
  0xe7   :  { %v373_v43 = vadd.f32 %v632_v39, %v36_v35  ;;  %v381_v44 = vadd.f32 %v656_v40, %v44_v37 }
  0xe8   :  { %v634_v46 = vpop.f32.mrf.mxu0  ;;  %v658_v48 = vpop.f32.mrf.mxu1 }
  0xe9   :  { %390 = vst.msk [vmem:[#allocation2] sm:$0xff] %vm19_vm0, %v373_v43  ;;  %398 = vst.msk [vmem:[#allocation2 + $0x40] sm:$0xff] %vm19_vm0, %v381_v44  ;;  %v635_v49 = vadd.f32 %v634_v46, %v633_v41  ;;  %v659_v50 = vadd.f32 %v658_v48, %v657_v42  ;;  %v41_v44 = vld [vmem:[#allocation2 + $0x28] sm:$0xff] }
  0xea   :  { %v636_v51 = vpop.f32.mrf.mxu0  ;;  %v660_v52 = vpop.f32.mrf.mxu1 }
  0xeb   :  { %v374_v53 = vadd.f32 %v635_v49, %v37_v45  ;;  %v382_v54 = vadd.f32 %v659_v50, %v45_v47  ;;  %v49_v45 = vld [vmem:[#allocation2 + $0x68] sm:$0xff] }
  0xec   :  { %v637_v56 = vpop.f32.mrf.mxu0  ;;  %v661_v58 = vpop.f32.mrf.mxu1 }
  0xed   :  { %391 = vst.msk [vmem:[#allocation2 + $0x8] sm:$0xff] %vm19_vm0, %v374_v53  ;;  %399 = vst.msk [vmem:[#allocation2 + $0x48] sm:$0xff] %vm19_vm0, %v382_v54  ;;  %v638_v59 = vadd.f32 %v637_v56, %v636_v51  ;;  %v662_v60 = vadd.f32 %v661_v58, %v660_v52 }
  0xee   :  { %v639_v62 = vpop.f32.mrf.mxu0  ;;  %v663_v63 = vpop.f32.mrf.mxu1 }
  0xef   :  { %v375_v0 = vadd.f32 %v638_v59, %v38_v55  ;;  %v383_v1 = vadd.f32 %v662_v60, %v46_v57 }
  0xf0   :  { %v409_v3 = vld [vmem:[#allocation2] sm:$0xff]  ;;  %v640_v5 = vpop.f32.mrf.mxu0  ;;  %v664_v7 = vpop.f32.mrf.mxu1 }
  0xf1   :  { %v417_v4 = vld [vmem:[#allocation2 + $0x40] sm:$0xff]  ;;  %v432_v8 = vadd.f32 %v875_v61, %v409_v3  ;;  %392 = vst.msk [vmem:[#allocation2 + $0x10] sm:$0xff] %vm19_vm0, %v375_v0  ;;  %400 = vst.msk [vmem:[#allocation2 + $0x50] sm:$0xff] %vm19_vm0, %v383_v1  ;;  %v641_v10 = vadd.f32 %v640_v5, %v639_v62  ;;  %v665_v11 = vadd.f32 %v664_v7, %v663_v63  ;;  %v42_v63 = vld [vmem:[#allocation2 + $0x30] sm:$0xff] }
  0xf2   :  { %v440_v9 = vadd.f32 %v875_v61, %v417_v4  ;;  %v642_v12 = vpop.f32.mrf.mxu0  ;;  %v666_v13 = vpop.f32.mrf.mxu1  ;;  %v50_v0 = vld [vmem:[#allocation2 + $0x70] sm:$0xff] }
  0xf3   :  { %v448_v14 = vmax.f32 %v432_v8, 0.0  ;;  %v376_v16 = vadd.f32 %v641_v10, %v39_v2  ;;  %v384_v17 = vadd.f32 %v665_v11, %v47_v6  ;;  %v51_v11 = vld [vmem:[#allocation2 + $0x78] sm:$0xff] }
  0xf4   :  { %v456_v15 = vmax.f32 %v440_v9, 0.0  ;;  %v410_v18 = vld [vmem:[#allocation2 + $0x8] sm:$0xff]  ;;  %v643_v20 = vpop.f32.mrf.mxu0  ;;  %v667_v21 = vpop.f32.mrf.mxu1  ;;  %v43_v9 = vld [vmem:[#allocation2 + $0x38] sm:$0xff] }
  0xf5   :  { %v418_v19 = vld [vmem:[#allocation2 + $0x48] sm:$0xff]  ;;  %v598_v22 = vpack.c.bf16 %v448_v14, %v448_v14  ;;  %v433_v24 = vadd.f32 %v875_v61, %v410_v18  ;;  %393 = vst.msk [vmem:[#allocation2 + $0x18] sm:$0xff] %vm19_vm0, %v376_v16  ;;  %401 = vst.msk [vmem:[#allocation2 + $0x58] sm:$0xff] %vm19_vm0, %v384_v17  ;;  %v644_v28 = vadd.f32 %v643_v20, %v642_v12 }
  0xf6   :  { %v606_v23 = vpack.c.bf16 %v456_v15, %v456_v15  ;;  %v441_v25 = vadd.f32 %v875_v61, %v418_v19  ;;  %v668_v29 = vadd.f32 %v667_v21, %v666_v13  ;;  %v645_v30 = vpop.f32.mrf.mxu0  ;;  %v669_v31 = vpop.f32.mrf.mxu1 }
  0xf7   :  { %529 = vst.msk [vmem:[%s972_s3] sm:$0xf] %vm528_vm1, %v598_v22  ;;  %v449_v32 = vmax.f32 %v433_v24, 0.0  ;;  %v377_v36 = vadd.f32 %v644_v28, %v40_v26 }
  0xf8   :  { %537 = vst.msk [vmem:[%s972_s3 + $0x20] sm:$0xf] %vm528_vm1, %v606_v23  ;;  %v457_v33 = vmax.f32 %v441_v25, 0.0  ;;  %v411_v34 = vld [vmem:[#allocation2 + $0x10] sm:$0xff]  ;;  %v385_v37 = vadd.f32 %v668_v29, %v48_v27  ;;  %v646_v38 = vpop.f32.mrf.mxu0  ;;  %v670_v39 = vpop.f32.mrf.mxu1 }
  0xf9   :  { %v419_v35 = vld [vmem:[#allocation2 + $0x50] sm:$0xff]  ;;  %v599_v40 = vpack.c.bf16 %v449_v32, %v449_v32  ;;  %v434_v42 = vadd.f32 %v875_v61, %v411_v34  ;;  %394 = vst.msk [vmem:[#allocation2 + $0x20] sm:$0xff] %vm19_vm0, %v377_v36  ;;  %v647_v46 = vadd.f32 %v646_v38, %v645_v30  ;;  %v671_v47 = vadd.f32 %v670_v39, %v669_v31 }
  0xfa   :  { %v607_v41 = vpack.c.bf16 %v457_v33, %v457_v33  ;;  %v442_v43 = vadd.f32 %v875_v61, %v419_v35  ;;  %402 = vst.msk [vmem:[#allocation2 + $0x60] sm:$0xff] %vm19_vm0, %v385_v37  ;;  %v648_v48 = vpop.f32.mrf.mxu0  ;;  %v672_v49 = vpop.f32.mrf.mxu1 }
  0xfb   :  { %530 = vst.msk [vmem:[%s972_s3 + $0x4] sm:$0xf] %vm528_vm1, %v599_v40  ;;  %v450_v50 = vmax.f32 %v434_v42, 0.0  ;;  %v378_v54 = vadd.f32 %v647_v46, %v41_v44  ;;  %v386_v55 = vadd.f32 %v671_v47, %v49_v45 }
  0xfc   :  { %538 = vst.msk [vmem:[%s972_s3 + $0x24] sm:$0xf] %vm528_vm1, %v607_v41  ;;  %v458_v51 = vmax.f32 %v442_v43, 0.0  ;;  %v412_v52 = vld [vmem:[#allocation2 + $0x18] sm:$0xff]  ;;  %v649_v56 = vpop.f32.mrf.mxu0  ;;  %v673_v57 = vpop.f32.mrf.mxu1 }
  0xfd   :  { %v420_v53 = vld [vmem:[#allocation2 + $0x58] sm:$0xff]  ;;  %v600_v58 = vpack.c.bf16 %v450_v50, %v450_v50  ;;  %v435_v60 = vadd.f32 %v875_v61, %v412_v52  ;;  %395 = vst.msk [vmem:[#allocation2 + $0x28] sm:$0xff] %vm19_vm0, %v378_v54  ;;  %403 = vst.msk [vmem:[#allocation2 + $0x68] sm:$0xff] %vm19_vm0, %v386_v55  ;;  %v650_v1 = vadd.f32 %v649_v56, %v648_v48 }
  0xfe   :  { %v608_v59 = vpack.c.bf16 %v458_v51, %v458_v51  ;;  %v443_v62 = vadd.f32 %v875_v61, %v420_v53  ;;  %v674_v2 = vadd.f32 %v673_v57, %v672_v49  ;;  %v651_v3 = vpop.f32.mrf.mxu0  ;;  %v675_v4 = vpop.f32.mrf.mxu1 }
  0xff   :  { %531 = vst.msk [vmem:[%s972_s3 + $0x8] sm:$0xf] %vm528_vm1, %v600_v58  ;;  %v451_v5 = vmax.f32 %v435_v60, 0.0  ;;  %v379_v7 = vadd.f32 %v650_v1, %v42_v63 }
 0x100   :  { %539 = vst.msk [vmem:[%s972_s3 + $0x28] sm:$0xf] %vm528_vm1, %v608_v59  ;;  %v459_v6 = vmax.f32 %v443_v62, 0.0  ;;  %v387_v8 = vadd.f32 %v674_v2, %v50_v0  ;;  %v652_v10 = vpop.f32.mrf.mxu0  ;;  %v676_v12 = vpop.f32.mrf.mxu1  ;;  %v413_v15 = vld [vmem:[#allocation2 + $0x20] sm:$0xff] }
 0x101   :  { %v601_v13 = vpack.c.bf16 %v451_v5, %v451_v5  ;;  %v421_v16 = vld [vmem:[#allocation2 + $0x60] sm:$0xff]  ;;  %v653_v17 = vadd.f32 %v652_v10, %v651_v3  ;;  %v677_v18 = vadd.f32 %v676_v12, %v675_v4  ;;  %v436_v19 = vadd.f32 %v875_v61, %v413_v15  ;;  %396 = vst.msk [vmem:[#allocation2 + $0x30] sm:$0xff] %vm19_vm0, %v379_v7 }
 0x102   :  { %v609_v14 = vpack.c.bf16 %v459_v6, %v459_v6  ;;  %v444_v20 = vadd.f32 %v875_v61, %v421_v16  ;;  %404 = vst.msk [vmem:[#allocation2 + $0x70] sm:$0xff] %vm19_vm0, %v387_v8 }
 0x103   :  { %532 = vst.msk [vmem:[%s972_s3 + $0xc] sm:$0xf] %vm528_vm1, %v601_v13  ;;  %v380_v21 = vadd.f32 %v653_v17, %v43_v9  ;;  %v388_v22 = vadd.f32 %v677_v18, %v51_v11  ;;  %v452_v23 = vmax.f32 %v436_v19, 0.0 }
 0x104   :  { %540 = vst.msk [vmem:[%s972_s3 + $0x2c] sm:$0xf] %vm528_vm1, %v609_v14  ;;  %v460_v24 = vmax.f32 %v444_v20, 0.0  ;;  %v414_v25 = vld [vmem:[#allocation2 + $0x28] sm:$0xff] }
 0x105   :  { %v422_v26 = vld [vmem:[#allocation2 + $0x68] sm:$0xff]  ;;  %397 = vst.msk [vmem:[#allocation2 + $0x38] sm:$0xff] %vm19_vm0, %v380_v21  ;;  %405 = vst.msk [vmem:[#allocation2 + $0x78] sm:$0xff] %vm19_vm0, %v388_v22  ;;  %v602_v27 = vpack.c.bf16 %v452_v23, %v452_v23  ;;  %v437_v29 = vadd.f32 %v875_v61, %v414_v25 }
 0x106   :  { %v610_v28 = vpack.c.bf16 %v460_v24, %v460_v24  ;;  %v445_v30 = vadd.f32 %v875_v61, %v422_v26 }
 0x107   :  { %533 = vst.msk [vmem:[%s972_s3 + $0x10] sm:$0xf] %vm528_vm1, %v602_v27  ;;  %v453_v31 = vmax.f32 %v437_v29, 0.0 }
 0x108   :  { %541 = vst.msk [vmem:[%s972_s3 + $0x30] sm:$0xf] %vm528_vm1, %v610_v28  ;;  %v461_v32 = vmax.f32 %v445_v30, 0.0  ;;  %v415_v33 = vld [vmem:[#allocation2 + $0x30] sm:$0xff] }
 0x109   :  { %v423_v34 = vld [vmem:[#allocation2 + $0x70] sm:$0xff]  ;;  %v603_v35 = vpack.c.bf16 %v453_v31, %v453_v31  ;;  %v438_v37 = vadd.f32 %v875_v61, %v415_v33 }
 0x10a   :  { %v611_v36 = vpack.c.bf16 %v461_v32, %v461_v32  ;;  %v446_v38 = vadd.f32 %v875_v61, %v423_v34 }
 0x10b   :  { %534 = vst.msk [vmem:[%s972_s3 + $0x14] sm:$0xf] %vm528_vm1, %v603_v35  ;;  %v454_v39 = vmax.f32 %v438_v37, 0.0 }
 0x10c   :  { %542 = vst.msk [vmem:[%s972_s3 + $0x34] sm:$0xf] %vm528_vm1, %v611_v36  ;;  %v462_v40 = vmax.f32 %v446_v38, 0.0  ;;  %v416_v41 = vld [vmem:[#allocation2 + $0x38] sm:$0xff] }
 0x10d   :  { %v424_v42 = vld [vmem:[#allocation2 + $0x78] sm:$0xff]  ;;  %v439_v43 = vadd.f32 %v875_v61, %v416_v41  ;;  %v604_v45 = vpack.c.bf16 %v454_v39, %v454_v39 }
 0x10e   :  { %v447_v44 = vadd.f32 %v875_v61, %v424_v42  ;;  %v612_v46 = vpack.c.bf16 %v462_v40, %v462_v40 }
 0x10f   :  { %v455_v47 = vmax.f32 %v439_v43, 0.0  ;;  %535 = vst.msk [vmem:[%s972_s3 + $0x18] sm:$0xf] %vm528_vm1, %v604_v45 }
 0x110   :  { %v463_v48 = vmax.f32 %v447_v44, 0.0  ;;  %543 = vst.msk [vmem:[%s972_s3 + $0x38] sm:$0xf] %vm528_vm1, %v612_v46 }
 0x111   :  { %v605_v49 = vpack.c.bf16 %v455_v47, %v455_v47 }
 0x112   :  { %v613_v50 = vpack.c.bf16 %v463_v48, %v463_v48 }
 0x113   :  { %536 = vst.msk [vmem:[%s972_s3 + $0x1c] sm:$0xf] %vm528_vm1, %v605_v49 }
 0x114   :  { %544 = vst.msk [vmem:[%s972_s3 + $0x3c] sm:$0xf] %vm528_vm1, %v613_v50 }

// kernel: resnet_forward.24
= control target key start
LH: loop header
LB: loop body
LE: loop exit
PB: predicated region body
PF: predicated region fallthrough
CT: control target
= control target key end

     0   :  { %s995_s12 = smov 0   ;;  %s997_s13 = smov 0   ;;  %s1115_s0 = inlined_call_operand.vmem [shape: bf16[32,768], index: 0, kind: input, shape index: {}]   ;;  %s1116_s1 = inlined_call_operand.vmem [shape: bf16[768,64], index: 1, kind: input, shape index: {}]   ;;  %s1117_s2 = inlined_call_operand.vmem [shape: f32[1,64], index: 2, kind: input, shape index: {}]   ;;  %s1118_s3 = inlined_call_operand.vmem [shape: bf16[32,64], index: 3, kind: output, shape index: {}]  }
   0x1   :  { %s999_s14 = smov 0   ;;  %s1001_s15 = smov 0  }
   0x2   :  { %s1003_s16 = smov 0  }
   0x3 LB: > { %s22_s17 = sadd.s32 1, %s968_s15  ;;  %p41_p1 = scmp.ne.s32.totalorder %s960_s13, %s956_s12  ;;  %s972_s16 = sphi %s1003_s16, %s13_s16   ;;  %s968_s15 = sphi %s1001_s15, %s1122_s15   ;;  %s964_s14 = sphi %s999_s14, %s1121_s14   ;;  %s960_s13 = sphi %s997_s13, %s1120_s13   ;;  %s956_s12 = sphi %s995_s12, %s1119_s12  }
   0x4   : > { %p23_p0 = scmp.ge.s32.totalorder %s22_s17, 2  ;;  %p42_p2 = scmp.eq.s32.totalorder %s972_s16, 0 }
   0x5   : > { %s34_s19 = sadd.s32 1, %s960_s13  ;;  %p743_p5 = scmp.ge.s32.totalorder %s972_s16, 2 }
   0x6   : > { %s1124_s17 = smov (%p23_p0, %s22_s17), 0  ;;  %p43_p3 = por %p42_p2, %p41_p1 }
   0x7   : > { %s30_s18 = ssub.s32 %s968_s15, %s1124_s17  ;;  %143 = sbr.rel (%p743_p5) target bundleno = 21 (0x15), region = 20 }
   0x8   : > { %p32_p4 = scmp.eq.s32.totalorder %s30_s18, 0 }
   0xa   : > { %s1030_s20 = scalar_select %p32_p4, %s960_s13, %s34_s19  }
   0xc   : > { %146 = sbr.rel (!%p43_p3) target bundleno = 21 (0x15), region = 24  ;;  %s148_s21 = sand.u32 (%p43_p3), 1, %s960_s13  }
   0xd   : > { %s796_s22 = smul.u32 (%p43_p3), 12, %s968_s15 }
   0xe   : > { %s859_s23 = smul.u32 (%p43_p3), 48, %s148_s21 }
   0xf   : > { %s156_s26 = scalar_lea.vmem (%p43_p3), %s1115_s0, %s796_s22 }
  0x10   : > { %v171_v0 = vld [vmem:[%s156_s26] sm:$0xff] (%p43_p3)  ;;  %v173_v1 = vld [vmem:[%s156_s26 + $0x18] sm:$0xff] (%p43_p3)  ;;  %v175_v2 = vld [vmem:[%s156_s26 + $0x30] sm:$0xff] (%p43_p3)  ;;  %s150_s27 = scalar_lea.vmem (%p43_p3), [#allocation3], %s859_s23 }
  0x11   : > { %172 = vst [vmem:[%s150_s27] sm:$0xff] %v171_v0  ;;  %174 = vst [vmem:[%s150_s27 + $0xc] sm:$0xff] %v173_v1  ;;  %v177_v3 = vld [vmem:[%s156_s26 + $0x48] sm:$0xff]  ;;  %v747_v5 = vld [vmem:[%s156_s26 + $0x20] sm:$0xf] }
  0x12   : > { %176 = vst [vmem:[%s150_s27 + $0x18] sm:$0xff] %v175_v2  ;;  %v745_v4 = vld [vmem:[%s156_s26 + $0x8] sm:$0xf]  ;;  %178 = vst [vmem:[%s150_s27 + $0x24] sm:$0xff] %v177_v3  ;;  %v749_v6 = vld [vmem:[%s156_s26 + $0x38] sm:$0xf] }
  0x13   : > { %746 = vst [vmem:[%s150_s27 + $0x8] sm:$0xf] %v745_v4  ;;  %748 = vst [vmem:[%s150_s27 + $0x14] sm:$0xf] %v747_v5  ;;  %v751_v7 = vld [vmem:[%s156_s26 + $0x50] sm:$0xf] }
  0x14   : > { %750 = vst [vmem:[%s150_s27 + $0x20] sm:$0xf] %v749_v6  ;;  %752 = vst [vmem:[%s150_s27 + $0x2c] sm:$0xf] %v751_v7 }
  0x15 PF: > { %p753_p6 = scmp.ge.s32.totalorder %s972_s16, 1  ;;  %p208_p7 = scmp.lt.s32.totalorder %s972_s16, 3 }
  0x17   : > { %p209_p8 = pnand %p753_p6, %p208_p7 }
  0x18   : > { %s215_s28 = sand.u32 (!%p209_p8), 1, %s956_s12   ;;  %s245_s29 = smul.u32 (!%p209_p8), 48, %s964_s14 }
  0x19   : > { %212 = sbr.rel (%p209_p8) target bundleno = 299 (0x12b), region = 54  ;;  %p755_p10 = scmp.ne.s32.totalorder (!%p209_p8), %s964_s14, 0 }
  0x1a   : > { %s860_s30 = smul.u32 (!%p209_p8), 48, %s215_s28  ;;  %p246_p9 = scmp.lt.s32.totalorder (!%p209_p8), %s245_s29, 95 }
  0x1c   : > { %s1047_s8 = scalar_lea.vmem (!%p209_p8), [#allocation3], %s860_s30 }
  0x1e   : > { %s1126_s29 = smov (!%p246_p9, %s245_s29), 95  ;;  %261 = sbr.rel (%p755_p10) target bundleno = 38 (0x26), region = 62 }
  0x1f   : > { %s754_s4 = sshll.u32 %s1126_s29, 2 }
  0x20   : > { %s1045_s7 = scalar_lea.vmem %s1116_s1, %s754_s4 }
  0x23   : > { %vm262_vm0 = vcmask 523264   ;;  %v974_v8 = vmov 0.0  }
  0x24   : > { %263 = vst.msk [vmem:[#allocation2] sm:$0xff] %vm262_vm0, %v974_v8  ;;  %264 = vst.msk [vmem:[#allocation2 + $0x8] sm:$0xff] %vm262_vm0, %v974_v8 }
  0x25   : > { %265 = vst.msk [vmem:[#allocation2 + $0x10] sm:$0xff] %vm262_vm0, %v974_v8  ;;  %266 = vst.msk [vmem:[#allocation2 + $0x18] sm:$0xff] %vm262_vm0, %v974_v8 }
  0x26 PF: > { %v902_v9 = vld [vmem:[%s1045_s7 + $0x78] sm:$0xff]   ;;  %v905_v12 = vld [vmem:[%s1045_s7 + $0x70] sm:$0xff]   ;;  %v908_v15 = vld [vmem:[%s1045_s7 + $0x68] sm:$0xff]   ;;  %vm605_vm1 = vcmask 523264   ;;  %p786_p11 = scmp.ne.s32.totalorder %s964_s14, 1 }
  0x27   : > { %v903_v10 = vld [vmem:[%s1045_s7 + $0x38] sm:$0xff]   ;;  %801 = vmatprep.subr.bf16.mxu0 %v902_v9  ;;  %v906_v13 = vld [vmem:[%s1045_s7 + $0x30] sm:$0xff]   ;;  %v909_v16 = vld [vmem:[%s1045_s7 + $0x28] sm:$0xff]  }
  0x28   : > { %v904_v11 = vld [vmem:[%s1045_s7 + $0xb8] sm:$0xff]   ;;  %802 = vmatpush3.bf16.msra.mxu0 %v903_v10  ;;  %v907_v14 = vld [vmem:[%s1045_s7 + $0xb0] sm:$0xff]   ;;  %v910_v17 = vld [vmem:[%s1045_s7 + $0xa8] sm:$0xff]  }
  0x29   : > { %839 = vmatprep.subr.bf16.mxu1 %v904_v11  ;;  %803 = vmatprep.subr.bf16.mxu0 %v905_v12  ;;  %v911_v18 = vld [vmem:[%s1045_s7 + $0x60] sm:$0xff]   ;;  %v914_v21 = vld [vmem:[%s1045_s7 + $0x58] sm:$0xff]   ;;  %v917_v24 = vld [vmem:[%s1045_s7 + $0x50] sm:$0xff]  }
  0x2a   : > { %840 = vmatpush3.bf16.msra.mxu1 %v904_v11  ;;  %v912_v19 = vld [vmem:[%s1045_s7 + $0x20] sm:$0xff]   ;;  %v916_v22 = vld [vmem:[%s1045_s7 + $0x98] sm:$0xff]   ;;  %v919_v25 = vld [vmem:[%s1045_s7 + $0x90] sm:$0xff]  }
  0x2b   : > { %841 = vmatprep.subr.bf16.mxu1 %v907_v14  ;;  %v913_v20 = vld [vmem:[%s1045_s7 + $0xa0] sm:$0xff]   ;;  %v915_v23 = vld [vmem:[%s1045_s7 + $0x18] sm:$0xff]   ;;  %v918_v26 = vld [vmem:[%s1045_s7 + $0x10] sm:$0xff]  }
  0x2c   : > { %804 = vmatpush3.bf16.msra.mxu0 %v906_v13  ;;  %v920_v27 = vld [vmem:[%s1045_s7 + $0x48] sm:$0xff]   ;;  %v923_v30 = vld [vmem:[%s1045_s7 + $0x40] sm:$0xff]   ;;  %v269_v58 = vld [vmem:[#allocation2 + $0x10] sm:$0xff] }
  0x2d   : > { %805 = vmatprep.subr.bf16.mxu0 %v908_v15  ;;  %v921_v28 = vld [vmem:[%s1045_s7 + $0x8] sm:$0xff]   ;;  %v925_v31 = vld [vmem:[%s1045_s7 + $0x80] sm:$0xff]   ;;  %v270_v0 = vld [vmem:[#allocation2 + $0x18] sm:$0xff] }
  0x2e   : > { %842 = vmatpush3.bf16.msra.mxu1 %v907_v14  ;;  %v922_v29 = vld [vmem:[%s1045_s7 + $0x88] sm:$0xff]   ;;  %v928_v32 = vld [vmem:[%s1047_s8 + $0x4] ss:$12 sps:$4 sm:$0xff]  }
  0x2f   : > { %843 = vmatprep.subr.bf16.mxu1 %v910_v17  ;;  %v929_v33 = vld [vmem:[%s1047_s8 + $0x8] ss:$12 sps:$4 sm:$0xff]   ;;  %535 = vmatprep.mubr.bf16.mxu0 %v928_v32  ;;  %v926_v35 = vld [vmem:[%s1047_s8] ss:$12 sps:$4 sm:$0xff]   ;;  %v933_v38 = vld [vmem:[%s1047_s8 + $0x18] ss:$12 sps:$4 sm:$0xff]  }
  0x30   : > { %806 = vmatpush3.bf16.msra.mxu0 %v909_v16  ;;  %v924_v34 = vld [vmem:[%s1045_s7] sm:$0xff]   ;;  %855 = vmatprep.mubr.bf16.mxu1 %v929_v33  ;;  %v931_v36 = vld [vmem:[%s1047_s8 + $0x1c] ss:$12 sps:$4 sm:$0xff]  }
  0x31   : > { %807 = vmatprep.subr.bf16.mxu0 %v911_v18  ;;  %v930_v37 = vld [vmem:[%s1047_s8 + $0x20] ss:$12 sps:$4 sm:$0xff]  }
  0x32   : > { %844 = vmatpush3.bf16.msra.mxu1 %v910_v17  ;;  %v267_v44 = vld [vmem:[#allocation2] sm:$0xff]  ;;  %v268_v52 = vld [vmem:[#allocation2 + $0x8] sm:$0xff] }
  0x33   : > { %845 = vmatprep.subr.bf16.mxu1 %v913_v20 }
  0x34   : > { %808 = vmatpush3.bf16.msra.mxu0 %v912_v19 }
  0x35   : > { %809 = vmatprep.subr.bf16.mxu0 %v914_v21 }
  0x36   : > { %846 = vmatpush3.bf16.msra.mxu1 %v913_v20 }
  0x37   : > { %847 = vmatprep.subr.bf16.mxu1 %v916_v22 }
  0x38   : > { %810 = vmatpush3.bf16.msra.mxu0 %v915_v23 }
  0x39   : > { %811 = vmatprep.subr.bf16.mxu0 %v917_v24 }
  0x3a   : > { %848 = vmatpush3.bf16.msra.mxu1 %v916_v22 }
  0x3b   : > { %849 = vmatprep.subr.bf16.mxu1 %v919_v25 }
  0x3c   : > { %812 = vmatpush3.bf16.msra.mxu0 %v918_v26 }
  0x3d   : > { %813 = vmatprep.subr.bf16.mxu0 %v920_v27 }
  0x3e   : > { %850 = vmatpush3.bf16.msra.mxu1 %v919_v25 }
  0x3f   : > { %851 = vmatprep.subr.bf16.mxu1 %v922_v29 }
  0x40   : > { %814 = vmatpush3.bf16.msra.mxu0 %v921_v28 }
  0x41   : > { %815 = vmatprep.subr.bf16.mxu0 %v923_v30 }
  0x42   : > { %852 = vmatpush3.bf16.msra.mxu1 %v922_v29 }
  0x43   : > { %853 = vmatprep.subr.bf16.mxu1 %v925_v31 }
  0x44   : > { %816 = vmatpush3.bf16.msra.mxu0 %v924_v34 }
  0x46   : > { %854 = vmatpush3.bf16.msra.mxu1 %v925_v31 }
  0x47   : > { %536 = vmatmul.mubr.bf16.vlgmr.msra.gmra.mxu0 %v926_v35 }
  0x48   : > { %543 = vmatprep.mubr.bf16.mxu0 %v931_v36 }
  0x49   : > { %856 = vmatmul.mubr.bf16.vlgmr.msra.gmra.mxu1 %v930_v37 }
  0x4f   : > { %544 = vmatmul.mubr.bf16.gmra.mxu0 %v933_v38 }
 0x107   : > { %v817_v39 = vpop.f32.mrf.mxu0 }
 0x109   : > { %v818_v40 = vpop.f32.mrf.mxu0  ;;  %v857_v41 = vpop.f32.mrf.mxu1 }
 0x10a   : > { %v819_v42 = vadd.f32 %v818_v40, %v817_v39 }
 0x10b   : > { %v820_v43 = vpop.f32.mrf.mxu0  ;;  %v586_v45 = vpop.f32.mrf.mxu1 }
 0x10c   : > { %v587_v46 = vadd.f32 %v819_v42, %v586_v45 }
 0x10d   : > { %v821_v47 = vpop.f32.mrf.mxu0  ;;  %v858_v48 = vpop.f32.mrf.mxu1 }
 0x10e   : > { %v601_v49 = vadd.f32 %v587_v46, %v267_v44  ;;  %v822_v50 = vadd.f32 %v821_v47, %v820_v43 }
 0x10f   : > { %v823_v51 = vpop.f32.mrf.mxu0  ;;  %v589_v53 = vpop.f32.mrf.mxu1 }
 0x110   : > { %606 = vst.msk [vmem:[#allocation2] sm:$0xff] %vm605_vm1, %v601_v49  ;;  %v590_v54 = vadd.f32 %v822_v50, %v589_v53 }
 0x111   : > { %v824_v55 = vpop.f32.mrf.mxu0 }
 0x112   : > { %v602_v56 = vadd.f32 %v590_v54, %v268_v52  ;;  %v825_v57 = vadd.f32 %v824_v55, %v823_v51 }
 0x113   : > { %v826_v59 = vpop.f32.mrf.mxu0 }
 0x114   : > { %607 = vst.msk [vmem:[#allocation2 + $0x8] sm:$0xff] %vm605_vm1, %v602_v56  ;;  %v595_v60 = vadd.f32 %v857_v41, %v825_v57 }
 0x115   : > { %v827_v61 = vpop.f32.mrf.mxu0 }
 0x116   : > { %v603_v62 = vadd.f32 %v595_v60, %v269_v58  ;;  %v828_v63 = vadd.f32 %v827_v61, %v826_v59 }
 0x118   : > { %608 = vst.msk [vmem:[#allocation2 + $0x10] sm:$0xff] %vm605_vm1, %v603_v62  ;;  %v598_v1 = vadd.f32 %v858_v48, %v828_v63  ;;  %613 = sbr.rel (%p786_p11) target bundleno = 299 (0x12b), region = 66 }
 0x11a   : > { %v604_v2 = vadd.f32 %v598_v1, %v270_v0 }
 0x11c   : > { %609 = vst.msk [vmem:[#allocation2 + $0x18] sm:$0xff] %vm605_vm1, %v604_v2 }
 0x11d   : > { %v614_v3 = vld [vmem:[#allocation2] sm:$0xff]  ;;  %v615_v5 = vld [vmem:[#allocation2 + $0x8] sm:$0xff]  ;;  %vm649_vm2 = vcmask 519168  }
 0x11e   : > { %v787_v4 = vld [vmem:[%s1117_s2] ss:$0 sm:$0xff] }
 0x11f   : > { %v625_v6 = vadd.f32 %v787_v4, %v614_v3  ;;  %v626_v7 = vadd.f32 %v787_v4, %v615_v5  ;;  %v616_v8 = vld [vmem:[#allocation2 + $0x10] sm:$0xff] }
 0x120   : > { %v627_v10 = vadd.f32 %v787_v4, %v616_v8 }
 0x121   : > { %v629_v12 = vmax.f32 %v625_v6, 0.0  ;;  %v630_v13 = vmax.f32 %v626_v7, 0.0 }
 0x122   : > { %v631_v14 = vmax.f32 %v627_v10, 0.0 }
 0x123   : > { %v617_v9 = vld [vmem:[#allocation2 + $0x18] sm:$0xff]  ;;  %v797_v16 = vpack.c.bf16 %v629_v12, %v629_v12  ;;  %v798_v17 = vpack.c.bf16 %v630_v13, %v630_v13 }
 0x124   : > { %v628_v11 = vadd.f32 %v787_v4, %v617_v9  ;;  %v799_v18 = vpack.c.bf16 %v631_v14, %v631_v14 }
 0x125   : > { %650 = vst.msk [vmem:[%s1118_s3] sm:$0xf] %vm649_vm2, %v797_v16  ;;  %651 = vst.msk [vmem:[%s1118_s3 + $0x4] sm:$0xf] %vm649_vm2, %v798_v17 }
 0x126   : > { %v632_v15 = vmax.f32 %v628_v11, 0.0  ;;  %652 = vst.msk [vmem:[%s1118_s3 + $0x8] sm:$0xf] %vm649_vm2, %v799_v18 }
 0x128   : > { %v800_v19 = vpack.c.bf16 %v632_v15, %v632_v15 }
 0x12a   : > { %653 = vst.msk [vmem:[%s1118_s3 + $0xc] sm:$0xf] %vm649_vm2, %v800_v19 }
 0x12b PF: > { %s13_s16 = sadd.s32 1, %s972_s16   ;;  %s1119_s12 = smov %s960_s13 }
 0x12c   : > { %p10_p12 = scmp.ge.s32.totalorder %s13_s16, 4   ;;  %s1120_s13 = smov %s1030_s20 }
 0x12d   : > { %s1121_s14 = smov %s968_s15  ;;  %s1122_s15 = smov %s1124_s17 }
 0x12e   :  { %12 = sbr.rel (!%p10_p12) target bundleno = 3 (0x3), region = 110 }

// kernel: resnet_forward.23
= control target key start
LH: loop header
LB: loop body
LE: loop exit
PB: predicated region body
PF: predicated region fallthrough
CT: control target
= control target key end

     0   :  { %vm84_vm0 = vcmask 519168   ;;  %s259_s0 = inlined_call_operand.vmem [shape: bf16[9,32,64], index: 0, kind: input, shape index: {}]   ;;  %s260_s1 = inlined_call_operand.vmem [shape: bf16[32,64], index: 1, kind: output, shape index: {}]  }
   0x1   :  { %v8_v0 = vld [vmem:[%s259_s0] sm:$0xf]  ;;  %v93_v1 = vld [vmem:[%s259_s0 + $0x10] sm:$0xf]  ;;  %v9_v6 = vld [vmem:[%s259_s0 + $0x4] sm:$0xf] }
   0x2   :  { %v97_v2 = vld [vmem:[%s259_s0 + $0x20] sm:$0xf]  ;;  %v17_v3 = vmax.bf16 %v93_v1, %v8_v0  ;;  %v101_v4 = vld [vmem:[%s259_s0 + $0x30] sm:$0xf]  ;;  %v94_v7 = vld [vmem:[%s259_s0 + $0x14] sm:$0xf] }
   0x3   :  { %v98_v8 = vld [vmem:[%s259_s0 + $0x24] sm:$0xf]  ;;  %v105_v9 = vld [vmem:[%s259_s0 + $0x40] sm:$0xf]  ;;  %v18_v10 = vmax.bf16 %v94_v7, %v9_v6  ;;  %v109_v12 = vld [vmem:[%s259_s0 + $0x50] sm:$0xf] }
   0x4   :  { %v26_v5 = vmax.bf16 %v97_v2, %v17_v3  ;;  %v102_v13 = vld [vmem:[%s259_s0 + $0x34] sm:$0xf]  ;;  %v10_v15 = vld [vmem:[%s259_s0 + $0x8] sm:$0xf]  ;;  %v95_v16 = vld [vmem:[%s259_s0 + $0x18] sm:$0xf] }
   0x5   :  { %v27_v14 = vmax.bf16 %v98_v8, %v18_v10  ;;  %v99_v17 = vld [vmem:[%s259_s0 + $0x28] sm:$0xf]  ;;  %v106_v19 = vld [vmem:[%s259_s0 + $0x44] sm:$0xf]  ;;  %v19_v20 = vmax.bf16 %v95_v16, %v10_v15  ;;  %v113_v21 = vld [vmem:[%s259_s0 + $0x60] sm:$0xf] }
   0x6   :  { %v35_v11 = vmax.bf16 %v101_v4, %v26_v5  ;;  %v110_v23 = vld [vmem:[%s259_s0 + $0x54] sm:$0xf]  ;;  %v103_v24 = vld [vmem:[%s259_s0 + $0x38] sm:$0xf]  ;;  %v11_v27 = vld [vmem:[%s259_s0 + $0xc] sm:$0xf] }
   0x7   :  { %v36_v22 = vmax.bf16 %v102_v13, %v27_v14  ;;  %v28_v26 = vmax.bf16 %v99_v17, %v19_v20  ;;  %v96_v28 = vld [vmem:[%s259_s0 + $0x1c] sm:$0xf]  ;;  %v100_v29 = vld [vmem:[%s259_s0 + $0x2c] sm:$0xf]  ;;  %v117_v30 = vld [vmem:[%s259_s0 + $0x70] sm:$0xf] }
   0x8   :  { %v44_v18 = vmax.bf16 %v105_v9, %v35_v11  ;;  %v107_v32 = vld [vmem:[%s259_s0 + $0x48] sm:$0xf]  ;;  %v20_v33 = vmax.bf16 %v96_v28, %v11_v27  ;;  %v114_v35 = vld [vmem:[%s259_s0 + $0x64] sm:$0xf]  ;;  %v104_v37 = vld [vmem:[%s259_s0 + $0x3c] sm:$0xf] }
   0x9   :  { %v45_v31 = vmax.bf16 %v106_v19, %v36_v22  ;;  %v37_v36 = vmax.bf16 %v103_v24, %v28_v26  ;;  %v121_v38 = vld [vmem:[%s259_s0 + $0x80] sm:$0xf]  ;;  %v111_v40 = vld [vmem:[%s259_s0 + $0x58] sm:$0xf]  ;;  %v118_v43 = vld [vmem:[%s259_s0 + $0x74] sm:$0xf] }
   0xa   :  { %v53_v25 = vmax.bf16 %v109_v12, %v44_v18  ;;  %v29_v41 = vmax.bf16 %v100_v29, %v20_v33  ;;  %v108_v45 = vld [vmem:[%s259_s0 + $0x4c] sm:$0xf]  ;;  %v115_v47 = vld [vmem:[%s259_s0 + $0x68] sm:$0xf]  ;;  %v122_v50 = vld [vmem:[%s259_s0 + $0x84] sm:$0xf] }
   0xb   :  { %v54_v39 = vmax.bf16 %v110_v23, %v45_v31  ;;  %v46_v44 = vmax.bf16 %v107_v32, %v37_v36  ;;  %v112_v52 = vld [vmem:[%s259_s0 + $0x5c] sm:$0xf]  ;;  %v119_v54 = vld [vmem:[%s259_s0 + $0x78] sm:$0xf]  ;;  %v116_v57 = vld [vmem:[%s259_s0 + $0x6c] sm:$0xf] }
   0xc   :  { %v62_v34 = vmax.bf16 %v113_v21, %v53_v25  ;;  %v38_v48 = vmax.bf16 %v104_v37, %v29_v41  ;;  %v123_v59 = vld [vmem:[%s259_s0 + $0x88] sm:$0xf]  ;;  %v120_v62 = vld [vmem:[%s259_s0 + $0x7c] sm:$0xf]  ;;  %v124_v1 = vld [vmem:[%s259_s0 + $0x8c] sm:$0xf] }
   0xd   :  { %v63_v46 = vmax.bf16 %v114_v35, %v54_v39  ;;  %v55_v51 = vmax.bf16 %v111_v40, %v46_v44 }
   0xe   :  { %v71_v42 = vmax.bf16 %v117_v30, %v62_v34  ;;  %v47_v55 = vmax.bf16 %v108_v45, %v38_v48 }
   0xf   :  { %v72_v53 = vmax.bf16 %v118_v43, %v63_v46  ;;  %v64_v56 = vmax.bf16 %v115_v47, %v55_v51 }
  0x10   :  { %v80_v49 = vmax.bf16 %v121_v38, %v71_v42  ;;  %v56_v60 = vmax.bf16 %v112_v52, %v47_v55 }
  0x11   :  { %v81_v58 = vmax.bf16 %v122_v50, %v72_v53  ;;  %v73_v61 = vmax.bf16 %v119_v54, %v64_v56 }
  0x12   :  { %85 = vst.msk [vmem:[%s260_s1] sm:$0xf] %vm84_vm0, %v80_v49  ;;  %v65_v63 = vmax.bf16 %v116_v57, %v56_v60 }
  0x13   :  { %86 = vst.msk [vmem:[%s260_s1 + $0x4] sm:$0xf] %vm84_vm0, %v81_v58  ;;  %v82_v0 = vmax.bf16 %v123_v59, %v73_v61 }
  0x14   :  { %v74_v2 = vmax.bf16 %v120_v62, %v65_v63 }
  0x15   :  { %87 = vst.msk [vmem:[%s260_s1 + $0x8] sm:$0xf] %vm84_vm0, %v82_v0 }
  0x16   :  { %v83_v3 = vmax.bf16 %v124_v1, %v74_v2 }
  0x18   :  { %88 = vst.msk [vmem:[%s260_s1 + $0xc] sm:$0xf] %vm84_vm0, %v83_v3 }

// kernel: resnet_forward.25
= control target key start
LH: loop header
LB: loop body
LE: loop exit
PB: predicated region body
PF: predicated region fallthrough
CT: control target
= control target key end

     0   :  { %s1086_s15 = smov 0   ;;  %s1088_s16 = smov 0   ;;  %s1212_s0 = inlined_call_operand.vmem [shape: bf16[32,768], index: 0, kind: input, shape index: {}]   ;;  %s1213_s1 = inlined_call_operand.vmem [shape: bf16[768,64], index: 1, kind: input, shape index: {}]   ;;  %s1214_s2 = inlined_call_operand.vmem [shape: f32[1,64], index: 2, kind: input, shape index: {}]   ;;  %s1215_s3 = inlined_call_operand.vmem [shape: bf16[32,64], index: 3, kind: input, shape index: {}]   ;;  %s1216_s4 = inlined_call_operand.vmem [shape: bf16[32,64], index: 4, kind: output, shape index: {}]  }
   0x1   :  { %s1090_s17 = smov 0   ;;  %s1092_s18 = smov 0  }
   0x2   :  { %s1094_s19 = smov 0  }
   0x3 LB: > { %s23_s20 = sadd.s32 1, %s1054_s18  ;;  %p42_p1 = scmp.ne.s32.totalorder %s1046_s16, %s1042_s15  ;;  %s1058_s19 = sphi %s1094_s19, %s14_s19   ;;  %s1054_s18 = sphi %s1092_s18, %s1220_s18   ;;  %s1050_s17 = sphi %s1090_s17, %s1219_s17   ;;  %s1046_s16 = sphi %s1088_s16, %s1218_s16   ;;  %s1042_s15 = sphi %s1086_s15, %s1217_s15  }
   0x4   : > { %p24_p0 = scmp.ge.s32.totalorder %s23_s20, 2  ;;  %p43_p2 = scmp.eq.s32.totalorder %s1058_s19, 0 }
   0x5   : > { %s35_s22 = sadd.s32 1, %s1046_s16  ;;  %p820_p5 = scmp.ge.s32.totalorder %s1058_s19, 2 }
   0x6   : > { %s1222_s20 = smov (%p24_p0, %s23_s20), 0  ;;  %p44_p3 = por %p43_p2, %p42_p1 }
   0x7   : > { %s31_s21 = ssub.s32 %s1054_s18, %s1222_s20  ;;  %179 = sbr.rel (%p820_p5) target bundleno = 21 (0x15), region = 24 }
   0x8   : > { %p33_p4 = scmp.eq.s32.totalorder %s31_s21, 0 }
   0xa   : > { %s1121_s23 = scalar_select %p33_p4, %s1046_s16, %s35_s22  }
   0xc   : > { %182 = sbr.rel (!%p44_p3) target bundleno = 21 (0x15), region = 28  ;;  %s184_s24 = sand.u32 (%p44_p3), 1, %s1046_s16  }
   0xd   : > { %s873_s25 = smul.u32 (%p44_p3), 12, %s1054_s18 }
   0xe   : > { %s945_s26 = smul.u32 (%p44_p3), 48, %s184_s24 }
   0xf   : > { %s192_s29 = scalar_lea.vmem (%p44_p3), %s1212_s0, %s873_s25 }
  0x10   : > { %v207_v0 = vld [vmem:[%s192_s29] sm:$0xff] (%p44_p3)  ;;  %v209_v1 = vld [vmem:[%s192_s29 + $0x18] sm:$0xff] (%p44_p3)  ;;  %v211_v2 = vld [vmem:[%s192_s29 + $0x30] sm:$0xff] (%p44_p3)  ;;  %s186_s30 = scalar_lea.vmem (%p44_p3), [#allocation3], %s945_s26 }
  0x11   : > { %208 = vst [vmem:[%s186_s30] sm:$0xff] %v207_v0  ;;  %210 = vst [vmem:[%s186_s30 + $0xc] sm:$0xff] %v209_v1  ;;  %v213_v3 = vld [vmem:[%s192_s29 + $0x48] sm:$0xff]  ;;  %v824_v5 = vld [vmem:[%s192_s29 + $0x20] sm:$0xf] }
  0x12   : > { %212 = vst [vmem:[%s186_s30 + $0x18] sm:$0xff] %v211_v2  ;;  %v822_v4 = vld [vmem:[%s192_s29 + $0x8] sm:$0xf]  ;;  %214 = vst [vmem:[%s186_s30 + $0x24] sm:$0xff] %v213_v3  ;;  %v826_v6 = vld [vmem:[%s192_s29 + $0x38] sm:$0xf] }
  0x13   : > { %823 = vst [vmem:[%s186_s30 + $0x8] sm:$0xf] %v822_v4  ;;  %825 = vst [vmem:[%s186_s30 + $0x14] sm:$0xf] %v824_v5  ;;  %v828_v7 = vld [vmem:[%s192_s29 + $0x50] sm:$0xf] }
  0x14   : > { %827 = vst [vmem:[%s186_s30 + $0x20] sm:$0xf] %v826_v6  ;;  %829 = vst [vmem:[%s186_s30 + $0x2c] sm:$0xf] %v828_v7 }
  0x15 PF: > { %p830_p6 = scmp.ge.s32.totalorder %s1058_s19, 1  ;;  %p244_p7 = scmp.lt.s32.totalorder %s1058_s19, 3 }
  0x17   : > { %p245_p8 = pnand %p830_p6, %p244_p7 }
  0x18   : > { %s251_s5 = sand.u32 (!%p245_p8), 1, %s1042_s15   ;;  %s288_s6 = smul.u32 (!%p245_p8), 48, %s1050_s17 }
  0x19   : > { %248 = sbr.rel (%p245_p8) target bundleno = 301 (0x12d), region = 58  ;;  %p832_p10 = scmp.ne.s32.totalorder (!%p245_p8), %s1050_s17, 0 }
  0x1a   : > { %s946_s7 = smul.u32 (!%p245_p8), 48, %s251_s5  ;;  %p289_p9 = scmp.lt.s32.totalorder (!%p245_p8), %s288_s6, 95 }
  0x1c   : > { %s1138_s12 = scalar_lea.vmem (!%p245_p8), [#allocation3], %s946_s7 }
  0x1e   : > { %s1224_s6 = smov (!%p289_p9, %s288_s6), 95  ;;  %310 = sbr.rel (%p832_p10) target bundleno = 38 (0x26), region = 66 }
  0x1f   : > { %s831_s8 = sshll.u32 %s1224_s6, 2 }
  0x20   : > { %s1136_s11 = scalar_lea.vmem %s1213_s1, %s831_s8 }
  0x23   : > { %vm311_vm0 = vcmask 523264   ;;  %v1060_v8 = vmov 0.0  }
  0x24   : > { %312 = vst.msk [vmem:[#allocation2] sm:$0xff] %vm311_vm0, %v1060_v8  ;;  %313 = vst.msk [vmem:[#allocation2 + $0x8] sm:$0xff] %vm311_vm0, %v1060_v8 }
  0x25   : > { %314 = vst.msk [vmem:[#allocation2 + $0x10] sm:$0xff] %vm311_vm0, %v1060_v8  ;;  %315 = vst.msk [vmem:[#allocation2 + $0x18] sm:$0xff] %vm311_vm0, %v1060_v8 }
  0x26 PF: > { %v988_v9 = vld [vmem:[%s1136_s11 + $0x78] sm:$0xff]   ;;  %v991_v12 = vld [vmem:[%s1136_s11 + $0x70] sm:$0xff]   ;;  %v994_v15 = vld [vmem:[%s1136_s11 + $0x68] sm:$0xff]   ;;  %vm654_vm1 = vcmask 523264   ;;  %p863_p11 = scmp.ne.s32.totalorder %s1050_s17, 1 }
  0x27   : > { %v989_v10 = vld [vmem:[%s1136_s11 + $0x38] sm:$0xff]   ;;  %887 = vmatprep.subr.bf16.mxu0 %v988_v9  ;;  %v992_v13 = vld [vmem:[%s1136_s11 + $0x30] sm:$0xff]   ;;  %v995_v16 = vld [vmem:[%s1136_s11 + $0x28] sm:$0xff]  }
  0x28   : > { %v990_v11 = vld [vmem:[%s1136_s11 + $0xb8] sm:$0xff]   ;;  %888 = vmatpush3.bf16.msra.mxu0 %v989_v10  ;;  %v993_v14 = vld [vmem:[%s1136_s11 + $0xb0] sm:$0xff]   ;;  %v996_v17 = vld [vmem:[%s1136_s11 + $0xa8] sm:$0xff]  }
  0x29   : > { %925 = vmatprep.subr.bf16.mxu1 %v990_v11  ;;  %889 = vmatprep.subr.bf16.mxu0 %v991_v12  ;;  %v997_v18 = vld [vmem:[%s1136_s11 + $0x60] sm:$0xff]   ;;  %v1000_v21 = vld [vmem:[%s1136_s11 + $0x58] sm:$0xff]   ;;  %v1003_v24 = vld [vmem:[%s1136_s11 + $0x50] sm:$0xff]  }
  0x2a   : > { %926 = vmatpush3.bf16.msra.mxu1 %v990_v11  ;;  %v998_v19 = vld [vmem:[%s1136_s11 + $0x20] sm:$0xff]   ;;  %v1002_v22 = vld [vmem:[%s1136_s11 + $0x98] sm:$0xff]   ;;  %v1005_v25 = vld [vmem:[%s1136_s11 + $0x90] sm:$0xff]  }
  0x2b   : > { %927 = vmatprep.subr.bf16.mxu1 %v993_v14  ;;  %v999_v20 = vld [vmem:[%s1136_s11 + $0xa0] sm:$0xff]   ;;  %v1001_v23 = vld [vmem:[%s1136_s11 + $0x18] sm:$0xff]   ;;  %v1004_v26 = vld [vmem:[%s1136_s11 + $0x10] sm:$0xff]  }
  0x2c   : > { %890 = vmatpush3.bf16.msra.mxu0 %v992_v13  ;;  %v1006_v27 = vld [vmem:[%s1136_s11 + $0x48] sm:$0xff]   ;;  %v1009_v30 = vld [vmem:[%s1136_s11 + $0x40] sm:$0xff]   ;;  %v318_v58 = vld [vmem:[#allocation2 + $0x10] sm:$0xff] }
  0x2d   : > { %891 = vmatprep.subr.bf16.mxu0 %v994_v15  ;;  %v1007_v28 = vld [vmem:[%s1136_s11 + $0x8] sm:$0xff]   ;;  %v1011_v31 = vld [vmem:[%s1136_s11 + $0x80] sm:$0xff]   ;;  %v319_v0 = vld [vmem:[#allocation2 + $0x18] sm:$0xff] }
  0x2e   : > { %928 = vmatpush3.bf16.msra.mxu1 %v993_v14  ;;  %v1008_v29 = vld [vmem:[%s1136_s11 + $0x88] sm:$0xff]   ;;  %v1014_v32 = vld [vmem:[%s1138_s12 + $0x4] ss:$12 sps:$4 sm:$0xff]  }
  0x2f   : > { %929 = vmatprep.subr.bf16.mxu1 %v996_v17  ;;  %v1015_v33 = vld [vmem:[%s1138_s12 + $0x8] ss:$12 sps:$4 sm:$0xff]   ;;  %584 = vmatprep.mubr.bf16.mxu0 %v1014_v32  ;;  %v1012_v35 = vld [vmem:[%s1138_s12] ss:$12 sps:$4 sm:$0xff]   ;;  %v1019_v38 = vld [vmem:[%s1138_s12 + $0x18] ss:$12 sps:$4 sm:$0xff]  }
  0x30   : > { %892 = vmatpush3.bf16.msra.mxu0 %v995_v16  ;;  %v1010_v34 = vld [vmem:[%s1136_s11] sm:$0xff]   ;;  %941 = vmatprep.mubr.bf16.mxu1 %v1015_v33  ;;  %v1017_v36 = vld [vmem:[%s1138_s12 + $0x1c] ss:$12 sps:$4 sm:$0xff]  }
  0x31   : > { %893 = vmatprep.subr.bf16.mxu0 %v997_v18  ;;  %v1016_v37 = vld [vmem:[%s1138_s12 + $0x20] ss:$12 sps:$4 sm:$0xff]  }
  0x32   : > { %930 = vmatpush3.bf16.msra.mxu1 %v996_v17  ;;  %v316_v44 = vld [vmem:[#allocation2] sm:$0xff]  ;;  %v317_v52 = vld [vmem:[#allocation2 + $0x8] sm:$0xff] }
  0x33   : > { %931 = vmatprep.subr.bf16.mxu1 %v999_v20 }
  0x34   : > { %894 = vmatpush3.bf16.msra.mxu0 %v998_v19 }
  0x35   : > { %895 = vmatprep.subr.bf16.mxu0 %v1000_v21 }
  0x36   : > { %932 = vmatpush3.bf16.msra.mxu1 %v999_v20 }
  0x37   : > { %933 = vmatprep.subr.bf16.mxu1 %v1002_v22 }
  0x38   : > { %896 = vmatpush3.bf16.msra.mxu0 %v1001_v23 }
  0x39   : > { %897 = vmatprep.subr.bf16.mxu0 %v1003_v24 }
  0x3a   : > { %934 = vmatpush3.bf16.msra.mxu1 %v1002_v22 }
  0x3b   : > { %935 = vmatprep.subr.bf16.mxu1 %v1005_v25 }
  0x3c   : > { %898 = vmatpush3.bf16.msra.mxu0 %v1004_v26 }
  0x3d   : > { %899 = vmatprep.subr.bf16.mxu0 %v1006_v27 }
  0x3e   : > { %936 = vmatpush3.bf16.msra.mxu1 %v1005_v25 }
  0x3f   : > { %937 = vmatprep.subr.bf16.mxu1 %v1008_v29 }
  0x40   : > { %900 = vmatpush3.bf16.msra.mxu0 %v1007_v28 }
  0x41   : > { %901 = vmatprep.subr.bf16.mxu0 %v1009_v30 }
  0x42   : > { %938 = vmatpush3.bf16.msra.mxu1 %v1008_v29 }
  0x43   : > { %939 = vmatprep.subr.bf16.mxu1 %v1011_v31 }
  0x44   : > { %902 = vmatpush3.bf16.msra.mxu0 %v1010_v34 }
  0x46   : > { %940 = vmatpush3.bf16.msra.mxu1 %v1011_v31 }
  0x47   : > { %585 = vmatmul.mubr.bf16.vlgmr.msra.gmra.mxu0 %v1012_v35 }
  0x48   : > { %592 = vmatprep.mubr.bf16.mxu0 %v1017_v36 }
  0x49   : > { %942 = vmatmul.mubr.bf16.vlgmr.msra.gmra.mxu1 %v1016_v37 }
  0x4f   : > { %593 = vmatmul.mubr.bf16.gmra.mxu0 %v1019_v38 }
 0x107   : > { %v903_v39 = vpop.f32.mrf.mxu0 }
 0x109   : > { %v904_v40 = vpop.f32.mrf.mxu0  ;;  %v943_v41 = vpop.f32.mrf.mxu1 }
 0x10a   : > { %v905_v42 = vadd.f32 %v904_v40, %v903_v39 }
 0x10b   : > { %v906_v43 = vpop.f32.mrf.mxu0  ;;  %v635_v45 = vpop.f32.mrf.mxu1 }
 0x10c   : > { %v636_v46 = vadd.f32 %v905_v42, %v635_v45 }
 0x10d   : > { %v907_v47 = vpop.f32.mrf.mxu0  ;;  %v944_v48 = vpop.f32.mrf.mxu1 }
 0x10e   : > { %v650_v49 = vadd.f32 %v636_v46, %v316_v44  ;;  %v908_v50 = vadd.f32 %v907_v47, %v906_v43 }
 0x10f   : > { %v909_v51 = vpop.f32.mrf.mxu0  ;;  %v638_v53 = vpop.f32.mrf.mxu1 }
 0x110   : > { %655 = vst.msk [vmem:[#allocation2] sm:$0xff] %vm654_vm1, %v650_v49  ;;  %v639_v54 = vadd.f32 %v908_v50, %v638_v53 }
 0x111   : > { %v910_v55 = vpop.f32.mrf.mxu0 }
 0x112   : > { %v651_v56 = vadd.f32 %v639_v54, %v317_v52  ;;  %v911_v57 = vadd.f32 %v910_v55, %v909_v51 }
 0x113   : > { %v912_v59 = vpop.f32.mrf.mxu0 }
 0x114   : > { %656 = vst.msk [vmem:[#allocation2 + $0x8] sm:$0xff] %vm654_vm1, %v651_v56  ;;  %v644_v60 = vadd.f32 %v943_v41, %v911_v57 }
 0x115   : > { %v913_v61 = vpop.f32.mrf.mxu0 }
 0x116   : > { %v652_v62 = vadd.f32 %v644_v60, %v318_v58  ;;  %v914_v63 = vadd.f32 %v913_v61, %v912_v59 }
 0x118   : > { %657 = vst.msk [vmem:[#allocation2 + $0x10] sm:$0xff] %vm654_vm1, %v652_v62  ;;  %v647_v1 = vadd.f32 %v944_v48, %v914_v63  ;;  %662 = sbr.rel (%p863_p11) target bundleno = 301 (0x12d), region = 70 }
 0x11a   : > { %v653_v2 = vadd.f32 %v647_v1, %v319_v0 }
 0x11c   : > { %658 = vst.msk [vmem:[#allocation2 + $0x18] sm:$0xff] %vm654_vm1, %v653_v2 }
 0x11d   : > { %v663_v3 = vld [vmem:[#allocation2] sm:$0xff]  ;;  %v664_v8 = vld [vmem:[#allocation2 + $0x8] sm:$0xff]  ;;  %vm710_vm2 = vcmask 519168  }
 0x11e   : > { %v864_v4 = vld [vmem:[%s1214_s2] ss:$0 sm:$0xff]  ;;  %v886_v11 = vld [vmem:[%s1215_s3 + $0x8] sm:$0xff]  }
 0x11f   : > { %v879_v5 = vld [vmem:[%s1215_s3] sm:$0xff]   ;;  %v674_v6 = vadd.f32 %v864_v4, %v663_v3  ;;  %v665_v10 = vld [vmem:[#allocation2 + $0x10] sm:$0xff]  ;;  %v675_v12 = vadd.f32 %v864_v4, %v664_v8  ;;  %v884_v14 = vunpack.c.l.bf16 %v886_v11  ;;  %v885_v16 = vunpack.c.h.bf16 %v886_v11 }
 0x120   : > { %v880_v7 = vunpack.c.l.bf16 %v879_v5  ;;  %v881_v9 = vunpack.c.h.bf16 %v879_v5  ;;  %v676_v13 = vadd.f32 %v864_v4, %v665_v10 }
 0x122   : > { %v686_v17 = vadd.f32 %v880_v7, %v674_v6  ;;  %v687_v19 = vadd.f32 %v881_v9, %v675_v12  ;;  %v688_v20 = vadd.f32 %v884_v14, %v676_v13 }
 0x123   : > { %v666_v15 = vld [vmem:[#allocation2 + $0x18] sm:$0xff] }
 0x124   : > { %v677_v18 = vadd.f32 %v864_v4, %v666_v15  ;;  %v690_v21 = vmax.f32 %v686_v17, 0.0  ;;  %v691_v23 = vmax.f32 %v687_v19, 0.0  ;;  %v692_v24 = vmax.f32 %v688_v20, 0.0 }
 0x126   : > { %v689_v22 = vadd.f32 %v885_v16, %v677_v18  ;;  %v874_v25 = vpack.c.bf16 %v690_v21, %v690_v21  ;;  %v875_v27 = vpack.c.bf16 %v691_v23, %v691_v23  ;;  %v876_v28 = vpack.c.bf16 %v692_v24, %v692_v24 }
 0x128   : > { %v693_v26 = vmax.f32 %v689_v22, 0.0  ;;  %711 = vst.msk [vmem:[%s1216_s4] sm:$0xf] %vm710_vm2, %v874_v25  ;;  %712 = vst.msk [vmem:[%s1216_s4 + $0x4] sm:$0xf] %vm710_vm2, %v875_v27 }
 0x129   : > { %713 = vst.msk [vmem:[%s1216_s4 + $0x8] sm:$0xf] %vm710_vm2, %v876_v28 }
 0x12a   : > { %v877_v29 = vpack.c.bf16 %v693_v26, %v693_v26 }
 0x12c   : > { %714 = vst.msk [vmem:[%s1216_s4 + $0xc] sm:$0xf] %vm710_vm2, %v877_v29 }
 0x12d PF: > { %s14_s19 = sadd.s32 1, %s1058_s19   ;;  %s1217_s15 = smov %s1046_s16 }
 0x12e   : > { %p11_p12 = scmp.ge.s32.totalorder %s14_s19, 4   ;;  %s1218_s16 = smov %s1121_s23 }
 0x12f   : > { %s1219_s17 = smov %s1054_s18  ;;  %s1220_s18 = smov %s1222_s20 }
 0x130   :  { %13 = sbr.rel (!%p11_p12) target bundleno = 3 (0x3), region = 117 }

// kernel: resnet_forward.28
= control target key start
LH: loop header
LB: loop body
LE: loop exit
PB: predicated region body
PF: predicated region fallthrough
CT: control target
= control target key end

     0   :  { %s797_s12 = smov 0   ;;  %s799_s13 = smov 0   ;;  %s872_s0 = inlined_call_operand.vmem [shape: bf16[8,768], index: 0, kind: input, shape index: {}]   ;;  %s873_s1 = inlined_call_operand.vmem [shape: bf16[768,128], index: 1, kind: input, shape index: {}]   ;;  %s874_s2 = inlined_call_operand.vmem [shape: f32[1,128], index: 2, kind: input, shape index: {}]   ;;  %s875_s3 = inlined_call_operand.vmem [shape: bf16[8,128], index: 3, kind: output, shape index: {}]  }
   0x1   :  { %s801_s14 = smov 0  }
   0x2 LB: > { %s22_s15 = sadd.s32 1, %s768_s13  ;;  %p609_p0 = scmp.ge.s32.totalorder %s772_s14, 1  ;;  %s772_s14 = sphi %s801_s14, %s13_s14   ;;  %s768_s13 = sphi %s799_s13, %s877_s13   ;;  %s764_s12 = sphi %s797_s12, %s876_s12  }
   0x3   : > { %p23_p1 = scmp.ge.s32.totalorder %s22_s15, 2  ;;  %p167_p2 = scmp.lt.s32.totalorder %s772_s14, 3 }
   0x5   : > { %s879_s15 = smov (%p23_p1, %s22_s15), 0  ;;  %p168_p3 = pnand %p609_p0, %p167_p2 }
   0x6   : > { %s199_s16 = smul.u32 (!%p168_p3), 3, %s764_s12  ;;  %p612_p6 = scmp.ne.s32.totalorder (!%p168_p3), %s764_s12, 0 }
   0x7   : > { %171 = sbr.rel (%p168_p3) target bundleno = 272 (0x110), region = 32 }
   0x8   : > { %s209_s17 = smul.u32 (!%p168_p3), 48, %s764_s12  ;;  %p202_p4 = scmp.lt.s32.totalorder (!%p168_p3), %s199_s16, 5 }
   0xa   : > { %p210_p5 = scmp.lt.s32.totalorder (!%p168_p3), %s209_s17, 95 }
   0xc   : > { %s881_s16 = smov (!%p202_p4, %s199_s16), 5  ;;  %s883_s17 = smov (!%p210_p5, %s209_s17), 95 }
   0xd   : > { %s610_s18 = sshll.u32 %s881_s16, 2  ;;  %s611_s22 = sshll.u32 %s883_s17, 2 }
   0xe   : > { %s822_s21 = scalar_lea.vmem %s872_s0, %s610_s18  ;;  %s827_s25 = scalar_lea.vmem %s873_s1, %s611_s22 }
   0xf   : > { %223 = sbr.rel (%p612_p6) target bundleno = 22 (0x16), region = 36 }
  0x14   : > { %v774_v0 = vmov 0.0  }
  0x15   : > { %224 = vst [vmem:[#allocation2] sm:$0xff] %v774_v0 }
  0x16 PF: > { %v723_v1 = vld [vmem:[%s827_s25 + $0x78] sm:$0xff]   ;;  %v775_v2 = vmov 0.0   ;;  %vm776_vm0 = vmmov 0   ;;  %v726_v5 = vld [vmem:[%s827_s25 + $0x70] sm:$0xff]   ;;  %v729_v8 = vld [vmem:[%s827_s25 + $0x68] sm:$0xff]   ;;  %p640_p7 = scmp.ne.s32.totalorder %s764_s12, 1 }
  0x17   : > { %676 = vmatprep.subr.bf16.mxu1 %v775_v2  ;;  %v724_v3 = vld [vmem:[%s827_s25 + $0xb8] sm:$0xff]   ;;  %645 = vmatprep.subr.bf16.mxu0 %v723_v1  ;;  %v727_v6 = vld [vmem:[%s827_s25 + $0xb0] sm:$0xff]   ;;  %v730_v9 = vld [vmem:[%s827_s25 + $0xa8] sm:$0xff]  }
  0x18   : > { %v725_v4 = vld [vmem:[%s827_s25 + $0x38] sm:$0xff]   ;;  %692 = vmatprep.mubr.msk.bf16.mxu1 %vm776_vm0, %v775_v2  ;;  %677 = vmatpush3.bf16.msra.mxu1 %v724_v3  ;;  %v728_v7 = vld [vmem:[%s827_s25 + $0x30] sm:$0xff]   ;;  %v731_v10 = vld [vmem:[%s827_s25 + $0x28] sm:$0xff]  }
  0x19   : > { %646 = vmatpush3.bf16.msra.mxu0 %v725_v4  ;;  %678 = vmatprep.subr.bf16.mxu1 %v775_v2  ;;  %v732_v11 = vld [vmem:[%s827_s25 + $0x60] sm:$0xff]   ;;  %v735_v14 = vld [vmem:[%s827_s25 + $0x58] sm:$0xff]   ;;  %v738_v17 = vld [vmem:[%s827_s25 + $0x50] sm:$0xff]  }
  0x1a   : > { %647 = vmatprep.subr.bf16.mxu0 %v726_v5  ;;  %v733_v12 = vld [vmem:[%s827_s25 + $0xa0] sm:$0xff]   ;;  %v736_v15 = vld [vmem:[%s827_s25 + $0x98] sm:$0xff]   ;;  %v739_v18 = vld [vmem:[%s827_s25 + $0x90] sm:$0xff]  }
  0x1b   : > { %v734_v13 = vld [vmem:[%s827_s25 + $0x20] sm:$0xff]   ;;  %v737_v16 = vld [vmem:[%s827_s25 + $0x18] sm:$0xff]   ;;  %v740_v19 = vld [vmem:[%s827_s25 + $0x10] sm:$0xff]  }
  0x1c   : > { %679 = vmatpush3.bf16.msra.mxu1 %v727_v6  ;;  %v741_v20 = vld [vmem:[%s827_s25 + $0x48] sm:$0xff]   ;;  %v226_v23 = vld [vmem:[%s822_s21] sm:$0xff] }
  0x1d   : > { %648 = vmatpush3.bf16.msra.mxu0 %v728_v7  ;;  %680 = vmatprep.subr.bf16.mxu1 %v775_v2  ;;  %v742_v21 = vld [vmem:[%s827_s25 + $0x88] sm:$0xff]   ;;  %v744_v24 = vld [vmem:[%s827_s25 + $0x40] sm:$0xff]   ;;  %v614_v25 = vcombine.high %v226_v23, %v226_v23  ;;  %v613_v29 = vcombine.low %v226_v23, %v226_v23 }
  0x1e   : > { %649 = vmatprep.subr.bf16.mxu0 %v729_v8  ;;  %v743_v22 = vld [vmem:[%s827_s25 + $0x8] sm:$0xff]   ;;  %v745_v26 = vld [vmem:[%s827_s25 + $0x80] sm:$0xff]  }
  0x1f   : > { %463 = vmatprep.mubr.bf16.mxu0 %v614_v25  ;;  %v746_v27 = vld [vmem:[%s827_s25] sm:$0xff]   ;;  %v749_v28 = vld [vmem:[%s822_s21 + $0x8] ss:$0 sps:$4 sm:$0xff]  }
  0x20   : > { %681 = vmatpush3.bf16.msra.mxu1 %v730_v9  ;;  %v225_v36 = vld [vmem:[#allocation2] sm:$0xff] }
  0x21   : > { %650 = vmatpush3.bf16.msra.mxu0 %v731_v10  ;;  %682 = vmatprep.subr.bf16.mxu1 %v775_v2 }
  0x22   : > { %651 = vmatprep.subr.bf16.mxu0 %v732_v11 }
  0x24   : > { %683 = vmatpush3.bf16.msra.mxu1 %v733_v12 }
  0x25   : > { %652 = vmatpush3.bf16.msra.mxu0 %v734_v13  ;;  %684 = vmatprep.subr.bf16.mxu1 %v775_v2 }
  0x26   : > { %653 = vmatprep.subr.bf16.mxu0 %v735_v14 }
  0x28   : > { %685 = vmatpush3.bf16.msra.mxu1 %v736_v15 }
  0x29   : > { %654 = vmatpush3.bf16.msra.mxu0 %v737_v16  ;;  %686 = vmatprep.subr.bf16.mxu1 %v775_v2 }
  0x2a   : > { %655 = vmatprep.subr.bf16.mxu0 %v738_v17 }
  0x2c   : > { %687 = vmatpush3.bf16.msra.mxu1 %v739_v18 }
  0x2d   : > { %656 = vmatpush3.bf16.msra.mxu0 %v740_v19  ;;  %688 = vmatprep.subr.bf16.mxu1 %v775_v2 }
  0x2e   : > { %657 = vmatprep.subr.bf16.mxu0 %v741_v20 }
  0x30   : > { %689 = vmatpush3.bf16.msra.mxu1 %v742_v21 }
  0x31   : > { %658 = vmatpush3.bf16.msra.mxu0 %v743_v22  ;;  %690 = vmatprep.subr.bf16.mxu1 %v775_v2 }
  0x32   : > { %659 = vmatprep.subr.bf16.mxu0 %v744_v24 }
  0x34   : > { %691 = vmatpush3.bf16.msra.mxu1 %v745_v26 }
  0x35   : > { %660 = vmatpush3.bf16.msra.mxu0 %v746_v27 }
  0x37   : > { %693 = vmatmul.mubr.bf16.vlgmr.msra.gmra.mxu1 %v749_v28 }
  0x38   : > { %464 = vmatmul.mubr.bf16.vlgmr.msra.gmra.mxu0 %v613_v29 }
  0xf7   : > { %v505_v30 = vpop.f32.mrf.mxu1 }
  0xf8   : > { %v661_v31 = vpop.f32.mrf.mxu0 }
  0xf9   : > { %v694_v32 = vpop.f32.mrf.mxu1 }
  0xfa   : > { %v662_v33 = vpop.f32.mrf.mxu0 }
  0xfb   : > { %v663_v34 = vadd.f32 %v662_v33, %v661_v31  ;;  %v508_v35 = vpop.f32.mrf.mxu1 }
  0xfc   : > { %v664_v37 = vpop.f32.mrf.mxu0 }
  0xfd   : > { %v506_v38 = vadd.f32 %v663_v34, %v505_v30  ;;  %v695_v39 = vpop.f32.mrf.mxu1  ;;  %516 = sbr.rel (%p640_p7) target bundleno = 272 (0x110), region = 40 }
  0xfe   : > { %v665_v40 = vpop.f32.mrf.mxu0 }
  0xff   : > { %v511_v41 = vadd.f32 %v506_v38, %v225_v36 }
 0x101   : > { %512 = vst [vmem:[#allocation2] sm:$0xff] %v511_v41 }
 0x102   : > { %v641_v43 = vld [vmem:[%s874_s2] ss:$0 sm:$0xff] }
 0x108   : > { %v517_v42 = vld [vmem:[#allocation2] sm:$0xff] }
 0x109   : > { %v525_v44 = vadd.f32 %v641_v43, %v517_v42 }
 0x10b   : > { %v526_v45 = vmax.f32 %v525_v44, 0.0 }
 0x10d   : > { %v527_v46 = vpack.c.bf16 %v526_v45, %v526_v45 }
 0x10f   : > { %528 = vst [vmem:[%s875_s3] sm:$0xf] %v527_v46 }
 0x110 PF: > { %s13_s14 = sadd.s32 1, %s772_s14   ;;  %s876_s12 = smov %s768_s13 }
 0x111   : > { %p10_p8 = scmp.ge.s32.totalorder %s13_s14, 4   ;;  %s877_s13 = smov %s879_s15 }
 0x113   :  { %12 = sbr.rel (!%p10_p8) target bundleno = 2 (0x2), region = 73 }

// kernel: resnet_forward.30
= control target key start
LH: loop header
LB: loop body
LE: loop exit
PB: predicated region body
PF: predicated region fallthrough
CT: control target
= control target key end

     0   :  { %s865_s15 = smov 0   ;;  %s867_s16 = smov 0   ;;  %s943_s0 = inlined_call_operand.vmem [shape: bf16[8,1152], index: 0, kind: input, shape index: {}]   ;;  %s944_s1 = inlined_call_operand.vmem [shape: bf16[1152,128], index: 1, kind: input, shape index: {}]   ;;  %s945_s2 = inlined_call_operand.vmem [shape: f32[1,128], index: 2, kind: input, shape index: {}]   ;;  %s946_s3 = inlined_call_operand.vmem [shape: bf16[8,128], index: 3, kind: input, shape index: {}]   ;;  %s947_s4 = inlined_call_operand.vmem [shape: bf16[8,128], index: 4, kind: output, shape index: {}]  }
   0x1   :  { %s869_s17 = smov 0  }
   0x2 LB: > { %s23_s18 = sadd.s32 1, %s831_s16  ;;  %p672_p0 = scmp.ge.s32.totalorder %s835_s17, 1  ;;  %s835_s17 = sphi %s869_s17, %s14_s17   ;;  %s831_s16 = sphi %s867_s16, %s949_s16   ;;  %s827_s15 = sphi %s865_s15, %s948_s15  }
   0x3   : > { %p24_p1 = scmp.ge.s32.totalorder %s23_s18, 3  ;;  %p201_p2 = scmp.lt.s32.totalorder %s835_s17, 4 }
   0x5   : > { %s951_s18 = smov (%p24_p1, %s23_s18), 0  ;;  %p202_p3 = pnand %p672_p0, %p201_p2 }
   0x6   : > { %s239_s19 = smul.u32 (!%p202_p3), 3, %s827_s15  ;;  %p675_p6 = scmp.ne.s32.totalorder (!%p202_p3), %s827_s15, 0 }
   0x7   : > { %205 = sbr.rel (%p202_p3) target bundleno = 274 (0x112), region = 36 }
   0x8   : > { %s249_s20 = smul.u32 (!%p202_p3), 48, %s827_s15  ;;  %p242_p4 = scmp.lt.s32.totalorder (!%p202_p3), %s239_s19, 8 }
   0xa   : > { %p250_p5 = scmp.lt.s32.totalorder (!%p202_p3), %s249_s20, 143 }
   0xc   : > { %s953_s19 = smov (!%p242_p4, %s239_s19), 8  ;;  %s955_s20 = smov (!%p250_p5, %s249_s20), 143 }
   0xd   : > { %s673_s21 = sshll.u32 %s953_s19, 2  ;;  %s674_s25 = sshll.u32 %s955_s20, 2 }
   0xe   : > { %s890_s24 = scalar_lea.vmem %s943_s0, %s673_s21  ;;  %s895_s28 = scalar_lea.vmem %s944_s1, %s674_s25 }
   0xf   : > { %267 = sbr.rel (%p675_p6) target bundleno = 22 (0x16), region = 40 }
  0x14   : > { %v837_v0 = vmov 0.0  }
  0x15   : > { %268 = vst [vmem:[#allocation2] sm:$0xff] %v837_v0 }
  0x16 PF: > { %v786_v1 = vld [vmem:[%s895_s28 + $0x78] sm:$0xff]   ;;  %v838_v2 = vmov 0.0   ;;  %vm839_vm0 = vmmov 0   ;;  %v789_v5 = vld [vmem:[%s895_s28 + $0x70] sm:$0xff]   ;;  %v792_v8 = vld [vmem:[%s895_s28 + $0x68] sm:$0xff]   ;;  %p703_p7 = scmp.ne.s32.totalorder %s827_s15, 2 }
  0x17   : > { %739 = vmatprep.subr.bf16.mxu1 %v838_v2  ;;  %v787_v3 = vld [vmem:[%s895_s28 + $0xb8] sm:$0xff]   ;;  %708 = vmatprep.subr.bf16.mxu0 %v786_v1  ;;  %v790_v6 = vld [vmem:[%s895_s28 + $0xb0] sm:$0xff]   ;;  %v793_v9 = vld [vmem:[%s895_s28 + $0xa8] sm:$0xff]  }
  0x18   : > { %v788_v4 = vld [vmem:[%s895_s28 + $0x38] sm:$0xff]   ;;  %755 = vmatprep.mubr.msk.bf16.mxu1 %vm839_vm0, %v838_v2  ;;  %740 = vmatpush3.bf16.msra.mxu1 %v787_v3  ;;  %v791_v7 = vld [vmem:[%s895_s28 + $0x30] sm:$0xff]   ;;  %v794_v10 = vld [vmem:[%s895_s28 + $0x28] sm:$0xff]  }
  0x19   : > { %709 = vmatpush3.bf16.msra.mxu0 %v788_v4  ;;  %741 = vmatprep.subr.bf16.mxu1 %v838_v2  ;;  %v795_v11 = vld [vmem:[%s895_s28 + $0x60] sm:$0xff]   ;;  %v798_v14 = vld [vmem:[%s895_s28 + $0x58] sm:$0xff]   ;;  %v801_v17 = vld [vmem:[%s895_s28 + $0x50] sm:$0xff]  }
  0x1a   : > { %710 = vmatprep.subr.bf16.mxu0 %v789_v5  ;;  %v796_v12 = vld [vmem:[%s895_s28 + $0xa0] sm:$0xff]   ;;  %v799_v15 = vld [vmem:[%s895_s28 + $0x98] sm:$0xff]   ;;  %v802_v18 = vld [vmem:[%s895_s28 + $0x90] sm:$0xff]  }
  0x1b   : > { %v797_v13 = vld [vmem:[%s895_s28 + $0x20] sm:$0xff]   ;;  %v800_v16 = vld [vmem:[%s895_s28 + $0x18] sm:$0xff]   ;;  %v803_v19 = vld [vmem:[%s895_s28 + $0x10] sm:$0xff]  }
  0x1c   : > { %742 = vmatpush3.bf16.msra.mxu1 %v790_v6  ;;  %v804_v20 = vld [vmem:[%s895_s28 + $0x48] sm:$0xff]   ;;  %v270_v23 = vld [vmem:[%s890_s24] sm:$0xff] }
  0x1d   : > { %711 = vmatpush3.bf16.msra.mxu0 %v791_v7  ;;  %743 = vmatprep.subr.bf16.mxu1 %v838_v2  ;;  %v805_v21 = vld [vmem:[%s895_s28 + $0x88] sm:$0xff]   ;;  %v807_v24 = vld [vmem:[%s895_s28 + $0x40] sm:$0xff]   ;;  %v677_v25 = vcombine.high %v270_v23, %v270_v23  ;;  %v676_v29 = vcombine.low %v270_v23, %v270_v23 }
  0x1e   : > { %712 = vmatprep.subr.bf16.mxu0 %v792_v8  ;;  %v806_v22 = vld [vmem:[%s895_s28 + $0x8] sm:$0xff]   ;;  %v808_v26 = vld [vmem:[%s895_s28 + $0x80] sm:$0xff]  }
  0x1f   : > { %507 = vmatprep.mubr.bf16.mxu0 %v677_v25  ;;  %v809_v27 = vld [vmem:[%s895_s28] sm:$0xff]   ;;  %v812_v28 = vld [vmem:[%s890_s24 + $0x8] ss:$0 sps:$4 sm:$0xff]  }
  0x20   : > { %744 = vmatpush3.bf16.msra.mxu1 %v793_v9  ;;  %v269_v36 = vld [vmem:[#allocation2] sm:$0xff] }
  0x21   : > { %713 = vmatpush3.bf16.msra.mxu0 %v794_v10  ;;  %745 = vmatprep.subr.bf16.mxu1 %v838_v2 }
  0x22   : > { %714 = vmatprep.subr.bf16.mxu0 %v795_v11 }
  0x24   : > { %746 = vmatpush3.bf16.msra.mxu1 %v796_v12 }
  0x25   : > { %715 = vmatpush3.bf16.msra.mxu0 %v797_v13  ;;  %747 = vmatprep.subr.bf16.mxu1 %v838_v2 }
  0x26   : > { %716 = vmatprep.subr.bf16.mxu0 %v798_v14 }
  0x28   : > { %748 = vmatpush3.bf16.msra.mxu1 %v799_v15 }
  0x29   : > { %717 = vmatpush3.bf16.msra.mxu0 %v800_v16  ;;  %749 = vmatprep.subr.bf16.mxu1 %v838_v2 }
  0x2a   : > { %718 = vmatprep.subr.bf16.mxu0 %v801_v17 }
  0x2c   : > { %750 = vmatpush3.bf16.msra.mxu1 %v802_v18 }
  0x2d   : > { %719 = vmatpush3.bf16.msra.mxu0 %v803_v19  ;;  %751 = vmatprep.subr.bf16.mxu1 %v838_v2 }
  0x2e   : > { %720 = vmatprep.subr.bf16.mxu0 %v804_v20 }
  0x30   : > { %752 = vmatpush3.bf16.msra.mxu1 %v805_v21 }
  0x31   : > { %721 = vmatpush3.bf16.msra.mxu0 %v806_v22  ;;  %753 = vmatprep.subr.bf16.mxu1 %v838_v2 }
  0x32   : > { %722 = vmatprep.subr.bf16.mxu0 %v807_v24 }
  0x34   : > { %754 = vmatpush3.bf16.msra.mxu1 %v808_v26 }
  0x35   : > { %723 = vmatpush3.bf16.msra.mxu0 %v809_v27 }
  0x37   : > { %756 = vmatmul.mubr.bf16.vlgmr.msra.gmra.mxu1 %v812_v28 }
  0x38   : > { %508 = vmatmul.mubr.bf16.vlgmr.msra.gmra.mxu0 %v676_v29 }
  0xf7   : > { %v549_v30 = vpop.f32.mrf.mxu1 }
  0xf8   : > { %v724_v31 = vpop.f32.mrf.mxu0 }
  0xf9   : > { %v757_v32 = vpop.f32.mrf.mxu1 }
  0xfa   : > { %v725_v33 = vpop.f32.mrf.mxu0 }
  0xfb   : > { %v726_v34 = vadd.f32 %v725_v33, %v724_v31  ;;  %v552_v35 = vpop.f32.mrf.mxu1 }
  0xfc   : > { %v727_v37 = vpop.f32.mrf.mxu0 }
  0xfd   : > { %v550_v38 = vadd.f32 %v726_v34, %v549_v30  ;;  %v758_v39 = vpop.f32.mrf.mxu1  ;;  %560 = sbr.rel (%p703_p7) target bundleno = 274 (0x112), region = 44 }
  0xfe   : > { %v728_v40 = vpop.f32.mrf.mxu0 }
  0xff   : > { %v555_v41 = vadd.f32 %v550_v38, %v269_v36 }
 0x101   : > { %556 = vst [vmem:[#allocation2] sm:$0xff] %v555_v41 }
 0x102   : > { %v704_v43 = vld [vmem:[%s945_s2] ss:$0 sm:$0xff] }
 0x103   : > { %v570_v44 = vld [vmem:[%s946_s3] sm:$0xf] }
 0x104   : > { %v571_v46 = vunpack.c.l.bf16 %v570_v44 }
 0x108   : > { %v561_v42 = vld [vmem:[#allocation2] sm:$0xff] }
 0x109   : > { %v569_v45 = vadd.f32 %v704_v43, %v561_v42 }
 0x10b   : > { %v572_v47 = vadd.f32 %v571_v46, %v569_v45 }
 0x10d   : > { %v573_v48 = vmax.f32 %v572_v47, 0.0 }
 0x10f   : > { %v574_v49 = vpack.c.bf16 %v573_v48, %v573_v48 }
 0x111   : > { %575 = vst [vmem:[%s947_s4] sm:$0xf] %v574_v49 }
 0x112 PF: > { %s14_s17 = sadd.s32 1, %s835_s17   ;;  %s948_s15 = smov %s831_s16 }
 0x113   : > { %p11_p8 = scmp.ge.s32.totalorder %s14_s17, 5   ;;  %s949_s16 = smov %s951_s18 }
 0x115   :  { %13 = sbr.rel (!%p11_p8) target bundleno = 2 (0x2), region = 80 }

// kernel: resnet_forward.31
= control target key start
LH: loop header
LB: loop body
LE: loop exit
PB: predicated region body
PF: predicated region fallthrough
CT: control target
= control target key end

     0   :  { %s797_s12 = smov 0   ;;  %s799_s13 = smov 0   ;;  %s872_s0 = inlined_call_operand.vmem [shape: bf16[8,1152], index: 0, kind: input, shape index: {}]   ;;  %s873_s1 = inlined_call_operand.vmem [shape: bf16[1152,128], index: 1, kind: input, shape index: {}]   ;;  %s874_s2 = inlined_call_operand.vmem [shape: f32[1,128], index: 2, kind: input, shape index: {}]   ;;  %s875_s3 = inlined_call_operand.vmem [shape: bf16[8,128], index: 3, kind: output, shape index: {}]  }
   0x1   :  { %s801_s14 = smov 0  }
   0x2 LB: > { %s22_s15 = sadd.s32 1, %s768_s13  ;;  %p609_p0 = scmp.ge.s32.totalorder %s772_s14, 1  ;;  %s772_s14 = sphi %s801_s14, %s13_s14   ;;  %s768_s13 = sphi %s799_s13, %s877_s13   ;;  %s764_s12 = sphi %s797_s12, %s876_s12  }
   0x3   : > { %p23_p1 = scmp.ge.s32.totalorder %s22_s15, 3  ;;  %p167_p2 = scmp.lt.s32.totalorder %s772_s14, 4 }
   0x5   : > { %s879_s15 = smov (%p23_p1, %s22_s15), 0  ;;  %p168_p3 = pnand %p609_p0, %p167_p2 }
   0x6   : > { %s199_s16 = smul.u32 (!%p168_p3), 3, %s764_s12  ;;  %p612_p6 = scmp.ne.s32.totalorder (!%p168_p3), %s764_s12, 0 }
   0x7   : > { %171 = sbr.rel (%p168_p3) target bundleno = 272 (0x110), region = 32 }
   0x8   : > { %s209_s17 = smul.u32 (!%p168_p3), 48, %s764_s12  ;;  %p202_p4 = scmp.lt.s32.totalorder (!%p168_p3), %s199_s16, 8 }
   0xa   : > { %p210_p5 = scmp.lt.s32.totalorder (!%p168_p3), %s209_s17, 143 }
   0xc   : > { %s881_s16 = smov (!%p202_p4, %s199_s16), 8  ;;  %s883_s17 = smov (!%p210_p5, %s209_s17), 143 }
   0xd   : > { %s610_s18 = sshll.u32 %s881_s16, 2  ;;  %s611_s22 = sshll.u32 %s883_s17, 2 }
   0xe   : > { %s822_s21 = scalar_lea.vmem %s872_s0, %s610_s18  ;;  %s827_s25 = scalar_lea.vmem %s873_s1, %s611_s22 }
   0xf   : > { %223 = sbr.rel (%p612_p6) target bundleno = 22 (0x16), region = 36 }
  0x14   : > { %v774_v0 = vmov 0.0  }
  0x15   : > { %224 = vst [vmem:[#allocation2] sm:$0xff] %v774_v0 }
  0x16 PF: > { %v723_v1 = vld [vmem:[%s827_s25 + $0x78] sm:$0xff]   ;;  %v775_v2 = vmov 0.0   ;;  %vm776_vm0 = vmmov 0   ;;  %v726_v5 = vld [vmem:[%s827_s25 + $0x70] sm:$0xff]   ;;  %v729_v8 = vld [vmem:[%s827_s25 + $0x68] sm:$0xff]   ;;  %p640_p7 = scmp.ne.s32.totalorder %s764_s12, 2 }
  0x17   : > { %676 = vmatprep.subr.bf16.mxu1 %v775_v2  ;;  %v724_v3 = vld [vmem:[%s827_s25 + $0xb8] sm:$0xff]   ;;  %645 = vmatprep.subr.bf16.mxu0 %v723_v1  ;;  %v727_v6 = vld [vmem:[%s827_s25 + $0xb0] sm:$0xff]   ;;  %v730_v9 = vld [vmem:[%s827_s25 + $0xa8] sm:$0xff]  }
  0x18   : > { %v725_v4 = vld [vmem:[%s827_s25 + $0x38] sm:$0xff]   ;;  %692 = vmatprep.mubr.msk.bf16.mxu1 %vm776_vm0, %v775_v2  ;;  %677 = vmatpush3.bf16.msra.mxu1 %v724_v3  ;;  %v728_v7 = vld [vmem:[%s827_s25 + $0x30] sm:$0xff]   ;;  %v731_v10 = vld [vmem:[%s827_s25 + $0x28] sm:$0xff]  }
  0x19   : > { %646 = vmatpush3.bf16.msra.mxu0 %v725_v4  ;;  %678 = vmatprep.subr.bf16.mxu1 %v775_v2  ;;  %v732_v11 = vld [vmem:[%s827_s25 + $0x60] sm:$0xff]   ;;  %v735_v14 = vld [vmem:[%s827_s25 + $0x58] sm:$0xff]   ;;  %v738_v17 = vld [vmem:[%s827_s25 + $0x50] sm:$0xff]  }
  0x1a   : > { %647 = vmatprep.subr.bf16.mxu0 %v726_v5  ;;  %v733_v12 = vld [vmem:[%s827_s25 + $0xa0] sm:$0xff]   ;;  %v736_v15 = vld [vmem:[%s827_s25 + $0x98] sm:$0xff]   ;;  %v739_v18 = vld [vmem:[%s827_s25 + $0x90] sm:$0xff]  }
  0x1b   : > { %v734_v13 = vld [vmem:[%s827_s25 + $0x20] sm:$0xff]   ;;  %v737_v16 = vld [vmem:[%s827_s25 + $0x18] sm:$0xff]   ;;  %v740_v19 = vld [vmem:[%s827_s25 + $0x10] sm:$0xff]  }
  0x1c   : > { %679 = vmatpush3.bf16.msra.mxu1 %v727_v6  ;;  %v741_v20 = vld [vmem:[%s827_s25 + $0x48] sm:$0xff]   ;;  %v226_v23 = vld [vmem:[%s822_s21] sm:$0xff] }
  0x1d   : > { %648 = vmatpush3.bf16.msra.mxu0 %v728_v7  ;;  %680 = vmatprep.subr.bf16.mxu1 %v775_v2  ;;  %v742_v21 = vld [vmem:[%s827_s25 + $0x88] sm:$0xff]   ;;  %v744_v24 = vld [vmem:[%s827_s25 + $0x40] sm:$0xff]   ;;  %v614_v25 = vcombine.high %v226_v23, %v226_v23  ;;  %v613_v29 = vcombine.low %v226_v23, %v226_v23 }
  0x1e   : > { %649 = vmatprep.subr.bf16.mxu0 %v729_v8  ;;  %v743_v22 = vld [vmem:[%s827_s25 + $0x8] sm:$0xff]   ;;  %v745_v26 = vld [vmem:[%s827_s25 + $0x80] sm:$0xff]  }
  0x1f   : > { %463 = vmatprep.mubr.bf16.mxu0 %v614_v25  ;;  %v746_v27 = vld [vmem:[%s827_s25] sm:$0xff]   ;;  %v749_v28 = vld [vmem:[%s822_s21 + $0x8] ss:$0 sps:$4 sm:$0xff]  }
  0x20   : > { %681 = vmatpush3.bf16.msra.mxu1 %v730_v9  ;;  %v225_v36 = vld [vmem:[#allocation2] sm:$0xff] }
  0x21   : > { %650 = vmatpush3.bf16.msra.mxu0 %v731_v10  ;;  %682 = vmatprep.subr.bf16.mxu1 %v775_v2 }
  0x22   : > { %651 = vmatprep.subr.bf16.mxu0 %v732_v11 }
  0x24   : > { %683 = vmatpush3.bf16.msra.mxu1 %v733_v12 }
  0x25   : > { %652 = vmatpush3.bf16.msra.mxu0 %v734_v13  ;;  %684 = vmatprep.subr.bf16.mxu1 %v775_v2 }
  0x26   : > { %653 = vmatprep.subr.bf16.mxu0 %v735_v14 }
  0x28   : > { %685 = vmatpush3.bf16.msra.mxu1 %v736_v15 }
  0x29   : > { %654 = vmatpush3.bf16.msra.mxu0 %v737_v16  ;;  %686 = vmatprep.subr.bf16.mxu1 %v775_v2 }
  0x2a   : > { %655 = vmatprep.subr.bf16.mxu0 %v738_v17 }
  0x2c   : > { %687 = vmatpush3.bf16.msra.mxu1 %v739_v18 }
  0x2d   : > { %656 = vmatpush3.bf16.msra.mxu0 %v740_v19  ;;  %688 = vmatprep.subr.bf16.mxu1 %v775_v2 }
  0x2e   : > { %657 = vmatprep.subr.bf16.mxu0 %v741_v20 }
  0x30   : > { %689 = vmatpush3.bf16.msra.mxu1 %v742_v21 }
  0x31   : > { %658 = vmatpush3.bf16.msra.mxu0 %v743_v22  ;;  %690 = vmatprep.subr.bf16.mxu1 %v775_v2 }
  0x32   : > { %659 = vmatprep.subr.bf16.mxu0 %v744_v24 }
  0x34   : > { %691 = vmatpush3.bf16.msra.mxu1 %v745_v26 }
  0x35   : > { %660 = vmatpush3.bf16.msra.mxu0 %v746_v27 }
  0x37   : > { %693 = vmatmul.mubr.bf16.vlgmr.msra.gmra.mxu1 %v749_v28 }
  0x38   : > { %464 = vmatmul.mubr.bf16.vlgmr.msra.gmra.mxu0 %v613_v29 }
  0xf7   : > { %v505_v30 = vpop.f32.mrf.mxu1 }
  0xf8   : > { %v661_v31 = vpop.f32.mrf.mxu0 }
  0xf9   : > { %v694_v32 = vpop.f32.mrf.mxu1 }
  0xfa   : > { %v662_v33 = vpop.f32.mrf.mxu0 }
  0xfb   : > { %v663_v34 = vadd.f32 %v662_v33, %v661_v31  ;;  %v508_v35 = vpop.f32.mrf.mxu1 }
  0xfc   : > { %v664_v37 = vpop.f32.mrf.mxu0 }
  0xfd   : > { %v506_v38 = vadd.f32 %v663_v34, %v505_v30  ;;  %v695_v39 = vpop.f32.mrf.mxu1  ;;  %516 = sbr.rel (%p640_p7) target bundleno = 272 (0x110), region = 40 }
  0xfe   : > { %v665_v40 = vpop.f32.mrf.mxu0 }
  0xff   : > { %v511_v41 = vadd.f32 %v506_v38, %v225_v36 }
 0x101   : > { %512 = vst [vmem:[#allocation2] sm:$0xff] %v511_v41 }
 0x102   : > { %v641_v43 = vld [vmem:[%s874_s2] ss:$0 sm:$0xff] }
 0x108   : > { %v517_v42 = vld [vmem:[#allocation2] sm:$0xff] }
 0x109   : > { %v525_v44 = vadd.f32 %v641_v43, %v517_v42 }
 0x10b   : > { %v526_v45 = vmax.f32 %v525_v44, 0.0 }
 0x10d   : > { %v527_v46 = vpack.c.bf16 %v526_v45, %v526_v45 }
 0x10f   : > { %528 = vst [vmem:[%s875_s3] sm:$0xf] %v527_v46 }
 0x110 PF: > { %s13_s14 = sadd.s32 1, %s772_s14   ;;  %s876_s12 = smov %s768_s13 }
 0x111   : > { %p10_p8 = scmp.ge.s32.totalorder %s13_s14, 5   ;;  %s877_s13 = smov %s879_s15 }
 0x113   :  { %12 = sbr.rel (!%p10_p8) target bundleno = 2 (0x2), region = 73 }

// kernel: resnet_forward.29
= control target key start
LH: loop header
LB: loop body
LE: loop exit
PB: predicated region body
PF: predicated region fallthrough
CT: control target
= control target key end

     0   :  { %v194_v0 = vmov 0.0   ;;  %vm195_vm0 = vmmov 0   ;;  %s249_s1 = inlined_call_operand.vmem [shape: bf16[128,128], index: 1, kind: input, shape index: {}]   ;;  %s250_s0 = inlined_call_operand.vmem [shape: bf16[8,128], index: 0, kind: input, shape index: {}]   ;;  %s251_s2 = inlined_call_operand.vmem [shape: f32[1,128], index: 2, kind: input, shape index: {}]   ;;  %s252_s3 = inlined_call_operand.vmem [shape: bf16[8,128], index: 3, kind: output, shape index: {}]  }
   0x1   :  { %164 = vmatprep.subr.bf16.mxu0 %v194_v0  ;;  %v186_v1 = vld [vmem:[%s249_s1 + $0x38] sm:$0xff]   ;;  %180 = vmatprep.mubr.msk.bf16.mxu0 %vm195_vm0, %v194_v0  ;;  %v187_v2 = vld [vmem:[%s249_s1 + $0x30] sm:$0xff]   ;;  %v188_v3 = vld [vmem:[%s249_s1 + $0x28] sm:$0xff]  }
   0x2   :  { %165 = vmatpush3.bf16.msra.mxu0 %v186_v1  ;;  %v189_v4 = vld [vmem:[%s249_s1 + $0x20] sm:$0xff]   ;;  %v190_v5 = vld [vmem:[%s249_s1 + $0x18] sm:$0xff]   ;;  %v191_v6 = vld [vmem:[%s249_s1 + $0x10] sm:$0xff]  }
   0x3   :  { %166 = vmatprep.subr.bf16.mxu0 %v194_v0  ;;  %v192_v7 = vld [vmem:[%s249_s1 + $0x8] sm:$0xff]   ;;  %v193_v8 = vld [vmem:[%s249_s1] sm:$0xff]  }
   0x4   :  { %v21_v9 = vld [vmem:[%s250_s0] sm:$0xf] }
   0x5   :  { %v154_v10 = vld [vmem:[%s251_s2] ss:$0 sm:$0xff] }
   0x6   :  { %167 = vmatpush3.bf16.msra.mxu0 %v187_v2 }
   0x7   :  { %168 = vmatprep.subr.bf16.mxu0 %v194_v0 }
   0xa   :  { %169 = vmatpush3.bf16.msra.mxu0 %v188_v3 }
   0xb   :  { %170 = vmatprep.subr.bf16.mxu0 %v194_v0 }
   0xe   :  { %171 = vmatpush3.bf16.msra.mxu0 %v189_v4 }
   0xf   :  { %172 = vmatprep.subr.bf16.mxu0 %v194_v0 }
  0x12   :  { %173 = vmatpush3.bf16.msra.mxu0 %v190_v5 }
  0x13   :  { %174 = vmatprep.subr.bf16.mxu0 %v194_v0 }
  0x16   :  { %175 = vmatpush3.bf16.msra.mxu0 %v191_v6 }
  0x17   :  { %176 = vmatprep.subr.bf16.mxu0 %v194_v0 }
  0x1a   :  { %177 = vmatpush3.bf16.msra.mxu0 %v192_v7 }
  0x1b   :  { %178 = vmatprep.subr.bf16.mxu0 %v194_v0 }
  0x1e   :  { %179 = vmatpush3.bf16.msra.mxu0 %v193_v8 }
  0x21   :  { %181 = vmatmul.mubr.bf16.vlgmr.msra.gmra.mxu0 %v21_v9 }
  0xe1   :  { %v120_v11 = vpop.f32.mrf.mxu0 }
  0xe2   :  { %v139_v12 = vadd.f32 %v154_v10, %v120_v11 }
  0xe3   :  { %v182_v13 = vpop.f32.mrf.mxu0 }
  0xe4   :  { %v140_v14 = vpack.c.bf16 %v139_v12, %v139_v12 }
  0xe5   :  { %v123_v15 = vpop.f32.mrf.mxu0 }
  0xe6   :  { %141 = vst [vmem:[%s252_s3] sm:$0xf] %v140_v14 }
  0xe7   :  { %v183_v16 = vpop.f32.mrf.mxu0 }

// kernel: resnet_forward.34
= control target key start
LH: loop header
LB: loop body
LE: loop exit
PB: predicated region body
PF: predicated region fallthrough
CT: control target
= control target key end

     0   :  { %v240_v1 = vmov 0   ;;  %v172_v18 = vlaneseq  ;;  %s318_s1 = inlined_call_operand.vmem [shape: bf16[128,256], index: 1, kind: input, shape index: {}]   ;;  %s319_s0 = inlined_call_operand.vmem [shape: bf16[8,128], index: 0, kind: input, shape index: {}]   ;;  %s320_s2 = inlined_call_operand.vmem [shape: f32[1,256], index: 2, kind: input, shape index: {}]   ;;  %s321_s3 = inlined_call_operand.vmem [shape: bf16[8,256], index: 3, kind: output, shape index: {}]  }
   0x1   :  { %v216_v0 = vld [vmem:[%s318_s1 + $0x74] ss:$8 sps:$4 sm:$0xff]   ;;  %152 = vmatprep.mubr.bf16.mxu0 %v240_v1  ;;  %v218_v2 = vld [vmem:[%s318_s1 + $0x70] ss:$8 sps:$4 sm:$0xff]   ;;  %v219_v3 = vld [vmem:[%s318_s1 + $0x64] ss:$8 sps:$4 sm:$0xff]  }
   0x2   :  { %120 = vmatprep.subr.bf16.mxu0 %v216_v0  ;;  %v221_v4 = vld [vmem:[%s318_s1 + $0x60] ss:$8 sps:$4 sm:$0xff]   ;;  %v222_v5 = vld [vmem:[%s318_s1 + $0x54] ss:$8 sps:$4 sm:$0xff]   ;;  %v224_v6 = vld [vmem:[%s318_s1 + $0x50] ss:$8 sps:$4 sm:$0xff]  }
   0x3   :  { %121 = vmatpush1.bf16.msra.mxu0 %v218_v2  ;;  %v225_v7 = vld [vmem:[%s318_s1 + $0x44] ss:$8 sps:$4 sm:$0xff]   ;;  %v227_v8 = vld [vmem:[%s318_s1 + $0x40] ss:$8 sps:$4 sm:$0xff]   ;;  %v228_v9 = vld [vmem:[%s318_s1 + $0x34] ss:$8 sps:$4 sm:$0xff]  }
   0x4   :  { %122 = vmatprep.subr.bf16.mxu0 %v219_v3  ;;  %v230_v10 = vld [vmem:[%s318_s1 + $0x30] ss:$8 sps:$4 sm:$0xff]   ;;  %v231_v11 = vld [vmem:[%s318_s1 + $0x24] ss:$8 sps:$4 sm:$0xff]   ;;  %v233_v12 = vld [vmem:[%s318_s1 + $0x20] ss:$8 sps:$4 sm:$0xff]  }
   0x5   :  { %v234_v13 = vld [vmem:[%s318_s1 + $0x14] ss:$8 sps:$4 sm:$0xff]   ;;  %v236_v14 = vld [vmem:[%s318_s1 + $0x10] ss:$8 sps:$4 sm:$0xff]   ;;  %v237_v15 = vld [vmem:[%s318_s1 + $0x4] ss:$8 sps:$4 sm:$0xff]  }
   0x6   :  { %v239_v16 = vld [vmem:[%s318_s1] ss:$8 sps:$4 sm:$0xff]   ;;  %v173_v19 = vshrl.u32 %v172_v18, 7 }
   0x7   :  { %123 = vmatpush1.bf16.msra.mxu0 %v221_v4  ;;  %v23_v17 = vld [vmem:[%s319_s0] sm:$0xf] }
   0x8   :  { %124 = vmatprep.subr.bf16.mxu0 %v222_v5  ;;  %v174_v20 = vsub.s32 0, %v173_v19  ;;  %v178_v21 = vsub.s32 1, %v173_v19  ;;  %v170_v22 = vld [vmem:[%s320_s2] sm:$0x3] }
   0xa   :  { %v175_v23 = vrot.slane %v170_v22, %v174_v20  ;;  %v179_v24 = vrot.slane %v170_v22, %v178_v21 }
   0xb   :  { %125 = vmatpush1.bf16.msra.mxu0 %v224_v6 }
   0xc   :  { %126 = vmatprep.subr.bf16.mxu0 %v225_v7 }
   0xf   :  { %127 = vmatpush1.bf16.msra.mxu0 %v227_v8 }
  0x10   :  { %128 = vmatprep.subr.bf16.mxu0 %v228_v9 }
  0x13   :  { %129 = vmatpush1.bf16.msra.mxu0 %v230_v10 }
  0x14   :  { %130 = vmatprep.subr.bf16.mxu0 %v231_v11 }
  0x17   :  { %131 = vmatpush1.bf16.msra.mxu0 %v233_v12 }
  0x18   :  { %132 = vmatprep.subr.bf16.mxu0 %v234_v13 }
  0x1b   :  { %133 = vmatpush1.bf16.msra.mxu0 %v236_v14 }
  0x1c   :  { %134 = vmatprep.subr.bf16.mxu0 %v237_v15 }
  0x1f   :  { %135 = vmatpush1.bf16.msra.mxu0 %v239_v16 }
  0x22   :  { %153 = vmatmul.mubr.bf16.vlgmr.msra.gmra.mxu0 %v23_v17 }
  0xe2   :  { %v154_v25 = vpop.f32.mrf.mxu0 }
  0xe3   :  { %v182_v27 = vadd.f32 %v175_v23, %v154_v25 }
  0xe4   :  { %v156_v26 = vpop.f32.mrf.mxu0 }
  0xe5   :  { %v183_v28 = vadd.f32 %v179_v24, %v156_v26 }
  0xe6   :  { %v158_v29 = vpop.f32.mrf.mxu0 }
  0xe7   :  { %v214_v30 = vpack.c.bf16 %v183_v28, %v182_v27 }
  0xe8   :  { %v159_v31 = vpop.f32.mrf.mxu0 }
  0xe9   :  { %192 = vst [vmem:[%s321_s3] sm:$0xff] %v214_v30 }

// kernel: resnet_forward.33
= control target key start
LH: loop header
LB: loop body
LE: loop exit
PB: predicated region body
PF: predicated region fallthrough
CT: control target
= control target key end

     0   :  { %s943_s12 = smov 0   ;;  %s945_s13 = smov 0   ;;  %s1042_s0 = inlined_call_operand.vmem [shape: bf16[8,1152], index: 0, kind: input, shape index: {}]   ;;  %s1043_s1 = inlined_call_operand.vmem [shape: bf16[1152,256], index: 1, kind: input, shape index: {}]   ;;  %s1044_s2 = inlined_call_operand.vmem [shape: f32[1,256], index: 2, kind: input, shape index: {}]   ;;  %s1045_s3 = inlined_call_operand.vmem [shape: bf16[8,256], index: 3, kind: output, shape index: {}]  }
   0x1   :  { %s947_s14 = smov 0  }
   0x2 LB: > { %s22_s15 = sadd.s32 1, %s915_s13  ;;  %p733_p0 = scmp.ge.s32.totalorder %s919_s14, 1  ;;  %s919_s14 = sphi %s947_s14, %s13_s14   ;;  %s915_s13 = sphi %s945_s13, %s1047_s13   ;;  %s911_s12 = sphi %s943_s12, %s1046_s12  }
   0x3   : > { %p23_p1 = scmp.ge.s32.totalorder %s22_s15, 3  ;;  %p168_p2 = scmp.lt.s32.totalorder %s919_s14, 4 }
   0x5   : > { %s1049_s15 = smov (%p23_p1, %s22_s15), 0  ;;  %p169_p3 = pnand %p733_p0, %p168_p2 }
   0x6   : > { %s202_s16 = smul.u32 (!%p169_p3), 3, %s911_s12  ;;  %p737_p6 = scmp.ne.s32.totalorder (!%p169_p3), %s911_s12, 0 }
   0x7   : > { %172 = sbr.rel (%p169_p3) target bundleno = 302 (0x12e), region = 32 }
   0x8   : > { %s212_s17 = smul.u32 (!%p169_p3), 48, %s911_s12  ;;  %p205_p4 = scmp.lt.s32.totalorder (!%p169_p3), %s202_s16, 8 }
   0xa   : > { %p213_p5 = scmp.lt.s32.totalorder (!%p169_p3), %s212_s17, 143 }
   0xc   : > { %s1051_s16 = smov (!%p205_p4, %s202_s16), 8  ;;  %s1053_s17 = smov (!%p213_p5, %s212_s17), 143 }
   0xd   : > { %s734_s18 = sshll.u32 %s1051_s16, 2  ;;  %s794_s22 = sshll.u32 %s1053_s17, 3 }
   0xe   : > { %s968_s21 = scalar_lea.vmem %s1042_s0, %s734_s18  ;;  %s973_s25 = scalar_lea.vmem %s1043_s1, %s794_s22 }
   0xf   : > { %228 = sbr.rel (%p737_p6) target bundleno = 22 (0x16), region = 36 }
  0x14   : > { %v921_v0 = vmov 0.0  }
  0x15   : > { %229 = vst [vmem:[#allocation2] sm:$0xff] %v921_v0  ;;  %230 = vst [vmem:[#allocation2 + $0x8] sm:$0xff] %v921_v0 }
  0x16 PF: > { %v822_v1 = vld [vmem:[%s973_s25 + $0x74] ss:$8 sps:$4 sm:$0xff]   ;;  %v824_v2 = vld [vmem:[%s973_s25 + $0x70] ss:$8 sps:$4 sm:$0xff]   ;;  %v922_v3 = vmov 0   ;;  %v233_v34 = vld [vmem:[%s968_s21] sm:$0xff] }
  0x17   : > { %607 = vmatprep.mubr.bf16.mxu1 %v922_v3  ;;  %534 = vmatprep.subr.bf16.mxu0 %v822_v1  ;;  %v825_v4 = vld [vmem:[%s973_s25 + $0x64] ss:$8 sps:$4 sm:$0xff]   ;;  %v827_v5 = vld [vmem:[%s973_s25 + $0x60] ss:$8 sps:$4 sm:$0xff]   ;;  %v828_v6 = vld [vmem:[%s973_s25 + $0x54] ss:$8 sps:$4 sm:$0xff]   ;;  %v739_v36 = vcombine.high %v233_v34, %v233_v34  ;;  %v738_v53 = vcombine.low %v233_v34, %v233_v34 }
  0x18   : > { %535 = vmatpush1.bf16.msra.mxu0 %v824_v2  ;;  %v830_v7 = vld [vmem:[%s973_s25 + $0x50] ss:$8 sps:$4 sm:$0xff]   ;;  %v831_v8 = vld [vmem:[%s973_s25 + $0x44] ss:$8 sps:$4 sm:$0xff]   ;;  %v843_v9 = vld [vmem:[%s973_s25 + $0x174] ss:$8 sps:$4 sm:$0xff]  }
  0x19   : > { %536 = vmatprep.subr.bf16.mxu0 %v825_v4  ;;  %v845_v10 = vld [vmem:[%s973_s25 + $0x170] ss:$8 sps:$4 sm:$0xff]   ;;  %v833_v11 = vld [vmem:[%s973_s25 + $0x40] ss:$8 sps:$4 sm:$0xff]   ;;  %v834_v12 = vld [vmem:[%s973_s25 + $0x34] ss:$8 sps:$4 sm:$0xff]   ;;  %575 = vmatprep.subr.bf16.mxu1 %v843_v9 }
  0x1a   : > { %v849_v13 = vld [vmem:[%s973_s25 + $0x164] ss:$8 sps:$4 sm:$0xff]   ;;  %576 = vmatpush1.bf16.msra.mxu1 %v845_v10  ;;  %v851_v14 = vld [vmem:[%s973_s25 + $0x160] ss:$8 sps:$4 sm:$0xff]   ;;  %v836_v15 = vld [vmem:[%s973_s25 + $0x30] ss:$8 sps:$4 sm:$0xff]   ;;  %566 = vmatprep.mubr.bf16.mxu0 %v739_v36 }
  0x1b   : > { %577 = vmatprep.subr.bf16.mxu1 %v849_v13  ;;  %v855_v16 = vld [vmem:[%s973_s25 + $0x154] ss:$8 sps:$4 sm:$0xff]   ;;  %v837_v17 = vld [vmem:[%s973_s25 + $0x24] ss:$8 sps:$4 sm:$0xff]   ;;  %v857_v18 = vld [vmem:[%s973_s25 + $0x150] ss:$8 sps:$4 sm:$0xff]  }
  0x1c   : > { %537 = vmatpush1.bf16.msra.mxu0 %v827_v5  ;;  %v861_v19 = vld [vmem:[%s973_s25 + $0x144] ss:$8 sps:$4 sm:$0xff]   ;;  %v839_v20 = vld [vmem:[%s973_s25 + $0x20] ss:$8 sps:$4 sm:$0xff]   ;;  %v840_v21 = vld [vmem:[%s973_s25 + $0x14] ss:$8 sps:$4 sm:$0xff]  }
  0x1d   : > { %538 = vmatprep.subr.bf16.mxu0 %v828_v6  ;;  %v863_v22 = vld [vmem:[%s973_s25 + $0x140] ss:$8 sps:$4 sm:$0xff]   ;;  %v867_v23 = vld [vmem:[%s973_s25 + $0x134] ss:$8 sps:$4 sm:$0xff]   ;;  %v842_v24 = vld [vmem:[%s973_s25 + $0x10] ss:$8 sps:$4 sm:$0xff]  }
  0x1e   : > { %578 = vmatpush1.bf16.msra.mxu1 %v851_v14  ;;  %v846_v25 = vld [vmem:[%s973_s25 + $0x4] ss:$8 sps:$4 sm:$0xff]   ;;  %v869_v26 = vld [vmem:[%s973_s25 + $0x130] ss:$8 sps:$4 sm:$0xff]   ;;  %v848_v28 = vld [vmem:[%s973_s25] ss:$8 sps:$4 sm:$0xff]  }
  0x1f   : > { %579 = vmatprep.subr.bf16.mxu1 %v855_v16  ;;  %v873_v27 = vld [vmem:[%s973_s25 + $0x124] ss:$8 sps:$4 sm:$0xff]   ;;  %v852_v29 = vld [vmem:[%s973_s25 + $0xf4] ss:$8 sps:$4 sm:$0xff]   ;;  %v875_v30 = vld [vmem:[%s973_s25 + $0x120] ss:$8 sps:$4 sm:$0xff]  }
  0x20   : > { %539 = vmatpush1.bf16.msra.mxu0 %v830_v7  ;;  %v879_v31 = vld [vmem:[%s973_s25 + $0x114] ss:$8 sps:$4 sm:$0xff]   ;;  %v854_v32 = vld [vmem:[%s973_s25 + $0xf0] ss:$8 sps:$4 sm:$0xff]   ;;  %v858_v33 = vld [vmem:[%s973_s25 + $0xe4] ss:$8 sps:$4 sm:$0xff]  }
  0x21   : > { %540 = vmatprep.subr.bf16.mxu0 %v831_v8  ;;  %v881_v35 = vld [vmem:[%s973_s25 + $0x110] ss:$8 sps:$4 sm:$0xff]   ;;  %v885_v37 = vld [vmem:[%s973_s25 + $0x104] ss:$8 sps:$4 sm:$0xff]   ;;  %v860_v38 = vld [vmem:[%s973_s25 + $0xe0] ss:$8 sps:$4 sm:$0xff]  }
  0x22   : > { %580 = vmatpush1.bf16.msra.mxu1 %v857_v18  ;;  %v864_v39 = vld [vmem:[%s973_s25 + $0xd4] ss:$8 sps:$4 sm:$0xff]   ;;  %v887_v40 = vld [vmem:[%s973_s25 + $0x100] ss:$8 sps:$4 sm:$0xff]   ;;  %v866_v41 = vld [vmem:[%s973_s25 + $0xd0] ss:$8 sps:$4 sm:$0xff]  }
  0x23   : > { %581 = vmatprep.subr.bf16.mxu1 %v861_v19  ;;  %v870_v42 = vld [vmem:[%s973_s25 + $0xc4] ss:$8 sps:$4 sm:$0xff]   ;;  %v891_v43 = vld [vmem:[%s968_s21 + $0x8] ss:$0 sps:$4 sm:$0xff]   ;;  %v876_v45 = vld [vmem:[%s973_s25 + $0xb4] ss:$8 sps:$4 sm:$0xff]  }
  0x24   : > { %541 = vmatpush1.bf16.msra.mxu0 %v833_v11  ;;  %v872_v44 = vld [vmem:[%s973_s25 + $0xc0] ss:$8 sps:$4 sm:$0xff]   ;;  %v878_v46 = vld [vmem:[%s973_s25 + $0xb0] ss:$8 sps:$4 sm:$0xff]   ;;  %v882_v47 = vld [vmem:[%s973_s25 + $0xa4] ss:$8 sps:$4 sm:$0xff]  }
  0x25   : > { %542 = vmatprep.subr.bf16.mxu0 %v834_v12  ;;  %v884_v48 = vld [vmem:[%s973_s25 + $0xa0] ss:$8 sps:$4 sm:$0xff]   ;;  %v888_v49 = vld [vmem:[%s973_s25 + $0x94] ss:$8 sps:$4 sm:$0xff]   ;;  %v890_v50 = vld [vmem:[%s973_s25 + $0x90] ss:$8 sps:$4 sm:$0xff]  }
  0x26   : > { %582 = vmatpush1.bf16.msra.mxu1 %v863_v22  ;;  %v892_v51 = vld [vmem:[%s973_s25 + $0x84] ss:$8 sps:$4 sm:$0xff]   ;;  %v894_v52 = vld [vmem:[%s973_s25 + $0x80] ss:$8 sps:$4 sm:$0xff]   ;;  %p789_p7 = scmp.ne.s32.totalorder %s911_s12, 2 }
  0x27   : > { %583 = vmatprep.subr.bf16.mxu1 %v867_v23  ;;  %v231_v58 = vld [vmem:[#allocation2] sm:$0xff]  ;;  %v232_v61 = vld [vmem:[#allocation2 + $0x8] sm:$0xff] }
  0x28   : > { %543 = vmatpush1.bf16.msra.mxu0 %v836_v15 }
  0x29   : > { %544 = vmatprep.subr.bf16.mxu0 %v837_v17 }
  0x2a   : > { %584 = vmatpush1.bf16.msra.mxu1 %v869_v26 }
  0x2b   : > { %585 = vmatprep.subr.bf16.mxu1 %v873_v27 }
  0x2c   : > { %545 = vmatpush1.bf16.msra.mxu0 %v839_v20 }
  0x2d   : > { %546 = vmatprep.subr.bf16.mxu0 %v840_v21 }
  0x2e   : > { %586 = vmatpush1.bf16.msra.mxu1 %v875_v30 }
  0x2f   : > { %587 = vmatprep.subr.bf16.mxu1 %v879_v31 }
  0x30   : > { %547 = vmatpush1.bf16.msra.mxu0 %v842_v24 }
  0x31   : > { %548 = vmatprep.subr.bf16.mxu0 %v846_v25 }
  0x32   : > { %588 = vmatpush1.bf16.msra.mxu1 %v881_v35 }
  0x33   : > { %589 = vmatprep.subr.bf16.mxu1 %v885_v37 }
  0x34   : > { %549 = vmatpush1.bf16.msra.mxu0 %v848_v28 }
  0x35   : > { %550 = vmatprep.subr.bf16.mxu0 %v852_v29 }
  0x36   : > { %590 = vmatpush1.bf16.msra.mxu1 %v887_v40 }
  0x38   : > { %551 = vmatpush2.bf16.msra.mxu0 %v854_v32 }
  0x39   : > { %552 = vmatprep.subr.bf16.mxu0 %v858_v33  ;;  %608 = vmatmul.mubr.bf16.vlgmr.msra.gmra.mxu1 %v891_v43 }
  0x3c   : > { %553 = vmatpush2.bf16.msra.mxu0 %v860_v38 }
  0x3d   : > { %554 = vmatprep.subr.bf16.mxu0 %v864_v39 }
  0x40   : > { %555 = vmatpush2.bf16.msra.mxu0 %v866_v41 }
  0x41   : > { %556 = vmatprep.subr.bf16.mxu0 %v870_v42 }
  0x44   : > { %557 = vmatpush2.bf16.msra.mxu0 %v872_v44 }
  0x45   : > { %558 = vmatprep.subr.bf16.mxu0 %v876_v45 }
  0x48   : > { %559 = vmatpush2.bf16.msra.mxu0 %v878_v46 }
  0x49   : > { %560 = vmatprep.subr.bf16.mxu0 %v882_v47 }
  0x4c   : > { %561 = vmatpush2.bf16.msra.mxu0 %v884_v48 }
  0x4d   : > { %562 = vmatprep.subr.bf16.mxu0 %v888_v49 }
  0x50   : > { %563 = vmatpush2.bf16.msra.mxu0 %v890_v50 }
  0x51   : > { %564 = vmatprep.subr.bf16.mxu0 %v892_v51 }
  0x54   : > { %565 = vmatpush2.bf16.msra.mxu0 %v894_v52 }
  0x57   : > { %567 = vmatmul.mubr.bf16.vlgmr.msra.gmra.mxu0 %v738_v53 }
  0xf9   : > { %v609_v54 = vpop.f32.mrf.mxu1 }
  0xfb   : > { %v611_v55 = vpop.f32.mrf.mxu1 }
  0xfd   : > { %v613_v56 = vpop.f32.mrf.mxu1 }
  0xff   : > { %v614_v57 = vpop.f32.mrf.mxu1 }
 0x117   : > { %v568_v59 = vpop.f32.mrf.mxu0 }
 0x118   : > { %v610_v60 = vadd.f32 %v609_v54, %v568_v59 }
 0x119   : > { %v570_v62 = vpop.f32.mrf.mxu0 }
 0x11a   : > { %v616_v63 = vadd.f32 %v610_v60, %v231_v58  ;;  %v612_v0 = vadd.f32 %v611_v55, %v570_v62  ;;  %623 = sbr.rel (%p789_p7) target bundleno = 302 (0x12e), region = 40 }
 0x11b   : > { %v572_v1 = vpop.f32.mrf.mxu0 }
 0x11c   : > { %618 = vst [vmem:[#allocation2] sm:$0xff] %v616_v63  ;;  %v617_v2 = vadd.f32 %v612_v0, %v232_v61 }
 0x11d   : > { %v573_v3 = vpop.f32.mrf.mxu0 }
 0x11e   : > { %619 = vst [vmem:[#allocation2 + $0x8] sm:$0xff] %v617_v2 }
 0x11f   : > { %v628_v4 = vlaneseq  ;;  %v626_v6 = vld [vmem:[%s1044_s2] sm:$0x3] }
 0x121   : > { %v629_v5 = vshrl.u32 %v628_v4, 7 }
 0x123   : > { %v630_v7 = vsub.s32 0, %v629_v5  ;;  %v634_v8 = vsub.s32 1, %v629_v5  ;;  %v624_v9 = vld [vmem:[#allocation2] sm:$0xff] }
 0x125   : > { %v625_v10 = vld [vmem:[#allocation2 + $0x8] sm:$0xff]  ;;  %v631_v11 = vrot.slane %v626_v6, %v630_v7  ;;  %v635_v12 = vrot.slane %v626_v6, %v634_v8 }
 0x127   : > { %v638_v13 = vadd.f32 %v631_v11, %v624_v9  ;;  %v639_v14 = vadd.f32 %v635_v12, %v625_v10 }
 0x129   : > { %v640_v15 = vmax.f32 %v638_v13, 0.0  ;;  %v641_v16 = vmax.f32 %v639_v14, 0.0 }
 0x12b   : > { %v795_v17 = vpack.c.bf16 %v641_v16, %v640_v15 }
 0x12d   : > { %650 = vst [vmem:[%s1045_s3] sm:$0xff] %v795_v17 }
 0x12e PF: > { %s13_s14 = sadd.s32 1, %s919_s14   ;;  %s1046_s12 = smov %s915_s13 }
 0x12f   : > { %p10_p8 = scmp.ge.s32.totalorder %s13_s14, 5   ;;  %s1047_s13 = smov %s1049_s15 }
 0x131   :  { %12 = sbr.rel (!%p10_p8) target bundleno = 2 (0x2), region = 73 }

// kernel: resnet_forward.35
= control target key start
LH: loop header
LB: loop body
LE: loop exit
PB: predicated region body
PF: predicated region fallthrough
CT: control target
= control target key end

     0   :  { %s1016_s15 = smov 0   ;;  %s1018_s16 = smov 0   ;;  %s1118_s0 = inlined_call_operand.vmem [shape: bf16[8,2304], index: 0, kind: input, shape index: {}]   ;;  %s1119_s1 = inlined_call_operand.vmem [shape: bf16[2304,256], index: 1, kind: input, shape index: {}]   ;;  %s1120_s2 = inlined_call_operand.vmem [shape: f32[1,256], index: 2, kind: input, shape index: {}]   ;;  %s1121_s3 = inlined_call_operand.vmem [shape: bf16[8,256], index: 3, kind: input, shape index: {}]   ;;  %s1122_s4 = inlined_call_operand.vmem [shape: bf16[8,256], index: 4, kind: output, shape index: {}]  }
   0x1   :  { %s1020_s17 = smov 0  }
   0x2 LB: > { %s23_s18 = sadd.s32 1, %s983_s16  ;;  %p801_p0 = scmp.ge.s32.totalorder %s987_s17, 1  ;;  %s987_s17 = sphi %s1020_s17, %s14_s17   ;;  %s983_s16 = sphi %s1018_s16, %s1124_s16   ;;  %s979_s15 = sphi %s1016_s15, %s1123_s15  }
   0x3   : > { %p24_p1 = scmp.ge.s32.totalorder %s23_s18, 6  ;;  %p203_p2 = scmp.lt.s32.totalorder %s987_s17, 7 }
   0x5   : > { %s1126_s18 = smov (%p24_p1, %s23_s18), 0  ;;  %p204_p3 = pnand %p801_p0, %p203_p2 }
   0x6   : > { %s244_s19 = smul.u32 (!%p204_p3), 3, %s979_s15  ;;  %p805_p6 = scmp.ne.s32.totalorder (!%p204_p3), %s979_s15, 0 }
   0x7   : > { %207 = sbr.rel (%p204_p3) target bundleno = 304 (0x130), region = 36 }
   0x8   : > { %s254_s20 = smul.u32 (!%p204_p3), 48, %s979_s15  ;;  %p247_p4 = scmp.lt.s32.totalorder (!%p204_p3), %s244_s19, 17 }
   0xa   : > { %p255_p5 = scmp.lt.s32.totalorder (!%p204_p3), %s254_s20, 287 }
   0xc   : > { %s1128_s19 = smov (!%p247_p4, %s244_s19), 17  ;;  %s1130_s20 = smov (!%p255_p5, %s254_s20), 287 }
   0xd   : > { %s802_s21 = sshll.u32 %s1128_s19, 2  ;;  %s862_s25 = sshll.u32 %s1130_s20, 3 }
   0xe   : > { %s1041_s24 = scalar_lea.vmem %s1118_s0, %s802_s21  ;;  %s1046_s28 = scalar_lea.vmem %s1119_s1, %s862_s25 }
   0xf   : > { %275 = sbr.rel (%p805_p6) target bundleno = 22 (0x16), region = 40 }
  0x14   : > { %v989_v0 = vmov 0.0  }
  0x15   : > { %276 = vst [vmem:[#allocation2] sm:$0xff] %v989_v0  ;;  %277 = vst [vmem:[#allocation2 + $0x8] sm:$0xff] %v989_v0 }
  0x16 PF: > { %v890_v1 = vld [vmem:[%s1046_s28 + $0x74] ss:$8 sps:$4 sm:$0xff]   ;;  %v892_v2 = vld [vmem:[%s1046_s28 + $0x70] ss:$8 sps:$4 sm:$0xff]   ;;  %v990_v3 = vmov 0   ;;  %v280_v34 = vld [vmem:[%s1041_s24] sm:$0xff] }
  0x17   : > { %654 = vmatprep.mubr.bf16.mxu1 %v990_v3  ;;  %581 = vmatprep.subr.bf16.mxu0 %v890_v1  ;;  %v893_v4 = vld [vmem:[%s1046_s28 + $0x64] ss:$8 sps:$4 sm:$0xff]   ;;  %v895_v5 = vld [vmem:[%s1046_s28 + $0x60] ss:$8 sps:$4 sm:$0xff]   ;;  %v896_v6 = vld [vmem:[%s1046_s28 + $0x54] ss:$8 sps:$4 sm:$0xff]   ;;  %v807_v36 = vcombine.high %v280_v34, %v280_v34  ;;  %v806_v53 = vcombine.low %v280_v34, %v280_v34 }
  0x18   : > { %582 = vmatpush1.bf16.msra.mxu0 %v892_v2  ;;  %v898_v7 = vld [vmem:[%s1046_s28 + $0x50] ss:$8 sps:$4 sm:$0xff]   ;;  %v899_v8 = vld [vmem:[%s1046_s28 + $0x44] ss:$8 sps:$4 sm:$0xff]   ;;  %v911_v9 = vld [vmem:[%s1046_s28 + $0x174] ss:$8 sps:$4 sm:$0xff]  }
  0x19   : > { %583 = vmatprep.subr.bf16.mxu0 %v893_v4  ;;  %v913_v10 = vld [vmem:[%s1046_s28 + $0x170] ss:$8 sps:$4 sm:$0xff]   ;;  %v901_v11 = vld [vmem:[%s1046_s28 + $0x40] ss:$8 sps:$4 sm:$0xff]   ;;  %v902_v12 = vld [vmem:[%s1046_s28 + $0x34] ss:$8 sps:$4 sm:$0xff]   ;;  %622 = vmatprep.subr.bf16.mxu1 %v911_v9 }
  0x1a   : > { %v917_v13 = vld [vmem:[%s1046_s28 + $0x164] ss:$8 sps:$4 sm:$0xff]   ;;  %623 = vmatpush1.bf16.msra.mxu1 %v913_v10  ;;  %v919_v14 = vld [vmem:[%s1046_s28 + $0x160] ss:$8 sps:$4 sm:$0xff]   ;;  %v904_v15 = vld [vmem:[%s1046_s28 + $0x30] ss:$8 sps:$4 sm:$0xff]   ;;  %613 = vmatprep.mubr.bf16.mxu0 %v807_v36 }
  0x1b   : > { %624 = vmatprep.subr.bf16.mxu1 %v917_v13  ;;  %v923_v16 = vld [vmem:[%s1046_s28 + $0x154] ss:$8 sps:$4 sm:$0xff]   ;;  %v905_v17 = vld [vmem:[%s1046_s28 + $0x24] ss:$8 sps:$4 sm:$0xff]   ;;  %v925_v18 = vld [vmem:[%s1046_s28 + $0x150] ss:$8 sps:$4 sm:$0xff]  }
  0x1c   : > { %584 = vmatpush1.bf16.msra.mxu0 %v895_v5  ;;  %v929_v19 = vld [vmem:[%s1046_s28 + $0x144] ss:$8 sps:$4 sm:$0xff]   ;;  %v907_v20 = vld [vmem:[%s1046_s28 + $0x20] ss:$8 sps:$4 sm:$0xff]   ;;  %v908_v21 = vld [vmem:[%s1046_s28 + $0x14] ss:$8 sps:$4 sm:$0xff]  }
  0x1d   : > { %585 = vmatprep.subr.bf16.mxu0 %v896_v6  ;;  %v931_v22 = vld [vmem:[%s1046_s28 + $0x140] ss:$8 sps:$4 sm:$0xff]   ;;  %v935_v23 = vld [vmem:[%s1046_s28 + $0x134] ss:$8 sps:$4 sm:$0xff]   ;;  %v910_v24 = vld [vmem:[%s1046_s28 + $0x10] ss:$8 sps:$4 sm:$0xff]  }
  0x1e   : > { %625 = vmatpush1.bf16.msra.mxu1 %v919_v14  ;;  %v914_v25 = vld [vmem:[%s1046_s28 + $0x4] ss:$8 sps:$4 sm:$0xff]   ;;  %v937_v26 = vld [vmem:[%s1046_s28 + $0x130] ss:$8 sps:$4 sm:$0xff]   ;;  %v916_v28 = vld [vmem:[%s1046_s28] ss:$8 sps:$4 sm:$0xff]  }
  0x1f   : > { %626 = vmatprep.subr.bf16.mxu1 %v923_v16  ;;  %v941_v27 = vld [vmem:[%s1046_s28 + $0x124] ss:$8 sps:$4 sm:$0xff]   ;;  %v920_v29 = vld [vmem:[%s1046_s28 + $0xf4] ss:$8 sps:$4 sm:$0xff]   ;;  %v943_v30 = vld [vmem:[%s1046_s28 + $0x120] ss:$8 sps:$4 sm:$0xff]  }
  0x20   : > { %586 = vmatpush1.bf16.msra.mxu0 %v898_v7  ;;  %v947_v31 = vld [vmem:[%s1046_s28 + $0x114] ss:$8 sps:$4 sm:$0xff]   ;;  %v922_v32 = vld [vmem:[%s1046_s28 + $0xf0] ss:$8 sps:$4 sm:$0xff]   ;;  %v926_v33 = vld [vmem:[%s1046_s28 + $0xe4] ss:$8 sps:$4 sm:$0xff]  }
  0x21   : > { %587 = vmatprep.subr.bf16.mxu0 %v899_v8  ;;  %v949_v35 = vld [vmem:[%s1046_s28 + $0x110] ss:$8 sps:$4 sm:$0xff]   ;;  %v953_v37 = vld [vmem:[%s1046_s28 + $0x104] ss:$8 sps:$4 sm:$0xff]   ;;  %v928_v38 = vld [vmem:[%s1046_s28 + $0xe0] ss:$8 sps:$4 sm:$0xff]  }
  0x22   : > { %627 = vmatpush1.bf16.msra.mxu1 %v925_v18  ;;  %v932_v39 = vld [vmem:[%s1046_s28 + $0xd4] ss:$8 sps:$4 sm:$0xff]   ;;  %v955_v40 = vld [vmem:[%s1046_s28 + $0x100] ss:$8 sps:$4 sm:$0xff]   ;;  %v934_v41 = vld [vmem:[%s1046_s28 + $0xd0] ss:$8 sps:$4 sm:$0xff]  }
  0x23   : > { %628 = vmatprep.subr.bf16.mxu1 %v929_v19  ;;  %v938_v42 = vld [vmem:[%s1046_s28 + $0xc4] ss:$8 sps:$4 sm:$0xff]   ;;  %v959_v43 = vld [vmem:[%s1041_s24 + $0x8] ss:$0 sps:$4 sm:$0xff]   ;;  %v944_v45 = vld [vmem:[%s1046_s28 + $0xb4] ss:$8 sps:$4 sm:$0xff]  }
  0x24   : > { %588 = vmatpush1.bf16.msra.mxu0 %v901_v11  ;;  %v940_v44 = vld [vmem:[%s1046_s28 + $0xc0] ss:$8 sps:$4 sm:$0xff]   ;;  %v946_v46 = vld [vmem:[%s1046_s28 + $0xb0] ss:$8 sps:$4 sm:$0xff]   ;;  %v950_v47 = vld [vmem:[%s1046_s28 + $0xa4] ss:$8 sps:$4 sm:$0xff]  }
  0x25   : > { %589 = vmatprep.subr.bf16.mxu0 %v902_v12  ;;  %v952_v48 = vld [vmem:[%s1046_s28 + $0xa0] ss:$8 sps:$4 sm:$0xff]   ;;  %v956_v49 = vld [vmem:[%s1046_s28 + $0x94] ss:$8 sps:$4 sm:$0xff]   ;;  %v958_v50 = vld [vmem:[%s1046_s28 + $0x90] ss:$8 sps:$4 sm:$0xff]  }
  0x26   : > { %629 = vmatpush1.bf16.msra.mxu1 %v931_v22  ;;  %v960_v51 = vld [vmem:[%s1046_s28 + $0x84] ss:$8 sps:$4 sm:$0xff]   ;;  %v962_v52 = vld [vmem:[%s1046_s28 + $0x80] ss:$8 sps:$4 sm:$0xff]   ;;  %p857_p7 = scmp.ne.s32.totalorder %s979_s15, 5 }
  0x27   : > { %630 = vmatprep.subr.bf16.mxu1 %v935_v23  ;;  %v278_v58 = vld [vmem:[#allocation2] sm:$0xff]  ;;  %v279_v61 = vld [vmem:[#allocation2 + $0x8] sm:$0xff] }
  0x28   : > { %590 = vmatpush1.bf16.msra.mxu0 %v904_v15 }
  0x29   : > { %591 = vmatprep.subr.bf16.mxu0 %v905_v17 }
  0x2a   : > { %631 = vmatpush1.bf16.msra.mxu1 %v937_v26 }
  0x2b   : > { %632 = vmatprep.subr.bf16.mxu1 %v941_v27 }
  0x2c   : > { %592 = vmatpush1.bf16.msra.mxu0 %v907_v20 }
  0x2d   : > { %593 = vmatprep.subr.bf16.mxu0 %v908_v21 }
  0x2e   : > { %633 = vmatpush1.bf16.msra.mxu1 %v943_v30 }
  0x2f   : > { %634 = vmatprep.subr.bf16.mxu1 %v947_v31 }
  0x30   : > { %594 = vmatpush1.bf16.msra.mxu0 %v910_v24 }
  0x31   : > { %595 = vmatprep.subr.bf16.mxu0 %v914_v25 }
  0x32   : > { %635 = vmatpush1.bf16.msra.mxu1 %v949_v35 }
  0x33   : > { %636 = vmatprep.subr.bf16.mxu1 %v953_v37 }
  0x34   : > { %596 = vmatpush1.bf16.msra.mxu0 %v916_v28 }
  0x35   : > { %597 = vmatprep.subr.bf16.mxu0 %v920_v29 }
  0x36   : > { %637 = vmatpush1.bf16.msra.mxu1 %v955_v40 }
  0x38   : > { %598 = vmatpush2.bf16.msra.mxu0 %v922_v32 }
  0x39   : > { %599 = vmatprep.subr.bf16.mxu0 %v926_v33  ;;  %655 = vmatmul.mubr.bf16.vlgmr.msra.gmra.mxu1 %v959_v43 }
  0x3c   : > { %600 = vmatpush2.bf16.msra.mxu0 %v928_v38 }
  0x3d   : > { %601 = vmatprep.subr.bf16.mxu0 %v932_v39 }
  0x40   : > { %602 = vmatpush2.bf16.msra.mxu0 %v934_v41 }
  0x41   : > { %603 = vmatprep.subr.bf16.mxu0 %v938_v42 }
  0x44   : > { %604 = vmatpush2.bf16.msra.mxu0 %v940_v44 }
  0x45   : > { %605 = vmatprep.subr.bf16.mxu0 %v944_v45 }
  0x48   : > { %606 = vmatpush2.bf16.msra.mxu0 %v946_v46 }
  0x49   : > { %607 = vmatprep.subr.bf16.mxu0 %v950_v47 }
  0x4c   : > { %608 = vmatpush2.bf16.msra.mxu0 %v952_v48 }
  0x4d   : > { %609 = vmatprep.subr.bf16.mxu0 %v956_v49 }
  0x50   : > { %610 = vmatpush2.bf16.msra.mxu0 %v958_v50 }
  0x51   : > { %611 = vmatprep.subr.bf16.mxu0 %v960_v51 }
  0x54   : > { %612 = vmatpush2.bf16.msra.mxu0 %v962_v52 }
  0x57   : > { %614 = vmatmul.mubr.bf16.vlgmr.msra.gmra.mxu0 %v806_v53 }
  0xf9   : > { %v656_v54 = vpop.f32.mrf.mxu1 }
  0xfb   : > { %v658_v55 = vpop.f32.mrf.mxu1 }
  0xfd   : > { %v660_v56 = vpop.f32.mrf.mxu1 }
  0xff   : > { %v661_v57 = vpop.f32.mrf.mxu1 }
 0x117   : > { %v615_v59 = vpop.f32.mrf.mxu0 }
 0x118   : > { %v657_v60 = vadd.f32 %v656_v54, %v615_v59 }
 0x119   : > { %v617_v62 = vpop.f32.mrf.mxu0 }
 0x11a   : > { %v663_v63 = vadd.f32 %v657_v60, %v278_v58  ;;  %v659_v0 = vadd.f32 %v658_v55, %v617_v62  ;;  %670 = sbr.rel (%p857_p7) target bundleno = 304 (0x130), region = 44 }
 0x11b   : > { %v619_v1 = vpop.f32.mrf.mxu0 }
 0x11c   : > { %665 = vst [vmem:[#allocation2] sm:$0xff] %v663_v63  ;;  %v664_v2 = vadd.f32 %v659_v0, %v279_v61 }
 0x11d   : > { %v620_v3 = vpop.f32.mrf.mxu0 }
 0x11e   : > { %666 = vst [vmem:[#allocation2 + $0x8] sm:$0xff] %v664_v2 }
 0x11f   : > { %v675_v4 = vlaneseq  ;;  %v673_v6 = vld [vmem:[%s1120_s2] sm:$0x3] }
 0x120   : > { %v687_v7 = vld [vmem:[%s1121_s3] sm:$0xff] }
 0x121   : > { %v676_v5 = vshrl.u32 %v675_v4, 7  ;;  %v688_v14 = vunpack.c.l.bf16 %v687_v7  ;;  %v689_v15 = vunpack.c.h.bf16 %v687_v7 }
 0x123   : > { %v677_v8 = vsub.s32 0, %v676_v5  ;;  %v681_v9 = vsub.s32 1, %v676_v5  ;;  %v671_v10 = vld [vmem:[#allocation2] sm:$0xff] }
 0x125   : > { %v672_v11 = vld [vmem:[#allocation2 + $0x8] sm:$0xff]  ;;  %v678_v12 = vrot.slane %v673_v6, %v677_v8  ;;  %v682_v13 = vrot.slane %v673_v6, %v681_v9 }
 0x127   : > { %v685_v16 = vadd.f32 %v678_v12, %v671_v10  ;;  %v686_v17 = vadd.f32 %v682_v13, %v672_v11 }
 0x129   : > { %v690_v18 = vadd.f32 %v688_v14, %v685_v16  ;;  %v691_v19 = vadd.f32 %v689_v15, %v686_v17 }
 0x12b   : > { %v692_v20 = vmax.f32 %v690_v18, 0.0  ;;  %v693_v21 = vmax.f32 %v691_v19, 0.0 }
 0x12d   : > { %v863_v22 = vpack.c.bf16 %v693_v21, %v692_v20 }
 0x12f   : > { %702 = vst [vmem:[%s1122_s4] sm:$0xff] %v863_v22 }
 0x130 PF: > { %s14_s17 = sadd.s32 1, %s987_s17   ;;  %s1123_s15 = smov %s983_s16 }
 0x131   : > { %p11_p8 = scmp.ge.s32.totalorder %s14_s17, 8   ;;  %s1124_s16 = smov %s1126_s18 }
 0x133   :  { %13 = sbr.rel (!%p11_p8) target bundleno = 2 (0x2), region = 80 }

// kernel: resnet_forward.36
= control target key start
LH: loop header
LB: loop body
LE: loop exit
PB: predicated region body
PF: predicated region fallthrough
CT: control target
= control target key end

     0   :  { %s943_s12 = smov 0   ;;  %s945_s13 = smov 0   ;;  %s1042_s0 = inlined_call_operand.vmem [shape: bf16[8,2304], index: 0, kind: input, shape index: {}]   ;;  %s1043_s1 = inlined_call_operand.vmem [shape: bf16[2304,256], index: 1, kind: input, shape index: {}]   ;;  %s1044_s2 = inlined_call_operand.vmem [shape: f32[1,256], index: 2, kind: input, shape index: {}]   ;;  %s1045_s3 = inlined_call_operand.vmem [shape: bf16[8,256], index: 3, kind: output, shape index: {}]  }
   0x1   :  { %s947_s14 = smov 0  }
   0x2 LB: > { %s22_s15 = sadd.s32 1, %s915_s13  ;;  %p733_p0 = scmp.ge.s32.totalorder %s919_s14, 1  ;;  %s919_s14 = sphi %s947_s14, %s13_s14   ;;  %s915_s13 = sphi %s945_s13, %s1047_s13   ;;  %s911_s12 = sphi %s943_s12, %s1046_s12  }
   0x3   : > { %p23_p1 = scmp.ge.s32.totalorder %s22_s15, 6  ;;  %p168_p2 = scmp.lt.s32.totalorder %s919_s14, 7 }
   0x5   : > { %s1049_s15 = smov (%p23_p1, %s22_s15), 0  ;;  %p169_p3 = pnand %p733_p0, %p168_p2 }
   0x6   : > { %s202_s16 = smul.u32 (!%p169_p3), 3, %s911_s12  ;;  %p737_p6 = scmp.ne.s32.totalorder (!%p169_p3), %s911_s12, 0 }
   0x7   : > { %172 = sbr.rel (%p169_p3) target bundleno = 302 (0x12e), region = 32 }
   0x8   : > { %s212_s17 = smul.u32 (!%p169_p3), 48, %s911_s12  ;;  %p205_p4 = scmp.lt.s32.totalorder (!%p169_p3), %s202_s16, 17 }
   0xa   : > { %p213_p5 = scmp.lt.s32.totalorder (!%p169_p3), %s212_s17, 287 }
   0xc   : > { %s1051_s16 = smov (!%p205_p4, %s202_s16), 17  ;;  %s1053_s17 = smov (!%p213_p5, %s212_s17), 287 }
   0xd   : > { %s734_s18 = sshll.u32 %s1051_s16, 2  ;;  %s794_s22 = sshll.u32 %s1053_s17, 3 }
   0xe   : > { %s968_s21 = scalar_lea.vmem %s1042_s0, %s734_s18  ;;  %s973_s25 = scalar_lea.vmem %s1043_s1, %s794_s22 }
   0xf   : > { %228 = sbr.rel (%p737_p6) target bundleno = 22 (0x16), region = 36 }
  0x14   : > { %v921_v0 = vmov 0.0  }
  0x15   : > { %229 = vst [vmem:[#allocation2] sm:$0xff] %v921_v0  ;;  %230 = vst [vmem:[#allocation2 + $0x8] sm:$0xff] %v921_v0 }
  0x16 PF: > { %v822_v1 = vld [vmem:[%s973_s25 + $0x74] ss:$8 sps:$4 sm:$0xff]   ;;  %v824_v2 = vld [vmem:[%s973_s25 + $0x70] ss:$8 sps:$4 sm:$0xff]   ;;  %v922_v3 = vmov 0   ;;  %v233_v34 = vld [vmem:[%s968_s21] sm:$0xff] }
  0x17   : > { %607 = vmatprep.mubr.bf16.mxu1 %v922_v3  ;;  %534 = vmatprep.subr.bf16.mxu0 %v822_v1  ;;  %v825_v4 = vld [vmem:[%s973_s25 + $0x64] ss:$8 sps:$4 sm:$0xff]   ;;  %v827_v5 = vld [vmem:[%s973_s25 + $0x60] ss:$8 sps:$4 sm:$0xff]   ;;  %v828_v6 = vld [vmem:[%s973_s25 + $0x54] ss:$8 sps:$4 sm:$0xff]   ;;  %v739_v36 = vcombine.high %v233_v34, %v233_v34  ;;  %v738_v53 = vcombine.low %v233_v34, %v233_v34 }
  0x18   : > { %535 = vmatpush1.bf16.msra.mxu0 %v824_v2  ;;  %v830_v7 = vld [vmem:[%s973_s25 + $0x50] ss:$8 sps:$4 sm:$0xff]   ;;  %v831_v8 = vld [vmem:[%s973_s25 + $0x44] ss:$8 sps:$4 sm:$0xff]   ;;  %v843_v9 = vld [vmem:[%s973_s25 + $0x174] ss:$8 sps:$4 sm:$0xff]  }
  0x19   : > { %536 = vmatprep.subr.bf16.mxu0 %v825_v4  ;;  %v845_v10 = vld [vmem:[%s973_s25 + $0x170] ss:$8 sps:$4 sm:$0xff]   ;;  %v833_v11 = vld [vmem:[%s973_s25 + $0x40] ss:$8 sps:$4 sm:$0xff]   ;;  %v834_v12 = vld [vmem:[%s973_s25 + $0x34] ss:$8 sps:$4 sm:$0xff]   ;;  %575 = vmatprep.subr.bf16.mxu1 %v843_v9 }
  0x1a   : > { %v849_v13 = vld [vmem:[%s973_s25 + $0x164] ss:$8 sps:$4 sm:$0xff]   ;;  %576 = vmatpush1.bf16.msra.mxu1 %v845_v10  ;;  %v851_v14 = vld [vmem:[%s973_s25 + $0x160] ss:$8 sps:$4 sm:$0xff]   ;;  %v836_v15 = vld [vmem:[%s973_s25 + $0x30] ss:$8 sps:$4 sm:$0xff]   ;;  %566 = vmatprep.mubr.bf16.mxu0 %v739_v36 }
  0x1b   : > { %577 = vmatprep.subr.bf16.mxu1 %v849_v13  ;;  %v855_v16 = vld [vmem:[%s973_s25 + $0x154] ss:$8 sps:$4 sm:$0xff]   ;;  %v837_v17 = vld [vmem:[%s973_s25 + $0x24] ss:$8 sps:$4 sm:$0xff]   ;;  %v857_v18 = vld [vmem:[%s973_s25 + $0x150] ss:$8 sps:$4 sm:$0xff]  }
  0x1c   : > { %537 = vmatpush1.bf16.msra.mxu0 %v827_v5  ;;  %v861_v19 = vld [vmem:[%s973_s25 + $0x144] ss:$8 sps:$4 sm:$0xff]   ;;  %v839_v20 = vld [vmem:[%s973_s25 + $0x20] ss:$8 sps:$4 sm:$0xff]   ;;  %v840_v21 = vld [vmem:[%s973_s25 + $0x14] ss:$8 sps:$4 sm:$0xff]  }
  0x1d   : > { %538 = vmatprep.subr.bf16.mxu0 %v828_v6  ;;  %v863_v22 = vld [vmem:[%s973_s25 + $0x140] ss:$8 sps:$4 sm:$0xff]   ;;  %v867_v23 = vld [vmem:[%s973_s25 + $0x134] ss:$8 sps:$4 sm:$0xff]   ;;  %v842_v24 = vld [vmem:[%s973_s25 + $0x10] ss:$8 sps:$4 sm:$0xff]  }
  0x1e   : > { %578 = vmatpush1.bf16.msra.mxu1 %v851_v14  ;;  %v846_v25 = vld [vmem:[%s973_s25 + $0x4] ss:$8 sps:$4 sm:$0xff]   ;;  %v869_v26 = vld [vmem:[%s973_s25 + $0x130] ss:$8 sps:$4 sm:$0xff]   ;;  %v848_v28 = vld [vmem:[%s973_s25] ss:$8 sps:$4 sm:$0xff]  }
  0x1f   : > { %579 = vmatprep.subr.bf16.mxu1 %v855_v16  ;;  %v873_v27 = vld [vmem:[%s973_s25 + $0x124] ss:$8 sps:$4 sm:$0xff]   ;;  %v852_v29 = vld [vmem:[%s973_s25 + $0xf4] ss:$8 sps:$4 sm:$0xff]   ;;  %v875_v30 = vld [vmem:[%s973_s25 + $0x120] ss:$8 sps:$4 sm:$0xff]  }
  0x20   : > { %539 = vmatpush1.bf16.msra.mxu0 %v830_v7  ;;  %v879_v31 = vld [vmem:[%s973_s25 + $0x114] ss:$8 sps:$4 sm:$0xff]   ;;  %v854_v32 = vld [vmem:[%s973_s25 + $0xf0] ss:$8 sps:$4 sm:$0xff]   ;;  %v858_v33 = vld [vmem:[%s973_s25 + $0xe4] ss:$8 sps:$4 sm:$0xff]  }
  0x21   : > { %540 = vmatprep.subr.bf16.mxu0 %v831_v8  ;;  %v881_v35 = vld [vmem:[%s973_s25 + $0x110] ss:$8 sps:$4 sm:$0xff]   ;;  %v885_v37 = vld [vmem:[%s973_s25 + $0x104] ss:$8 sps:$4 sm:$0xff]   ;;  %v860_v38 = vld [vmem:[%s973_s25 + $0xe0] ss:$8 sps:$4 sm:$0xff]  }
  0x22   : > { %580 = vmatpush1.bf16.msra.mxu1 %v857_v18  ;;  %v864_v39 = vld [vmem:[%s973_s25 + $0xd4] ss:$8 sps:$4 sm:$0xff]   ;;  %v887_v40 = vld [vmem:[%s973_s25 + $0x100] ss:$8 sps:$4 sm:$0xff]   ;;  %v866_v41 = vld [vmem:[%s973_s25 + $0xd0] ss:$8 sps:$4 sm:$0xff]  }
  0x23   : > { %581 = vmatprep.subr.bf16.mxu1 %v861_v19  ;;  %v870_v42 = vld [vmem:[%s973_s25 + $0xc4] ss:$8 sps:$4 sm:$0xff]   ;;  %v891_v43 = vld [vmem:[%s968_s21 + $0x8] ss:$0 sps:$4 sm:$0xff]   ;;  %v876_v45 = vld [vmem:[%s973_s25 + $0xb4] ss:$8 sps:$4 sm:$0xff]  }
  0x24   : > { %541 = vmatpush1.bf16.msra.mxu0 %v833_v11  ;;  %v872_v44 = vld [vmem:[%s973_s25 + $0xc0] ss:$8 sps:$4 sm:$0xff]   ;;  %v878_v46 = vld [vmem:[%s973_s25 + $0xb0] ss:$8 sps:$4 sm:$0xff]   ;;  %v882_v47 = vld [vmem:[%s973_s25 + $0xa4] ss:$8 sps:$4 sm:$0xff]  }
  0x25   : > { %542 = vmatprep.subr.bf16.mxu0 %v834_v12  ;;  %v884_v48 = vld [vmem:[%s973_s25 + $0xa0] ss:$8 sps:$4 sm:$0xff]   ;;  %v888_v49 = vld [vmem:[%s973_s25 + $0x94] ss:$8 sps:$4 sm:$0xff]   ;;  %v890_v50 = vld [vmem:[%s973_s25 + $0x90] ss:$8 sps:$4 sm:$0xff]  }
  0x26   : > { %582 = vmatpush1.bf16.msra.mxu1 %v863_v22  ;;  %v892_v51 = vld [vmem:[%s973_s25 + $0x84] ss:$8 sps:$4 sm:$0xff]   ;;  %v894_v52 = vld [vmem:[%s973_s25 + $0x80] ss:$8 sps:$4 sm:$0xff]   ;;  %p789_p7 = scmp.ne.s32.totalorder %s911_s12, 5 }
  0x27   : > { %583 = vmatprep.subr.bf16.mxu1 %v867_v23  ;;  %v231_v58 = vld [vmem:[#allocation2] sm:$0xff]  ;;  %v232_v61 = vld [vmem:[#allocation2 + $0x8] sm:$0xff] }
  0x28   : > { %543 = vmatpush1.bf16.msra.mxu0 %v836_v15 }
  0x29   : > { %544 = vmatprep.subr.bf16.mxu0 %v837_v17 }
  0x2a   : > { %584 = vmatpush1.bf16.msra.mxu1 %v869_v26 }
  0x2b   : > { %585 = vmatprep.subr.bf16.mxu1 %v873_v27 }
  0x2c   : > { %545 = vmatpush1.bf16.msra.mxu0 %v839_v20 }
  0x2d   : > { %546 = vmatprep.subr.bf16.mxu0 %v840_v21 }
  0x2e   : > { %586 = vmatpush1.bf16.msra.mxu1 %v875_v30 }
  0x2f   : > { %587 = vmatprep.subr.bf16.mxu1 %v879_v31 }
  0x30   : > { %547 = vmatpush1.bf16.msra.mxu0 %v842_v24 }
  0x31   : > { %548 = vmatprep.subr.bf16.mxu0 %v846_v25 }
  0x32   : > { %588 = vmatpush1.bf16.msra.mxu1 %v881_v35 }
  0x33   : > { %589 = vmatprep.subr.bf16.mxu1 %v885_v37 }
  0x34   : > { %549 = vmatpush1.bf16.msra.mxu0 %v848_v28 }
  0x35   : > { %550 = vmatprep.subr.bf16.mxu0 %v852_v29 }
  0x36   : > { %590 = vmatpush1.bf16.msra.mxu1 %v887_v40 }
  0x38   : > { %551 = vmatpush2.bf16.msra.mxu0 %v854_v32 }
  0x39   : > { %552 = vmatprep.subr.bf16.mxu0 %v858_v33  ;;  %608 = vmatmul.mubr.bf16.vlgmr.msra.gmra.mxu1 %v891_v43 }
  0x3c   : > { %553 = vmatpush2.bf16.msra.mxu0 %v860_v38 }
  0x3d   : > { %554 = vmatprep.subr.bf16.mxu0 %v864_v39 }
  0x40   : > { %555 = vmatpush2.bf16.msra.mxu0 %v866_v41 }
  0x41   : > { %556 = vmatprep.subr.bf16.mxu0 %v870_v42 }
  0x44   : > { %557 = vmatpush2.bf16.msra.mxu0 %v872_v44 }
  0x45   : > { %558 = vmatprep.subr.bf16.mxu0 %v876_v45 }
  0x48   : > { %559 = vmatpush2.bf16.msra.mxu0 %v878_v46 }
  0x49   : > { %560 = vmatprep.subr.bf16.mxu0 %v882_v47 }
  0x4c   : > { %561 = vmatpush2.bf16.msra.mxu0 %v884_v48 }
  0x4d   : > { %562 = vmatprep.subr.bf16.mxu0 %v888_v49 }
  0x50   : > { %563 = vmatpush2.bf16.msra.mxu0 %v890_v50 }
  0x51   : > { %564 = vmatprep.subr.bf16.mxu0 %v892_v51 }
  0x54   : > { %565 = vmatpush2.bf16.msra.mxu0 %v894_v52 }
  0x57   : > { %567 = vmatmul.mubr.bf16.vlgmr.msra.gmra.mxu0 %v738_v53 }
  0xf9   : > { %v609_v54 = vpop.f32.mrf.mxu1 }
  0xfb   : > { %v611_v55 = vpop.f32.mrf.mxu1 }
  0xfd   : > { %v613_v56 = vpop.f32.mrf.mxu1 }
  0xff   : > { %v614_v57 = vpop.f32.mrf.mxu1 }
 0x117   : > { %v568_v59 = vpop.f32.mrf.mxu0 }
 0x118   : > { %v610_v60 = vadd.f32 %v609_v54, %v568_v59 }
 0x119   : > { %v570_v62 = vpop.f32.mrf.mxu0 }
 0x11a   : > { %v616_v63 = vadd.f32 %v610_v60, %v231_v58  ;;  %v612_v0 = vadd.f32 %v611_v55, %v570_v62  ;;  %623 = sbr.rel (%p789_p7) target bundleno = 302 (0x12e), region = 40 }
 0x11b   : > { %v572_v1 = vpop.f32.mrf.mxu0 }
 0x11c   : > { %618 = vst [vmem:[#allocation2] sm:$0xff] %v616_v63  ;;  %v617_v2 = vadd.f32 %v612_v0, %v232_v61 }
 0x11d   : > { %v573_v3 = vpop.f32.mrf.mxu0 }
 0x11e   : > { %619 = vst [vmem:[#allocation2 + $0x8] sm:$0xff] %v617_v2 }
 0x11f   : > { %v628_v4 = vlaneseq  ;;  %v626_v6 = vld [vmem:[%s1044_s2] sm:$0x3] }
 0x121   : > { %v629_v5 = vshrl.u32 %v628_v4, 7 }
 0x123   : > { %v630_v7 = vsub.s32 0, %v629_v5  ;;  %v634_v8 = vsub.s32 1, %v629_v5  ;;  %v624_v9 = vld [vmem:[#allocation2] sm:$0xff] }
 0x125   : > { %v625_v10 = vld [vmem:[#allocation2 + $0x8] sm:$0xff]  ;;  %v631_v11 = vrot.slane %v626_v6, %v630_v7  ;;  %v635_v12 = vrot.slane %v626_v6, %v634_v8 }
 0x127   : > { %v638_v13 = vadd.f32 %v631_v11, %v624_v9  ;;  %v639_v14 = vadd.f32 %v635_v12, %v625_v10 }
 0x129   : > { %v640_v15 = vmax.f32 %v638_v13, 0.0  ;;  %v641_v16 = vmax.f32 %v639_v14, 0.0 }
 0x12b   : > { %v795_v17 = vpack.c.bf16 %v641_v16, %v640_v15 }
 0x12d   : > { %650 = vst [vmem:[%s1045_s3] sm:$0xff] %v795_v17 }
 0x12e PF: > { %s13_s14 = sadd.s32 1, %s919_s14   ;;  %s1046_s12 = smov %s915_s13 }
 0x12f   : > { %p10_p8 = scmp.ge.s32.totalorder %s13_s14, 8   ;;  %s1047_s13 = smov %s1049_s15 }
 0x131   :  { %12 = sbr.rel (!%p10_p8) target bundleno = 2 (0x2), region = 73 }

// kernel: resnet_forward.38
= control target key start
LH: loop header
LB: loop body
LE: loop exit
PB: predicated region body
PF: predicated region fallthrough
CT: control target
= control target key end

     0   :  { %s1468_s12 = smov 0   ;;  %s1470_s13 = smov 0   ;;  %s1628_s0 = inlined_call_operand.vmem [shape: bf16[8,2304], index: 0, kind: input, shape index: {}]   ;;  %s1629_s1 = inlined_call_operand.vmem [shape: bf16[2304,512], index: 1, kind: input, shape index: {}]   ;;  %s1630_s2 = inlined_call_operand.vmem [shape: f32[1,512], index: 2, kind: input, shape index: {}]   ;;  %s1631_s3 = inlined_call_operand.vmem [shape: bf16[8,512], index: 3, kind: output, shape index: {}]  }
   0x1   :  { %s1472_s14 = smov 0  }
   0x2 LB: > { %s22_s15 = sadd.s32 1, %s1440_s13  ;;  %p1136_p0 = scmp.ge.s32.totalorder %s1444_s14, 1  ;;  %s1444_s14 = sphi %s1472_s14, %s13_s14   ;;  %s1440_s13 = sphi %s1470_s13, %s1633_s13   ;;  %s1436_s12 = sphi %s1468_s12, %s1632_s12  }
   0x3   : > { %p23_p1 = scmp.ge.s32.totalorder %s22_s15, 6  ;;  %p168_p2 = scmp.lt.s32.totalorder %s1444_s14, 7 }
   0x5   : > { %s1635_s15 = smov (%p23_p1, %s22_s15), 0  ;;  %p169_p3 = pnand %p1136_p0, %p168_p2 }
   0x6   : > { %s202_s16 = smul.u32 (!%p169_p3), 3, %s1436_s12  ;;  %p1140_p6 = scmp.ne.s32.totalorder (!%p169_p3), %s1436_s12, 0 }
   0x7   : > { %172 = sbr.rel (%p169_p3) target bundleno = 336 (0x150), region = 32 }
   0x8   : > { %s212_s17 = smul.u32 (!%p169_p3), 48, %s1436_s12  ;;  %p205_p4 = scmp.lt.s32.totalorder (!%p169_p3), %s202_s16, 17 }
   0xa   : > { %p213_p5 = scmp.lt.s32.totalorder (!%p169_p3), %s212_s17, 287 }
   0xc   : > { %s1637_s16 = smov (!%p205_p4, %s202_s16), 17  ;;  %s1639_s17 = smov (!%p213_p5, %s212_s17), 287 }
   0xd   : > { %s1137_s18 = sshll.u32 %s1637_s16, 2  ;;  %s1246_s22 = sshll.u32 %s1639_s17, 4 }
   0xe   : > { %s1493_s21 = scalar_lea.vmem %s1628_s0, %s1137_s18  ;;  %s1498_s25 = scalar_lea.vmem %s1629_s1, %s1246_s22 }
   0xf   : > { %228 = sbr.rel (%p1140_p6) target bundleno = 23 (0x17), region = 36 }
  0x14   : > { %v1446_v0 = vmov 0.0  }
  0x15   : > { %229 = vst [vmem:[#allocation2 + $0x10] sm:$0xff] %v1446_v0  ;;  %230 = vst [vmem:[#allocation2] sm:$0xff] %v1446_v0 }
  0x16   : > { %231 = vst [vmem:[#allocation2 + $0x18] sm:$0xff] %v1446_v0  ;;  %232 = vst [vmem:[#allocation2 + $0x8] sm:$0xff] %v1446_v0 }
  0x17 PF: > { %v1275_v1 = vld [vmem:[%s1498_s25 + $0xe4] ss:$16 sps:$4 sm:$0xff]   ;;  %v1447_v3 = vmov 0   ;;  %v1279_v4 = vld [vmem:[%s1498_s25 + $0xe0] ss:$16 sps:$4 sm:$0xff]   ;;  %p1240_p7 = scmp.ne.s32.totalorder %s1436_s12, 5 }
  0x18   : > { %v1277_v2 = vld [vmem:[%s1498_s25 + $0x2e4] ss:$16 sps:$4 sm:$0xff]   ;;  %899 = vmatprep.mubr.bf16.mxu1 %v1447_v3  ;;  %826 = vmatprep.subr.bf16.mxu0 %v1275_v1  ;;  %v1280_v5 = vld [vmem:[%s1498_s25 + $0x2e0] ss:$16 sps:$4 sm:$0xff]   ;;  %v1328_v35 = vld [vmem:[%s1498_s25 + $0xec] ss:$16 sps:$4 sm:$0xff]  }
  0x19   : > { %867 = vmatprep.subr.bf16.mxu1 %v1277_v2  ;;  %v1281_v6 = vld [vmem:[%s1498_s25 + $0xc4] ss:$16 sps:$4 sm:$0xff]   ;;  %827 = vmatpush1.bf16.msra.mxu0 %v1279_v4  ;;  %v1285_v8 = vld [vmem:[%s1498_s25 + $0xc0] ss:$16 sps:$4 sm:$0xff]   ;;  %v1537_v36 = vld [vmem:[%s1493_s21 + $0x8] ss:$0 sps:$4 sm:$0xff]  }
  0x1a   : > { %868 = vmatpush1.bf16.msra.mxu1 %v1280_v5  ;;  %v1283_v7 = vld [vmem:[%s1498_s25 + $0x2c4] ss:$16 sps:$4 sm:$0xff]   ;;  %828 = vmatprep.subr.bf16.mxu0 %v1281_v6  ;;  %v1286_v9 = vld [vmem:[%s1498_s25 + $0x2c0] ss:$16 sps:$4 sm:$0xff]   ;;  %v1326_v37 = vld [vmem:[%s1498_s25 + $0xe8] ss:$16 sps:$4 sm:$0xff]  }
  0x1b   : > { %869 = vmatprep.subr.bf16.mxu1 %v1283_v7  ;;  %v1287_v10 = vld [vmem:[%s1498_s25 + $0xa4] ss:$16 sps:$4 sm:$0xff]   ;;  %v1291_v12 = vld [vmem:[%s1498_s25 + $0xa0] ss:$16 sps:$4 sm:$0xff]   ;;  %v1334_v40 = vld [vmem:[%s1498_s25 + $0xcc] ss:$16 sps:$4 sm:$0xff]  }
  0x1c   : > { %v1289_v11 = vld [vmem:[%s1498_s25 + $0x2a4] ss:$16 sps:$4 sm:$0xff]   ;;  %v1292_v13 = vld [vmem:[%s1498_s25 + $0x2a0] ss:$16 sps:$4 sm:$0xff]   ;;  %v1332_v41 = vld [vmem:[%s1498_s25 + $0xc8] ss:$16 sps:$4 sm:$0xff]  }
  0x1d   : > { %829 = vmatpush1.bf16.msra.mxu0 %v1285_v8  ;;  %v1293_v14 = vld [vmem:[%s1498_s25 + $0x84] ss:$16 sps:$4 sm:$0xff]   ;;  %v1297_v16 = vld [vmem:[%s1498_s25 + $0x80] ss:$16 sps:$4 sm:$0xff]   ;;  %v1340_v44 = vld [vmem:[%s1498_s25 + $0xac] ss:$16 sps:$4 sm:$0xff]  }
  0x1e   : > { %870 = vmatpush1.bf16.msra.mxu1 %v1286_v9  ;;  %830 = vmatprep.subr.bf16.mxu0 %v1287_v10  ;;  %v1295_v15 = vld [vmem:[%s1498_s25 + $0x284] ss:$16 sps:$4 sm:$0xff]   ;;  %v1298_v17 = vld [vmem:[%s1498_s25 + $0x280] ss:$16 sps:$4 sm:$0xff]   ;;  %v1338_v45 = vld [vmem:[%s1498_s25 + $0xa8] ss:$16 sps:$4 sm:$0xff]  }
  0x1f   : > { %871 = vmatprep.subr.bf16.mxu1 %v1289_v11  ;;  %v1299_v18 = vld [vmem:[%s1498_s25 + $0x64] ss:$16 sps:$4 sm:$0xff]   ;;  %v1303_v20 = vld [vmem:[%s1498_s25 + $0x60] ss:$16 sps:$4 sm:$0xff]   ;;  %v1346_v48 = vld [vmem:[%s1498_s25 + $0x8c] ss:$16 sps:$4 sm:$0xff]  }
  0x20   : > { %v1301_v19 = vld [vmem:[%s1498_s25 + $0x264] ss:$16 sps:$4 sm:$0xff]   ;;  %v1304_v21 = vld [vmem:[%s1498_s25 + $0x260] ss:$16 sps:$4 sm:$0xff]   ;;  %v1344_v49 = vld [vmem:[%s1498_s25 + $0x88] ss:$16 sps:$4 sm:$0xff]  }
  0x21   : > { %831 = vmatpush1.bf16.msra.mxu0 %v1291_v12  ;;  %v1305_v22 = vld [vmem:[%s1498_s25 + $0x44] ss:$16 sps:$4 sm:$0xff]   ;;  %v1309_v24 = vld [vmem:[%s1498_s25 + $0x40] ss:$16 sps:$4 sm:$0xff]   ;;  %v1352_v54 = vld [vmem:[%s1498_s25 + $0x6c] ss:$16 sps:$4 sm:$0xff]  }
  0x22   : > { %872 = vmatpush1.bf16.msra.mxu1 %v1292_v13  ;;  %832 = vmatprep.subr.bf16.mxu0 %v1293_v14  ;;  %v1307_v23 = vld [vmem:[%s1498_s25 + $0x244] ss:$16 sps:$4 sm:$0xff]   ;;  %v1310_v25 = vld [vmem:[%s1498_s25 + $0x240] ss:$16 sps:$4 sm:$0xff]   ;;  %v1350_v55 = vld [vmem:[%s1498_s25 + $0x68] ss:$16 sps:$4 sm:$0xff]  }
  0x23   : > { %873 = vmatprep.subr.bf16.mxu1 %v1295_v15  ;;  %v1311_v26 = vld [vmem:[%s1498_s25 + $0x24] ss:$16 sps:$4 sm:$0xff]   ;;  %v1315_v28 = vld [vmem:[%s1498_s25 + $0x20] ss:$16 sps:$4 sm:$0xff]   ;;  %v1358_v58 = vld [vmem:[%s1498_s25 + $0x4c] ss:$16 sps:$4 sm:$0xff]  }
  0x24   : > { %v1313_v27 = vld [vmem:[%s1498_s25 + $0x224] ss:$16 sps:$4 sm:$0xff]   ;;  %v1316_v29 = vld [vmem:[%s1498_s25 + $0x220] ss:$16 sps:$4 sm:$0xff]   ;;  %v1356_v59 = vld [vmem:[%s1498_s25 + $0x48] ss:$16 sps:$4 sm:$0xff]  }
  0x25   : > { %833 = vmatpush1.bf16.msra.mxu0 %v1297_v16  ;;  %v1317_v30 = vld [vmem:[%s1498_s25 + $0x4] ss:$16 sps:$4 sm:$0xff]   ;;  %v1321_v32 = vld [vmem:[%s1498_s25] ss:$16 sps:$4 sm:$0xff]   ;;  %v1364_v62 = vld [vmem:[%s1498_s25 + $0x2c] ss:$16 sps:$4 sm:$0xff]  }
  0x26   : > { %874 = vmatpush1.bf16.msra.mxu1 %v1298_v17  ;;  %834 = vmatprep.subr.bf16.mxu0 %v1299_v18  ;;  %v1319_v31 = vld [vmem:[%s1498_s25 + $0x204] ss:$16 sps:$4 sm:$0xff]   ;;  %v1322_v33 = vld [vmem:[%s1498_s25 + $0x200] ss:$16 sps:$4 sm:$0xff]   ;;  %v1362_v63 = vld [vmem:[%s1498_s25 + $0x28] ss:$16 sps:$4 sm:$0xff]  }
  0x27   : > { %875 = vmatprep.subr.bf16.mxu1 %v1301_v19  ;;  %v1323_v34 = vld [vmem:[%s1498_s25 + $0x1e4] ss:$16 sps:$4 sm:$0xff]   ;;  %v1329_v38 = vld [vmem:[%s1498_s25 + $0x1e0] ss:$16 sps:$4 sm:$0xff]   ;;  %v1370_v2 = vld [vmem:[%s1498_s25 + $0xc] ss:$16 sps:$4 sm:$0xff]  }
  0x28   : > { %v1330_v39 = vld [vmem:[%s1498_s25 + $0x1c4] ss:$16 sps:$4 sm:$0xff]   ;;  %v1335_v42 = vld [vmem:[%s1498_s25 + $0x1c0] ss:$16 sps:$4 sm:$0xff]   ;;  %v1368_v4 = vld [vmem:[%s1498_s25 + $0x8] ss:$16 sps:$4 sm:$0xff]  }
  0x29   : > { %835 = vmatpush1.bf16.msra.mxu0 %v1303_v20  ;;  %v1336_v43 = vld [vmem:[%s1498_s25 + $0x1a4] ss:$16 sps:$4 sm:$0xff]   ;;  %v1341_v46 = vld [vmem:[%s1498_s25 + $0x1a0] ss:$16 sps:$4 sm:$0xff]   ;;  %v1376_v6 = vld [vmem:[%s1498_s25 + $0x1ec] ss:$16 sps:$4 sm:$0xff]  }
  0x2a   : > { %876 = vmatpush1.bf16.msra.mxu1 %v1304_v21  ;;  %836 = vmatprep.subr.bf16.mxu0 %v1305_v22  ;;  %v1342_v47 = vld [vmem:[%s1498_s25 + $0x184] ss:$16 sps:$4 sm:$0xff]   ;;  %v1347_v51 = vld [vmem:[%s1498_s25 + $0x180] ss:$16 sps:$4 sm:$0xff]   ;;  %v1379_v7 = vld [vmem:[%s1498_s25 + $0x2ec] ss:$16 sps:$4 sm:$0xff]  }
  0x2b   : > { %877 = vmatprep.subr.bf16.mxu1 %v1307_v23  ;;  %v237_v50 = vld [vmem:[%s1493_s21] sm:$0xff]  ;;  %v1374_v9 = vld [vmem:[%s1498_s25 + $0x1e8] ss:$16 sps:$4 sm:$0xff]   ;;  %v1382_v11 = vld [vmem:[%s1498_s25 + $0x1cc] ss:$16 sps:$4 sm:$0xff]  }
  0x2c   : > { %v1348_v52 = vld [vmem:[%s1498_s25 + $0x164] ss:$16 sps:$4 sm:$0xff]   ;;  %v1142_v53 = vcombine.high %v237_v50, %v237_v50  ;;  %v1353_v56 = vld [vmem:[%s1498_s25 + $0x160] ss:$16 sps:$4 sm:$0xff]   ;;  %v1573_v8 = vcombine.low %v237_v50, %v237_v50  ;;  %v1377_v10 = vld [vmem:[%s1498_s25 + $0x2e8] ss:$16 sps:$4 sm:$0xff]  }
  0x2d   : > { %837 = vmatpush1.bf16.msra.mxu0 %v1309_v24  ;;  %v1354_v57 = vld [vmem:[%s1498_s25 + $0x144] ss:$16 sps:$4 sm:$0xff]   ;;  %v1359_v60 = vld [vmem:[%s1498_s25 + $0x140] ss:$16 sps:$4 sm:$0xff]   ;;  %v1385_v12 = vld [vmem:[%s1498_s25 + $0x2cc] ss:$16 sps:$4 sm:$0xff]  }
  0x2e   : > { %878 = vmatpush1.bf16.msra.mxu1 %v1310_v25  ;;  %838 = vmatprep.subr.bf16.mxu0 %v1311_v26  ;;  %v1360_v61 = vld [vmem:[%s1498_s25 + $0x124] ss:$16 sps:$4 sm:$0xff]   ;;  %v1365_v0 = vld [vmem:[%s1498_s25 + $0x120] ss:$16 sps:$4 sm:$0xff]   ;;  %v1380_v13 = vld [vmem:[%s1498_s25 + $0x1c8] ss:$16 sps:$4 sm:$0xff]  }
  0x2f   : > { %879 = vmatprep.subr.bf16.mxu1 %v1313_v27  ;;  %858 = vmatprep.mubr.bf16.mxu0 %v1142_v53  ;;  %v1366_v1 = vld [vmem:[%s1498_s25 + $0x104] ss:$16 sps:$4 sm:$0xff]   ;;  %v1371_v5 = vld [vmem:[%s1498_s25 + $0x100] ss:$16 sps:$4 sm:$0xff]   ;;  %v1383_v14 = vld [vmem:[%s1498_s25 + $0x2c8] ss:$16 sps:$4 sm:$0xff]  }
  0x30   : > { %v1388_v15 = vld [vmem:[%s1498_s25 + $0x1ac] ss:$16 sps:$4 sm:$0xff]   ;;  %v1386_v17 = vld [vmem:[%s1498_s25 + $0x1a8] ss:$16 sps:$4 sm:$0xff]  }
  0x31   : > { %839 = vmatpush1.bf16.msra.mxu0 %v1315_v28  ;;  %v1391_v16 = vld [vmem:[%s1498_s25 + $0x2ac] ss:$16 sps:$4 sm:$0xff]   ;;  %v1389_v18 = vld [vmem:[%s1498_s25 + $0x2a8] ss:$16 sps:$4 sm:$0xff]  }
  0x32   : > { %880 = vmatpush1.bf16.msra.mxu1 %v1316_v29  ;;  %840 = vmatprep.subr.bf16.mxu0 %v1317_v30  ;;  %v1394_v19 = vld [vmem:[%s1498_s25 + $0x18c] ss:$16 sps:$4 sm:$0xff]   ;;  %v1392_v21 = vld [vmem:[%s1498_s25 + $0x188] ss:$16 sps:$4 sm:$0xff]  }
  0x33   : > { %881 = vmatprep.subr.bf16.mxu1 %v1319_v31  ;;  %v1397_v20 = vld [vmem:[%s1498_s25 + $0x28c] ss:$16 sps:$4 sm:$0xff]   ;;  %v1395_v22 = vld [vmem:[%s1498_s25 + $0x288] ss:$16 sps:$4 sm:$0xff]  }
  0x34   : > { %v1403_v23 = vld [vmem:[%s1498_s25 + $0x26c] ss:$16 sps:$4 sm:$0xff]   ;;  %v1398_v24 = vld [vmem:[%s1498_s25 + $0x168] ss:$16 sps:$4 sm:$0xff]  }
  0x35   : > { %841 = vmatpush1.bf16.msra.mxu0 %v1321_v32  ;;  %v1401_v25 = vld [vmem:[%s1498_s25 + $0x268] ss:$16 sps:$4 sm:$0xff]   ;;  %v1406_v26 = vld [vmem:[%s1498_s25 + $0x14c] ss:$16 sps:$4 sm:$0xff]  }
  0x36   : > { %882 = vmatpush1.bf16.msra.mxu1 %v1322_v33  ;;  %842 = vmatprep.subr.bf16.mxu0 %v1323_v34  ;;  %v1409_v27 = vld [vmem:[%s1498_s25 + $0x24c] ss:$16 sps:$4 sm:$0xff]   ;;  %v1404_v28 = vld [vmem:[%s1498_s25 + $0x148] ss:$16 sps:$4 sm:$0xff]  }
  0x37   : > { %908 = vmatprep.subr.bf16.mxu1 %v1328_v35  ;;  %v1407_v29 = vld [vmem:[%s1498_s25 + $0x248] ss:$16 sps:$4 sm:$0xff]   ;;  %v1412_v30 = vld [vmem:[%s1498_s25 + $0x12c] ss:$16 sps:$4 sm:$0xff]  }
  0x38   : > { %v1415_v31 = vld [vmem:[%s1498_s25 + $0x22c] ss:$16 sps:$4 sm:$0xff]   ;;  %v1410_v32 = vld [vmem:[%s1498_s25 + $0x128] ss:$16 sps:$4 sm:$0xff]  }
  0x39   : > { %900 = vmatmul.mubr.bf16.vlgmr.msra.gmra.mxu1 %v1537_v36  ;;  %843 = vmatpush2.bf16.msra.mxu0 %v1329_v38  ;;  %v1413_v33 = vld [vmem:[%s1498_s25 + $0x228] ss:$16 sps:$4 sm:$0xff]   ;;  %v1418_v34 = vld [vmem:[%s1498_s25 + $0x10c] ss:$16 sps:$4 sm:$0xff]  }
  0x3a   : > { %909 = vmatpush1.bf16.msra.mxu1 %v1326_v37  ;;  %844 = vmatprep.subr.bf16.mxu0 %v1330_v39  ;;  %v1421_v35 = vld [vmem:[%s1498_s25 + $0x20c] ss:$16 sps:$4 sm:$0xff]   ;;  %v1416_v37 = vld [vmem:[%s1498_s25 + $0x108] ss:$16 sps:$4 sm:$0xff]  }
  0x3b   : > { %910 = vmatprep.subr.bf16.mxu1 %v1334_v40  ;;  %940 = vmatprep.mubr.bf16.mxu1 %v1142_v53  ;;  %v1419_v38 = vld [vmem:[%s1498_s25 + $0x208] ss:$16 sps:$4 sm:$0xff]  }
  0x3d   : > { %845 = vmatpush2.bf16.msra.mxu0 %v1335_v42 }
  0x3e   : > { %911 = vmatpush1.bf16.msra.mxu1 %v1332_v41  ;;  %846 = vmatprep.subr.bf16.mxu0 %v1336_v43  ;;  %v233_v43 = vld [vmem:[#allocation2 + $0x10] sm:$0xff] }
  0x3f   : > { %912 = vmatprep.subr.bf16.mxu1 %v1340_v44 }
  0x41   : > { %847 = vmatpush2.bf16.msra.mxu0 %v1341_v46  ;;  %v234_v46 = vld [vmem:[#allocation2] sm:$0xff] }
  0x42   : > { %913 = vmatpush1.bf16.msra.mxu1 %v1338_v45  ;;  %848 = vmatprep.subr.bf16.mxu0 %v1342_v47 }
  0x43   : > { %914 = vmatprep.subr.bf16.mxu1 %v1346_v48 }
  0x45   : > { %849 = vmatpush2.bf16.msra.mxu0 %v1347_v51 }
  0x46   : > { %915 = vmatpush1.bf16.msra.mxu1 %v1344_v49  ;;  %850 = vmatprep.subr.bf16.mxu0 %v1348_v52 }
  0x47   : > { %916 = vmatprep.subr.bf16.mxu1 %v1352_v54  ;;  %v235_v54 = vld [vmem:[#allocation2 + $0x18] sm:$0xff] }
  0x49   : > { %851 = vmatpush2.bf16.msra.mxu0 %v1353_v56 }
  0x4a   : > { %917 = vmatpush1.bf16.msra.mxu1 %v1350_v55  ;;  %852 = vmatprep.subr.bf16.mxu0 %v1354_v57  ;;  %v236_v57 = vld [vmem:[#allocation2 + $0x8] sm:$0xff] }
  0x4b   : > { %918 = vmatprep.subr.bf16.mxu1 %v1358_v58 }
  0x4d   : > { %853 = vmatpush2.bf16.msra.mxu0 %v1359_v60 }
  0x4e   : > { %919 = vmatpush1.bf16.msra.mxu1 %v1356_v59  ;;  %854 = vmatprep.subr.bf16.mxu0 %v1360_v61 }
  0x4f   : > { %920 = vmatprep.subr.bf16.mxu1 %v1364_v62 }
  0x51   : > { %855 = vmatpush2.bf16.msra.mxu0 %v1365_v0 }
  0x52   : > { %921 = vmatpush1.bf16.msra.mxu1 %v1362_v63  ;;  %856 = vmatprep.subr.bf16.mxu0 %v1366_v1 }
  0x53   : > { %922 = vmatprep.subr.bf16.mxu1 %v1370_v2 }
  0x55   : > { %857 = vmatpush2.bf16.msra.mxu0 %v1371_v5 }
  0x56   : > { %923 = vmatpush1.bf16.msra.mxu1 %v1368_v4  ;;  %949 = vmatprep.subr.bf16.mxu0 %v1379_v7 }
  0x57   : > { %924 = vmatprep.subr.bf16.mxu1 %v1376_v6 }
  0x58   : > { %859 = vmatmul.mubr.bf16.vlgmr.msra.gmra.mxu0 %v1573_v8 }
  0x59   : > { %950 = vmatpush1.bf16.msra.mxu0 %v1377_v10  ;;  %981 = vmatprep.mubr.bf16.mxu0 %v1447_v3  ;;  %v1400_v3 = vld [vmem:[%s1498_s25 + $0x16c] ss:$16 sps:$4 sm:$0xff]  }
  0x5a   : > { %925 = vmatpush2.bf16.msra.mxu1 %v1374_v9  ;;  %951 = vmatprep.subr.bf16.mxu0 %v1385_v12 }
  0x5b   : > { %926 = vmatprep.subr.bf16.mxu1 %v1382_v11 }
  0x5d   : > { %952 = vmatpush1.bf16.msra.mxu0 %v1383_v14 }
  0x5e   : > { %927 = vmatpush2.bf16.msra.mxu1 %v1380_v13  ;;  %953 = vmatprep.subr.bf16.mxu0 %v1391_v16 }
  0x5f   : > { %928 = vmatprep.subr.bf16.mxu1 %v1388_v15 }
  0x61   : > { %954 = vmatpush1.bf16.msra.mxu0 %v1389_v18 }
  0x62   : > { %929 = vmatpush2.bf16.msra.mxu1 %v1386_v17  ;;  %955 = vmatprep.subr.bf16.mxu0 %v1397_v20 }
  0x63   : > { %930 = vmatprep.subr.bf16.mxu1 %v1394_v19 }
  0x65   : > { %956 = vmatpush1.bf16.msra.mxu0 %v1395_v22 }
  0x66   : > { %931 = vmatpush2.bf16.msra.mxu1 %v1392_v21  ;;  %957 = vmatprep.subr.bf16.mxu0 %v1403_v23 }
  0x67   : > { %932 = vmatprep.subr.bf16.mxu1 %v1400_v3 }
  0x69   : > { %958 = vmatpush1.bf16.msra.mxu0 %v1401_v25 }
  0x6a   : > { %933 = vmatpush2.bf16.msra.mxu1 %v1398_v24  ;;  %959 = vmatprep.subr.bf16.mxu0 %v1409_v27 }
  0x6b   : > { %934 = vmatprep.subr.bf16.mxu1 %v1406_v26 }
  0x6d   : > { %960 = vmatpush1.bf16.msra.mxu0 %v1407_v29 }
  0x6e   : > { %935 = vmatpush2.bf16.msra.mxu1 %v1404_v28  ;;  %961 = vmatprep.subr.bf16.mxu0 %v1415_v31 }
  0x6f   : > { %936 = vmatprep.subr.bf16.mxu1 %v1412_v30 }
  0x71   : > { %962 = vmatpush1.bf16.msra.mxu0 %v1413_v33 }
  0x72   : > { %937 = vmatpush2.bf16.msra.mxu1 %v1410_v32  ;;  %963 = vmatprep.subr.bf16.mxu0 %v1421_v35 }
  0x73   : > { %938 = vmatprep.subr.bf16.mxu1 %v1418_v34 }
  0x75   : > { %964 = vmatpush1.bf16.msra.mxu0 %v1419_v38 }
  0x76   : > { %939 = vmatpush2.bf16.msra.mxu1 %v1416_v37 }
  0x78   : > { %982 = vmatmul.mubr.bf16.vlgmr.msra.gmra.mxu0 %v1537_v36 }
  0x79   : > { %941 = vmatmul.mubr.bf16.vlgmr.msra.gmra.mxu1 %v1573_v8 }
  0xf9   : > { %v901_v39 = vpop.f32.mrf.mxu1 }
  0xfb   : > { %v903_v40 = vpop.f32.mrf.mxu1 }
  0xfd   : > { %v905_v41 = vpop.f32.mrf.mxu1 }
  0xff   : > { %v906_v42 = vpop.f32.mrf.mxu1 }
 0x118   : > { %v860_v44 = vpop.f32.mrf.mxu0 }
 0x119   : > { %v902_v45 = vadd.f32 %v901_v39, %v860_v44 }
 0x11a   : > { %v862_v47 = vpop.f32.mrf.mxu0 }
 0x11b   : > { %v990_v48 = vadd.f32 %v902_v45, %v233_v43  ;;  %v904_v49 = vadd.f32 %v903_v40, %v862_v47 }
 0x11c   : > { %v864_v50 = vpop.f32.mrf.mxu0 }
 0x11d   : > { %994 = vst [vmem:[#allocation2 + $0x10] sm:$0xff] %v990_v48  ;;  %v991_v51 = vadd.f32 %v904_v49, %v234_v46 }
 0x11e   : > { %v865_v52 = vpop.f32.mrf.mxu0 }
 0x11f   : > { %995 = vst [vmem:[#allocation2] sm:$0xff] %v991_v51 }
 0x138   : > { %v983_v55 = vpop.f32.mrf.mxu0 }
 0x139   : > { %v942_v53 = vpop.f32.mrf.mxu1 }
 0x13a   : > { %v984_v36 = vadd.f32 %v983_v55, %v942_v53  ;;  %v985_v58 = vpop.f32.mrf.mxu0 }
 0x13b   : > { %v944_v56 = vpop.f32.mrf.mxu1 }
 0x13c   : > { %v992_v59 = vadd.f32 %v984_v36, %v235_v54  ;;  %v986_v60 = vadd.f32 %v985_v58, %v944_v56  ;;  %v987_v62 = vpop.f32.mrf.mxu0  ;;  %1001 = sbr.rel (%p1240_p7) target bundleno = 336 (0x150), region = 40 }
 0x13d   : > { %v946_v61 = vpop.f32.mrf.mxu1 }
 0x13e   : > { %996 = vst [vmem:[#allocation2 + $0x18] sm:$0xff] %v992_v59  ;;  %v993_v63 = vadd.f32 %v986_v60, %v236_v57  ;;  %v988_v1 = vpop.f32.mrf.mxu0 }
 0x13f   : > { %v947_v0 = vpop.f32.mrf.mxu1 }
 0x140   : > { %997 = vst [vmem:[#allocation2 + $0x8] sm:$0xff] %v993_v63 }
 0x141   : > { %v1008_v2 = vlaneseq  ;;  %v1006_v5 = vld [vmem:[%s1630_s2] sm:$0xf]  ;;  %v1002_v6 = vld [vmem:[#allocation2 + $0x10] sm:$0xff] }
 0x142   : > { %v1003_v11 = vld [vmem:[#allocation2] sm:$0xff] }
 0x143   : > { %v1009_v4 = vshrl.u32 %v1008_v2, 7 }
 0x145   : > { %v1010_v7 = vsub.s32 0, %v1009_v4  ;;  %v1014_v8 = vsub.s32 1, %v1009_v4  ;;  %v1018_v9 = vsub.s32 2, %v1009_v4  ;;  %v1022_v10 = vsub.s32 3, %v1009_v4  ;;  %v1004_v12 = vld [vmem:[#allocation2 + $0x18] sm:$0xff] }
 0x147   : > { %v1005_v13 = vld [vmem:[#allocation2 + $0x8] sm:$0xff]  ;;  %v1011_v14 = vrot.slane %v1006_v5, %v1010_v7  ;;  %v1015_v15 = vrot.slane %v1006_v5, %v1014_v8  ;;  %v1019_v16 = vrot.slane %v1006_v5, %v1018_v9  ;;  %v1023_v17 = vrot.slane %v1006_v5, %v1022_v10 }
 0x149   : > { %v1028_v18 = vadd.f32 %v1011_v14, %v1002_v6  ;;  %v1029_v19 = vadd.f32 %v1015_v15, %v1003_v11  ;;  %v1030_v20 = vadd.f32 %v1019_v16, %v1004_v12  ;;  %v1031_v21 = vadd.f32 %v1023_v17, %v1005_v13 }
 0x14b   : > { %v1032_v22 = vmax.f32 %v1028_v18, 0.0  ;;  %v1033_v3 = vmax.f32 %v1029_v19, 0.0  ;;  %v1034_v23 = vmax.f32 %v1030_v20, 0.0  ;;  %v1035_v24 = vmax.f32 %v1031_v21, 0.0 }
 0x14d   : > { %v1247_v25 = vpack.c.bf16 %v1033_v3, %v1032_v22  ;;  %v1248_v26 = vpack.c.bf16 %v1035_v24, %v1034_v23 }
 0x14f   : > { %1052 = vst [vmem:[%s1631_s3] sm:$0xff] %v1247_v25  ;;  %1053 = vst [vmem:[%s1631_s3 + $0x8] sm:$0xff] %v1248_v26 }
 0x150 PF: > { %s13_s14 = sadd.s32 1, %s1444_s14   ;;  %s1632_s12 = smov %s1440_s13 }
 0x151   : > { %p10_p8 = scmp.ge.s32.totalorder %s13_s14, 8   ;;  %s1633_s13 = smov %s1635_s15 }
 0x153   :  { %12 = sbr.rel (!%p10_p8) target bundleno = 2 (0x2), region = 73 }

// kernel: resnet_forward.41
= control target key start
LH: loop header
LB: loop body
LE: loop exit
PB: predicated region body
PF: predicated region fallthrough
CT: control target
= control target key end

     0   :  { %s1744_s12 = smov 0   ;;  %s1746_s13 = smov 0   ;;  %s1938_s0 = inlined_call_operand.vmem [shape: bf16[8,4608], index: 0, kind: input, shape index: {}]   ;;  %s1939_s1 = inlined_call_operand.vmem [shape: bf16[4608,512], index: 1, kind: input, shape index: {}]   ;;  %s1940_s2 = inlined_call_operand.vmem [shape: f32[1,512], index: 2, kind: input, shape index: {}]   ;;  %s1941_s3 = inlined_call_operand.vmem [shape: bf16[8,512], index: 3, kind: output, shape index: {}]  }
   0x1   :  { %s1748_s14 = smov 0  }
   0x2 LB: > { %s22_s15 = sadd.s32 1, %s1717_s13  ;;  %p1330_p0 = scmp.ge.s32.totalorder %s1721_s14, 1  ;;  %s1721_s14 = sphi %s1748_s14, %s13_s14   ;;  %s1717_s13 = sphi %s1746_s13, %s1943_s13   ;;  %s1713_s12 = sphi %s1744_s12, %s1942_s12  }
   0x3   : > { %p23_p1 = scmp.ge.s32.totalorder %s22_s15, 9  ;;  %p168_p2 = scmp.lt.s32.totalorder %s1721_s14, 10 }
   0x5   : > { %s1945_s15 = smov (%p23_p1, %s22_s15), 0  ;;  %p169_p3 = pnand %p1330_p0, %p168_p2 }
   0x6   : > { %s1331_s16 = sshll.u32 (!%p169_p3), %s1713_s12, 2  ;;  %s1333_s17 = sshll.u32 (!%p169_p3), %s1713_s12, 6 }
   0x7   : > { %172 = sbr.rel (%p169_p3) target bundleno = 368 (0x170), region = 32  ;;  %p205_p4 = scmp.lt.s32.totalorder (!%p169_p3), %s1331_s16, 35 }
   0x8   : > { %p213_p5 = scmp.lt.s32.totalorder (!%p169_p3), %s1333_s17, 575  ;;  %p1336_p6 = scmp.ne.s32.totalorder (!%p169_p3), %s1713_s12, 0 }
   0xc   : > { %s1947_s16 = smov (!%p205_p4, %s1331_s16), 35  ;;  %s1949_s17 = smov (!%p213_p5, %s1333_s17), 575 }
   0xd   : > { %s1332_s18 = sshll.u32 %s1947_s16, 2  ;;  %s1475_s22 = sshll.u32 %s1949_s17, 4 }
   0xe   : > { %s1769_s21 = scalar_lea.vmem %s1938_s0, %s1332_s18  ;;  %s1774_s25 = scalar_lea.vmem %s1939_s1, %s1475_s22 }
   0xf   : > { %227 = sbr.rel (%p1336_p6) target bundleno = 23 (0x17), region = 36 }
  0x14   : > { %v1723_v0 = vmov 0.0  }
  0x15   : > { %228 = vst [vmem:[#allocation2 + $0x10] sm:$0xff] %v1723_v0  ;;  %229 = vst [vmem:[#allocation2] sm:$0xff] %v1723_v0 }
  0x16   : > { %230 = vst [vmem:[#allocation2 + $0x18] sm:$0xff] %v1723_v0  ;;  %231 = vst [vmem:[#allocation2 + $0x8] sm:$0xff] %v1723_v0 }
  0x17 PF: > { %v1503_v1 = vld [vmem:[%s1774_s25 + $0xe4] ss:$16 sps:$4 sm:$0xff]   ;;  %v1507_v3 = vld [vmem:[%s1774_s25 + $0xe0] ss:$16 sps:$4 sm:$0xff]   ;;  %v237_v49 = vld [vmem:[%s1769_s21 + $0x8] sm:$0xff]  ;;  %p1469_p7 = scmp.ne.s32.totalorder %s1713_s12, 8 }
  0x18   : > { %v1505_v2 = vld [vmem:[%s1774_s25 + $0x2e4] ss:$16 sps:$4 sm:$0xff]   ;;  %1020 = vmatprep.subr.bf16.mxu0 %v1503_v1  ;;  %v1508_v4 = vld [vmem:[%s1774_s25 + $0x2e0] ss:$16 sps:$4 sm:$0xff]   ;;  %v1340_v52 = vcombine.high %v237_v49, %v237_v49 }
  0x19   : > { %1061 = vmatprep.subr.bf16.mxu1 %v1505_v2  ;;  %v1509_v5 = vld [vmem:[%s1774_s25 + $0xc4] ss:$16 sps:$4 sm:$0xff]   ;;  %1021 = vmatpush1.bf16.msra.mxu0 %v1507_v3  ;;  %v1513_v7 = vld [vmem:[%s1774_s25 + $0xc0] ss:$16 sps:$4 sm:$0xff]  }
  0x1a   : > { %1062 = vmatpush1.bf16.msra.mxu1 %v1508_v4  ;;  %v1511_v6 = vld [vmem:[%s1774_s25 + $0x2c4] ss:$16 sps:$4 sm:$0xff]   ;;  %1022 = vmatprep.subr.bf16.mxu0 %v1509_v5  ;;  %v1514_v8 = vld [vmem:[%s1774_s25 + $0x2c0] ss:$16 sps:$4 sm:$0xff]   ;;  %v1605_v5 = vld [vmem:[%s1774_s25 + $0xec] ss:$16 sps:$4 sm:$0xff]  }
  0x1b   : > { %1063 = vmatprep.subr.bf16.mxu1 %v1511_v6  ;;  %v1515_v9 = vld [vmem:[%s1774_s25 + $0xa4] ss:$16 sps:$4 sm:$0xff]   ;;  %v1519_v11 = vld [vmem:[%s1774_s25 + $0xa0] ss:$16 sps:$4 sm:$0xff]   ;;  %1093 = vmatprep.mubr.bf16.mxu1 %v1340_v52  ;;  %v1608_v6 = vld [vmem:[%s1774_s25 + $0x2ec] ss:$16 sps:$4 sm:$0xff]  }
  0x1c   : > { %v1517_v10 = vld [vmem:[%s1774_s25 + $0x2a4] ss:$16 sps:$4 sm:$0xff]   ;;  %v1520_v12 = vld [vmem:[%s1774_s25 + $0x2a0] ss:$16 sps:$4 sm:$0xff]  }
  0x1d   : > { %1023 = vmatpush1.bf16.msra.mxu0 %v1513_v7  ;;  %v1521_v13 = vld [vmem:[%s1774_s25 + $0x84] ss:$16 sps:$4 sm:$0xff]   ;;  %v1525_v15 = vld [vmem:[%s1774_s25 + $0x80] ss:$16 sps:$4 sm:$0xff]  }
  0x1e   : > { %1064 = vmatpush1.bf16.msra.mxu1 %v1514_v8  ;;  %1024 = vmatprep.subr.bf16.mxu0 %v1515_v9  ;;  %v1523_v14 = vld [vmem:[%s1774_s25 + $0x284] ss:$16 sps:$4 sm:$0xff]   ;;  %v1526_v16 = vld [vmem:[%s1774_s25 + $0x280] ss:$16 sps:$4 sm:$0xff]   ;;  %v1850_v8 = vcombine.low %v237_v49, %v237_v49  ;;  %v1603_v9 = vld [vmem:[%s1774_s25 + $0xe8] ss:$16 sps:$4 sm:$0xff]  }
  0x1f   : > { %1065 = vmatprep.subr.bf16.mxu1 %v1517_v10  ;;  %v1527_v17 = vld [vmem:[%s1774_s25 + $0x64] ss:$16 sps:$4 sm:$0xff]   ;;  %v1531_v19 = vld [vmem:[%s1774_s25 + $0x60] ss:$16 sps:$4 sm:$0xff]   ;;  %v1606_v10 = vld [vmem:[%s1774_s25 + $0x2e8] ss:$16 sps:$4 sm:$0xff]  }
  0x20   : > { %v1529_v18 = vld [vmem:[%s1774_s25 + $0x264] ss:$16 sps:$4 sm:$0xff]   ;;  %v1532_v20 = vld [vmem:[%s1774_s25 + $0x260] ss:$16 sps:$4 sm:$0xff]   ;;  %v1663_v49 = vld [vmem:[%s1774_s25 + $0x1a8] ss:$16 sps:$4 sm:$0xff]  }
  0x21   : > { %1025 = vmatpush1.bf16.msra.mxu0 %v1519_v11  ;;  %v1533_v21 = vld [vmem:[%s1774_s25 + $0x44] ss:$16 sps:$4 sm:$0xff]   ;;  %v1537_v23 = vld [vmem:[%s1774_s25 + $0x40] ss:$16 sps:$4 sm:$0xff]   ;;  %v1611_v11 = vld [vmem:[%s1774_s25 + $0xcc] ss:$16 sps:$4 sm:$0xff]  }
  0x22   : > { %1066 = vmatpush1.bf16.msra.mxu1 %v1520_v12  ;;  %1026 = vmatprep.subr.bf16.mxu0 %v1521_v13  ;;  %v1535_v22 = vld [vmem:[%s1774_s25 + $0x244] ss:$16 sps:$4 sm:$0xff]   ;;  %v1538_v24 = vld [vmem:[%s1774_s25 + $0x240] ss:$16 sps:$4 sm:$0xff]   ;;  %v1614_v12 = vld [vmem:[%s1774_s25 + $0x2cc] ss:$16 sps:$4 sm:$0xff]  }
  0x23   : > { %1067 = vmatprep.subr.bf16.mxu1 %v1523_v14  ;;  %v1539_v25 = vld [vmem:[%s1774_s25 + $0x24] ss:$16 sps:$4 sm:$0xff]   ;;  %v1543_v27 = vld [vmem:[%s1774_s25 + $0x20] ss:$16 sps:$4 sm:$0xff]   ;;  %v1609_v13 = vld [vmem:[%s1774_s25 + $0xc8] ss:$16 sps:$4 sm:$0xff]  }
  0x24   : > { %v1541_v26 = vld [vmem:[%s1774_s25 + $0x224] ss:$16 sps:$4 sm:$0xff]   ;;  %v1544_v28 = vld [vmem:[%s1774_s25 + $0x220] ss:$16 sps:$4 sm:$0xff]   ;;  %v1612_v14 = vld [vmem:[%s1774_s25 + $0x2c8] ss:$16 sps:$4 sm:$0xff]  }
  0x25   : > { %1027 = vmatpush1.bf16.msra.mxu0 %v1525_v15  ;;  %v1545_v29 = vld [vmem:[%s1774_s25 + $0x4] ss:$16 sps:$4 sm:$0xff]   ;;  %v1549_v31 = vld [vmem:[%s1774_s25] ss:$16 sps:$4 sm:$0xff]   ;;  %v1617_v15 = vld [vmem:[%s1774_s25 + $0xac] ss:$16 sps:$4 sm:$0xff]  }
  0x26   : > { %1068 = vmatpush1.bf16.msra.mxu1 %v1526_v16  ;;  %1028 = vmatprep.subr.bf16.mxu0 %v1527_v17  ;;  %v1547_v30 = vld [vmem:[%s1774_s25 + $0x204] ss:$16 sps:$4 sm:$0xff]   ;;  %v1550_v32 = vld [vmem:[%s1774_s25 + $0x200] ss:$16 sps:$4 sm:$0xff]   ;;  %v1620_v16 = vld [vmem:[%s1774_s25 + $0x2ac] ss:$16 sps:$4 sm:$0xff]  }
  0x27   : > { %1069 = vmatprep.subr.bf16.mxu1 %v1529_v18  ;;  %v1551_v33 = vld [vmem:[%s1774_s25 + $0x1e4] ss:$16 sps:$4 sm:$0xff]   ;;  %v1555_v35 = vld [vmem:[%s1774_s25 + $0x1e0] ss:$16 sps:$4 sm:$0xff]   ;;  %v1615_v17 = vld [vmem:[%s1774_s25 + $0xa8] ss:$16 sps:$4 sm:$0xff]  }
  0x28   : > { %v1553_v34 = vld [vmem:[%s1774_s25 + $0x3e4] ss:$16 sps:$4 sm:$0xff]   ;;  %v1556_v36 = vld [vmem:[%s1774_s25 + $0x3e0] ss:$16 sps:$4 sm:$0xff]   ;;  %v1618_v18 = vld [vmem:[%s1774_s25 + $0x2a8] ss:$16 sps:$4 sm:$0xff]  }
  0x29   : > { %1029 = vmatpush1.bf16.msra.mxu0 %v1531_v19  ;;  %v1557_v37 = vld [vmem:[%s1774_s25 + $0x1c4] ss:$16 sps:$4 sm:$0xff]   ;;  %v1561_v39 = vld [vmem:[%s1774_s25 + $0x1c0] ss:$16 sps:$4 sm:$0xff]   ;;  %v1623_v19 = vld [vmem:[%s1774_s25 + $0x8c] ss:$16 sps:$4 sm:$0xff]  }
  0x2a   : > { %1070 = vmatpush1.bf16.msra.mxu1 %v1532_v20  ;;  %1030 = vmatprep.subr.bf16.mxu0 %v1533_v21  ;;  %v1559_v38 = vld [vmem:[%s1774_s25 + $0x3c4] ss:$16 sps:$4 sm:$0xff]   ;;  %v1562_v40 = vld [vmem:[%s1774_s25 + $0x3c0] ss:$16 sps:$4 sm:$0xff]   ;;  %v1626_v20 = vld [vmem:[%s1774_s25 + $0x28c] ss:$16 sps:$4 sm:$0xff]  }
  0x2b   : > { %1071 = vmatprep.subr.bf16.mxu1 %v1535_v22  ;;  %v1563_v41 = vld [vmem:[%s1774_s25 + $0x1a4] ss:$16 sps:$4 sm:$0xff]   ;;  %v1567_v43 = vld [vmem:[%s1774_s25 + $0x1a0] ss:$16 sps:$4 sm:$0xff]   ;;  %v1621_v21 = vld [vmem:[%s1774_s25 + $0x88] ss:$16 sps:$4 sm:$0xff]  }
  0x2c   : > { %v1565_v42 = vld [vmem:[%s1774_s25 + $0x3a4] ss:$16 sps:$4 sm:$0xff]   ;;  %v1568_v44 = vld [vmem:[%s1774_s25 + $0x3a0] ss:$16 sps:$4 sm:$0xff]   ;;  %v1624_v22 = vld [vmem:[%s1774_s25 + $0x288] ss:$16 sps:$4 sm:$0xff]  }
  0x2d   : > { %1031 = vmatpush1.bf16.msra.mxu0 %v1537_v23  ;;  %v1569_v45 = vld [vmem:[%s1774_s25 + $0x184] ss:$16 sps:$4 sm:$0xff]   ;;  %v1573_v50 = vld [vmem:[%s1774_s25 + $0x180] ss:$16 sps:$4 sm:$0xff]   ;;  %v1629_v23 = vld [vmem:[%s1774_s25 + $0x6c] ss:$16 sps:$4 sm:$0xff]  }
  0x2e   : > { %1072 = vmatpush1.bf16.msra.mxu1 %v1538_v24  ;;  %1032 = vmatprep.subr.bf16.mxu0 %v1539_v25  ;;  %v1571_v46 = vld [vmem:[%s1774_s25 + $0x384] ss:$16 sps:$4 sm:$0xff]   ;;  %v1574_v51 = vld [vmem:[%s1774_s25 + $0x380] ss:$16 sps:$4 sm:$0xff]   ;;  %v1632_v24 = vld [vmem:[%s1774_s25 + $0x26c] ss:$16 sps:$4 sm:$0xff]  }
  0x2f   : > { %1073 = vmatprep.subr.bf16.mxu1 %v1541_v26  ;;  %v236_v47 = vld [vmem:[%s1769_s21] sm:$0xff]  ;;  %v1627_v25 = vld [vmem:[%s1774_s25 + $0x68] ss:$16 sps:$4 sm:$0xff]  }
  0x30   : > { %v1824_v48 = vcombine.high %v236_v47, %v236_v47  ;;  %v1575_v53 = vld [vmem:[%s1774_s25 + $0x164] ss:$16 sps:$4 sm:$0xff]   ;;  %v1579_v55 = vld [vmem:[%s1774_s25 + $0x160] ss:$16 sps:$4 sm:$0xff]   ;;  %v1848_v7 = vcombine.low %v236_v47, %v236_v47  ;;  %v1630_v26 = vld [vmem:[%s1774_s25 + $0x268] ss:$16 sps:$4 sm:$0xff]  }
  0x31   : > { %1033 = vmatpush1.bf16.msra.mxu0 %v1543_v27  ;;  %v1577_v54 = vld [vmem:[%s1774_s25 + $0x364] ss:$16 sps:$4 sm:$0xff]   ;;  %v1580_v56 = vld [vmem:[%s1774_s25 + $0x360] ss:$16 sps:$4 sm:$0xff]   ;;  %v1635_v27 = vld [vmem:[%s1774_s25 + $0x4c] ss:$16 sps:$4 sm:$0xff]  }
  0x32   : > { %1074 = vmatpush1.bf16.msra.mxu1 %v1544_v28  ;;  %1034 = vmatprep.subr.bf16.mxu0 %v1545_v29  ;;  %v1581_v57 = vld [vmem:[%s1774_s25 + $0x144] ss:$16 sps:$4 sm:$0xff]   ;;  %v1585_v59 = vld [vmem:[%s1774_s25 + $0x140] ss:$16 sps:$4 sm:$0xff]   ;;  %v1638_v28 = vld [vmem:[%s1774_s25 + $0x24c] ss:$16 sps:$4 sm:$0xff]  }
  0x33   : > { %1075 = vmatprep.subr.bf16.mxu1 %v1547_v30  ;;  %1052 = vmatprep.mubr.bf16.mxu0 %v1824_v48  ;;  %v1583_v58 = vld [vmem:[%s1774_s25 + $0x344] ss:$16 sps:$4 sm:$0xff]   ;;  %v1586_v60 = vld [vmem:[%s1774_s25 + $0x340] ss:$16 sps:$4 sm:$0xff]   ;;  %v1633_v29 = vld [vmem:[%s1774_s25 + $0x48] ss:$16 sps:$4 sm:$0xff]  }
  0x34   : > { %v1587_v61 = vld [vmem:[%s1774_s25 + $0x124] ss:$16 sps:$4 sm:$0xff]   ;;  %v1591_v63 = vld [vmem:[%s1774_s25 + $0x120] ss:$16 sps:$4 sm:$0xff]   ;;  %v1636_v30 = vld [vmem:[%s1774_s25 + $0x248] ss:$16 sps:$4 sm:$0xff]  }
  0x35   : > { %1035 = vmatpush1.bf16.msra.mxu0 %v1549_v31  ;;  %v1589_v62 = vld [vmem:[%s1774_s25 + $0x324] ss:$16 sps:$4 sm:$0xff]   ;;  %v1592_v0 = vld [vmem:[%s1774_s25 + $0x320] ss:$16 sps:$4 sm:$0xff]   ;;  %v1641_v31 = vld [vmem:[%s1774_s25 + $0x2c] ss:$16 sps:$4 sm:$0xff]  }
  0x36   : > { %1076 = vmatpush1.bf16.msra.mxu1 %v1550_v32  ;;  %1036 = vmatprep.subr.bf16.mxu0 %v1551_v33  ;;  %v1593_v1 = vld [vmem:[%s1774_s25 + $0x104] ss:$16 sps:$4 sm:$0xff]   ;;  %v1597_v3 = vld [vmem:[%s1774_s25 + $0x100] ss:$16 sps:$4 sm:$0xff]   ;;  %v1644_v32 = vld [vmem:[%s1774_s25 + $0x22c] ss:$16 sps:$4 sm:$0xff]  }
  0x37   : > { %1077 = vmatprep.subr.bf16.mxu1 %v1553_v34  ;;  %v1595_v2 = vld [vmem:[%s1774_s25 + $0x304] ss:$16 sps:$4 sm:$0xff]   ;;  %v1598_v4 = vld [vmem:[%s1774_s25 + $0x300] ss:$16 sps:$4 sm:$0xff]   ;;  %v1639_v33 = vld [vmem:[%s1774_s25 + $0x28] ss:$16 sps:$4 sm:$0xff]  }
  0x38   : > { %v1642_v34 = vld [vmem:[%s1774_s25 + $0x228] ss:$16 sps:$4 sm:$0xff]   ;;  %v1665_v47 = vld [vmem:[%s1774_s25 + $0x1ac] ss:$16 sps:$4 sm:$0xff]  }
  0x39   : > { %1037 = vmatpush2.bf16.msra.mxu0 %v1555_v35  ;;  %v1647_v35 = vld [vmem:[%s1774_s25 + $0xc] ss:$16 sps:$4 sm:$0xff]  }
  0x3a   : > { %1078 = vmatpush2.bf16.msra.mxu1 %v1556_v36  ;;  %1038 = vmatprep.subr.bf16.mxu0 %v1557_v37  ;;  %v1650_v36 = vld [vmem:[%s1774_s25 + $0x20c] ss:$16 sps:$4 sm:$0xff]   ;;  %v1645_v37 = vld [vmem:[%s1774_s25 + $0x8] ss:$16 sps:$4 sm:$0xff]  }
  0x3b   : > { %1079 = vmatprep.subr.bf16.mxu1 %v1559_v38  ;;  %v1648_v38 = vld [vmem:[%s1774_s25 + $0x208] ss:$16 sps:$4 sm:$0xff]  }
  0x3d   : > { %1039 = vmatpush2.bf16.msra.mxu0 %v1561_v39  ;;  %v1653_v39 = vld [vmem:[%s1774_s25 + $0x1ec] ss:$16 sps:$4 sm:$0xff]  }
  0x3e   : > { %1080 = vmatpush2.bf16.msra.mxu1 %v1562_v40  ;;  %1040 = vmatprep.subr.bf16.mxu0 %v1563_v41  ;;  %v1656_v40 = vld [vmem:[%s1774_s25 + $0x3ec] ss:$16 sps:$4 sm:$0xff]   ;;  %v1651_v41 = vld [vmem:[%s1774_s25 + $0x1e8] ss:$16 sps:$4 sm:$0xff]  }
  0x3f   : > { %1081 = vmatprep.subr.bf16.mxu1 %v1565_v42  ;;  %v1654_v42 = vld [vmem:[%s1774_s25 + $0x3e8] ss:$16 sps:$4 sm:$0xff]  }
  0x41   : > { %1041 = vmatpush2.bf16.msra.mxu0 %v1567_v43  ;;  %v1659_v43 = vld [vmem:[%s1774_s25 + $0x1cc] ss:$16 sps:$4 sm:$0xff]  }
  0x42   : > { %1082 = vmatpush2.bf16.msra.mxu1 %v1568_v44  ;;  %1042 = vmatprep.subr.bf16.mxu0 %v1569_v45  ;;  %v1662_v44 = vld [vmem:[%s1774_s25 + $0x3cc] ss:$16 sps:$4 sm:$0xff]   ;;  %v1657_v45 = vld [vmem:[%s1774_s25 + $0x1c8] ss:$16 sps:$4 sm:$0xff]  }
  0x43   : > { %1083 = vmatprep.subr.bf16.mxu1 %v1571_v46  ;;  %v1660_v46 = vld [vmem:[%s1774_s25 + $0x3c8] ss:$16 sps:$4 sm:$0xff]  }
  0x45   : > { %1043 = vmatpush2.bf16.msra.mxu0 %v1573_v50  ;;  %v1666_v50 = vld [vmem:[%s1774_s25 + $0x3a8] ss:$16 sps:$4 sm:$0xff]  }
  0x46   : > { %1084 = vmatpush2.bf16.msra.mxu1 %v1574_v51  ;;  %1044 = vmatprep.subr.bf16.mxu0 %v1575_v53  ;;  %v1671_v51 = vld [vmem:[%s1774_s25 + $0x18c] ss:$16 sps:$4 sm:$0xff]   ;;  %v1669_v53 = vld [vmem:[%s1774_s25 + $0x188] ss:$16 sps:$4 sm:$0xff]  }
  0x47   : > { %1085 = vmatprep.subr.bf16.mxu1 %v1577_v54  ;;  %v1672_v54 = vld [vmem:[%s1774_s25 + $0x388] ss:$16 sps:$4 sm:$0xff]  }
  0x49   : > { %1045 = vmatpush2.bf16.msra.mxu0 %v1579_v55  ;;  %v1677_v55 = vld [vmem:[%s1774_s25 + $0x16c] ss:$16 sps:$4 sm:$0xff]  }
  0x4a   : > { %1086 = vmatpush2.bf16.msra.mxu1 %v1580_v56  ;;  %1046 = vmatprep.subr.bf16.mxu0 %v1581_v57  ;;  %v1680_v56 = vld [vmem:[%s1774_s25 + $0x36c] ss:$16 sps:$4 sm:$0xff]   ;;  %v1675_v57 = vld [vmem:[%s1774_s25 + $0x168] ss:$16 sps:$4 sm:$0xff]  }
  0x4b   : > { %1087 = vmatprep.subr.bf16.mxu1 %v1583_v58  ;;  %v1678_v58 = vld [vmem:[%s1774_s25 + $0x368] ss:$16 sps:$4 sm:$0xff]  }
  0x4d   : > { %1047 = vmatpush2.bf16.msra.mxu0 %v1585_v59  ;;  %v1683_v59 = vld [vmem:[%s1774_s25 + $0x14c] ss:$16 sps:$4 sm:$0xff]  }
  0x4e   : > { %1088 = vmatpush2.bf16.msra.mxu1 %v1586_v60  ;;  %1048 = vmatprep.subr.bf16.mxu0 %v1587_v61  ;;  %v1686_v60 = vld [vmem:[%s1774_s25 + $0x34c] ss:$16 sps:$4 sm:$0xff]   ;;  %v1681_v61 = vld [vmem:[%s1774_s25 + $0x148] ss:$16 sps:$4 sm:$0xff]  }
  0x4f   : > { %1089 = vmatprep.subr.bf16.mxu1 %v1589_v62  ;;  %v1684_v62 = vld [vmem:[%s1774_s25 + $0x348] ss:$16 sps:$4 sm:$0xff]  }
  0x51   : > { %1049 = vmatpush2.bf16.msra.mxu0 %v1591_v63  ;;  %v1689_v63 = vld [vmem:[%s1774_s25 + $0x12c] ss:$16 sps:$4 sm:$0xff]  }
  0x52   : > { %1090 = vmatpush2.bf16.msra.mxu1 %v1592_v0  ;;  %1050 = vmatprep.subr.bf16.mxu0 %v1593_v1  ;;  %v1692_v0 = vld [vmem:[%s1774_s25 + $0x32c] ss:$16 sps:$4 sm:$0xff]   ;;  %v1687_v1 = vld [vmem:[%s1774_s25 + $0x128] ss:$16 sps:$4 sm:$0xff]  }
  0x53   : > { %1091 = vmatprep.subr.bf16.mxu1 %v1595_v2  ;;  %v1690_v2 = vld [vmem:[%s1774_s25 + $0x328] ss:$16 sps:$4 sm:$0xff]  }
  0x55   : > { %1051 = vmatpush2.bf16.msra.mxu0 %v1597_v3  ;;  %v1695_v3 = vld [vmem:[%s1774_s25 + $0x10c] ss:$16 sps:$4 sm:$0xff]  }
  0x56   : > { %1092 = vmatpush2.bf16.msra.mxu1 %v1598_v4  ;;  %1102 = vmatprep.subr.bf16.mxu0 %v1605_v5  ;;  %v1698_v4 = vld [vmem:[%s1774_s25 + $0x30c] ss:$16 sps:$4 sm:$0xff]   ;;  %v1693_v5 = vld [vmem:[%s1774_s25 + $0x108] ss:$16 sps:$4 sm:$0xff]  }
  0x57   : > { %1143 = vmatprep.subr.bf16.mxu1 %v1608_v6  ;;  %v1696_v6 = vld [vmem:[%s1774_s25 + $0x308] ss:$16 sps:$4 sm:$0xff]  }
  0x58   : > { %1053 = vmatmul.mubr.bf16.vlgmr.msra.gmra.mxu0 %v1848_v7 }
  0x59   : > { %1094 = vmatmul.mubr.bf16.vlgmr.msra.gmra.mxu1 %v1850_v8  ;;  %1103 = vmatpush1.bf16.msra.mxu0 %v1603_v9 }
  0x5a   : > { %1144 = vmatpush1.bf16.msra.mxu1 %v1606_v10  ;;  %1104 = vmatprep.subr.bf16.mxu0 %v1611_v11  ;;  %v232_v10 = vld [vmem:[#allocation2 + $0x10] sm:$0xff] }
  0x5b   : > { %1145 = vmatprep.subr.bf16.mxu1 %v1614_v12  ;;  %1134 = vmatprep.mubr.bf16.mxu0 %v1824_v48  ;;  %v1668_v48 = vld [vmem:[%s1774_s25 + $0x3ac] ss:$16 sps:$4 sm:$0xff]  }
  0x5c   : > { %1175 = vmatprep.mubr.bf16.mxu1 %v1340_v52  ;;  %v1674_v52 = vld [vmem:[%s1774_s25 + $0x38c] ss:$16 sps:$4 sm:$0xff]  }
  0x5d   : > { %1105 = vmatpush1.bf16.msra.mxu0 %v1609_v13 }
  0x5e   : > { %1146 = vmatpush1.bf16.msra.mxu1 %v1612_v14  ;;  %1106 = vmatprep.subr.bf16.mxu0 %v1617_v15  ;;  %v233_v14 = vld [vmem:[#allocation2] sm:$0xff] }
  0x5f   : > { %1147 = vmatprep.subr.bf16.mxu1 %v1620_v16 }
  0x61   : > { %1107 = vmatpush1.bf16.msra.mxu0 %v1615_v17 }
  0x62   : > { %1148 = vmatpush1.bf16.msra.mxu1 %v1618_v18  ;;  %1108 = vmatprep.subr.bf16.mxu0 %v1623_v19 }
  0x63   : > { %1149 = vmatprep.subr.bf16.mxu1 %v1626_v20 }
  0x65   : > { %1109 = vmatpush1.bf16.msra.mxu0 %v1621_v21 }
  0x66   : > { %1150 = vmatpush1.bf16.msra.mxu1 %v1624_v22  ;;  %1110 = vmatprep.subr.bf16.mxu0 %v1629_v23 }
  0x67   : > { %1151 = vmatprep.subr.bf16.mxu1 %v1632_v24 }
  0x69   : > { %1111 = vmatpush1.bf16.msra.mxu0 %v1627_v25 }
  0x6a   : > { %1152 = vmatpush1.bf16.msra.mxu1 %v1630_v26  ;;  %1112 = vmatprep.subr.bf16.mxu0 %v1635_v27  ;;  %v235_v26 = vld [vmem:[#allocation2 + $0x8] sm:$0xff] }
  0x6b   : > { %1153 = vmatprep.subr.bf16.mxu1 %v1638_v28 }
  0x6d   : > { %1113 = vmatpush1.bf16.msra.mxu0 %v1633_v29 }
  0x6e   : > { %1154 = vmatpush1.bf16.msra.mxu1 %v1636_v30  ;;  %1114 = vmatprep.subr.bf16.mxu0 %v1641_v31 }
  0x6f   : > { %1155 = vmatprep.subr.bf16.mxu1 %v1644_v32 }
  0x71   : > { %1115 = vmatpush1.bf16.msra.mxu0 %v1639_v33 }
  0x72   : > { %1156 = vmatpush1.bf16.msra.mxu1 %v1642_v34  ;;  %1116 = vmatprep.subr.bf16.mxu0 %v1647_v35 }
  0x73   : > { %1157 = vmatprep.subr.bf16.mxu1 %v1650_v36 }
  0x75   : > { %1117 = vmatpush1.bf16.msra.mxu0 %v1645_v37 }
  0x76   : > { %1158 = vmatpush1.bf16.msra.mxu1 %v1648_v38  ;;  %1118 = vmatprep.subr.bf16.mxu0 %v1653_v39 }
  0x77   : > { %1159 = vmatprep.subr.bf16.mxu1 %v1656_v40 }
  0x79   : > { %1119 = vmatpush2.bf16.msra.mxu0 %v1651_v41 }
  0x7a   : > { %1160 = vmatpush2.bf16.msra.mxu1 %v1654_v42  ;;  %1120 = vmatprep.subr.bf16.mxu0 %v1659_v43 }
  0x7b   : > { %1161 = vmatprep.subr.bf16.mxu1 %v1662_v44 }
  0x7d   : > { %1121 = vmatpush2.bf16.msra.mxu0 %v1657_v45 }
  0x7e   : > { %1162 = vmatpush2.bf16.msra.mxu1 %v1660_v46  ;;  %1122 = vmatprep.subr.bf16.mxu0 %v1665_v47 }
  0x7f   : > { %1163 = vmatprep.subr.bf16.mxu1 %v1668_v48 }
  0x81   : > { %1123 = vmatpush2.bf16.msra.mxu0 %v1663_v49 }
  0x82   : > { %1164 = vmatpush2.bf16.msra.mxu1 %v1666_v50  ;;  %1124 = vmatprep.subr.bf16.mxu0 %v1671_v51 }
  0x83   : > { %1165 = vmatprep.subr.bf16.mxu1 %v1674_v52 }
  0x85   : > { %1125 = vmatpush2.bf16.msra.mxu0 %v1669_v53 }
  0x86   : > { %1166 = vmatpush2.bf16.msra.mxu1 %v1672_v54  ;;  %1126 = vmatprep.subr.bf16.mxu0 %v1677_v55 }
  0x87   : > { %1167 = vmatprep.subr.bf16.mxu1 %v1680_v56 }
  0x89   : > { %1127 = vmatpush2.bf16.msra.mxu0 %v1675_v57 }
  0x8a   : > { %1168 = vmatpush2.bf16.msra.mxu1 %v1678_v58  ;;  %1128 = vmatprep.subr.bf16.mxu0 %v1683_v59 }
  0x8b   : > { %1169 = vmatprep.subr.bf16.mxu1 %v1686_v60 }
  0x8d   : > { %1129 = vmatpush2.bf16.msra.mxu0 %v1681_v61 }
  0x8e   : > { %1170 = vmatpush2.bf16.msra.mxu1 %v1684_v62  ;;  %1130 = vmatprep.subr.bf16.mxu0 %v1689_v63 }
  0x8f   : > { %1171 = vmatprep.subr.bf16.mxu1 %v1692_v0 }
  0x91   : > { %1131 = vmatpush2.bf16.msra.mxu0 %v1687_v1 }
  0x92   : > { %1172 = vmatpush2.bf16.msra.mxu1 %v1690_v2  ;;  %1132 = vmatprep.subr.bf16.mxu0 %v1695_v3 }
  0x93   : > { %1173 = vmatprep.subr.bf16.mxu1 %v1698_v4 }
  0x95   : > { %1133 = vmatpush2.bf16.msra.mxu0 %v1693_v5 }
  0x96   : > { %1174 = vmatpush2.bf16.msra.mxu1 %v1696_v6 }
  0x98   : > { %1135 = vmatmul.mubr.bf16.vlgmr.msra.gmra.mxu0 %v1848_v7  ;;  %v234_v7 = vld [vmem:[#allocation2 + $0x18] sm:$0xff] }
  0x99   : > { %1176 = vmatmul.mubr.bf16.vlgmr.msra.gmra.mxu1 %v1850_v8 }
 0x118   : > { %v1054_v9 = vpop.f32.mrf.mxu0 }
 0x119   : > { %v1095_v11 = vpop.f32.mrf.mxu1 }
 0x11a   : > { %v1096_v12 = vadd.f32 %v1095_v11, %v1054_v9  ;;  %v1056_v13 = vpop.f32.mrf.mxu0 }
 0x11b   : > { %v1097_v15 = vpop.f32.mrf.mxu1 }
 0x11c   : > { %v1184_v16 = vadd.f32 %v1096_v12, %v232_v10  ;;  %v1098_v17 = vadd.f32 %v1097_v15, %v1056_v13  ;;  %v1058_v18 = vpop.f32.mrf.mxu0 }
 0x11d   : > { %v1099_v19 = vpop.f32.mrf.mxu1 }
 0x11e   : > { %1188 = vst [vmem:[#allocation2 + $0x10] sm:$0xff] %v1184_v16  ;;  %v1185_v20 = vadd.f32 %v1098_v17, %v233_v14  ;;  %v1059_v21 = vpop.f32.mrf.mxu0 }
 0x11f   : > { %v1100_v22 = vpop.f32.mrf.mxu1 }
 0x120   : > { %1189 = vst [vmem:[#allocation2] sm:$0xff] %v1185_v20 }
 0x158   : > { %v1136_v23 = vpop.f32.mrf.mxu0 }
 0x159   : > { %v1177_v24 = vpop.f32.mrf.mxu1 }
 0x15a   : > { %v1178_v8 = vadd.f32 %v1177_v24, %v1136_v23  ;;  %v1138_v25 = vpop.f32.mrf.mxu0 }
 0x15b   : > { %v1179_v27 = vpop.f32.mrf.mxu1 }
 0x15c   : > { %v1186_v28 = vadd.f32 %v1178_v8, %v234_v7  ;;  %v1180_v29 = vadd.f32 %v1179_v27, %v1138_v25  ;;  %v1140_v30 = vpop.f32.mrf.mxu0  ;;  %1195 = sbr.rel (%p1469_p7) target bundleno = 368 (0x170), region = 40 }
 0x15d   : > { %v1181_v31 = vpop.f32.mrf.mxu1 }
 0x15e   : > { %1190 = vst [vmem:[#allocation2 + $0x18] sm:$0xff] %v1186_v28  ;;  %v1187_v32 = vadd.f32 %v1180_v29, %v235_v26  ;;  %v1141_v33 = vpop.f32.mrf.mxu0 }
 0x15f   : > { %v1182_v34 = vpop.f32.mrf.mxu1 }
 0x160   : > { %1191 = vst [vmem:[#allocation2 + $0x8] sm:$0xff] %v1187_v32 }
 0x161   : > { %v1202_v35 = vlaneseq  ;;  %v1200_v37 = vld [vmem:[%s1940_s2] sm:$0xf]  ;;  %v1196_v38 = vld [vmem:[#allocation2 + $0x10] sm:$0xff] }
 0x162   : > { %v1197_v43 = vld [vmem:[#allocation2] sm:$0xff] }
 0x163   : > { %v1203_v36 = vshrl.u32 %v1202_v35, 7 }
 0x165   : > { %v1204_v39 = vsub.s32 0, %v1203_v36  ;;  %v1208_v40 = vsub.s32 1, %v1203_v36  ;;  %v1212_v41 = vsub.s32 2, %v1203_v36  ;;  %v1216_v42 = vsub.s32 3, %v1203_v36  ;;  %v1198_v44 = vld [vmem:[#allocation2 + $0x18] sm:$0xff] }
 0x167   : > { %v1199_v45 = vld [vmem:[#allocation2 + $0x8] sm:$0xff]  ;;  %v1205_v46 = vrot.slane %v1200_v37, %v1204_v39  ;;  %v1209_v47 = vrot.slane %v1200_v37, %v1208_v40  ;;  %v1213_v48 = vrot.slane %v1200_v37, %v1212_v41  ;;  %v1217_v49 = vrot.slane %v1200_v37, %v1216_v42 }
 0x169   : > { %v1222_v50 = vadd.f32 %v1205_v46, %v1196_v38  ;;  %v1223_v51 = vadd.f32 %v1209_v47, %v1197_v43  ;;  %v1224_v52 = vadd.f32 %v1213_v48, %v1198_v44  ;;  %v1225_v53 = vadd.f32 %v1217_v49, %v1199_v45 }
 0x16b   : > { %v1226_v54 = vmax.f32 %v1222_v50, 0.0  ;;  %v1227_v55 = vmax.f32 %v1223_v51, 0.0  ;;  %v1228_v56 = vmax.f32 %v1224_v52, 0.0  ;;  %v1229_v57 = vmax.f32 %v1225_v53, 0.0 }
 0x16d   : > { %v1476_v58 = vpack.c.bf16 %v1227_v55, %v1226_v54  ;;  %v1477_v59 = vpack.c.bf16 %v1229_v57, %v1228_v56 }
 0x16f   : > { %1246 = vst [vmem:[%s1941_s3] sm:$0xff] %v1476_v58  ;;  %1247 = vst [vmem:[%s1941_s3 + $0x8] sm:$0xff] %v1477_v59 }
 0x170 PF: > { %s13_s14 = sadd.s32 1, %s1721_s14   ;;  %s1942_s12 = smov %s1717_s13 }
 0x171   : > { %p10_p8 = scmp.ge.s32.totalorder %s13_s14, 11   ;;  %s1943_s13 = smov %s1945_s15 }
 0x173   :  { %12 = sbr.rel (!%p10_p8) target bundleno = 2 (0x2), region = 73 }

// kernel: resnet_forward.40
= control target key start
LH: loop header
LB: loop body
LE: loop exit
PB: predicated region body
PF: predicated region fallthrough
CT: control target
= control target key end

     0   :  { %s1822_s15 = smov 0   ;;  %s1824_s16 = smov 0   ;;  %s2022_s0 = inlined_call_operand.vmem [shape: bf16[8,4608], index: 0, kind: input, shape index: {}]   ;;  %s2023_s1 = inlined_call_operand.vmem [shape: bf16[4608,512], index: 1, kind: input, shape index: {}]   ;;  %s2024_s2 = inlined_call_operand.vmem [shape: f32[1,512], index: 2, kind: input, shape index: {}]   ;;  %s2025_s3 = inlined_call_operand.vmem [shape: bf16[8,512], index: 3, kind: input, shape index: {}]   ;;  %s2026_s4 = inlined_call_operand.vmem [shape: bf16[8,512], index: 4, kind: output, shape index: {}]  }
   0x1   :  { %s1826_s17 = smov 0  }
   0x2 LB: > { %s23_s18 = sadd.s32 1, %s1790_s16  ;;  %p1403_p0 = scmp.ge.s32.totalorder %s1794_s17, 1  ;;  %s1794_s17 = sphi %s1826_s17, %s14_s17   ;;  %s1790_s16 = sphi %s1824_s16, %s2028_s16   ;;  %s1786_s15 = sphi %s1822_s15, %s2027_s15  }
   0x3   : > { %p24_p1 = scmp.ge.s32.totalorder %s23_s18, 9  ;;  %p203_p2 = scmp.lt.s32.totalorder %s1794_s17, 10 }
   0x5   : > { %s2030_s18 = smov (%p24_p1, %s23_s18), 0  ;;  %p204_p3 = pnand %p1403_p0, %p203_p2 }
   0x6   : > { %s1404_s19 = sshll.u32 (!%p204_p3), %s1786_s15, 2  ;;  %s1406_s20 = sshll.u32 (!%p204_p3), %s1786_s15, 6 }
   0x7   : > { %207 = sbr.rel (%p204_p3) target bundleno = 370 (0x172), region = 36  ;;  %p247_p4 = scmp.lt.s32.totalorder (!%p204_p3), %s1404_s19, 35 }
   0x8   : > { %p255_p5 = scmp.lt.s32.totalorder (!%p204_p3), %s1406_s20, 575  ;;  %p1409_p6 = scmp.ne.s32.totalorder (!%p204_p3), %s1786_s15, 0 }
   0xc   : > { %s2032_s19 = smov (!%p247_p4, %s1404_s19), 35  ;;  %s2034_s20 = smov (!%p255_p5, %s1406_s20), 575 }
   0xd   : > { %s1405_s21 = sshll.u32 %s2032_s19, 2  ;;  %s1548_s25 = sshll.u32 %s2034_s20, 4 }
   0xe   : > { %s1847_s24 = scalar_lea.vmem %s2022_s0, %s1405_s21  ;;  %s1852_s28 = scalar_lea.vmem %s2023_s1, %s1548_s25 }
   0xf   : > { %274 = sbr.rel (%p1409_p6) target bundleno = 23 (0x17), region = 40 }
  0x14   : > { %v1796_v0 = vmov 0.0  }
  0x15   : > { %275 = vst [vmem:[#allocation2 + $0x10] sm:$0xff] %v1796_v0  ;;  %276 = vst [vmem:[#allocation2] sm:$0xff] %v1796_v0 }
  0x16   : > { %277 = vst [vmem:[#allocation2 + $0x18] sm:$0xff] %v1796_v0  ;;  %278 = vst [vmem:[#allocation2 + $0x8] sm:$0xff] %v1796_v0 }
  0x17 PF: > { %v1576_v1 = vld [vmem:[%s1852_s28 + $0xe4] ss:$16 sps:$4 sm:$0xff]   ;;  %v1580_v3 = vld [vmem:[%s1852_s28 + $0xe0] ss:$16 sps:$4 sm:$0xff]   ;;  %v284_v49 = vld [vmem:[%s1847_s24 + $0x8] sm:$0xff]  ;;  %p1542_p7 = scmp.ne.s32.totalorder %s1786_s15, 8 }
  0x18   : > { %v1578_v2 = vld [vmem:[%s1852_s28 + $0x2e4] ss:$16 sps:$4 sm:$0xff]   ;;  %1067 = vmatprep.subr.bf16.mxu0 %v1576_v1  ;;  %v1581_v4 = vld [vmem:[%s1852_s28 + $0x2e0] ss:$16 sps:$4 sm:$0xff]   ;;  %v1413_v52 = vcombine.high %v284_v49, %v284_v49 }
  0x19   : > { %1108 = vmatprep.subr.bf16.mxu1 %v1578_v2  ;;  %v1582_v5 = vld [vmem:[%s1852_s28 + $0xc4] ss:$16 sps:$4 sm:$0xff]   ;;  %1068 = vmatpush1.bf16.msra.mxu0 %v1580_v3  ;;  %v1586_v7 = vld [vmem:[%s1852_s28 + $0xc0] ss:$16 sps:$4 sm:$0xff]  }
  0x1a   : > { %1109 = vmatpush1.bf16.msra.mxu1 %v1581_v4  ;;  %v1584_v6 = vld [vmem:[%s1852_s28 + $0x2c4] ss:$16 sps:$4 sm:$0xff]   ;;  %1069 = vmatprep.subr.bf16.mxu0 %v1582_v5  ;;  %v1587_v8 = vld [vmem:[%s1852_s28 + $0x2c0] ss:$16 sps:$4 sm:$0xff]   ;;  %v1678_v5 = vld [vmem:[%s1852_s28 + $0xec] ss:$16 sps:$4 sm:$0xff]  }
  0x1b   : > { %1110 = vmatprep.subr.bf16.mxu1 %v1584_v6  ;;  %v1588_v9 = vld [vmem:[%s1852_s28 + $0xa4] ss:$16 sps:$4 sm:$0xff]   ;;  %v1592_v11 = vld [vmem:[%s1852_s28 + $0xa0] ss:$16 sps:$4 sm:$0xff]   ;;  %1140 = vmatprep.mubr.bf16.mxu1 %v1413_v52  ;;  %v1681_v6 = vld [vmem:[%s1852_s28 + $0x2ec] ss:$16 sps:$4 sm:$0xff]  }
  0x1c   : > { %v1590_v10 = vld [vmem:[%s1852_s28 + $0x2a4] ss:$16 sps:$4 sm:$0xff]   ;;  %v1593_v12 = vld [vmem:[%s1852_s28 + $0x2a0] ss:$16 sps:$4 sm:$0xff]  }
  0x1d   : > { %1070 = vmatpush1.bf16.msra.mxu0 %v1586_v7  ;;  %v1594_v13 = vld [vmem:[%s1852_s28 + $0x84] ss:$16 sps:$4 sm:$0xff]   ;;  %v1598_v15 = vld [vmem:[%s1852_s28 + $0x80] ss:$16 sps:$4 sm:$0xff]  }
  0x1e   : > { %1111 = vmatpush1.bf16.msra.mxu1 %v1587_v8  ;;  %1071 = vmatprep.subr.bf16.mxu0 %v1588_v9  ;;  %v1596_v14 = vld [vmem:[%s1852_s28 + $0x284] ss:$16 sps:$4 sm:$0xff]   ;;  %v1599_v16 = vld [vmem:[%s1852_s28 + $0x280] ss:$16 sps:$4 sm:$0xff]   ;;  %v1928_v8 = vcombine.low %v284_v49, %v284_v49  ;;  %v1676_v9 = vld [vmem:[%s1852_s28 + $0xe8] ss:$16 sps:$4 sm:$0xff]  }
  0x1f   : > { %1112 = vmatprep.subr.bf16.mxu1 %v1590_v10  ;;  %v1600_v17 = vld [vmem:[%s1852_s28 + $0x64] ss:$16 sps:$4 sm:$0xff]   ;;  %v1604_v19 = vld [vmem:[%s1852_s28 + $0x60] ss:$16 sps:$4 sm:$0xff]   ;;  %v1679_v10 = vld [vmem:[%s1852_s28 + $0x2e8] ss:$16 sps:$4 sm:$0xff]  }
  0x20   : > { %v1602_v18 = vld [vmem:[%s1852_s28 + $0x264] ss:$16 sps:$4 sm:$0xff]   ;;  %v1605_v20 = vld [vmem:[%s1852_s28 + $0x260] ss:$16 sps:$4 sm:$0xff]   ;;  %v1736_v49 = vld [vmem:[%s1852_s28 + $0x1a8] ss:$16 sps:$4 sm:$0xff]  }
  0x21   : > { %1072 = vmatpush1.bf16.msra.mxu0 %v1592_v11  ;;  %v1606_v21 = vld [vmem:[%s1852_s28 + $0x44] ss:$16 sps:$4 sm:$0xff]   ;;  %v1610_v23 = vld [vmem:[%s1852_s28 + $0x40] ss:$16 sps:$4 sm:$0xff]   ;;  %v1684_v11 = vld [vmem:[%s1852_s28 + $0xcc] ss:$16 sps:$4 sm:$0xff]  }
  0x22   : > { %1113 = vmatpush1.bf16.msra.mxu1 %v1593_v12  ;;  %1073 = vmatprep.subr.bf16.mxu0 %v1594_v13  ;;  %v1608_v22 = vld [vmem:[%s1852_s28 + $0x244] ss:$16 sps:$4 sm:$0xff]   ;;  %v1611_v24 = vld [vmem:[%s1852_s28 + $0x240] ss:$16 sps:$4 sm:$0xff]   ;;  %v1687_v12 = vld [vmem:[%s1852_s28 + $0x2cc] ss:$16 sps:$4 sm:$0xff]  }
  0x23   : > { %1114 = vmatprep.subr.bf16.mxu1 %v1596_v14  ;;  %v1612_v25 = vld [vmem:[%s1852_s28 + $0x24] ss:$16 sps:$4 sm:$0xff]   ;;  %v1616_v27 = vld [vmem:[%s1852_s28 + $0x20] ss:$16 sps:$4 sm:$0xff]   ;;  %v1682_v13 = vld [vmem:[%s1852_s28 + $0xc8] ss:$16 sps:$4 sm:$0xff]  }
  0x24   : > { %v1614_v26 = vld [vmem:[%s1852_s28 + $0x224] ss:$16 sps:$4 sm:$0xff]   ;;  %v1617_v28 = vld [vmem:[%s1852_s28 + $0x220] ss:$16 sps:$4 sm:$0xff]   ;;  %v1685_v14 = vld [vmem:[%s1852_s28 + $0x2c8] ss:$16 sps:$4 sm:$0xff]  }
  0x25   : > { %1074 = vmatpush1.bf16.msra.mxu0 %v1598_v15  ;;  %v1618_v29 = vld [vmem:[%s1852_s28 + $0x4] ss:$16 sps:$4 sm:$0xff]   ;;  %v1622_v31 = vld [vmem:[%s1852_s28] ss:$16 sps:$4 sm:$0xff]   ;;  %v1690_v15 = vld [vmem:[%s1852_s28 + $0xac] ss:$16 sps:$4 sm:$0xff]  }
  0x26   : > { %1115 = vmatpush1.bf16.msra.mxu1 %v1599_v16  ;;  %1075 = vmatprep.subr.bf16.mxu0 %v1600_v17  ;;  %v1620_v30 = vld [vmem:[%s1852_s28 + $0x204] ss:$16 sps:$4 sm:$0xff]   ;;  %v1623_v32 = vld [vmem:[%s1852_s28 + $0x200] ss:$16 sps:$4 sm:$0xff]   ;;  %v1693_v16 = vld [vmem:[%s1852_s28 + $0x2ac] ss:$16 sps:$4 sm:$0xff]  }
  0x27   : > { %1116 = vmatprep.subr.bf16.mxu1 %v1602_v18  ;;  %v1624_v33 = vld [vmem:[%s1852_s28 + $0x1e4] ss:$16 sps:$4 sm:$0xff]   ;;  %v1628_v35 = vld [vmem:[%s1852_s28 + $0x1e0] ss:$16 sps:$4 sm:$0xff]   ;;  %v1688_v17 = vld [vmem:[%s1852_s28 + $0xa8] ss:$16 sps:$4 sm:$0xff]  }
  0x28   : > { %v1626_v34 = vld [vmem:[%s1852_s28 + $0x3e4] ss:$16 sps:$4 sm:$0xff]   ;;  %v1629_v36 = vld [vmem:[%s1852_s28 + $0x3e0] ss:$16 sps:$4 sm:$0xff]   ;;  %v1691_v18 = vld [vmem:[%s1852_s28 + $0x2a8] ss:$16 sps:$4 sm:$0xff]  }
  0x29   : > { %1076 = vmatpush1.bf16.msra.mxu0 %v1604_v19  ;;  %v1630_v37 = vld [vmem:[%s1852_s28 + $0x1c4] ss:$16 sps:$4 sm:$0xff]   ;;  %v1634_v39 = vld [vmem:[%s1852_s28 + $0x1c0] ss:$16 sps:$4 sm:$0xff]   ;;  %v1696_v19 = vld [vmem:[%s1852_s28 + $0x8c] ss:$16 sps:$4 sm:$0xff]  }
  0x2a   : > { %1117 = vmatpush1.bf16.msra.mxu1 %v1605_v20  ;;  %1077 = vmatprep.subr.bf16.mxu0 %v1606_v21  ;;  %v1632_v38 = vld [vmem:[%s1852_s28 + $0x3c4] ss:$16 sps:$4 sm:$0xff]   ;;  %v1635_v40 = vld [vmem:[%s1852_s28 + $0x3c0] ss:$16 sps:$4 sm:$0xff]   ;;  %v1699_v20 = vld [vmem:[%s1852_s28 + $0x28c] ss:$16 sps:$4 sm:$0xff]  }
  0x2b   : > { %1118 = vmatprep.subr.bf16.mxu1 %v1608_v22  ;;  %v1636_v41 = vld [vmem:[%s1852_s28 + $0x1a4] ss:$16 sps:$4 sm:$0xff]   ;;  %v1640_v43 = vld [vmem:[%s1852_s28 + $0x1a0] ss:$16 sps:$4 sm:$0xff]   ;;  %v1694_v21 = vld [vmem:[%s1852_s28 + $0x88] ss:$16 sps:$4 sm:$0xff]  }
  0x2c   : > { %v1638_v42 = vld [vmem:[%s1852_s28 + $0x3a4] ss:$16 sps:$4 sm:$0xff]   ;;  %v1641_v44 = vld [vmem:[%s1852_s28 + $0x3a0] ss:$16 sps:$4 sm:$0xff]   ;;  %v1697_v22 = vld [vmem:[%s1852_s28 + $0x288] ss:$16 sps:$4 sm:$0xff]  }
  0x2d   : > { %1078 = vmatpush1.bf16.msra.mxu0 %v1610_v23  ;;  %v1642_v45 = vld [vmem:[%s1852_s28 + $0x184] ss:$16 sps:$4 sm:$0xff]   ;;  %v1646_v50 = vld [vmem:[%s1852_s28 + $0x180] ss:$16 sps:$4 sm:$0xff]   ;;  %v1702_v23 = vld [vmem:[%s1852_s28 + $0x6c] ss:$16 sps:$4 sm:$0xff]  }
  0x2e   : > { %1119 = vmatpush1.bf16.msra.mxu1 %v1611_v24  ;;  %1079 = vmatprep.subr.bf16.mxu0 %v1612_v25  ;;  %v1644_v46 = vld [vmem:[%s1852_s28 + $0x384] ss:$16 sps:$4 sm:$0xff]   ;;  %v1647_v51 = vld [vmem:[%s1852_s28 + $0x380] ss:$16 sps:$4 sm:$0xff]   ;;  %v1705_v24 = vld [vmem:[%s1852_s28 + $0x26c] ss:$16 sps:$4 sm:$0xff]  }
  0x2f   : > { %1120 = vmatprep.subr.bf16.mxu1 %v1614_v26  ;;  %v283_v47 = vld [vmem:[%s1847_s24] sm:$0xff]  ;;  %v1700_v25 = vld [vmem:[%s1852_s28 + $0x68] ss:$16 sps:$4 sm:$0xff]  }
  0x30   : > { %v1902_v48 = vcombine.high %v283_v47, %v283_v47  ;;  %v1648_v53 = vld [vmem:[%s1852_s28 + $0x164] ss:$16 sps:$4 sm:$0xff]   ;;  %v1652_v55 = vld [vmem:[%s1852_s28 + $0x160] ss:$16 sps:$4 sm:$0xff]   ;;  %v1926_v7 = vcombine.low %v283_v47, %v283_v47  ;;  %v1703_v26 = vld [vmem:[%s1852_s28 + $0x268] ss:$16 sps:$4 sm:$0xff]  }
  0x31   : > { %1080 = vmatpush1.bf16.msra.mxu0 %v1616_v27  ;;  %v1650_v54 = vld [vmem:[%s1852_s28 + $0x364] ss:$16 sps:$4 sm:$0xff]   ;;  %v1653_v56 = vld [vmem:[%s1852_s28 + $0x360] ss:$16 sps:$4 sm:$0xff]   ;;  %v1708_v27 = vld [vmem:[%s1852_s28 + $0x4c] ss:$16 sps:$4 sm:$0xff]  }
  0x32   : > { %1121 = vmatpush1.bf16.msra.mxu1 %v1617_v28  ;;  %1081 = vmatprep.subr.bf16.mxu0 %v1618_v29  ;;  %v1654_v57 = vld [vmem:[%s1852_s28 + $0x144] ss:$16 sps:$4 sm:$0xff]   ;;  %v1658_v59 = vld [vmem:[%s1852_s28 + $0x140] ss:$16 sps:$4 sm:$0xff]   ;;  %v1711_v28 = vld [vmem:[%s1852_s28 + $0x24c] ss:$16 sps:$4 sm:$0xff]  }
  0x33   : > { %1122 = vmatprep.subr.bf16.mxu1 %v1620_v30  ;;  %1099 = vmatprep.mubr.bf16.mxu0 %v1902_v48  ;;  %v1656_v58 = vld [vmem:[%s1852_s28 + $0x344] ss:$16 sps:$4 sm:$0xff]   ;;  %v1659_v60 = vld [vmem:[%s1852_s28 + $0x340] ss:$16 sps:$4 sm:$0xff]   ;;  %v1706_v29 = vld [vmem:[%s1852_s28 + $0x48] ss:$16 sps:$4 sm:$0xff]  }
  0x34   : > { %v1660_v61 = vld [vmem:[%s1852_s28 + $0x124] ss:$16 sps:$4 sm:$0xff]   ;;  %v1664_v63 = vld [vmem:[%s1852_s28 + $0x120] ss:$16 sps:$4 sm:$0xff]   ;;  %v1709_v30 = vld [vmem:[%s1852_s28 + $0x248] ss:$16 sps:$4 sm:$0xff]  }
  0x35   : > { %1082 = vmatpush1.bf16.msra.mxu0 %v1622_v31  ;;  %v1662_v62 = vld [vmem:[%s1852_s28 + $0x324] ss:$16 sps:$4 sm:$0xff]   ;;  %v1665_v0 = vld [vmem:[%s1852_s28 + $0x320] ss:$16 sps:$4 sm:$0xff]   ;;  %v1714_v31 = vld [vmem:[%s1852_s28 + $0x2c] ss:$16 sps:$4 sm:$0xff]  }
  0x36   : > { %1123 = vmatpush1.bf16.msra.mxu1 %v1623_v32  ;;  %1083 = vmatprep.subr.bf16.mxu0 %v1624_v33  ;;  %v1666_v1 = vld [vmem:[%s1852_s28 + $0x104] ss:$16 sps:$4 sm:$0xff]   ;;  %v1670_v3 = vld [vmem:[%s1852_s28 + $0x100] ss:$16 sps:$4 sm:$0xff]   ;;  %v1717_v32 = vld [vmem:[%s1852_s28 + $0x22c] ss:$16 sps:$4 sm:$0xff]  }
  0x37   : > { %1124 = vmatprep.subr.bf16.mxu1 %v1626_v34  ;;  %v1668_v2 = vld [vmem:[%s1852_s28 + $0x304] ss:$16 sps:$4 sm:$0xff]   ;;  %v1671_v4 = vld [vmem:[%s1852_s28 + $0x300] ss:$16 sps:$4 sm:$0xff]   ;;  %v1712_v33 = vld [vmem:[%s1852_s28 + $0x28] ss:$16 sps:$4 sm:$0xff]  }
  0x38   : > { %v1715_v34 = vld [vmem:[%s1852_s28 + $0x228] ss:$16 sps:$4 sm:$0xff]   ;;  %v1738_v47 = vld [vmem:[%s1852_s28 + $0x1ac] ss:$16 sps:$4 sm:$0xff]  }
  0x39   : > { %1084 = vmatpush2.bf16.msra.mxu0 %v1628_v35  ;;  %v1720_v35 = vld [vmem:[%s1852_s28 + $0xc] ss:$16 sps:$4 sm:$0xff]  }
  0x3a   : > { %1125 = vmatpush2.bf16.msra.mxu1 %v1629_v36  ;;  %1085 = vmatprep.subr.bf16.mxu0 %v1630_v37  ;;  %v1723_v36 = vld [vmem:[%s1852_s28 + $0x20c] ss:$16 sps:$4 sm:$0xff]   ;;  %v1718_v37 = vld [vmem:[%s1852_s28 + $0x8] ss:$16 sps:$4 sm:$0xff]  }
  0x3b   : > { %1126 = vmatprep.subr.bf16.mxu1 %v1632_v38  ;;  %v1721_v38 = vld [vmem:[%s1852_s28 + $0x208] ss:$16 sps:$4 sm:$0xff]  }
  0x3d   : > { %1086 = vmatpush2.bf16.msra.mxu0 %v1634_v39  ;;  %v1726_v39 = vld [vmem:[%s1852_s28 + $0x1ec] ss:$16 sps:$4 sm:$0xff]  }
  0x3e   : > { %1127 = vmatpush2.bf16.msra.mxu1 %v1635_v40  ;;  %1087 = vmatprep.subr.bf16.mxu0 %v1636_v41  ;;  %v1729_v40 = vld [vmem:[%s1852_s28 + $0x3ec] ss:$16 sps:$4 sm:$0xff]   ;;  %v1724_v41 = vld [vmem:[%s1852_s28 + $0x1e8] ss:$16 sps:$4 sm:$0xff]  }
  0x3f   : > { %1128 = vmatprep.subr.bf16.mxu1 %v1638_v42  ;;  %v1727_v42 = vld [vmem:[%s1852_s28 + $0x3e8] ss:$16 sps:$4 sm:$0xff]  }
  0x41   : > { %1088 = vmatpush2.bf16.msra.mxu0 %v1640_v43  ;;  %v1732_v43 = vld [vmem:[%s1852_s28 + $0x1cc] ss:$16 sps:$4 sm:$0xff]  }
  0x42   : > { %1129 = vmatpush2.bf16.msra.mxu1 %v1641_v44  ;;  %1089 = vmatprep.subr.bf16.mxu0 %v1642_v45  ;;  %v1735_v44 = vld [vmem:[%s1852_s28 + $0x3cc] ss:$16 sps:$4 sm:$0xff]   ;;  %v1730_v45 = vld [vmem:[%s1852_s28 + $0x1c8] ss:$16 sps:$4 sm:$0xff]  }
  0x43   : > { %1130 = vmatprep.subr.bf16.mxu1 %v1644_v46  ;;  %v1733_v46 = vld [vmem:[%s1852_s28 + $0x3c8] ss:$16 sps:$4 sm:$0xff]  }
  0x45   : > { %1090 = vmatpush2.bf16.msra.mxu0 %v1646_v50  ;;  %v1739_v50 = vld [vmem:[%s1852_s28 + $0x3a8] ss:$16 sps:$4 sm:$0xff]  }
  0x46   : > { %1131 = vmatpush2.bf16.msra.mxu1 %v1647_v51  ;;  %1091 = vmatprep.subr.bf16.mxu0 %v1648_v53  ;;  %v1744_v51 = vld [vmem:[%s1852_s28 + $0x18c] ss:$16 sps:$4 sm:$0xff]   ;;  %v1742_v53 = vld [vmem:[%s1852_s28 + $0x188] ss:$16 sps:$4 sm:$0xff]  }
  0x47   : > { %1132 = vmatprep.subr.bf16.mxu1 %v1650_v54  ;;  %v1745_v54 = vld [vmem:[%s1852_s28 + $0x388] ss:$16 sps:$4 sm:$0xff]  }
  0x49   : > { %1092 = vmatpush2.bf16.msra.mxu0 %v1652_v55  ;;  %v1750_v55 = vld [vmem:[%s1852_s28 + $0x16c] ss:$16 sps:$4 sm:$0xff]  }
  0x4a   : > { %1133 = vmatpush2.bf16.msra.mxu1 %v1653_v56  ;;  %1093 = vmatprep.subr.bf16.mxu0 %v1654_v57  ;;  %v1753_v56 = vld [vmem:[%s1852_s28 + $0x36c] ss:$16 sps:$4 sm:$0xff]   ;;  %v1748_v57 = vld [vmem:[%s1852_s28 + $0x168] ss:$16 sps:$4 sm:$0xff]  }
  0x4b   : > { %1134 = vmatprep.subr.bf16.mxu1 %v1656_v58  ;;  %v1751_v58 = vld [vmem:[%s1852_s28 + $0x368] ss:$16 sps:$4 sm:$0xff]  }
  0x4d   : > { %1094 = vmatpush2.bf16.msra.mxu0 %v1658_v59  ;;  %v1756_v59 = vld [vmem:[%s1852_s28 + $0x14c] ss:$16 sps:$4 sm:$0xff]  }
  0x4e   : > { %1135 = vmatpush2.bf16.msra.mxu1 %v1659_v60  ;;  %1095 = vmatprep.subr.bf16.mxu0 %v1660_v61  ;;  %v1759_v60 = vld [vmem:[%s1852_s28 + $0x34c] ss:$16 sps:$4 sm:$0xff]   ;;  %v1754_v61 = vld [vmem:[%s1852_s28 + $0x148] ss:$16 sps:$4 sm:$0xff]  }
  0x4f   : > { %1136 = vmatprep.subr.bf16.mxu1 %v1662_v62  ;;  %v1757_v62 = vld [vmem:[%s1852_s28 + $0x348] ss:$16 sps:$4 sm:$0xff]  }
  0x51   : > { %1096 = vmatpush2.bf16.msra.mxu0 %v1664_v63  ;;  %v1762_v63 = vld [vmem:[%s1852_s28 + $0x12c] ss:$16 sps:$4 sm:$0xff]  }
  0x52   : > { %1137 = vmatpush2.bf16.msra.mxu1 %v1665_v0  ;;  %1097 = vmatprep.subr.bf16.mxu0 %v1666_v1  ;;  %v1765_v0 = vld [vmem:[%s1852_s28 + $0x32c] ss:$16 sps:$4 sm:$0xff]   ;;  %v1760_v1 = vld [vmem:[%s1852_s28 + $0x128] ss:$16 sps:$4 sm:$0xff]  }
  0x53   : > { %1138 = vmatprep.subr.bf16.mxu1 %v1668_v2  ;;  %v1763_v2 = vld [vmem:[%s1852_s28 + $0x328] ss:$16 sps:$4 sm:$0xff]  }
  0x55   : > { %1098 = vmatpush2.bf16.msra.mxu0 %v1670_v3  ;;  %v1768_v3 = vld [vmem:[%s1852_s28 + $0x10c] ss:$16 sps:$4 sm:$0xff]  }
  0x56   : > { %1139 = vmatpush2.bf16.msra.mxu1 %v1671_v4  ;;  %1149 = vmatprep.subr.bf16.mxu0 %v1678_v5  ;;  %v1771_v4 = vld [vmem:[%s1852_s28 + $0x30c] ss:$16 sps:$4 sm:$0xff]   ;;  %v1766_v5 = vld [vmem:[%s1852_s28 + $0x108] ss:$16 sps:$4 sm:$0xff]  }
  0x57   : > { %1190 = vmatprep.subr.bf16.mxu1 %v1681_v6  ;;  %v1769_v6 = vld [vmem:[%s1852_s28 + $0x308] ss:$16 sps:$4 sm:$0xff]  }
  0x58   : > { %1100 = vmatmul.mubr.bf16.vlgmr.msra.gmra.mxu0 %v1926_v7 }
  0x59   : > { %1141 = vmatmul.mubr.bf16.vlgmr.msra.gmra.mxu1 %v1928_v8  ;;  %1150 = vmatpush1.bf16.msra.mxu0 %v1676_v9 }
  0x5a   : > { %1191 = vmatpush1.bf16.msra.mxu1 %v1679_v10  ;;  %1151 = vmatprep.subr.bf16.mxu0 %v1684_v11  ;;  %v279_v10 = vld [vmem:[#allocation2 + $0x10] sm:$0xff] }
  0x5b   : > { %1192 = vmatprep.subr.bf16.mxu1 %v1687_v12  ;;  %1181 = vmatprep.mubr.bf16.mxu0 %v1902_v48  ;;  %v1741_v48 = vld [vmem:[%s1852_s28 + $0x3ac] ss:$16 sps:$4 sm:$0xff]  }
  0x5c   : > { %1222 = vmatprep.mubr.bf16.mxu1 %v1413_v52  ;;  %v1747_v52 = vld [vmem:[%s1852_s28 + $0x38c] ss:$16 sps:$4 sm:$0xff]  }
  0x5d   : > { %1152 = vmatpush1.bf16.msra.mxu0 %v1682_v13 }
  0x5e   : > { %1193 = vmatpush1.bf16.msra.mxu1 %v1685_v14  ;;  %1153 = vmatprep.subr.bf16.mxu0 %v1690_v15  ;;  %v280_v14 = vld [vmem:[#allocation2] sm:$0xff] }
  0x5f   : > { %1194 = vmatprep.subr.bf16.mxu1 %v1693_v16 }
  0x61   : > { %1154 = vmatpush1.bf16.msra.mxu0 %v1688_v17 }
  0x62   : > { %1195 = vmatpush1.bf16.msra.mxu1 %v1691_v18  ;;  %1155 = vmatprep.subr.bf16.mxu0 %v1696_v19 }
  0x63   : > { %1196 = vmatprep.subr.bf16.mxu1 %v1699_v20 }
  0x65   : > { %1156 = vmatpush1.bf16.msra.mxu0 %v1694_v21 }
  0x66   : > { %1197 = vmatpush1.bf16.msra.mxu1 %v1697_v22  ;;  %1157 = vmatprep.subr.bf16.mxu0 %v1702_v23 }
  0x67   : > { %1198 = vmatprep.subr.bf16.mxu1 %v1705_v24 }
  0x69   : > { %1158 = vmatpush1.bf16.msra.mxu0 %v1700_v25 }
  0x6a   : > { %1199 = vmatpush1.bf16.msra.mxu1 %v1703_v26  ;;  %1159 = vmatprep.subr.bf16.mxu0 %v1708_v27  ;;  %v282_v26 = vld [vmem:[#allocation2 + $0x8] sm:$0xff] }
  0x6b   : > { %1200 = vmatprep.subr.bf16.mxu1 %v1711_v28 }
  0x6d   : > { %1160 = vmatpush1.bf16.msra.mxu0 %v1706_v29 }
  0x6e   : > { %1201 = vmatpush1.bf16.msra.mxu1 %v1709_v30  ;;  %1161 = vmatprep.subr.bf16.mxu0 %v1714_v31 }
  0x6f   : > { %1202 = vmatprep.subr.bf16.mxu1 %v1717_v32 }
  0x71   : > { %1162 = vmatpush1.bf16.msra.mxu0 %v1712_v33 }
  0x72   : > { %1203 = vmatpush1.bf16.msra.mxu1 %v1715_v34  ;;  %1163 = vmatprep.subr.bf16.mxu0 %v1720_v35 }
  0x73   : > { %1204 = vmatprep.subr.bf16.mxu1 %v1723_v36 }
  0x75   : > { %1164 = vmatpush1.bf16.msra.mxu0 %v1718_v37 }
  0x76   : > { %1205 = vmatpush1.bf16.msra.mxu1 %v1721_v38  ;;  %1165 = vmatprep.subr.bf16.mxu0 %v1726_v39 }
  0x77   : > { %1206 = vmatprep.subr.bf16.mxu1 %v1729_v40 }
  0x79   : > { %1166 = vmatpush2.bf16.msra.mxu0 %v1724_v41 }
  0x7a   : > { %1207 = vmatpush2.bf16.msra.mxu1 %v1727_v42  ;;  %1167 = vmatprep.subr.bf16.mxu0 %v1732_v43 }
  0x7b   : > { %1208 = vmatprep.subr.bf16.mxu1 %v1735_v44 }
  0x7d   : > { %1168 = vmatpush2.bf16.msra.mxu0 %v1730_v45 }
  0x7e   : > { %1209 = vmatpush2.bf16.msra.mxu1 %v1733_v46  ;;  %1169 = vmatprep.subr.bf16.mxu0 %v1738_v47 }
  0x7f   : > { %1210 = vmatprep.subr.bf16.mxu1 %v1741_v48 }
  0x81   : > { %1170 = vmatpush2.bf16.msra.mxu0 %v1736_v49 }
  0x82   : > { %1211 = vmatpush2.bf16.msra.mxu1 %v1739_v50  ;;  %1171 = vmatprep.subr.bf16.mxu0 %v1744_v51 }
  0x83   : > { %1212 = vmatprep.subr.bf16.mxu1 %v1747_v52 }
  0x85   : > { %1172 = vmatpush2.bf16.msra.mxu0 %v1742_v53 }
  0x86   : > { %1213 = vmatpush2.bf16.msra.mxu1 %v1745_v54  ;;  %1173 = vmatprep.subr.bf16.mxu0 %v1750_v55 }
  0x87   : > { %1214 = vmatprep.subr.bf16.mxu1 %v1753_v56 }
  0x89   : > { %1174 = vmatpush2.bf16.msra.mxu0 %v1748_v57 }
  0x8a   : > { %1215 = vmatpush2.bf16.msra.mxu1 %v1751_v58  ;;  %1175 = vmatprep.subr.bf16.mxu0 %v1756_v59 }
  0x8b   : > { %1216 = vmatprep.subr.bf16.mxu1 %v1759_v60 }
  0x8d   : > { %1176 = vmatpush2.bf16.msra.mxu0 %v1754_v61 }
  0x8e   : > { %1217 = vmatpush2.bf16.msra.mxu1 %v1757_v62  ;;  %1177 = vmatprep.subr.bf16.mxu0 %v1762_v63 }
  0x8f   : > { %1218 = vmatprep.subr.bf16.mxu1 %v1765_v0 }
  0x91   : > { %1178 = vmatpush2.bf16.msra.mxu0 %v1760_v1 }
  0x92   : > { %1219 = vmatpush2.bf16.msra.mxu1 %v1763_v2  ;;  %1179 = vmatprep.subr.bf16.mxu0 %v1768_v3 }
  0x93   : > { %1220 = vmatprep.subr.bf16.mxu1 %v1771_v4 }
  0x95   : > { %1180 = vmatpush2.bf16.msra.mxu0 %v1766_v5 }
  0x96   : > { %1221 = vmatpush2.bf16.msra.mxu1 %v1769_v6 }
  0x98   : > { %1182 = vmatmul.mubr.bf16.vlgmr.msra.gmra.mxu0 %v1926_v7  ;;  %v281_v7 = vld [vmem:[#allocation2 + $0x18] sm:$0xff] }
  0x99   : > { %1223 = vmatmul.mubr.bf16.vlgmr.msra.gmra.mxu1 %v1928_v8 }
 0x118   : > { %v1101_v9 = vpop.f32.mrf.mxu0 }
 0x119   : > { %v1142_v11 = vpop.f32.mrf.mxu1 }
 0x11a   : > { %v1143_v12 = vadd.f32 %v1142_v11, %v1101_v9  ;;  %v1103_v13 = vpop.f32.mrf.mxu0 }
 0x11b   : > { %v1144_v15 = vpop.f32.mrf.mxu1 }
 0x11c   : > { %v1231_v16 = vadd.f32 %v1143_v12, %v279_v10  ;;  %v1145_v17 = vadd.f32 %v1144_v15, %v1103_v13  ;;  %v1105_v18 = vpop.f32.mrf.mxu0 }
 0x11d   : > { %v1146_v19 = vpop.f32.mrf.mxu1 }
 0x11e   : > { %1235 = vst [vmem:[#allocation2 + $0x10] sm:$0xff] %v1231_v16  ;;  %v1232_v20 = vadd.f32 %v1145_v17, %v280_v14  ;;  %v1106_v21 = vpop.f32.mrf.mxu0 }
 0x11f   : > { %v1147_v22 = vpop.f32.mrf.mxu1 }
 0x120   : > { %1236 = vst [vmem:[#allocation2] sm:$0xff] %v1232_v20 }
 0x158   : > { %v1183_v23 = vpop.f32.mrf.mxu0 }
 0x159   : > { %v1224_v24 = vpop.f32.mrf.mxu1 }
 0x15a   : > { %v1225_v8 = vadd.f32 %v1224_v24, %v1183_v23  ;;  %v1185_v25 = vpop.f32.mrf.mxu0 }
 0x15b   : > { %v1226_v27 = vpop.f32.mrf.mxu1 }
 0x15c   : > { %v1233_v28 = vadd.f32 %v1225_v8, %v281_v7  ;;  %v1227_v29 = vadd.f32 %v1226_v27, %v1185_v25  ;;  %v1187_v30 = vpop.f32.mrf.mxu0  ;;  %1242 = sbr.rel (%p1542_p7) target bundleno = 370 (0x172), region = 44 }
 0x15d   : > { %v1228_v31 = vpop.f32.mrf.mxu1 }
 0x15e   : > { %1237 = vst [vmem:[#allocation2 + $0x18] sm:$0xff] %v1233_v28  ;;  %v1234_v32 = vadd.f32 %v1227_v29, %v282_v26  ;;  %v1188_v33 = vpop.f32.mrf.mxu0 }
 0x15f   : > { %v1229_v34 = vpop.f32.mrf.mxu1 }
 0x160   : > { %1238 = vst [vmem:[#allocation2 + $0x8] sm:$0xff] %v1234_v32 }
 0x161   : > { %v1249_v35 = vlaneseq  ;;  %v1273_v37 = vld [vmem:[%s2025_s3] sm:$0xff]  ;;  %v1274_v38 = vld [vmem:[%s2025_s3 + $0x8] sm:$0xff]  ;;  %v1243_v40 = vld [vmem:[#allocation2 + $0x10] sm:$0xff] }
 0x162   : > { %v1247_v39 = vld [vmem:[%s2024_s2] sm:$0xf]  ;;  %v1275_v46 = vunpack.c.l.bf16 %v1273_v37  ;;  %v1276_v47 = vunpack.c.h.bf16 %v1273_v37  ;;  %v1277_v50 = vunpack.c.l.bf16 %v1274_v38  ;;  %v1278_v51 = vunpack.c.h.bf16 %v1274_v38 }
 0x163   : > { %v1250_v36 = vshrl.u32 %v1249_v35, 7  ;;  %v1244_v45 = vld [vmem:[#allocation2] sm:$0xff] }
 0x165   : > { %v1251_v41 = vsub.s32 0, %v1250_v36  ;;  %v1255_v42 = vsub.s32 1, %v1250_v36  ;;  %v1259_v43 = vsub.s32 2, %v1250_v36  ;;  %v1263_v44 = vsub.s32 3, %v1250_v36  ;;  %v1245_v48 = vld [vmem:[#allocation2 + $0x18] sm:$0xff] }
 0x167   : > { %v1246_v49 = vld [vmem:[#allocation2 + $0x8] sm:$0xff]  ;;  %v1252_v52 = vrot.slane %v1247_v39, %v1251_v41  ;;  %v1256_v53 = vrot.slane %v1247_v39, %v1255_v42  ;;  %v1260_v54 = vrot.slane %v1247_v39, %v1259_v43  ;;  %v1264_v55 = vrot.slane %v1247_v39, %v1263_v44 }
 0x169   : > { %v1269_v56 = vadd.f32 %v1252_v52, %v1243_v40  ;;  %v1270_v57 = vadd.f32 %v1256_v53, %v1244_v45  ;;  %v1271_v58 = vadd.f32 %v1260_v54, %v1245_v48  ;;  %v1272_v59 = vadd.f32 %v1264_v55, %v1246_v49 }
 0x16b   : > { %v1279_v60 = vadd.f32 %v1275_v46, %v1269_v56  ;;  %v1280_v61 = vadd.f32 %v1276_v47, %v1270_v57  ;;  %v1281_v62 = vadd.f32 %v1277_v50, %v1271_v58  ;;  %v1282_v63 = vadd.f32 %v1278_v51, %v1272_v59 }
 0x16d   : > { %v1283_v0 = vmax.f32 %v1279_v60, 0.0  ;;  %v1284_v1 = vmax.f32 %v1280_v61, 0.0  ;;  %v1285_v2 = vmax.f32 %v1281_v62, 0.0  ;;  %v1286_v3 = vmax.f32 %v1282_v63, 0.0 }
 0x16f   : > { %v1549_v4 = vpack.c.bf16 %v1284_v1, %v1283_v0  ;;  %v1550_v5 = vpack.c.bf16 %v1286_v3, %v1285_v2 }
 0x171   : > { %1303 = vst [vmem:[%s2026_s4] sm:$0xff] %v1549_v4  ;;  %1304 = vst [vmem:[%s2026_s4 + $0x8] sm:$0xff] %v1550_v5 }
 0x172 PF: > { %s14_s17 = sadd.s32 1, %s1794_s17   ;;  %s2027_s15 = smov %s1790_s16 }
 0x173   : > { %p11_p8 = scmp.ge.s32.totalorder %s14_s17, 11   ;;  %s2028_s16 = smov %s2030_s18 }
 0x175   :  { %13 = sbr.rel (!%p11_p8) target bundleno = 2 (0x2), region = 80 }

// kernel: resnet_forward.39
= control target key start
LH: loop header
LB: loop body
LE: loop exit
PB: predicated region body
PF: predicated region fallthrough
CT: control target
= control target key end

     0   :  { %s955_s1 = inlined_call_operand.vmem [shape: bf16[256,512], index: 1, kind: input, shape index: {}]   ;;  %s956_s0 = inlined_call_operand.vmem [shape: bf16[8,256], index: 0, kind: input, shape index: {}]   ;;  %s957_s2 = inlined_call_operand.vmem [shape: f32[1,512], index: 2, kind: input, shape index: {}]   ;;  %s958_s3 = inlined_call_operand.vmem [shape: bf16[8,512], index: 3, kind: output, shape index: {}]  }
   0x1   :  { %v633_v0 = vld [vmem:[%s955_s1 + $0xe4] ss:$16 sps:$4 sm:$0xff]   ;;  %v635_v1 = vld [vmem:[%s955_s1 + $0xec] ss:$16 sps:$4 sm:$0xff]   ;;  %v637_v2 = vld [vmem:[%s955_s1 + $0xe0] ss:$16 sps:$4 sm:$0xff]  }
   0x2   :  { %418 = vmatprep.subr.bf16.mxu0 %v633_v0  ;;  %v638_v3 = vld [vmem:[%s955_s1 + $0xe8] ss:$16 sps:$4 sm:$0xff]   ;;  %459 = vmatprep.subr.bf16.mxu1 %v635_v1  ;;  %v639_v4 = vld [vmem:[%s955_s1 + $0xc4] ss:$16 sps:$4 sm:$0xff]   ;;  %v641_v5 = vld [vmem:[%s955_s1 + $0xcc] ss:$16 sps:$4 sm:$0xff]  }
   0x3   :  { %419 = vmatpush1.bf16.msra.mxu0 %v637_v2  ;;  %460 = vmatpush1.bf16.msra.mxu1 %v638_v3  ;;  %v643_v6 = vld [vmem:[%s955_s1 + $0xc0] ss:$16 sps:$4 sm:$0xff]   ;;  %v644_v7 = vld [vmem:[%s955_s1 + $0xc8] ss:$16 sps:$4 sm:$0xff]   ;;  %v645_v8 = vld [vmem:[%s955_s1 + $0xa4] ss:$16 sps:$4 sm:$0xff]   ;;  %v517_v3 = vlaneseq }
   0x4   :  { %420 = vmatprep.subr.bf16.mxu0 %v639_v4  ;;  %461 = vmatprep.subr.bf16.mxu1 %v641_v5  ;;  %v647_v9 = vld [vmem:[%s955_s1 + $0xac] ss:$16 sps:$4 sm:$0xff]   ;;  %v649_v10 = vld [vmem:[%s955_s1 + $0xa0] ss:$16 sps:$4 sm:$0xff]   ;;  %v650_v11 = vld [vmem:[%s955_s1 + $0xa8] ss:$16 sps:$4 sm:$0xff]  }
   0x5   :  { %v651_v12 = vld [vmem:[%s955_s1 + $0x84] ss:$16 sps:$4 sm:$0xff]   ;;  %v653_v13 = vld [vmem:[%s955_s1 + $0x8c] ss:$16 sps:$4 sm:$0xff]   ;;  %v655_v14 = vld [vmem:[%s955_s1 + $0x80] ss:$16 sps:$4 sm:$0xff]  }
   0x6   :  { %v656_v15 = vld [vmem:[%s955_s1 + $0x88] ss:$16 sps:$4 sm:$0xff]   ;;  %v657_v16 = vld [vmem:[%s955_s1 + $0x64] ss:$16 sps:$4 sm:$0xff]   ;;  %v659_v17 = vld [vmem:[%s955_s1 + $0x6c] ss:$16 sps:$4 sm:$0xff]  }
   0x7   :  { %421 = vmatpush1.bf16.msra.mxu0 %v643_v6  ;;  %462 = vmatpush1.bf16.msra.mxu1 %v644_v7  ;;  %v661_v18 = vld [vmem:[%s955_s1 + $0x60] ss:$16 sps:$4 sm:$0xff]   ;;  %v662_v19 = vld [vmem:[%s955_s1 + $0x68] ss:$16 sps:$4 sm:$0xff]   ;;  %v663_v20 = vld [vmem:[%s955_s1 + $0x44] ss:$16 sps:$4 sm:$0xff]  }
   0x8   :  { %422 = vmatprep.subr.bf16.mxu0 %v645_v8  ;;  %463 = vmatprep.subr.bf16.mxu1 %v647_v9  ;;  %v665_v21 = vld [vmem:[%s955_s1 + $0x4c] ss:$16 sps:$4 sm:$0xff]   ;;  %v667_v22 = vld [vmem:[%s955_s1 + $0x40] ss:$16 sps:$4 sm:$0xff]   ;;  %v668_v23 = vld [vmem:[%s955_s1 + $0x48] ss:$16 sps:$4 sm:$0xff]  }
   0x9   :  { %v669_v24 = vld [vmem:[%s955_s1 + $0x24] ss:$16 sps:$4 sm:$0xff]   ;;  %v671_v25 = vld [vmem:[%s955_s1 + $0x2c] ss:$16 sps:$4 sm:$0xff]   ;;  %v673_v26 = vld [vmem:[%s955_s1 + $0x20] ss:$16 sps:$4 sm:$0xff]  }
   0xa   :  { %v674_v27 = vld [vmem:[%s955_s1 + $0x28] ss:$16 sps:$4 sm:$0xff]   ;;  %v675_v28 = vld [vmem:[%s955_s1 + $0x4] ss:$16 sps:$4 sm:$0xff]   ;;  %v677_v29 = vld [vmem:[%s955_s1 + $0xc] ss:$16 sps:$4 sm:$0xff]  }
   0xb   :  { %423 = vmatpush1.bf16.msra.mxu0 %v649_v10  ;;  %464 = vmatpush1.bf16.msra.mxu1 %v650_v11  ;;  %v679_v30 = vld [vmem:[%s955_s1] ss:$16 sps:$4 sm:$0xff]   ;;  %v680_v31 = vld [vmem:[%s955_s1 + $0x8] ss:$16 sps:$4 sm:$0xff]   ;;  %v681_v32 = vld [vmem:[%s955_s1 + $0x1e4] ss:$16 sps:$4 sm:$0xff]  }
   0xc   :  { %424 = vmatprep.subr.bf16.mxu0 %v651_v12  ;;  %465 = vmatprep.subr.bf16.mxu1 %v653_v13  ;;  %v683_v33 = vld [vmem:[%s955_s1 + $0x1ec] ss:$16 sps:$4 sm:$0xff]   ;;  %v685_v34 = vld [vmem:[%s955_s1 + $0x1e0] ss:$16 sps:$4 sm:$0xff]   ;;  %v686_v35 = vld [vmem:[%s955_s1 + $0x1e8] ss:$16 sps:$4 sm:$0xff]  }
   0xd   :  { %v687_v36 = vld [vmem:[%s955_s1 + $0x1c4] ss:$16 sps:$4 sm:$0xff]   ;;  %v689_v37 = vld [vmem:[%s955_s1 + $0x1cc] ss:$16 sps:$4 sm:$0xff]   ;;  %v691_v38 = vld [vmem:[%s955_s1 + $0x1c0] ss:$16 sps:$4 sm:$0xff]  }
   0xe   :  { %v692_v39 = vld [vmem:[%s955_s1 + $0x1c8] ss:$16 sps:$4 sm:$0xff]   ;;  %v693_v40 = vld [vmem:[%s955_s1 + $0x1a4] ss:$16 sps:$4 sm:$0xff]   ;;  %v695_v41 = vld [vmem:[%s955_s1 + $0x1ac] ss:$16 sps:$4 sm:$0xff]  }
   0xf   :  { %425 = vmatpush1.bf16.msra.mxu0 %v655_v14  ;;  %466 = vmatpush1.bf16.msra.mxu1 %v656_v15  ;;  %v697_v42 = vld [vmem:[%s955_s1 + $0x1a0] ss:$16 sps:$4 sm:$0xff]   ;;  %v698_v43 = vld [vmem:[%s955_s1 + $0x1a8] ss:$16 sps:$4 sm:$0xff]   ;;  %v699_v44 = vld [vmem:[%s955_s1 + $0x184] ss:$16 sps:$4 sm:$0xff]  }
  0x10   :  { %426 = vmatprep.subr.bf16.mxu0 %v657_v16  ;;  %467 = vmatprep.subr.bf16.mxu1 %v659_v17  ;;  %v701_v45 = vld [vmem:[%s955_s1 + $0x18c] ss:$16 sps:$4 sm:$0xff]   ;;  %v26_v46 = vld [vmem:[%s956_s0] sm:$0xff]  ;;  %v704_v49 = vld [vmem:[%s955_s1 + $0x188] ss:$16 sps:$4 sm:$0xff]   ;;  %v518_v4 = vshrl.u32 %v517_v3, 7 }
  0x11   :  { %v564_v47 = vcombine.high %v26_v46, %v26_v46  ;;  %v703_v48 = vld [vmem:[%s955_s1 + $0x180] ss:$16 sps:$4 sm:$0xff]   ;;  %v705_v50 = vld [vmem:[%s955_s1 + $0x164] ss:$16 sps:$4 sm:$0xff]   ;;  %v707_v51 = vld [vmem:[%s955_s1 + $0x16c] ss:$16 sps:$4 sm:$0xff]   ;;  %v563_v2 = vcombine.low %v26_v46, %v26_v46 }
  0x12   :  { %v709_v52 = vld [vmem:[%s955_s1 + $0x160] ss:$16 sps:$4 sm:$0xff]   ;;  %v710_v53 = vld [vmem:[%s955_s1 + $0x168] ss:$16 sps:$4 sm:$0xff]   ;;  %v711_v54 = vld [vmem:[%s955_s1 + $0x144] ss:$16 sps:$4 sm:$0xff]  }
  0x13   :  { %427 = vmatpush1.bf16.msra.mxu0 %v661_v18  ;;  %468 = vmatpush1.bf16.msra.mxu1 %v662_v19  ;;  %v713_v55 = vld [vmem:[%s955_s1 + $0x14c] ss:$16 sps:$4 sm:$0xff]   ;;  %v715_v56 = vld [vmem:[%s955_s1 + $0x140] ss:$16 sps:$4 sm:$0xff]   ;;  %v716_v57 = vld [vmem:[%s955_s1 + $0x148] ss:$16 sps:$4 sm:$0xff]  }
  0x14   :  { %428 = vmatprep.subr.bf16.mxu0 %v663_v20  ;;  %469 = vmatprep.subr.bf16.mxu1 %v665_v21  ;;  %v717_v58 = vld [vmem:[%s955_s1 + $0x124] ss:$16 sps:$4 sm:$0xff]   ;;  %v719_v59 = vld [vmem:[%s955_s1 + $0x12c] ss:$16 sps:$4 sm:$0xff]   ;;  %v721_v60 = vld [vmem:[%s955_s1 + $0x120] ss:$16 sps:$4 sm:$0xff]  }
  0x15   :  { %450 = vmatprep.mubr.bf16.mxu0 %v564_v47  ;;  %491 = vmatprep.mubr.bf16.mxu1 %v564_v47  ;;  %v722_v61 = vld [vmem:[%s955_s1 + $0x128] ss:$16 sps:$4 sm:$0xff]   ;;  %v723_v62 = vld [vmem:[%s955_s1 + $0x104] ss:$16 sps:$4 sm:$0xff]   ;;  %v725_v63 = vld [vmem:[%s955_s1 + $0x10c] ss:$16 sps:$4 sm:$0xff]  }
  0x16   :  { %v727_v0 = vld [vmem:[%s955_s1 + $0x100] ss:$16 sps:$4 sm:$0xff]   ;;  %v728_v1 = vld [vmem:[%s955_s1 + $0x108] ss:$16 sps:$4 sm:$0xff]   ;;  %v519_v5 = vsub.s32 0, %v518_v4  ;;  %v527_v6 = vsub.s32 2, %v518_v4 }
  0x17   :  { %429 = vmatpush1.bf16.msra.mxu0 %v667_v22  ;;  %470 = vmatpush1.bf16.msra.mxu1 %v668_v23  ;;  %v523_v7 = vsub.s32 1, %v518_v4  ;;  %v531_v8 = vsub.s32 3, %v518_v4  ;;  %v515_v9 = vld [vmem:[%s957_s2] sm:$0xf] }
  0x18   :  { %430 = vmatprep.subr.bf16.mxu0 %v669_v24  ;;  %471 = vmatprep.subr.bf16.mxu1 %v671_v25  ;;  %v520_v10 = vrot.slane %v515_v9, %v519_v5  ;;  %v528_v11 = vrot.slane %v515_v9, %v527_v6 }
  0x19   :  { %v524_v12 = vrot.slane %v515_v9, %v523_v7  ;;  %v532_v13 = vrot.slane %v515_v9, %v531_v8 }
  0x1b   :  { %431 = vmatpush1.bf16.msra.mxu0 %v673_v26  ;;  %472 = vmatpush1.bf16.msra.mxu1 %v674_v27 }
  0x1c   :  { %432 = vmatprep.subr.bf16.mxu0 %v675_v28  ;;  %473 = vmatprep.subr.bf16.mxu1 %v677_v29 }
  0x1f   :  { %433 = vmatpush1.bf16.msra.mxu0 %v679_v30  ;;  %474 = vmatpush1.bf16.msra.mxu1 %v680_v31 }
  0x20   :  { %434 = vmatprep.subr.bf16.mxu0 %v681_v32  ;;  %475 = vmatprep.subr.bf16.mxu1 %v683_v33 }
  0x23   :  { %435 = vmatpush2.bf16.msra.mxu0 %v685_v34  ;;  %476 = vmatpush2.bf16.msra.mxu1 %v686_v35 }
  0x24   :  { %436 = vmatprep.subr.bf16.mxu0 %v687_v36  ;;  %477 = vmatprep.subr.bf16.mxu1 %v689_v37 }
  0x27   :  { %437 = vmatpush2.bf16.msra.mxu0 %v691_v38  ;;  %478 = vmatpush2.bf16.msra.mxu1 %v692_v39 }
  0x28   :  { %438 = vmatprep.subr.bf16.mxu0 %v693_v40  ;;  %479 = vmatprep.subr.bf16.mxu1 %v695_v41 }
  0x2b   :  { %439 = vmatpush2.bf16.msra.mxu0 %v697_v42  ;;  %480 = vmatpush2.bf16.msra.mxu1 %v698_v43 }
  0x2c   :  { %440 = vmatprep.subr.bf16.mxu0 %v699_v44  ;;  %481 = vmatprep.subr.bf16.mxu1 %v701_v45 }
  0x2f   :  { %441 = vmatpush2.bf16.msra.mxu0 %v703_v48  ;;  %482 = vmatpush2.bf16.msra.mxu1 %v704_v49 }
  0x30   :  { %442 = vmatprep.subr.bf16.mxu0 %v705_v50  ;;  %483 = vmatprep.subr.bf16.mxu1 %v707_v51 }
  0x33   :  { %443 = vmatpush2.bf16.msra.mxu0 %v709_v52  ;;  %484 = vmatpush2.bf16.msra.mxu1 %v710_v53 }
  0x34   :  { %444 = vmatprep.subr.bf16.mxu0 %v711_v54  ;;  %485 = vmatprep.subr.bf16.mxu1 %v713_v55 }
  0x37   :  { %445 = vmatpush2.bf16.msra.mxu0 %v715_v56  ;;  %486 = vmatpush2.bf16.msra.mxu1 %v716_v57 }
  0x38   :  { %446 = vmatprep.subr.bf16.mxu0 %v717_v58  ;;  %487 = vmatprep.subr.bf16.mxu1 %v719_v59 }
  0x3b   :  { %447 = vmatpush2.bf16.msra.mxu0 %v721_v60  ;;  %488 = vmatpush2.bf16.msra.mxu1 %v722_v61 }
  0x3c   :  { %448 = vmatprep.subr.bf16.mxu0 %v723_v62  ;;  %489 = vmatprep.subr.bf16.mxu1 %v725_v63 }
  0x3f   :  { %449 = vmatpush2.bf16.msra.mxu0 %v727_v0  ;;  %490 = vmatpush2.bf16.msra.mxu1 %v728_v1 }
  0x42   :  { %451 = vmatmul.mubr.bf16.vlgmr.msra.gmra.mxu0 %v563_v2  ;;  %492 = vmatmul.mubr.bf16.vlgmr.msra.gmra.mxu1 %v563_v2 }
 0x102   :  { %v452_v14 = vpop.f32.mrf.mxu0  ;;  %v493_v15 = vpop.f32.mrf.mxu1 }
 0x103   :  { %v537_v18 = vadd.f32 %v520_v10, %v452_v14  ;;  %v539_v19 = vadd.f32 %v528_v11, %v493_v15 }
 0x104   :  { %v454_v16 = vpop.f32.mrf.mxu0  ;;  %v495_v17 = vpop.f32.mrf.mxu1 }
 0x105   :  { %v538_v20 = vadd.f32 %v524_v12, %v454_v16  ;;  %v540_v21 = vadd.f32 %v532_v13, %v495_v17 }
 0x106   :  { %v456_v22 = vpop.f32.mrf.mxu0  ;;  %v497_v23 = vpop.f32.mrf.mxu1 }
 0x107   :  { %v631_v24 = vpack.c.bf16 %v538_v20, %v537_v18  ;;  %v632_v25 = vpack.c.bf16 %v540_v21, %v539_v19 }
 0x108   :  { %v457_v26 = vpop.f32.mrf.mxu0  ;;  %v498_v27 = vpop.f32.mrf.mxu1 }
 0x109   :  { %557 = vst [vmem:[%s958_s3] sm:$0xff] %v631_v24  ;;  %558 = vst [vmem:[%s958_s3 + $0x8] sm:$0xff] %v632_v25 }

// kernel: resnet_forward.43
= control target key start
LH: loop header
LB: loop body
LE: loop exit
PB: predicated region body
PF: predicated region fallthrough
CT: control target
= control target key end

     0   :  { %v23_v35 = vlaneseq  ;;  %vm386_vm0 = vcmask 1041409   ;;  %s3234_s0 = inlined_call_operand.vmem [shape: bf16[2,1,512], index: 0, kind: input, shape index: {}]   ;;  %s3235_s1 = inlined_call_operand.vmem [shape: bf16[512,1024], index: 1, kind: input, shape index: {}]   ;;  %s3236_s2 = inlined_call_operand.vmem [shape: f32[1,1024], index: 2, kind: input, shape index: {}]   ;;  %s3237_s3 = inlined_call_operand.hbm [shape: f32[2,1024], index: 3, kind: output, shape index: {}]  }
   0x1   :  { %v127_v0 = vld [vmem:[%s3235_s1 + $0x1c0] sm:$0xff] }
   0x2   :  { %v131_v1 = vld [vmem:[%s3235_s1 + $0x1e0] sm:$0xff]  ;;  %v2448_v44 = vshrl.u32 %v23_v35, 7 }
   0x3   :  { %v255_v2 = vld [vmem:[%s3235_s1 + $0x5c0] sm:$0xff]  ;;  %v2127_v3 = vcombine.high %v127_v0, %v131_v1  ;;  %v2126_v5 = vcombine.low %v127_v0, %v131_v1 }
   0x4   :  { %v259_v4 = vld [vmem:[%s3235_s1 + $0x5e0] sm:$0xff]  ;;  %v2463_v53 = vsub.s32 2, %v2448_v44  ;;  %v2466_v54 = vsub.s32 6, %v2448_v44 }
   0x5   :  { %v119_v6 = vld [vmem:[%s3235_s1 + $0x180] sm:$0xff]  ;;  %v2255_v8 = vcombine.high %v255_v2, %v259_v4  ;;  %v2254_v9 = vcombine.low %v255_v2, %v259_v4  ;;  %1682 = vmatprep.subr.bf16.mxu0 %v2127_v3 }
   0x6   :  { %v123_v7 = vld [vmem:[%s3235_s1 + $0x1a0] sm:$0xff]  ;;  %1683 = vmatpush1.bf16.msra.mxu0 %v2126_v5 }
   0x7   :  { %v2119_v10 = vcombine.high %v119_v6, %v123_v7  ;;  %v247_v11 = vld [vmem:[%s3235_s1 + $0x580] sm:$0xff]  ;;  %1723 = vmatprep.subr.bf16.mxu1 %v2255_v8  ;;  %v2118_v18 = vcombine.low %v119_v6, %v123_v7 }
   0x8   :  { %v251_v12 = vld [vmem:[%s3235_s1 + $0x5a0] sm:$0xff]  ;;  %1724 = vmatpush1.bf16.msra.mxu1 %v2254_v9 }
   0x9   :  { %v111_v13 = vld [vmem:[%s3235_s1 + $0x140] sm:$0xff]  ;;  %v2247_v14 = vcombine.high %v247_v11, %v251_v12  ;;  %1684 = vmatprep.subr.bf16.mxu0 %v2119_v10  ;;  %v2246_v19 = vcombine.low %v247_v11, %v251_v12 }
   0xa   :  { %v115_v15 = vld [vmem:[%s3235_s1 + $0x160] sm:$0xff]  ;;  %1685 = vmatpush1.bf16.msra.mxu0 %v2118_v18 }
   0xb   :  { %v239_v16 = vld [vmem:[%s3235_s1 + $0x540] sm:$0xff]  ;;  %v2111_v20 = vcombine.high %v111_v13, %v115_v15  ;;  %1725 = vmatprep.subr.bf16.mxu1 %v2247_v14  ;;  %v2110_v26 = vcombine.low %v111_v13, %v115_v15 }
   0xc   :  { %v243_v17 = vld [vmem:[%s3235_s1 + $0x560] sm:$0xff]  ;;  %1726 = vmatpush1.bf16.msra.mxu1 %v2246_v19 }
   0xd   :  { %v2239_v21 = vcombine.high %v239_v16, %v243_v17  ;;  %v103_v22 = vld [vmem:[%s3235_s1 + $0x100] sm:$0xff]  ;;  %1686 = vmatprep.subr.bf16.mxu0 %v2111_v20  ;;  %v2238_v27 = vcombine.low %v239_v16, %v243_v17 }
   0xe   :  { %v107_v23 = vld [vmem:[%s3235_s1 + $0x120] sm:$0xff]  ;;  %1687 = vmatpush1.bf16.msra.mxu0 %v2110_v26 }
   0xf   :  { %v231_v24 = vld [vmem:[%s3235_s1 + $0x500] sm:$0xff]  ;;  %v2103_v28 = vcombine.high %v103_v22, %v107_v23  ;;  %1727 = vmatprep.subr.bf16.mxu1 %v2239_v21  ;;  %v2102_v34 = vcombine.low %v103_v22, %v107_v23 }
  0x10   :  { %v235_v25 = vld [vmem:[%s3235_s1 + $0x520] sm:$0xff]  ;;  %1728 = vmatpush1.bf16.msra.mxu1 %v2238_v27 }
  0x11   :  { %v2231_v29 = vcombine.high %v231_v24, %v235_v25  ;;  %v95_v30 = vld [vmem:[%s3235_s1 + $0xc0] sm:$0xff]  ;;  %1688 = vmatprep.subr.bf16.mxu0 %v2103_v28  ;;  %v2230_v36 = vcombine.low %v231_v24, %v235_v25 }
  0x12   :  { %v99_v31 = vld [vmem:[%s3235_s1 + $0xe0] sm:$0xff]  ;;  %1689 = vmatpush1.bf16.msra.mxu0 %v2102_v34 }
  0x13   :  { %v223_v32 = vld [vmem:[%s3235_s1 + $0x4c0] sm:$0xff]  ;;  %v2095_v37 = vcombine.high %v95_v30, %v99_v31  ;;  %1729 = vmatprep.subr.bf16.mxu1 %v2231_v29  ;;  %v2094_v43 = vcombine.low %v95_v30, %v99_v31 }
  0x14   :  { %v227_v33 = vld [vmem:[%s3235_s1 + $0x4e0] sm:$0xff]  ;;  %1730 = vmatpush1.bf16.msra.mxu1 %v2230_v36 }
  0x15   :  { %v2223_v38 = vcombine.high %v223_v32, %v227_v33  ;;  %v87_v39 = vld [vmem:[%s3235_s1 + $0x80] sm:$0xff]  ;;  %1690 = vmatprep.subr.bf16.mxu0 %v2095_v37  ;;  %v2222_v45 = vcombine.low %v223_v32, %v227_v33 }
  0x16   :  { %v91_v40 = vld [vmem:[%s3235_s1 + $0xa0] sm:$0xff]  ;;  %1691 = vmatpush1.bf16.msra.mxu0 %v2094_v43 }
  0x17   :  { %v215_v41 = vld [vmem:[%s3235_s1 + $0x480] sm:$0xff]  ;;  %v2087_v46 = vcombine.high %v87_v39, %v91_v40  ;;  %1731 = vmatprep.subr.bf16.mxu1 %v2223_v38  ;;  %v2086_v52 = vcombine.low %v87_v39, %v91_v40 }
  0x18   :  { %v219_v42 = vld [vmem:[%s3235_s1 + $0x4a0] sm:$0xff]  ;;  %1732 = vmatpush1.bf16.msra.mxu1 %v2222_v45 }
  0x19   :  { %v2215_v47 = vcombine.high %v215_v41, %v219_v42  ;;  %v79_v48 = vld [vmem:[%s3235_s1 + $0x40] sm:$0xff]  ;;  %1692 = vmatprep.subr.bf16.mxu0 %v2087_v46  ;;  %v2214_v55 = vcombine.low %v215_v41, %v219_v42 }
  0x1a   :  { %v83_v49 = vld [vmem:[%s3235_s1 + $0x60] sm:$0xff]  ;;  %1693 = vmatpush1.bf16.msra.mxu0 %v2086_v52 }
  0x1b   :  { %v207_v50 = vld [vmem:[%s3235_s1 + $0x440] sm:$0xff]  ;;  %v2079_v56 = vcombine.high %v79_v48, %v83_v49  ;;  %1733 = vmatprep.subr.bf16.mxu1 %v2215_v47  ;;  %v2078_v1 = vcombine.low %v79_v48, %v83_v49 }
  0x1c   :  { %v211_v51 = vld [vmem:[%s3235_s1 + $0x460] sm:$0xff]  ;;  %1734 = vmatpush1.bf16.msra.mxu1 %v2214_v55  ;;  %v2552_v55 = vsub.s32 0, %v2448_v44 }
  0x1d   :  { %v71_v57 = vld [vmem:[%s3235_s1] sm:$0xff]  ;;  %v2207_v59 = vcombine.high %v207_v50, %v211_v51  ;;  %1694 = vmatprep.subr.bf16.mxu0 %v2079_v56  ;;  %v2206_v6 = vcombine.low %v207_v50, %v211_v51 }
  0x1e   :  { %v2327_v58 = vld [vmem:[%s3234_s0] sm:$0xff]   ;;  %1695 = vmatpush1.bf16.msra.mxu0 %v2078_v1 }
  0x1f   :  { %v75_v60 = vld [vmem:[%s3235_s1 + $0x20] sm:$0xff]  ;;  %v2483_v63 = vunpack.c.l.bf16 %v2327_v58  ;;  %v2485_v0 = vunpack.c.h.bf16 %v2327_v58  ;;  %1735 = vmatprep.subr.bf16.mxu1 %v2207_v59  ;;  %v2555_v58 = vsub.s32 4, %v2448_v44 }
  0x20   :  { %v199_v61 = vld [vmem:[%s3235_s1 + $0x400] sm:$0xff]  ;;  %v2071_v7 = vcombine.high %v71_v57, %v75_v60  ;;  %v2070_v15 = vcombine.low %v71_v57, %v75_v60  ;;  %1736 = vmatpush1.bf16.msra.mxu1 %v2206_v6 }
  0x21   :  { %v203_v62 = vld [vmem:[%s3235_s1 + $0x420] sm:$0xff]  ;;  %v30_v2 = vrot.slane %v2483_v63, %v2463_v53  ;;  %v46_v3 = vrot.slane %v2485_v0, %v2463_v53  ;;  %v38_v4 = vrot.slane %v2483_v63, %v2466_v54  ;;  %v54_v5 = vrot.slane %v2485_v0, %v2466_v54 }
  0x22   :  { %v2199_v8 = vcombine.high %v199_v61, %v203_v62  ;;  %v191_v9 = vld [vmem:[%s3235_s1 + $0x3c0] sm:$0xff]  ;;  %1696 = vmatprep.subr.bf16.mxu0 %v2071_v7  ;;  %v2198_v22 = vcombine.low %v199_v61, %v203_v62  ;;  %v50_v6 = vrot.slane %v2485_v0, %v2555_v58 }
  0x23   :  { %v195_v10 = vld [vmem:[%s3235_s1 + $0x3e0] sm:$0xff]  ;;  %v64_v11 = vpack.c.bf16 %v30_v2, %v30_v2  ;;  %v68_v12 = vpack.c.bf16 %v46_v3, %v46_v3  ;;  %v66_v13 = vpack.c.bf16 %v38_v4, %v38_v4  ;;  %v70_v14 = vpack.c.bf16 %v54_v5, %v54_v5  ;;  %1697 = vmatpush1.bf16.msra.mxu0 %v2070_v15 }
  0x24   :  { %v319_v16 = vld [vmem:[%s3235_s1 + $0x7c0] sm:$0xff]  ;;  %v2191_v23 = vcombine.high %v191_v9, %v195_v10  ;;  %1737 = vmatprep.subr.bf16.mxu1 %v2199_v8  ;;  %v2190_v31 = vcombine.low %v191_v9, %v195_v10  ;;  %v42_v3 = vrot.slane %v2485_v0, %v2552_v55 }
  0x25   :  { %v323_v17 = vld [vmem:[%s3235_s1 + $0x7e0] sm:$0xff]  ;;  %v378_v18 = vunpack.c.l.b16 %v64_v11  ;;  %v382_v19 = vunpack.c.l.b16 %v68_v12  ;;  %v380_v20 = vunpack.c.l.b16 %v66_v13  ;;  %v384_v21 = vunpack.c.l.b16 %v70_v14  ;;  %1738 = vmatpush1.bf16.msra.mxu1 %v2198_v22 }
  0x26   :  { %v2319_v24 = vcombine.high %v319_v16, %v323_v17  ;;  %v183_v25 = vld [vmem:[%s3235_s1 + $0x380] sm:$0xff]  ;;  %v2318_v32 = vcombine.low %v319_v16, %v323_v17  ;;  %1698 = vmatprep.subr.bf16.mxu0 %v2191_v23  ;;  %v26_v13 = vrot.slane %v2483_v63, %v2552_v55  ;;  %v67_v14 = vpack.c.bf16 %v42_v3, %v42_v3 }
  0x27   :  { %v187_v26 = vld [vmem:[%s3235_s1 + $0x3a0] sm:$0xff]  ;;  %v388_v27 = vrot.slane %v382_v19, 7  ;;  %v392_v28 = vrot.slane %v384_v21, 7  ;;  %1699 = vmatpush2.bf16.msra.mxu0 %v2190_v31  ;;  %v34_v16 = vrot.slane %v2483_v63, %v2555_v58  ;;  %v69_v17 = vpack.c.bf16 %v50_v6, %v50_v6 }
  0x28   :  { %v311_v29 = vld [vmem:[%s3235_s1 + $0x780] sm:$0xff]  ;;  %v2183_v35 = vcombine.high %v183_v25, %v187_v26  ;;  %1739 = vmatprep.subr.bf16.mxu1 %v2319_v24  ;;  %v2182_v43 = vcombine.low %v183_v25, %v187_v26  ;;  %v63_v23 = vpack.c.bf16 %v26_v13, %v26_v13  ;;  %v381_v24 = vunpack.c.l.b16 %v67_v14 }
  0x29   :  { %v315_v30 = vld [vmem:[%s3235_s1 + $0x7a0] sm:$0xff]  ;;  %v389_v33 = vsel %vm386_vm0, %v388_v27, %v378_v18  ;;  %v393_v34 = vsel %vm386_vm0, %v392_v28, %v380_v20  ;;  %1740 = vmatpush2.bf16.msra.mxu1 %v2318_v32  ;;  %v65_v27 = vpack.c.bf16 %v34_v16, %v34_v16  ;;  %v383_v28 = vunpack.c.l.b16 %v69_v17 }
  0x2a   :  { %v2521_v36 = vpack.c.b16 %v389_v33, %v389_v33  ;;  %v2523_v37 = vpack.c.b16 %v393_v34, %v393_v34  ;;  %v2311_v38 = vcombine.high %v311_v29, %v315_v30  ;;  %v175_v39 = vld [vmem:[%s3235_s1 + $0x340] sm:$0xff]  ;;  %1700 = vmatprep.subr.bf16.mxu0 %v2183_v35  ;;  %v2310_v45 = vcombine.low %v311_v29, %v315_v30 }
  0x2b   :  { %v179_v40 = vld [vmem:[%s3235_s1 + $0x360] sm:$0xff]  ;;  %1701 = vmatpush2.bf16.msra.mxu0 %v2182_v43  ;;  %v377_v35 = vunpack.c.l.b16 %v63_v23 }
  0x2c   :  { %v303_v41 = vld [vmem:[%s3235_s1 + $0x740] sm:$0xff]  ;;  %1714 = vmatprep.mubr.bf16.mxu0 %v2521_v36  ;;  %1755 = vmatprep.mubr.bf16.mxu1 %v2523_v37  ;;  %v2175_v46 = vcombine.high %v175_v39, %v179_v40  ;;  %v2174_v52 = vcombine.low %v175_v39, %v179_v40 }
  0x2d   :  { %v307_v42 = vld [vmem:[%s3235_s1 + $0x760] sm:$0xff]  ;;  %1741 = vmatprep.subr.bf16.mxu1 %v2311_v38  ;;  %v385_v38 = vrot.slane %v381_v24, 7 }
  0x2e   :  { %v2303_v47 = vcombine.high %v303_v41, %v307_v42  ;;  %v167_v48 = vld [vmem:[%s3235_s1 + $0x300] sm:$0xff]  ;;  %1742 = vmatpush2.bf16.msra.mxu1 %v2310_v45  ;;  %1702 = vmatprep.subr.bf16.mxu0 %v2175_v46  ;;  %v2302_v56 = vcombine.low %v303_v41, %v307_v42  ;;  %v379_v41 = vunpack.c.l.b16 %v65_v27  ;;  %v390_v42 = vrot.slane %v383_v28, 7  ;;  %v128_v45 = vld [vmem:[%s3235_s1 + $0x1c8] sm:$0xff] }
  0x2f   :  { %v171_v49 = vld [vmem:[%s3235_s1 + $0x320] sm:$0xff]  ;;  %1703 = vmatpush2.bf16.msra.mxu0 %v2174_v52  ;;  %v132_v46 = vld [vmem:[%s3235_s1 + $0x1e8] sm:$0xff] }
  0x30   :  { %v295_v50 = vld [vmem:[%s3235_s1 + $0x700] sm:$0xff]  ;;  %v2167_v57 = vcombine.high %v167_v48, %v171_v49  ;;  %1743 = vmatprep.subr.bf16.mxu1 %v2303_v47  ;;  %v2166_v2 = vcombine.low %v167_v48, %v171_v49  ;;  %v256_v47 = vld [vmem:[%s3235_s1 + $0x5c8] sm:$0xff]  ;;  %v391_v52 = vsel %vm386_vm0, %v390_v42, %v379_v41  ;;  %v2128_v3 = vcombine.low %v128_v45, %v132_v46 }
  0x31   :  { %v299_v51 = vld [vmem:[%s3235_s1 + $0x720] sm:$0xff]  ;;  %v260_v48 = vld [vmem:[%s3235_s1 + $0x5e8] sm:$0xff] }
  0x32   :  { %v2295_v59 = vcombine.high %v295_v50, %v299_v51  ;;  %v159_v60 = vld [vmem:[%s3235_s1 + $0x2c0] sm:$0xff]  ;;  %1744 = vmatpush2.bf16.msra.mxu1 %v2302_v56  ;;  %1704 = vmatprep.subr.bf16.mxu0 %v2167_v57  ;;  %v2294_v4 = vcombine.low %v295_v50, %v299_v51  ;;  %v387_v50 = vsel %vm386_vm0, %v385_v38, %v377_v35 }
  0x33   :  { %v163_v61 = vld [vmem:[%s3235_s1 + $0x2e0] sm:$0xff]  ;;  %1705 = vmatpush2.bf16.msra.mxu0 %v2166_v2  ;;  %v2129_v56 = vcombine.high %v128_v45, %v132_v46  ;;  %v2257_v57 = vcombine.high %v256_v47, %v260_v48  ;;  %v2641_v2 = vpack.c.b16 %v391_v52, %v391_v52 }
  0x34   :  { %v287_v62 = vld [vmem:[%s3235_s1 + $0x6c0] sm:$0xff]  ;;  %v2159_v5 = vcombine.high %v159_v60, %v163_v61  ;;  %1745 = vmatprep.subr.bf16.mxu1 %v2295_v59  ;;  %v2158_v0 = vcombine.low %v159_v60, %v163_v61  ;;  %v120_v59 = vld [vmem:[%s3235_s1 + $0x188] sm:$0xff]  ;;  %v2633_v61 = vpack.c.b16 %v387_v50, %v387_v50 }
  0x35   :  { %v291_v1 = vld [vmem:[%s3235_s1 + $0x6e0] sm:$0xff]  ;;  %v124_v60 = vld [vmem:[%s3235_s1 + $0x1a8] sm:$0xff] }
  0x36   :  { %v2287_v7 = vcombine.high %v287_v62, %v291_v1  ;;  %v151_v8 = vld [vmem:[%s3235_s1 + $0x280] sm:$0xff]  ;;  %v2286_v12 = vcombine.low %v287_v62, %v291_v1  ;;  %1746 = vmatpush2.bf16.msra.mxu1 %v2294_v4  ;;  %1706 = vmatprep.subr.bf16.mxu0 %v2159_v5  ;;  %v248_v62 = vld [vmem:[%s3235_s1 + $0x588] sm:$0xff] }
  0x37   :  { %v155_v9 = vld [vmem:[%s3235_s1 + $0x2a0] sm:$0xff]  ;;  %1707 = vmatpush2.bf16.msra.mxu0 %v2158_v0  ;;  %v252_v1 = vld [vmem:[%s3235_s1 + $0x5a8] sm:$0xff] }
  0x38   :  { %v279_v10 = vld [vmem:[%s3235_s1 + $0x680] sm:$0xff]  ;;  %v2151_v15 = vcombine.high %v151_v8, %v155_v9  ;;  %1747 = vmatprep.subr.bf16.mxu1 %v2287_v7  ;;  %v2150_v63 = vcombine.low %v151_v8, %v155_v9 }
  0x39   :  { %v283_v11 = vld [vmem:[%s3235_s1 + $0x6a0] sm:$0xff] }
  0x3a   :  { %v2279_v18 = vcombine.high %v279_v10, %v283_v11  ;;  %v143_v19 = vld [vmem:[%s3235_s1 + $0x240] sm:$0xff]  ;;  %1748 = vmatpush2.bf16.msra.mxu1 %v2286_v12  ;;  %1708 = vmatprep.subr.bf16.mxu0 %v2151_v15  ;;  %v2278_v25 = vcombine.low %v279_v10, %v283_v11 }
  0x3b   :  { %v147_v20 = vld [vmem:[%s3235_s1 + $0x260] sm:$0xff]  ;;  %1709 = vmatpush2.bf16.msra.mxu0 %v2150_v63 }
  0x3c   :  { %v271_v21 = vld [vmem:[%s3235_s1 + $0x640] sm:$0xff]  ;;  %v2143_v26 = vcombine.high %v143_v19, %v147_v20  ;;  %1749 = vmatprep.subr.bf16.mxu1 %v2279_v18  ;;  %v2142_v34 = vcombine.low %v143_v19, %v147_v20 }
  0x3d   :  { %v275_v22 = vld [vmem:[%s3235_s1 + $0x660] sm:$0xff] }
  0x3e   :  { %v2271_v29 = vcombine.high %v271_v21, %v275_v22  ;;  %v135_v30 = vld [vmem:[%s3235_s1 + $0x200] sm:$0xff]  ;;  %1750 = vmatpush2.bf16.msra.mxu1 %v2278_v25  ;;  %1710 = vmatprep.subr.bf16.mxu0 %v2143_v26  ;;  %v2270_v39 = vcombine.low %v271_v21, %v275_v22 }
  0x3f   :  { %v139_v31 = vld [vmem:[%s3235_s1 + $0x220] sm:$0xff]  ;;  %1711 = vmatpush2.bf16.msra.mxu0 %v2142_v34 }
  0x40   :  { %v263_v32 = vld [vmem:[%s3235_s1 + $0x600] sm:$0xff]  ;;  %v2135_v40 = vcombine.high %v135_v30, %v139_v31  ;;  %1751 = vmatprep.subr.bf16.mxu1 %v2271_v29  ;;  %v2134_v49 = vcombine.low %v135_v30, %v139_v31 }
  0x41   :  { %v267_v33 = vld [vmem:[%s3235_s1 + $0x620] sm:$0xff] }
  0x42   :  { %v2263_v43 = vcombine.high %v263_v32, %v267_v33  ;;  %1752 = vmatpush2.bf16.msra.mxu1 %v2270_v39  ;;  %1712 = vmatprep.subr.bf16.mxu0 %v2135_v40  ;;  %v2262_v51 = vcombine.low %v263_v32, %v267_v33 }
  0x43   :  { %1713 = vmatpush2.bf16.msra.mxu0 %v2134_v49 }
  0x44   :  { %1753 = vmatprep.subr.bf16.mxu1 %v2263_v43 }
  0x45   :  { %8 = vsyncpa [#allocation3], 0  ;;  %1764 = vmatprep.subr.bf16.mxu0 %v2129_v56  ;;  %v2256_v4 = vcombine.low %v256_v47, %v260_v48  ;;  %v2121_v5 = vcombine.high %v120_v59, %v124_v60  ;;  %v2249_v6 = vcombine.high %v248_v62, %v252_v1  ;;  %v112_v7 = vld [vmem:[%s3235_s1 + $0x148] sm:$0xff]  ;;  %v2120_v11 = vcombine.low %v120_v59, %v124_v60 }
  0x46   :  { %1754 = vmatpush2.bf16.msra.mxu1 %v2262_v51  ;;  %v116_v8 = vld [vmem:[%s3235_s1 + $0x168] sm:$0xff]  ;;  %1715 = vmatmul.mubr.bf16.vlgmr.msra.gmra.mxu0 %v2633_v61  ;;  %v2248_v0 = vcombine.low %v248_v62, %v252_v1 }
  0x47   :  { %1805 = vmatprep.subr.bf16.mxu1 %v2257_v57  ;;  %v240_v9 = vld [vmem:[%s3235_s1 + $0x548] sm:$0xff]  ;;  %1765 = vmatpush1.bf16.msra.mxu0 %v2128_v3  ;;  %v2113_v12 = vcombine.high %v112_v7, %v116_v8  ;;  %v2112_v18 = vcombine.low %v112_v7, %v116_v8 }
  0x48   :  { %v244_v10 = vld [vmem:[%s3235_s1 + $0x568] sm:$0xff]  ;;  %1766 = vmatprep.subr.bf16.mxu0 %v2121_v5  ;;  %1796 = vmatprep.mubr.bf16.mxu0 %v2521_v36 }
  0x49   :  { %1756 = vmatmul.mubr.bf16.vlgmr.msra.gmra.mxu1 %v2641_v2  ;;  %v2241_v13 = vcombine.high %v240_v9, %v244_v10  ;;  %v104_v14 = vld [vmem:[%s3235_s1 + $0x108] sm:$0xff]  ;;  %v2240_v19 = vcombine.low %v240_v9, %v244_v10 }
  0x4a   :  { %1806 = vmatpush1.bf16.msra.mxu1 %v2256_v4  ;;  %v108_v15 = vld [vmem:[%s3235_s1 + $0x128] sm:$0xff]  ;;  %1837 = vmatprep.mubr.bf16.mxu1 %v2523_v37 }
  0x4b   :  { %1807 = vmatprep.subr.bf16.mxu1 %v2249_v6  ;;  %v232_v16 = vld [vmem:[%s3235_s1 + $0x508] sm:$0xff]  ;;  %1767 = vmatpush1.bf16.msra.mxu0 %v2120_v11  ;;  %v2105_v20 = vcombine.high %v104_v14, %v108_v15  ;;  %v2104_v25 = vcombine.low %v104_v14, %v108_v15 }
  0x4c   :  { %v236_v17 = vld [vmem:[%s3235_s1 + $0x528] sm:$0xff]  ;;  %1768 = vmatprep.subr.bf16.mxu0 %v2113_v12 }
  0x4d   :  { %v2233_v21 = vcombine.high %v232_v16, %v236_v17  ;;  %v96_v22 = vld [vmem:[%s3235_s1 + $0xc8] sm:$0xff]  ;;  %v2232_v26 = vcombine.low %v232_v16, %v236_v17 }
  0x4e   :  { %1808 = vmatpush1.bf16.msra.mxu1 %v2248_v0  ;;  %v100_v63 = vld [vmem:[%s3235_s1 + $0xe8] sm:$0xff] }
  0x4f   :  { %1809 = vmatprep.subr.bf16.mxu1 %v2241_v13  ;;  %v224_v23 = vld [vmem:[%s3235_s1 + $0x4c8] sm:$0xff]  ;;  %1769 = vmatpush1.bf16.msra.mxu0 %v2112_v18  ;;  %v2097_v27 = vcombine.high %v96_v22, %v100_v63  ;;  %v2096_v33 = vcombine.low %v96_v22, %v100_v63 }
  0x50   :  { %v228_v24 = vld [vmem:[%s3235_s1 + $0x4e8] sm:$0xff]  ;;  %1770 = vmatprep.subr.bf16.mxu0 %v2105_v20 }
  0x51   :  { %v2225_v28 = vcombine.high %v224_v23, %v228_v24  ;;  %v88_v29 = vld [vmem:[%s3235_s1 + $0x88] sm:$0xff]  ;;  %v2224_v34 = vcombine.low %v224_v23, %v228_v24 }
  0x52   :  { %1810 = vmatpush1.bf16.msra.mxu1 %v2240_v19  ;;  %v92_v30 = vld [vmem:[%s3235_s1 + $0xa8] sm:$0xff] }
  0x53   :  { %1811 = vmatprep.subr.bf16.mxu1 %v2233_v21  ;;  %v216_v31 = vld [vmem:[%s3235_s1 + $0x488] sm:$0xff]  ;;  %1771 = vmatpush1.bf16.msra.mxu0 %v2104_v25  ;;  %v2089_v35 = vcombine.high %v88_v29, %v92_v30  ;;  %v2088_v43 = vcombine.low %v88_v29, %v92_v30 }
  0x54   :  { %v220_v32 = vld [vmem:[%s3235_s1 + $0x4a8] sm:$0xff]  ;;  %1772 = vmatprep.subr.bf16.mxu0 %v2097_v27 }
  0x55   :  { %v2217_v38 = vcombine.high %v216_v31, %v220_v32  ;;  %v80_v39 = vld [vmem:[%s3235_s1 + $0x48] sm:$0xff]  ;;  %v2216_v45 = vcombine.low %v216_v31, %v220_v32 }
  0x56   :  { %1812 = vmatpush1.bf16.msra.mxu1 %v2232_v26  ;;  %v84_v40 = vld [vmem:[%s3235_s1 + $0x68] sm:$0xff] }
  0x57   :  { %1813 = vmatprep.subr.bf16.mxu1 %v2225_v28  ;;  %v208_v41 = vld [vmem:[%s3235_s1 + $0x448] sm:$0xff]  ;;  %1773 = vmatpush1.bf16.msra.mxu0 %v2096_v33  ;;  %v2081_v46 = vcombine.high %v80_v39, %v84_v40  ;;  %v2080_v52 = vcombine.low %v80_v39, %v84_v40 }
  0x58   :  { %v212_v42 = vld [vmem:[%s3235_s1 + $0x468] sm:$0xff]  ;;  %1774 = vmatprep.subr.bf16.mxu0 %v2089_v35 }
  0x59   :  { %v2209_v47 = vcombine.high %v208_v41, %v212_v42  ;;  %v72_v48 = vld [vmem:[%s3235_s1 + $0x8] sm:$0xff]  ;;  %v2208_v56 = vcombine.low %v208_v41, %v212_v42 }
  0x5a   :  { %1814 = vmatpush1.bf16.msra.mxu1 %v2224_v34  ;;  %v76_v49 = vld [vmem:[%s3235_s1 + $0x28] sm:$0xff] }
  0x5b   :  { %1815 = vmatprep.subr.bf16.mxu1 %v2217_v38  ;;  %v200_v50 = vld [vmem:[%s3235_s1 + $0x408] sm:$0xff]  ;;  %1775 = vmatpush1.bf16.msra.mxu0 %v2088_v43  ;;  %v2073_v57 = vcombine.high %v72_v48, %v76_v49  ;;  %v2072_v4 = vcombine.low %v72_v48, %v76_v49 }
  0x5c   :  { %v204_v51 = vld [vmem:[%s3235_s1 + $0x428] sm:$0xff]  ;;  %1776 = vmatprep.subr.bf16.mxu0 %v2081_v46 }
  0x5d   :  { %v2201_v59 = vcombine.high %v200_v50, %v204_v51  ;;  %v192_v60 = vld [vmem:[%s3235_s1 + $0x3c8] sm:$0xff]  ;;  %v2200_v5 = vcombine.low %v200_v50, %v204_v51 }
  0x5e   :  { %1816 = vmatpush1.bf16.msra.mxu1 %v2216_v45  ;;  %v196_v62 = vld [vmem:[%s3235_s1 + $0x3e8] sm:$0xff] }
  0x5f   :  { %1817 = vmatprep.subr.bf16.mxu1 %v2209_v47  ;;  %v320_v1 = vld [vmem:[%s3235_s1 + $0x7c8] sm:$0xff]  ;;  %1777 = vmatpush1.bf16.msra.mxu0 %v2080_v52  ;;  %v2193_v6 = vcombine.high %v192_v60, %v196_v62  ;;  %v2192_v0 = vcombine.low %v192_v60, %v196_v62 }
  0x60   :  { %v324_v3 = vld [vmem:[%s3235_s1 + $0x7e8] sm:$0xff]  ;;  %1778 = vmatprep.subr.bf16.mxu0 %v2073_v57 }
  0x61   :  { %v2321_v7 = vcombine.high %v320_v1, %v324_v3  ;;  %v184_v8 = vld [vmem:[%s3235_s1 + $0x388] sm:$0xff]  ;;  %v2320_v12 = vcombine.low %v320_v1, %v324_v3 }
  0x62   :  { %1818 = vmatpush1.bf16.msra.mxu1 %v2208_v56  ;;  %v188_v9 = vld [vmem:[%s3235_s1 + $0x3a8] sm:$0xff] }
  0x63   :  { %1819 = vmatprep.subr.bf16.mxu1 %v2201_v59  ;;  %v312_v10 = vld [vmem:[%s3235_s1 + $0x788] sm:$0xff]  ;;  %1779 = vmatpush1.bf16.msra.mxu0 %v2072_v4  ;;  %v2185_v13 = vcombine.high %v184_v8, %v188_v9  ;;  %v2184_v19 = vcombine.low %v184_v8, %v188_v9  ;;  %v129_v9 = vld [vmem:[%s3235_s1 + $0x1d0] sm:$0xff] }
  0x64   :  { %v316_v11 = vld [vmem:[%s3235_s1 + $0x7a8] sm:$0xff]  ;;  %1780 = vmatprep.subr.bf16.mxu0 %v2193_v6 }
  0x65   :  { %v2313_v14 = vcombine.high %v312_v10, %v316_v11  ;;  %v176_v15 = vld [vmem:[%s3235_s1 + $0x348] sm:$0xff]  ;;  %v2312_v20 = vcombine.low %v312_v10, %v316_v11  ;;  %v133_v10 = vld [vmem:[%s3235_s1 + $0x1f0] sm:$0xff] }
  0x66   :  { %1820 = vmatpush1.bf16.msra.mxu1 %v2200_v5  ;;  %v180_v16 = vld [vmem:[%s3235_s1 + $0x368] sm:$0xff]  ;;  %v257_v11 = vld [vmem:[%s3235_s1 + $0x5d0] sm:$0xff] }
  0x67   :  { %1821 = vmatprep.subr.bf16.mxu1 %v2321_v7  ;;  %v304_v17 = vld [vmem:[%s3235_s1 + $0x748] sm:$0xff]  ;;  %1781 = vmatpush2.bf16.msra.mxu0 %v2192_v0  ;;  %v2177_v21 = vcombine.high %v176_v15, %v180_v16  ;;  %v2176_v26 = vcombine.low %v176_v15, %v180_v16  ;;  %v261_v0 = vld [vmem:[%s3235_s1 + $0x5f0] sm:$0xff] }
  0x68   :  { %v308_v18 = vld [vmem:[%s3235_s1 + $0x768] sm:$0xff]  ;;  %1782 = vmatprep.subr.bf16.mxu0 %v2185_v13  ;;  %v2259_v15 = vcombine.high %v257_v11, %v261_v0  ;;  %v121_v16 = vld [vmem:[%s3235_s1 + $0x190] sm:$0xff] }
  0x69   :  { %v2305_v22 = vcombine.high %v304_v17, %v308_v18  ;;  %v168_v63 = vld [vmem:[%s3235_s1 + $0x308] sm:$0xff]  ;;  %v2304_v27 = vcombine.low %v304_v17, %v308_v18  ;;  %v125_v17 = vld [vmem:[%s3235_s1 + $0x1b0] sm:$0xff] }
  0x6a   :  { %1822 = vmatpush2.bf16.msra.mxu1 %v2320_v12  ;;  %v172_v23 = vld [vmem:[%s3235_s1 + $0x328] sm:$0xff]  ;;  %v249_v18 = vld [vmem:[%s3235_s1 + $0x590] sm:$0xff] }
  0x6b   :  { %1823 = vmatprep.subr.bf16.mxu1 %v2313_v14  ;;  %v296_v24 = vld [vmem:[%s3235_s1 + $0x708] sm:$0xff]  ;;  %1783 = vmatpush2.bf16.msra.mxu0 %v2184_v19  ;;  %v2169_v28 = vcombine.high %v168_v63, %v172_v23  ;;  %v2168_v34 = vcombine.low %v168_v63, %v172_v23  ;;  %v2131_v14 = vcombine.high %v129_v9, %v133_v10  ;;  %v253_v19 = vld [vmem:[%s3235_s1 + $0x5b0] sm:$0xff] }
  0x6c   :  { %v300_v25 = vld [vmem:[%s3235_s1 + $0x728] sm:$0xff]  ;;  %1784 = vmatprep.subr.bf16.mxu0 %v2177_v21  ;;  %v2258_v21 = vcombine.low %v257_v11, %v261_v0  ;;  %v2251_v63 = vcombine.high %v249_v18, %v253_v19  ;;  %v113_v23 = vld [vmem:[%s3235_s1 + $0x150] sm:$0xff] }
  0x6d   :  { %v2297_v29 = vcombine.high %v296_v24, %v300_v25  ;;  %v160_v30 = vld [vmem:[%s3235_s1 + $0x2c8] sm:$0xff]  ;;  %v2296_v35 = vcombine.low %v296_v24, %v300_v25  ;;  %v117_v24 = vld [vmem:[%s3235_s1 + $0x170] sm:$0xff] }
  0x6e   :  { %1824 = vmatpush2.bf16.msra.mxu1 %v2312_v20  ;;  %v164_v31 = vld [vmem:[%s3235_s1 + $0x2e8] sm:$0xff]  ;;  %v2130_v20 = vcombine.low %v129_v9, %v133_v10  ;;  %v241_v25 = vld [vmem:[%s3235_s1 + $0x550] sm:$0xff] }
  0x6f   :  { %1825 = vmatprep.subr.bf16.mxu1 %v2305_v22  ;;  %v288_v32 = vld [vmem:[%s3235_s1 + $0x6c8] sm:$0xff]  ;;  %1785 = vmatpush2.bf16.msra.mxu0 %v2176_v26  ;;  %v2161_v38 = vcombine.high %v160_v30, %v164_v31  ;;  %v2160_v45 = vcombine.low %v160_v30, %v164_v31  ;;  %v2123_v22 = vcombine.high %v121_v16, %v125_v17  ;;  %v245_v26 = vld [vmem:[%s3235_s1 + $0x570] sm:$0xff] }
  0x70   :  { %v292_v33 = vld [vmem:[%s3235_s1 + $0x6e8] sm:$0xff]  ;;  %1786 = vmatprep.subr.bf16.mxu0 %v2169_v28  ;;  %v2250_v28 = vcombine.low %v249_v18, %v253_v19  ;;  %v2243_v30 = vcombine.high %v241_v25, %v245_v26  ;;  %v105_v31 = vld [vmem:[%s3235_s1 + $0x110] sm:$0xff] }
  0x71   :  { %v2289_v39 = vcombine.high %v288_v32, %v292_v33  ;;  %v152_v40 = vld [vmem:[%s3235_s1 + $0x288] sm:$0xff]  ;;  %v2288_v46 = vcombine.low %v288_v32, %v292_v33  ;;  %v109_v32 = vld [vmem:[%s3235_s1 + $0x130] sm:$0xff] }
  0x72   :  { %1826 = vmatpush2.bf16.msra.mxu1 %v2304_v27  ;;  %v156_v41 = vld [vmem:[%s3235_s1 + $0x2a8] sm:$0xff]  ;;  %v2122_v27 = vcombine.low %v121_v16, %v125_v17  ;;  %v233_v33 = vld [vmem:[%s3235_s1 + $0x510] sm:$0xff] }
  0x73   :  { %1827 = vmatprep.subr.bf16.mxu1 %v2297_v29  ;;  %v280_v42 = vld [vmem:[%s3235_s1 + $0x688] sm:$0xff]  ;;  %1787 = vmatpush2.bf16.msra.mxu0 %v2168_v34  ;;  %v2153_v47 = vcombine.high %v152_v40, %v156_v41  ;;  %v2152_v56 = vcombine.low %v152_v40, %v156_v41  ;;  %v2115_v29 = vcombine.high %v113_v23, %v117_v24  ;;  %v237_v34 = vld [vmem:[%s3235_s1 + $0x530] sm:$0xff] }
  0x74   :  { %v284_v43 = vld [vmem:[%s3235_s1 + $0x6a8] sm:$0xff]  ;;  %1788 = vmatprep.subr.bf16.mxu0 %v2161_v38  ;;  %v2242_v38 = vcombine.low %v241_v25, %v245_v26  ;;  %v2235_v40 = vcombine.high %v233_v33, %v237_v34  ;;  %v97_v41 = vld [vmem:[%s3235_s1 + $0xd0] sm:$0xff] }
  0x75   :  { %v2281_v48 = vcombine.high %v280_v42, %v284_v43  ;;  %v144_v49 = vld [vmem:[%s3235_s1 + $0x248] sm:$0xff]  ;;  %v2280_v57 = vcombine.low %v280_v42, %v284_v43  ;;  %v101_v42 = vld [vmem:[%s3235_s1 + $0xf0] sm:$0xff] }
  0x76   :  { %1828 = vmatpush2.bf16.msra.mxu1 %v2296_v35  ;;  %v148_v50 = vld [vmem:[%s3235_s1 + $0x268] sm:$0xff]  ;;  %v2114_v35 = vcombine.low %v113_v23, %v117_v24  ;;  %v225_v43 = vld [vmem:[%s3235_s1 + $0x4d0] sm:$0xff] }
  0x77   :  { %1829 = vmatprep.subr.bf16.mxu1 %v2289_v39  ;;  %v272_v51 = vld [vmem:[%s3235_s1 + $0x648] sm:$0xff]  ;;  %1789 = vmatpush2.bf16.msra.mxu0 %v2160_v45  ;;  %v2145_v59 = vcombine.high %v144_v49, %v148_v50  ;;  %v2144_v5 = vcombine.low %v144_v49, %v148_v50  ;;  %v2107_v39 = vcombine.high %v105_v31, %v109_v32  ;;  %v229_v45 = vld [vmem:[%s3235_s1 + $0x4f0] sm:$0xff] }
  0x78   :  { %v276_v52 = vld [vmem:[%s3235_s1 + $0x668] sm:$0xff]  ;;  %1790 = vmatprep.subr.bf16.mxu0 %v2153_v47  ;;  %v2234_v47 = vcombine.low %v233_v33, %v237_v34  ;;  %v2227_v49 = vcombine.high %v225_v43, %v229_v45  ;;  %v89_v50 = vld [vmem:[%s3235_s1 + $0x90] sm:$0xff] }
  0x79   :  { %v2273_v60 = vcombine.high %v272_v51, %v276_v52  ;;  %v136_v62 = vld [vmem:[%s3235_s1 + $0x208] sm:$0xff]  ;;  %v2272_v6 = vcombine.low %v272_v51, %v276_v52  ;;  %v93_v51 = vld [vmem:[%s3235_s1 + $0xb0] sm:$0xff] }
  0x7a   :  { %1830 = vmatpush2.bf16.msra.mxu1 %v2288_v46  ;;  %v140_v1 = vld [vmem:[%s3235_s1 + $0x228] sm:$0xff]  ;;  %v2106_v46 = vcombine.low %v105_v31, %v109_v32  ;;  %v217_v52 = vld [vmem:[%s3235_s1 + $0x490] sm:$0xff] }
  0x7b   :  { %1831 = vmatprep.subr.bf16.mxu1 %v2281_v48  ;;  %v264_v3 = vld [vmem:[%s3235_s1 + $0x608] sm:$0xff]  ;;  %1791 = vmatpush2.bf16.msra.mxu0 %v2152_v56  ;;  %v2137_v7 = vcombine.high %v136_v62, %v140_v1  ;;  %v2136_v12 = vcombine.low %v136_v62, %v140_v1  ;;  %v2099_v48 = vcombine.high %v97_v41, %v101_v42  ;;  %v221_v56 = vld [vmem:[%s3235_s1 + $0x4b0] sm:$0xff] }
  0x7c   :  { %v268_v4 = vld [vmem:[%s3235_s1 + $0x628] sm:$0xff]  ;;  %1792 = vmatprep.subr.bf16.mxu0 %v2145_v59  ;;  %v2226_v59 = vcombine.low %v225_v43, %v229_v45  ;;  %v2219_v62 = vcombine.high %v217_v52, %v221_v56  ;;  %v81_v1 = vld [vmem:[%s3235_s1 + $0x50] sm:$0xff] }
  0x7d   :  { %v2265_v8 = vcombine.high %v264_v3, %v268_v4  ;;  %v2264_v13 = vcombine.low %v264_v3, %v268_v4  ;;  %v85_v3 = vld [vmem:[%s3235_s1 + $0x70] sm:$0xff] }
  0x7e   :  { %1832 = vmatpush2.bf16.msra.mxu1 %v2280_v57  ;;  %v2098_v57 = vcombine.low %v97_v41, %v101_v42  ;;  %v209_v4 = vld [vmem:[%s3235_s1 + $0x450] sm:$0xff] }
  0x7f   :  { %1833 = vmatprep.subr.bf16.mxu1 %v2273_v60  ;;  %1793 = vmatpush2.bf16.msra.mxu0 %v2144_v5  ;;  %v2091_v60 = vcombine.high %v89_v50, %v93_v51  ;;  %v213_v5 = vld [vmem:[%s3235_s1 + $0x470] sm:$0xff] }
  0x80   :  { %1794 = vmatprep.subr.bf16.mxu0 %v2137_v7  ;;  %v2218_v7 = vcombine.low %v217_v52, %v221_v56  ;;  %v2211_v9 = vcombine.high %v209_v4, %v213_v5  ;;  %v73_v10 = vld [vmem:[%s3235_s1 + $0x10] sm:$0xff] }
  0x81   :  { %v77_v11 = vld [vmem:[%s3235_s1 + $0x30] sm:$0xff] }
  0x82   :  { %1834 = vmatpush2.bf16.msra.mxu1 %v2272_v6  ;;  %v2090_v6 = vcombine.low %v89_v50, %v93_v51  ;;  %v201_v0 = vld [vmem:[%s3235_s1 + $0x410] sm:$0xff] }
  0x83   :  { %1835 = vmatprep.subr.bf16.mxu1 %v2265_v8  ;;  %1795 = vmatpush2.bf16.msra.mxu0 %v2136_v12  ;;  %v2083_v8 = vcombine.high %v81_v1, %v85_v3  ;;  %v205_v12 = vld [vmem:[%s3235_s1 + $0x430] sm:$0xff] }
  0x84   :  { %1846 = vmatprep.subr.bf16.mxu0 %v2131_v14  ;;  %v2210_v14 = vcombine.low %v209_v4, %v213_v5  ;;  %v2203_v16 = vcombine.high %v201_v0, %v205_v12  ;;  %v193_v17 = vld [vmem:[%s3235_s1 + $0x3d0] sm:$0xff] }
  0x85   :  { %v197_v18 = vld [vmem:[%s3235_s1 + $0x3f0] sm:$0xff] }
  0x86   :  { %1836 = vmatpush2.bf16.msra.mxu1 %v2264_v13  ;;  %1797 = vmatmul.mubr.bf16.vlgmr.msra.gmra.mxu0 %v2633_v61  ;;  %v2082_v13 = vcombine.low %v81_v1, %v85_v3  ;;  %v321_v19 = vld [vmem:[%s3235_s1 + $0x7d0] sm:$0xff] }
  0x87   :  { %1887 = vmatprep.subr.bf16.mxu1 %v2259_v15  ;;  %1847 = vmatpush1.bf16.msra.mxu0 %v2130_v20  ;;  %v2075_v15 = vcombine.high %v73_v10, %v77_v11  ;;  %v325_v20 = vld [vmem:[%s3235_s1 + $0x7f0] sm:$0xff] }
  0x88   :  { %1848 = vmatprep.subr.bf16.mxu0 %v2123_v22  ;;  %1878 = vmatprep.mubr.bf16.mxu0 %v2521_v36  ;;  %v2202_v22 = vcombine.low %v201_v0, %v205_v12  ;;  %v2323_v23 = vcombine.high %v321_v19, %v325_v20  ;;  %v185_v24 = vld [vmem:[%s3235_s1 + $0x390] sm:$0xff] }
  0x89   :  { %1838 = vmatmul.mubr.bf16.vlgmr.msra.gmra.mxu1 %v2641_v2  ;;  %v189_v25 = vld [vmem:[%s3235_s1 + $0x3b0] sm:$0xff] }
  0x8a   :  { %1888 = vmatpush1.bf16.msra.mxu1 %v2258_v21  ;;  %1919 = vmatprep.mubr.bf16.mxu1 %v2523_v37  ;;  %v2074_v21 = vcombine.low %v73_v10, %v77_v11  ;;  %v313_v26 = vld [vmem:[%s3235_s1 + $0x790] sm:$0xff] }
  0x8b   :  { %1889 = vmatprep.subr.bf16.mxu1 %v2251_v63  ;;  %1849 = vmatpush1.bf16.msra.mxu0 %v2122_v27  ;;  %v2195_v63 = vcombine.high %v193_v17, %v197_v18  ;;  %v317_v27 = vld [vmem:[%s3235_s1 + $0x7b0] sm:$0xff] }
  0x8c   :  { %1850 = vmatprep.subr.bf16.mxu0 %v2115_v29  ;;  %v2322_v29 = vcombine.low %v321_v19, %v325_v20  ;;  %v2315_v31 = vcombine.high %v313_v26, %v317_v27  ;;  %v177_v32 = vld [vmem:[%s3235_s1 + $0x350] sm:$0xff] }
  0x8d   :  { %v181_v33 = vld [vmem:[%s3235_s1 + $0x370] sm:$0xff] }
  0x8e   :  { %1890 = vmatpush1.bf16.msra.mxu1 %v2250_v28  ;;  %v2194_v28 = vcombine.low %v193_v17, %v197_v18  ;;  %v305_v34 = vld [vmem:[%s3235_s1 + $0x750] sm:$0xff] }
  0x8f   :  { %1891 = vmatprep.subr.bf16.mxu1 %v2243_v30  ;;  %1851 = vmatpush1.bf16.msra.mxu0 %v2114_v35  ;;  %v2187_v30 = vcombine.high %v185_v24, %v189_v25  ;;  %v309_v35 = vld [vmem:[%s3235_s1 + $0x770] sm:$0xff] }
  0x90   :  { %1852 = vmatprep.subr.bf16.mxu0 %v2107_v39  ;;  %v2314_v39 = vcombine.low %v313_v26, %v317_v27  ;;  %v2307_v41 = vcombine.high %v305_v34, %v309_v35  ;;  %v169_v42 = vld [vmem:[%s3235_s1 + $0x310] sm:$0xff]  ;;  %v134_v26 = vld [vmem:[%s3235_s1 + $0x1f8] sm:$0xff] }
  0x91   :  { %v173_v43 = vld [vmem:[%s3235_s1 + $0x330] sm:$0xff]  ;;  %v258_v27 = vld [vmem:[%s3235_s1 + $0x5d8] sm:$0xff] }
  0x92   :  { %1892 = vmatpush1.bf16.msra.mxu1 %v2242_v38  ;;  %v2186_v38 = vcombine.low %v185_v24, %v189_v25  ;;  %v297_v45 = vld [vmem:[%s3235_s1 + $0x710] sm:$0xff]  ;;  %v130_v25 = vld [vmem:[%s3235_s1 + $0x1d8] sm:$0xff] }
  0x93   :  { %1893 = vmatprep.subr.bf16.mxu1 %v2235_v40  ;;  %1853 = vmatpush1.bf16.msra.mxu0 %v2106_v46  ;;  %v2179_v40 = vcombine.high %v177_v32, %v181_v33  ;;  %v301_v46 = vld [vmem:[%s3235_s1 + $0x730] sm:$0xff] }
  0x94   :  { %1854 = vmatprep.subr.bf16.mxu0 %v2099_v48  ;;  %v2306_v48 = vcombine.low %v305_v34, %v309_v35  ;;  %v2299_v50 = vcombine.high %v297_v45, %v301_v46  ;;  %v161_v51 = vld [vmem:[%s3235_s1 + $0x2d0] sm:$0xff]  ;;  %v126_v34 = vld [vmem:[%s3235_s1 + $0x1b8] sm:$0xff] }
  0x95   :  { %v165_v52 = vld [vmem:[%s3235_s1 + $0x2f0] sm:$0xff]  ;;  %v250_v35 = vld [vmem:[%s3235_s1 + $0x598] sm:$0xff] }
  0x96   :  { %1894 = vmatpush1.bf16.msra.mxu1 %v2234_v47  ;;  %v2178_v47 = vcombine.low %v177_v32, %v181_v33  ;;  %v289_v56 = vld [vmem:[%s3235_s1 + $0x6d0] sm:$0xff]  ;;  %v122_v33 = vld [vmem:[%s3235_s1 + $0x198] sm:$0xff] }
  0x97   :  { %1895 = vmatprep.subr.bf16.mxu1 %v2227_v49  ;;  %1855 = vmatpush1.bf16.msra.mxu0 %v2098_v57  ;;  %v2171_v49 = vcombine.high %v169_v42, %v173_v43  ;;  %v293_v57 = vld [vmem:[%s3235_s1 + $0x6f0] sm:$0xff] }
  0x98   :  { %1856 = vmatprep.subr.bf16.mxu0 %v2091_v60  ;;  %v2298_v60 = vcombine.low %v297_v45, %v301_v46  ;;  %v2291_v1 = vcombine.high %v289_v56, %v293_v57  ;;  %v153_v3 = vld [vmem:[%s3235_s1 + $0x290] sm:$0xff]  ;;  %v118_v45 = vld [vmem:[%s3235_s1 + $0x178] sm:$0xff] }
  0x99   :  { %v157_v4 = vld [vmem:[%s3235_s1 + $0x2b0] sm:$0xff]  ;;  %v242_v46 = vld [vmem:[%s3235_s1 + $0x558] sm:$0xff] }
  0x9a   :  { %1896 = vmatpush1.bf16.msra.mxu1 %v2226_v59  ;;  %v2170_v59 = vcombine.low %v169_v42, %v173_v43  ;;  %v281_v5 = vld [vmem:[%s3235_s1 + $0x690] sm:$0xff]  ;;  %v114_v43 = vld [vmem:[%s3235_s1 + $0x158] sm:$0xff] }
  0x9b   :  { %1897 = vmatprep.subr.bf16.mxu1 %v2219_v62  ;;  %1857 = vmatpush1.bf16.msra.mxu0 %v2090_v6  ;;  %v2163_v62 = vcombine.high %v161_v51, %v165_v52  ;;  %v285_v6 = vld [vmem:[%s3235_s1 + $0x6b0] sm:$0xff] }
  0x9c   :  { %1858 = vmatprep.subr.bf16.mxu0 %v2083_v8  ;;  %v2290_v8 = vcombine.low %v289_v56, %v293_v57  ;;  %v2283_v10 = vcombine.high %v281_v5, %v285_v6  ;;  %v145_v11 = vld [vmem:[%s3235_s1 + $0x250] sm:$0xff]  ;;  %v110_v56 = vld [vmem:[%s3235_s1 + $0x138] sm:$0xff] }
  0x9d   :  { %v149_v0 = vld [vmem:[%s3235_s1 + $0x270] sm:$0xff]  ;;  %v234_v57 = vld [vmem:[%s3235_s1 + $0x518] sm:$0xff] }
  0x9e   :  { %1898 = vmatpush1.bf16.msra.mxu1 %v2218_v7  ;;  %v2162_v7 = vcombine.low %v161_v51, %v165_v52  ;;  %v273_v12 = vld [vmem:[%s3235_s1 + $0x650] sm:$0xff]  ;;  %v106_v52 = vld [vmem:[%s3235_s1 + $0x118] sm:$0xff] }
  0x9f   :  { %1899 = vmatprep.subr.bf16.mxu1 %v2211_v9  ;;  %1859 = vmatpush1.bf16.msra.mxu0 %v2082_v13  ;;  %v2155_v9 = vcombine.high %v153_v3, %v157_v4  ;;  %v277_v13 = vld [vmem:[%s3235_s1 + $0x670] sm:$0xff] }
  0xa0   :  { %1860 = vmatprep.subr.bf16.mxu0 %v2075_v15  ;;  %v2282_v15 = vcombine.low %v281_v5, %v285_v6  ;;  %v2275_v17 = vcombine.high %v273_v12, %v277_v13  ;;  %v137_v18 = vld [vmem:[%s3235_s1 + $0x210] sm:$0xff]  ;;  %v230_v5 = vld [vmem:[%s3235_s1 + $0x4f8] sm:$0xff]  ;;  %v2108_v6 = vcombine.low %v106_v52, %v110_v56 }
  0xa1   :  { %v141_v19 = vld [vmem:[%s3235_s1 + $0x230] sm:$0xff] }
  0xa2   :  { %1900 = vmatpush1.bf16.msra.mxu1 %v2210_v14  ;;  %v2154_v14 = vcombine.low %v153_v3, %v157_v4  ;;  %v265_v20 = vld [vmem:[%s3235_s1 + $0x610] sm:$0xff]  ;;  %v102_v4 = vld [vmem:[%s3235_s1 + $0xf8] sm:$0xff] }
  0xa3   :  { %1901 = vmatprep.subr.bf16.mxu1 %v2203_v16  ;;  %1861 = vmatpush1.bf16.msra.mxu0 %v2074_v21  ;;  %v2147_v16 = vcombine.high %v145_v11, %v149_v0  ;;  %v269_v21 = vld [vmem:[%s3235_s1 + $0x630] sm:$0xff] }
  0xa4   :  { %1862 = vmatprep.subr.bf16.mxu0 %v2195_v63  ;;  %v2274_v63 = vcombine.low %v273_v12, %v277_v13  ;;  %v2267_v24 = vcombine.high %v265_v20, %v269_v21  ;;  %v222_v12 = vld [vmem:[%s3235_s1 + $0x4b8] sm:$0xff] }
  0xa6   :  { %1902 = vmatpush1.bf16.msra.mxu1 %v2202_v22  ;;  %v2146_v22 = vcombine.low %v145_v11, %v149_v0  ;;  %v94_v11 = vld [vmem:[%s3235_s1 + $0xb8] sm:$0xff] }
  0xa7   :  { %1903 = vmatprep.subr.bf16.mxu1 %v2323_v23  ;;  %1863 = vmatpush2.bf16.msra.mxu0 %v2194_v28  ;;  %v2139_v23 = vcombine.high %v137_v18, %v141_v19  ;;  %v262_v28 = vld [vmem:[%s3235_s1 + $0x5f8] sm:$0xff] }
  0xa8   :  { %1864 = vmatprep.subr.bf16.mxu0 %v2187_v30  ;;  %v2266_v30 = vcombine.low %v265_v20, %v269_v21  ;;  %v2261_v32 = vcombine.high %v258_v27, %v262_v28  ;;  %v218_v0 = vld [vmem:[%s3235_s1 + $0x498] sm:$0xff] }
  0xa9   :  { %v214_v20 = vld [vmem:[%s3235_s1 + $0x478] sm:$0xff] }
  0xaa   :  { %1904 = vmatpush2.bf16.msra.mxu1 %v2322_v29  ;;  %v2138_v29 = vcombine.low %v137_v18, %v141_v19  ;;  %v86_v18 = vld [vmem:[%s3235_s1 + $0x78] sm:$0xff] }
  0xab   :  { %1905 = vmatprep.subr.bf16.mxu1 %v2315_v31  ;;  %1865 = vmatpush2.bf16.msra.mxu0 %v2186_v38  ;;  %v2133_v31 = vcombine.high %v130_v25, %v134_v26  ;;  %v254_v38 = vld [vmem:[%s3235_s1 + $0x5b8] sm:$0xff] }
  0xac   :  { %1866 = vmatprep.subr.bf16.mxu0 %v2179_v40  ;;  %v2260_v40 = vcombine.low %v258_v27, %v262_v28  ;;  %v2253_v42 = vcombine.high %v250_v35, %v254_v38  ;;  %v210_v19 = vld [vmem:[%s3235_s1 + $0x458] sm:$0xff] }
  0xad   :  { %v206_v27 = vld [vmem:[%s3235_s1 + $0x438] sm:$0xff] }
  0xae   :  { %1906 = vmatpush2.bf16.msra.mxu1 %v2314_v39  ;;  %v2132_v39 = vcombine.low %v130_v25, %v134_v26  ;;  %v78_v25 = vld [vmem:[%s3235_s1 + $0x38] sm:$0xff] }
  0xaf   :  { %1907 = vmatprep.subr.bf16.mxu1 %v2307_v41  ;;  %1867 = vmatpush2.bf16.msra.mxu0 %v2178_v47  ;;  %v2125_v41 = vcombine.high %v122_v33, %v126_v34  ;;  %v246_v47 = vld [vmem:[%s3235_s1 + $0x578] sm:$0xff] }
  0xb0   :  { %1868 = vmatprep.subr.bf16.mxu0 %v2171_v49  ;;  %v2252_v49 = vcombine.low %v250_v35, %v254_v38  ;;  %v2245_v51 = vcombine.high %v242_v46, %v246_v47  ;;  %v202_v26 = vld [vmem:[%s3235_s1 + $0x418] sm:$0xff] }
  0xb1   :  { %v326_v35 = vld [vmem:[%s3235_s1 + $0x7f8] sm:$0xff] }
  0xb2   :  { %1908 = vmatpush2.bf16.msra.mxu1 %v2306_v48  ;;  %v2124_v48 = vcombine.low %v122_v33, %v126_v34  ;;  %v198_v33 = vld [vmem:[%s3235_s1 + $0x3f8] sm:$0xff] }
  0xb3   :  { %1909 = vmatprep.subr.bf16.mxu1 %v2299_v50  ;;  %1869 = vmatpush2.bf16.msra.mxu0 %v2170_v59  ;;  %v2117_v50 = vcombine.high %v114_v43, %v118_v45  ;;  %v238_v59 = vld [vmem:[%s3235_s1 + $0x538] sm:$0xff] }
  0xb4   :  { %1870 = vmatprep.subr.bf16.mxu0 %v2163_v62  ;;  %v2244_v62 = vcombine.low %v242_v46, %v246_v47  ;;  %v2237_v3 = vcombine.high %v234_v57, %v238_v59  ;;  %v322_v34 = vld [vmem:[%s3235_s1 + $0x7d8] sm:$0xff] }
  0xb5   :  { %v318_v46 = vld [vmem:[%s3235_s1 + $0x7b8] sm:$0xff] }
  0xb6   :  { %1910 = vmatpush2.bf16.msra.mxu1 %v2298_v60  ;;  %v2116_v60 = vcombine.low %v114_v43, %v118_v45  ;;  %v190_v43 = vld [vmem:[%s3235_s1 + $0x3b8] sm:$0xff] }
  0xb7   :  { %1911 = vmatprep.subr.bf16.mxu1 %v2291_v1  ;;  %1871 = vmatpush2.bf16.msra.mxu0 %v2162_v7  ;;  %v2109_v1 = vcombine.high %v106_v52, %v110_v56  ;;  %v2236_v7 = vcombine.low %v234_v57, %v238_v59  ;;  %v314_v45 = vld [vmem:[%s3235_s1 + $0x798] sm:$0xff] }
  0xb8   :  { %1872 = vmatprep.subr.bf16.mxu0 %v2155_v9  ;;  %v182_v52 = vld [vmem:[%s3235_s1 + $0x378] sm:$0xff] }
  0xb9   :  { %v306_v56 = vld [vmem:[%s3235_s1 + $0x758] sm:$0xff] }
  0xba   :  { %1912 = vmatpush2.bf16.msra.mxu1 %v2290_v8  ;;  %v310_v57 = vld [vmem:[%s3235_s1 + $0x778] sm:$0xff] }
  0xbb   :  { %1913 = vmatprep.subr.bf16.mxu1 %v2283_v10  ;;  %1873 = vmatpush2.bf16.msra.mxu0 %v2154_v14  ;;  %v90_v10 = vld [vmem:[%s3235_s1 + $0x98] sm:$0xff] }
  0xbc   :  { %1874 = vmatprep.subr.bf16.mxu0 %v2147_v16  ;;  %v2221_v16 = vcombine.high %v218_v0, %v222_v12  ;;  %v2092_v21 = vcombine.low %v90_v10, %v94_v11 }
  0xbe   :  { %1914 = vmatpush2.bf16.msra.mxu1 %v2282_v15  ;;  %v2093_v15 = vcombine.high %v90_v10, %v94_v11  ;;  %v166_v10 = vld [vmem:[%s3235_s1 + $0x2f8] sm:$0xff] }
  0xbf   :  { %1915 = vmatprep.subr.bf16.mxu1 %v2275_v17  ;;  %1875 = vmatpush2.bf16.msra.mxu0 %v2146_v22  ;;  %v82_v17 = vld [vmem:[%s3235_s1 + $0x58] sm:$0xff]  ;;  %v2220_v22 = vcombine.low %v218_v0, %v222_v12 }
  0xc0   :  { %1876 = vmatprep.subr.bf16.mxu0 %v2139_v23  ;;  %v2213_v23 = vcombine.high %v210_v19, %v214_v20  ;;  %v2084_v28 = vcombine.low %v82_v17, %v86_v18  ;;  %v290_v11 = vld [vmem:[%s3235_s1 + $0x6d8] sm:$0xff] }
  0xc1   :  { %v294_v0 = vld [vmem:[%s3235_s1 + $0x6f8] sm:$0xff] }
  0xc2   :  { %1916 = vmatpush2.bf16.msra.mxu1 %v2274_v63  ;;  %v2085_v63 = vcombine.high %v82_v17, %v86_v18  ;;  %v158_v17 = vld [vmem:[%s3235_s1 + $0x2b8] sm:$0xff] }
  0xc3   :  { %1917 = vmatprep.subr.bf16.mxu1 %v2267_v24  ;;  %1877 = vmatpush2.bf16.msra.mxu0 %v2138_v29  ;;  %v74_v24 = vld [vmem:[%s3235_s1 + $0x18] sm:$0xff]  ;;  %v2212_v29 = vcombine.low %v210_v19, %v214_v20 }
  0xc4   :  { %1928 = vmatprep.subr.bf16.mxu0 %v2133_v31  ;;  %v2205_v31 = vcombine.high %v202_v26, %v206_v27  ;;  %v2076_v38 = vcombine.low %v74_v24, %v78_v25  ;;  %v282_v18 = vld [vmem:[%s3235_s1 + $0x698] sm:$0xff] }
  0xc5   :  { %v286_v19 = vld [vmem:[%s3235_s1 + $0x6b8] sm:$0xff] }
  0xc6   :  { %1918 = vmatpush2.bf16.msra.mxu1 %v2266_v30  ;;  %1879 = vmatmul.mubr.bf16.vlgmr.msra.gmra.mxu0 %v2633_v61  ;;  %v2077_v30 = vcombine.high %v74_v24, %v78_v25  ;;  %v150_v24 = vld [vmem:[%s3235_s1 + $0x278] sm:$0xff] }
  0xc7   :  { %1969 = vmatprep.subr.bf16.mxu1 %v2261_v32  ;;  %1929 = vmatpush1.bf16.msra.mxu0 %v2132_v39  ;;  %v194_v32 = vld [vmem:[%s3235_s1 + $0x3d8] sm:$0xff]  ;;  %v2204_v39 = vcombine.low %v202_v26, %v206_v27 }
  0xc8   :  { %1930 = vmatprep.subr.bf16.mxu0 %v2125_v41  ;;  %1960 = vmatprep.mubr.bf16.mxu0 %v2521_v36  ;;  %v98_v36 = vld [vmem:[%s3235_s1 + $0xd8] sm:$0xff]  ;;  %v2325_v41 = vcombine.high %v322_v34, %v326_v35  ;;  %v2196_v47 = vcombine.low %v194_v32, %v198_v33 }
  0xc9   :  { %1920 = vmatmul.mubr.bf16.vlgmr.msra.gmra.mxu1 %v2641_v2  ;;  %v2101_v8 = vcombine.high %v98_v36, %v102_v4  ;;  %v2100_v13 = vcombine.low %v98_v36, %v102_v4  ;;  %v174_v36 = vld [vmem:[%s3235_s1 + $0x338] sm:$0xff] }
  0xca   :  { %1970 = vmatpush1.bf16.msra.mxu1 %v2260_v40  ;;  %2001 = vmatprep.mubr.bf16.mxu1 %v2523_v37  ;;  %v226_v37 = vld [vmem:[%s3235_s1 + $0x4d8] sm:$0xff]  ;;  %v2197_v40 = vcombine.high %v194_v32, %v198_v33 }
  0xcb   :  { %1971 = vmatprep.subr.bf16.mxu1 %v2253_v42  ;;  %1931 = vmatpush1.bf16.msra.mxu0 %v2124_v48  ;;  %v2229_v9 = vcombine.high %v226_v37, %v230_v5  ;;  %v2228_v14 = vcombine.low %v226_v37, %v230_v5  ;;  %v186_v42 = vld [vmem:[%s3235_s1 + $0x398] sm:$0xff]  ;;  %v2324_v48 = vcombine.low %v322_v34, %v326_v35 }
  0xcc   :  { %1932 = vmatprep.subr.bf16.mxu0 %v2117_v50  ;;  %v2317_v50 = vcombine.high %v314_v45, %v318_v46  ;;  %v2188_v59 = vcombine.low %v186_v42, %v190_v43  ;;  %v298_v4 = vld [vmem:[%s3235_s1 + $0x718] sm:$0xff] }
  0xcd   :  { %v302_v37 = vld [vmem:[%s3235_s1 + $0x738] sm:$0xff] }
  0xce   :  { %1972 = vmatpush1.bf16.msra.mxu1 %v2252_v49  ;;  %v2189_v49 = vcombine.high %v186_v42, %v190_v43  ;;  %v274_v25 = vld [vmem:[%s3235_s1 + $0x658] sm:$0xff]  ;;  %v3210_v43 = vld [vmem:[%s3236_s2] sm:$0xff] }
  0xcf   :  { %1973 = vmatprep.subr.bf16.mxu1 %v2245_v51  ;;  %1933 = vmatpush1.bf16.msra.mxu0 %v2116_v60  ;;  %v178_v51 = vld [vmem:[%s3235_s1 + $0x358] sm:$0xff]  ;;  %v2316_v60 = vcombine.low %v314_v45, %v318_v46  ;;  %v335_v45 = vsub.s32 1, %v2448_v44  ;;  %v332_v46 = vrot.slane %v3210_v43, %v2552_v55 }
  0xd0   :  { %1934 = vmatprep.subr.bf16.mxu0 %v2109_v1  ;;  %v2309_v1 = vcombine.high %v306_v56, %v310_v57  ;;  %v2180_v5 = vcombine.low %v178_v51, %v182_v52  ;;  %v278_v26 = vld [vmem:[%s3235_s1 + $0x678] sm:$0xff] }
  0xd1   :  { %v142_v32 = vld [vmem:[%s3235_s1 + $0x238] sm:$0xff] }
  0xd2   :  { %1974 = vmatpush1.bf16.msra.mxu1 %v2244_v62  ;;  %v2181_v62 = vcombine.high %v178_v51, %v182_v52  ;;  %v266_v33 = vld [vmem:[%s3235_s1 + $0x618] sm:$0xff] }
  0xd3   :  { %1975 = vmatprep.subr.bf16.mxu1 %v2237_v3  ;;  %1935 = vmatpush1.bf16.msra.mxu0 %v2108_v6  ;;  %v170_v3 = vld [vmem:[%s3235_s1 + $0x318] sm:$0xff]  ;;  %v2308_v6 = vcombine.low %v306_v56, %v310_v57 }
  0xd4   :  { %1936 = vmatprep.subr.bf16.mxu0 %v2101_v8  ;;  %v2301_v8 = vcombine.high %v298_v4, %v302_v37  ;;  %v2172_v12 = vcombine.low %v170_v3, %v174_v36  ;;  %v270_v34 = vld [vmem:[%s3235_s1 + $0x638] sm:$0xff] }
  0xd5   :  { %v2268_v42 = vcombine.low %v266_v33, %v270_v34 }
  0xd6   :  { %1976 = vmatpush1.bf16.msra.mxu1 %v2236_v7  ;;  %v2173_v7 = vcombine.high %v170_v3, %v174_v36  ;;  %v343_v36 = vsub.s32 3, %v2448_v44 }
  0xd7   :  { %1977 = vmatprep.subr.bf16.mxu1 %v2229_v9  ;;  %1937 = vmatpush1.bf16.msra.mxu0 %v2100_v13  ;;  %v162_v9 = vld [vmem:[%s3235_s1 + $0x2d8] sm:$0xff]  ;;  %v2300_v13 = vcombine.low %v298_v4, %v302_v37  ;;  %v2354_v4 = vmov 1983009808  }
  0xd8   :  { %1938 = vmatprep.subr.bf16.mxu0 %v2093_v15  ;;  %v2293_v15 = vcombine.high %v290_v11, %v294_v0  ;;  %v2164_v20 = vcombine.low %v162_v9, %v166_v10  ;;  %v2021_v37 = vunpack.c.l.s4 %v2354_v4 }
  0xda   :  { %1978 = vmatpush1.bf16.msra.mxu1 %v2228_v14  ;;  %v2165_v14 = vcombine.high %v162_v9, %v166_v10 }
  0xdb   :  { %1979 = vmatprep.subr.bf16.mxu1 %v2221_v16  ;;  %1939 = vmatpush1.bf16.msra.mxu0 %v2092_v21  ;;  %v154_v16 = vld [vmem:[%s3235_s1 + $0x298] sm:$0xff]  ;;  %v2292_v21 = vcombine.low %v290_v11, %v294_v0 }
  0xdc   :  { %1940 = vmatprep.subr.bf16.mxu0 %v2085_v63  ;;  %v2285_v63 = vcombine.high %v282_v18, %v286_v19  ;;  %v2156_v27 = vcombine.low %v154_v16, %v158_v17 }
  0xde   :  { %1980 = vmatpush1.bf16.msra.mxu1 %v2220_v22  ;;  %v2157_v22 = vcombine.high %v154_v16, %v158_v17 }
  0xdf   :  { %1981 = vmatprep.subr.bf16.mxu1 %v2213_v23  ;;  %1941 = vmatpush1.bf16.msra.mxu0 %v2084_v28  ;;  %v146_v23 = vld [vmem:[%s3235_s1 + $0x258] sm:$0xff]  ;;  %v2284_v28 = vcombine.low %v282_v18, %v286_v19 }
  0xe0   :  { %1942 = vmatprep.subr.bf16.mxu0 %v2077_v30  ;;  %v2277_v30 = vcombine.high %v274_v25, %v278_v26  ;;  %v2148_v35 = vcombine.low %v146_v23, %v150_v24 }
  0xe2   :  { %1982 = vmatpush1.bf16.msra.mxu1 %v2212_v29  ;;  %v2149_v29 = vcombine.high %v146_v23, %v150_v24 }
  0xe3   :  { %1983 = vmatprep.subr.bf16.mxu1 %v2205_v31  ;;  %1943 = vmatpush1.bf16.msra.mxu0 %v2076_v38  ;;  %v138_v31 = vld [vmem:[%s3235_s1 + $0x218] sm:$0xff]  ;;  %v2276_v38 = vcombine.low %v274_v25, %v278_v26  ;;  %s2355_s1 = smov [#allocation2]  }
  0xe4   :  { %1944 = vmatprep.subr.bf16.mxu0 %v2197_v40  ;;  %v2269_v40 = vcombine.high %v266_v33, %v270_v34  ;;  %s2062_s2 = sshll.u32 %s2355_s1, 4  ;;  %s2063_s2 = int_to_ptr.vmem [resolvable:$true] %s2062_s2 }
  0xe5   :  { %s2332_s25 = scalar_lea.vmem %s2063_s2, 256  ;;  %p2337_p1 = scmp.lt.s32.totalorder %s2063_s2, %s2063_s2 }
  0xe6   :  { %1984 = vmatpush1.bf16.msra.mxu1 %v2204_v39  ;;  %v2141_v39 = vcombine.high %v138_v31, %v142_v32  ;;  %p2333_p0 = scmp.ne.s32.totalorder %s2063_s2, %s2332_s25  ;;  %p2338_p2 = scmp.lt.s32.totalorder %s2332_s25, %s2332_s25 }
  0xe7   :  { %1985 = vmatprep.subr.bf16.mxu1 %v2325_v41  ;;  %1945 = vmatpush2.bf16.msra.mxu0 %v2196_v47  ;;  %v2140_v41 = vcombine.low %v138_v31, %v142_v32  ;;  %v336_v47 = vrot.slane %v3210_v43, %v335_v45 }
  0xe8   :  { %1946 = vmatprep.subr.bf16.mxu0 %v2189_v49  ;;  %p2339_p3 = por %p2338_p2, %p2337_p1 }
  0xea   :  { %1986 = vmatpush2.bf16.msra.mxu1 %v2324_v48  ;;  %p2340_p4 = pnand %p2339_p3, %p2333_p0 }
  0xeb   :  { %1987 = vmatprep.subr.bf16.mxu1 %v2317_v50  ;;  %1947 = vmatpush2.bf16.msra.mxu0 %v2188_v59 }
  0xec   :  { %1948 = vmatprep.subr.bf16.mxu0 %v2181_v62 }
  0xee   :  { %1988 = vmatpush2.bf16.msra.mxu1 %v2316_v60 }
  0xef   :  { %1989 = vmatprep.subr.bf16.mxu1 %v2309_v1  ;;  %1949 = vmatpush2.bf16.msra.mxu0 %v2180_v5  ;;  %v344_v5 = vrot.slane %v3210_v43, %v343_v36 }
  0xf0   :  { %1950 = vmatprep.subr.bf16.mxu0 %v2173_v7 }
  0xf2   :  { %1990 = vmatpush2.bf16.msra.mxu1 %v2308_v6  ;;  %v2022_v6 = vunpack.c.0.s8 %v2021_v37 }
  0xf3   :  { %1991 = vmatprep.subr.bf16.mxu1 %v2301_v8  ;;  %1951 = vmatpush2.bf16.msra.mxu0 %v2172_v12 }
  0xf4   :  { %1952 = vmatprep.subr.bf16.mxu0 %v2165_v14 }
  0xf6   :  { %1992 = vmatpush2.bf16.msra.mxu1 %v2300_v13  ;;  %v2025_v13 = vsub.s32 %v2022_v6, %v2448_v44 }
  0xf7   :  { %1993 = vmatprep.subr.bf16.mxu1 %v2293_v15  ;;  %1953 = vmatpush2.bf16.msra.mxu0 %v2164_v20 }
  0xf8   :  { %1954 = vmatprep.subr.bf16.mxu0 %v2157_v22  ;;  %v348_v22 = vrot.slane %v3210_v43, %v2555_v58  ;;  %v356_v58 = vrot.slane %v3210_v43, %v2466_v54 }
  0xfa   :  { %1994 = vmatpush2.bf16.msra.mxu1 %v2292_v21  ;;  %v351_v21 = vsub.s32 5, %v2448_v44 }
  0xfb   :  { %1995 = vmatprep.subr.bf16.mxu1 %v2285_v63  ;;  %1955 = vmatpush2.bf16.msra.mxu0 %v2156_v27 }
  0xfc   :  { %1956 = vmatprep.subr.bf16.mxu0 %v2149_v29  ;;  %v352_v63 = vrot.slane %v3210_v43, %v351_v21 }
  0xfe   :  { %1996 = vmatpush2.bf16.msra.mxu1 %v2284_v28 }
  0xff   :  { %1997 = vmatprep.subr.bf16.mxu1 %v2277_v30  ;;  %1957 = vmatpush2.bf16.msra.mxu0 %v2148_v35 }
 0x100   :  { %1958 = vmatprep.subr.bf16.mxu0 %v2141_v39 }
 0x102   :  { %1998 = vmatpush2.bf16.msra.mxu1 %v2276_v38  ;;  %v359_v38 = vsub.s32 7, %v2448_v44 }
 0x103   :  { %1999 = vmatprep.subr.bf16.mxu1 %v2269_v40  ;;  %1959 = vmatpush2.bf16.msra.mxu0 %v2140_v41 }
 0x104   :  { %v360_v39 = vrot.slane %v3210_v43, %v359_v38 }
 0x106   :  { %2000 = vmatpush2.bf16.msra.mxu1 %v2268_v42  ;;  %v1716_v48 = vpop.f32.mrf.mxu0  ;;  %1961 = vmatmul.mubr.bf16.vlgmr.msra.gmra.mxu0 %v2633_v61  ;;  %v340_v61 = vrot.slane %v3210_v43, %v2463_v53 }
 0x107   :  { %v1717_v49 = vadd.f32 %v1716_v48, %v332_v46 }
 0x108   :  { %v1718_v51 = vpop.f32.mrf.mxu0 }
 0x109   :  { %v1757_v50 = vpop.f32.mrf.mxu1  ;;  %2002 = vmatmul.mubr.bf16.vlgmr.msra.gmra.mxu1 %v2641_v2  ;;  %v1719_v56 = vadd.f32 %v1718_v51, %v336_v47 }
 0x10a   :  { %v1758_v52 = vadd.f32 %v1757_v50, %v1717_v49  ;;  %v1720_v59 = vpop.f32.mrf.mxu0 }
 0x10b   :  { %v1759_v57 = vpop.f32.mrf.mxu1 }
 0x10c   :  { %v1760_v60 = vadd.f32 %v1759_v57, %v1719_v56  ;;  %v1721_v1 = vpop.f32.mrf.mxu0 }
 0x10d   :  { %v1761_v62 = vpop.f32.mrf.mxu1 }
 0x10e   :  { %v2018_v3 = vcombine.low %v1758_v52, %v1760_v60 }
 0x10f   :  { %v1762_v55 = vpop.f32.mrf.mxu1 }
 0x110   :  { %v2026_v19 = vrot.slane %v2018_v3, %v2025_v13 }
 0x146   :  { %v1798_v2 = vpop.f32.mrf.mxu0 }
 0x147   :  { %v1799_v7 = vadd.f32 %v1798_v2, %v340_v61 }
 0x148   :  { %v1800_v9 = vpop.f32.mrf.mxu0 }
 0x149   :  { %v1839_v8 = vpop.f32.mrf.mxu1  ;;  %v1801_v11 = vadd.f32 %v1800_v9, %v344_v5 }
 0x14a   :  { %v1840_v10 = vadd.f32 %v1839_v8, %v1799_v7  ;;  %v1802_v12 = vpop.f32.mrf.mxu0 }
 0x14b   :  { %v1841_v0 = vpop.f32.mrf.mxu1 }
 0x14c   :  { %v1842_v14 = vadd.f32 %v1841_v0, %v1801_v11  ;;  %v1803_v16 = vpop.f32.mrf.mxu0 }
 0x14d   :  { %v1843_v15 = vpop.f32.mrf.mxu1 }
 0x14e   :  { %v2019_v17 = vcombine.low %v1840_v10, %v1842_v14 }
 0x14f   :  { %v1844_v18 = vpop.f32.mrf.mxu1 }
 0x150   :  { %v2033_v53 = vrot.slane %v2019_v17, %v2025_v13 }
 0x152   :  { %v2034_v20 = vcombine.low %v2026_v19, %v2033_v53 }
 0x154   :  { %2054 = vst [vmem:[#allocation2] sm:$0xff] %v2034_v20 }
 0x186   :  { %v1880_v23 = vpop.f32.mrf.mxu0 }
 0x187   :  { %v1881_v24 = vadd.f32 %v1880_v23, %v348_v22 }
 0x188   :  { %v1882_v26 = vpop.f32.mrf.mxu0 }
 0x189   :  { %v1921_v25 = vpop.f32.mrf.mxu1  ;;  %v1883_v28 = vadd.f32 %v1882_v26, %v352_v63 }
 0x18a   :  { %v1922_v27 = vadd.f32 %v1921_v25, %v1881_v24  ;;  %v1884_v30 = vpop.f32.mrf.mxu0 }
 0x18b   :  { %v1923_v29 = vpop.f32.mrf.mxu1 }
 0x18c   :  { %v1924_v31 = vadd.f32 %v1923_v29, %v1883_v28  ;;  %v1885_v33 = vpop.f32.mrf.mxu0 }
 0x18d   :  { %v1925_v32 = vpop.f32.mrf.mxu1 }
 0x18e   :  { %v2035_v34 = vcombine.low %v1922_v27, %v1924_v31 }
 0x18f   :  { %v1926_v35 = vpop.f32.mrf.mxu1 }
 0x190   :  { %v2043_v44 = vrot.slane %v2035_v34, %v2025_v13 }
 0x1c6   :  { %v1962_v40 = vpop.f32.mrf.mxu0 }
 0x1c7   :  { %v1963_v41 = vadd.f32 %v1962_v40, %v356_v58 }
 0x1c8   :  { %v1964_v45 = vpop.f32.mrf.mxu0 }
 0x1c9   :  { %v2003_v42 = vpop.f32.mrf.mxu1  ;;  %v1965_v46 = vadd.f32 %v1964_v45, %v360_v39 }
 0x1ca   :  { %v1966_v48 = vpop.f32.mrf.mxu0  ;;  %v2004_v49 = vadd.f32 %v2003_v42, %v1963_v41 }
 0x1cb   :  { %v2005_v47 = vpop.f32.mrf.mxu1 }
 0x1cc   :  { %v2006_v50 = vadd.f32 %v2005_v47, %v1965_v46  ;;  %v1967_v52 = vpop.f32.mrf.mxu0 }
 0x1cd   :  { %v2007_v51 = vpop.f32.mrf.mxu1 }
 0x1ce   :  { %v2036_v56 = vcombine.low %v2004_v49, %v2006_v50 }
 0x1cf   :  { %v2008_v57 = vpop.f32.mrf.mxu1 }
 0x1d0   :  { %v2050_v59 = vrot.slane %v2036_v56, %v2025_v13 }
 0x1d2   :  { %v2051_v54 = vcombine.low %v2043_v44, %v2050_v59 }
 0x1d4   :  { %2055 = vst [vmem:[#allocation2 + $0x8] sm:$0xff] %v2051_v54 }
 0x1d5   :  { %2343 = shalt.err (!%p2340_p4)
}
 0x1d6   :  { %2065 = dma.vmem_to_hbm [thread:$0]  %s2063_s2, 256, %s3237_s3, [#allocation3]  }
 0x1d7   :  { %2352 = dma.done.wait [#allocation3], 256  }
 0x1d8   :  { %2353 = vsyncadd [#allocation3], 4294967040 }
 0x1d9   :  { %2069 = vsyncpa [#allocation3], 1 }

</bundles_post_ra>
